<compile_context>
chip_gen: v6e
topology: v6e:2x2x1
jax: 0.10.0
libtpu: 0.0.40
codegen_flags: <defaults>
</compile_context>

<pallas_src>
import jax
import jax.numpy as jnp
from jax.experimental import pallas as pl
from jax.experimental.pallas import tpu as pltpu

BACKBONE_FEATURE_DIM = 2048   # backbone_feature_dim in the PyTorch module
CORR_EMBED_DIM = 32           # synthetic embedding dim for the correlation encoder
C_TILE = 128                  # class-block (lane) tile of the output Linear


# --------------------------------------------------------------------------- #
# Fused kernel (grid over class blocks):
#   step 0 : backbone matmul (all frames), feature relayout, corr argmax
#   every  : action-half matmul (K = T*2048) + corr-half VPU FMAs + bias
# --------------------------------------------------------------------------- #
def _fused_kernel(frames_ref,      # (T*N, K_act)      bf16  segment-major frames
                  w_act_ref,       # (K_act, F)        bf16  synthetic backbone proj
                  w_out_act_ref,   # (T*F, C_TILE)     bf16  action slice of output W (class block)
                  imgs_g_ref,      # (C, N, P, 1)      f32   pooled src frames @ Gram
                  tgt_ref,         # (N, C, S_pad)     f32   pooled target, lane-padded
                  w_out_corr_ref,  # (P, C_TILE)       f32   corr slice of output W (class block)
                  b_ref,           # (1, C_TILE)       f32   output bias (class block)
                  o_ref,           # (N, C_TILE)       f32   logits (class block)
                  feat_cat_ref,    # scratch (N, T*F)  bf16  concatenated action features
                  corr_feat_ref):  # scratch (N, P)    f32   argmax indices as floats
    j = pl.program_id(0)
    N, TF = feat_cat_ref.shape
    TN, _ = frames_ref.shape
    T = TN // N
    F = TF // T

    # ---- step 0: everything that does not depend on the class block ---------
    @pl.when(j == 0)
    def _prologue():
        # Backbone: ONE fused MXU matmul over all N*T frames (was T small dots).
        feat = jnp.dot(frames_ref[...], w_act_ref[...],
                       preferred_element_type=jnp.float32)        # (T*N, F) f32

        # Relayout (segment-major rows) -> (N, T*F), i.e. torch .view(N, -1)
        # ordering: sample-major, per-sample segment blocks in order.
        for t in range(T):                                         # static, T = 3
            feat_cat_ref[:, t * F:(t + 1) * F] = (
                feat[t * N:(t + 1) * N, :].astype(jnp.bfloat16))

        # Corr path: affinity as C fused multiply-adds on the VPU over a
        # lane-padded target spatial axis, then a first-occurrence argmax.
        Cc = imgs_g_ref.shape[0]
        P = imgs_g_ref.shape[2]
        S_pad = tgt_ref.shape[-1]
        S = P // (T - 1)
        imgs_g = imgs_g_ref[...]                                   # (C, N, P, 1)
        tgt = tgt_ref[...]                                         # (N, C, S_pad)
        aff = jnp.zeros((N, P, S_pad), jnp.float32)
        for c in range(Cc):                                        # C = 3 FMAs
            aff = aff + imgs_g[c] * tgt[:, c][:, None, :]

        q_iota = jax.lax.broadcasted_iota(jnp.int32, aff.shape, 2)
        aff = jnp.where(q_iota < S, aff, -jnp.inf)                 # mask lane padding
        mx = jnp.max(aff, axis=-1, keepdims=True)                  # one lane reduction
        # First-occurrence argmax (matches torch.argmax).  NaN affinities would
        # yield an out-of-range index — same failure mode as the reference.
        idx = jnp.min(jnp.where(aff == mx, q_iota, S_pad), axis=-1)    # (N, P) i32
        corr_feat_ref[...] = idx.astype(jnp.float32)

    # ---- every class block: action half of the Linear (K = T*F, one MXU op) --
    acc = jnp.dot(feat_cat_ref[...], w_out_act_ref[...],
                  preferred_element_type=jnp.float32)              # (N, C_TILE)

    # ---- corr half of the Linear (K = P = 8): VPU FMAs, no MXU push/pop ------
    # TODO(synk): at realistic P (large crop sizes) switch this back to the MXU.
    P = corr_feat_ref.shape[1]
    corr_feat = corr_feat_ref[...]                                 # (N, P)
    w_corr = w_out_corr_ref[...]                                   # (P, C_TILE)
    for p in range(P):                                             # static, P = 8
        acc = acc + corr_feat[:, p:p + 1] * w_corr[p:p + 1, :]

    o_ref[...] = acc + b_ref[...]


# --------------------------------------------------------------------------- #
# Forward pass (mirrors action_corr_model.forward)
# --------------------------------------------------------------------------- #
def action_corr_forward(x, w_act, w_corr_proj, w_out, b_out):
    N, T, C, H, W = x.shape
    F = BACKBONE_FEATURE_DIM
    Tm1 = T - 1
    Hs, Ws = H // 8, W // 8
    S = Hs * Ws
    P = Tm1 * S
    S_pad = pl.cdiv(S, 128) * 128                  # lane-pad target spatial axis
    K_act = C * H * W
    num_classes = w_out.shape[1]
    C_pad = pl.cdiv(num_classes, C_TILE) * C_TILE  # lane-pad classes for dense stores

    # ---- action path inputs: segment-major, channel-flattened, bf16 --------
    # TODO(synk): full ResNet50 TSM backbone not reproduced; replaced by a single
    # deterministic projection to the 2048-d backbone feature dim per frame.
    frames = x.transpose(1, 0, 2, 3, 4).reshape(T * N, K_act).astype(jnp.bfloat16)
    w_act_b = w_act.astype(jnp.bfloat16)

    # ---- split the output Linear around the K = T*2048 | (T-1)*S boundary ---
    w_out_act = jnp.pad(
        w_out[:T * F], ((0, 0), (0, C_pad - num_classes))).astype(jnp.bfloat16)
    w_out_corr = jnp.pad(w_out[T * F:], ((0, 0), (0, C_pad - num_classes)))
    bias = jnp.pad(b_out, (0, C_pad - num_classes)).reshape(1, C_pad)

    # ---- corr path inputs ----------------------------------------------------
    # TODO(synk): CycleTime encoder (checkpoint-loaded) not reproduced; frames are
    # 8x8 average-pooled and passed through a synthetic channel encoder (folded
    # into the Gram matrix G = W W^T); the affinity / view / argmax semantics of
    # corr_model(imgs, target) are kept.
    pooled = x.reshape(N, T, C, Hs, 8, Ws, 8).mean(axis=(4, 6)).reshape(N, T, C, S)
    G = w_corr_proj @ w_corr_proj.T                # (C, C) Gram of the encoder
    imgs = pooled[:, :Tm1].transpose(0, 1, 3, 2)   # (N, Tm1, S, C)
    imgs_g = jnp.einsum('ntpc,cd->ntpd', imgs, G)  # fold encoder into source side
    imgs_g = imgs_g.transpose(3, 0, 1, 2).reshape(C, N, P)[..., None]   # (C,N,P,1)
    tgt = jnp.pad(pooled[:, T - 1], ((0, 0), (0, 0), (0, S_pad - S)))   # (N,C,S_pad)

    grid = (C_pad // C_TILE,)
    out = pl.pallas_call(
        _fused_kernel,
        out_shape=jax.ShapeDtypeStruct((N, C_pad), jnp.float32),
        grid_spec=pltpu.PrefetchScalarGridSpec(
            num_scalar_prefetch=0,
            grid=grid,
            in_specs=[
                pl.BlockSpec((T * N, K_act), lambda j: (0, 0)),        # frames (once)
                pl.BlockSpec((K_act, F), lambda j: (0, 0)),            # w_act (once)
                pl.BlockSpec((T * F, C_TILE), lambda j: (0, j)),       # w_out_act (streamed)
                pl.BlockSpec((C, N, P, 1), lambda j: (0, 0, 0, 0)),    # imgs_g (once)
                pl.BlockSpec((N, C, S_pad), lambda j: (0, 0, 0)),      # tgt (once)
                pl.BlockSpec((P, C_TILE), lambda j: (0, j)),           # w_out_corr
                pl.BlockSpec((1, C_TILE), lambda j: (0, j)),           # bias
            ],
            out_specs=pl.BlockSpec((N, C_TILE), lambda j: (0, j)),
            scratch_shapes=[
                pltpu.VMEM((N, T * F), jnp.bfloat16),   # concatenated action features
                pltpu.VMEM((N, P), jnp.float32),        # corr argmax indices (as f32)
            ],
        ),
        compiler_params=pltpu.CompilerParams(
            # Class axis is "arbitrary": later blocks reuse step-0 scratch.
            dimension_semantics=("arbitrary",),
            # ~9 MiB resident at demo size; keep well under v7x's 64 MiB VMEM.
            vmem_limit_bytes=32 * 1024 * 1024,
        ),
    )(frames, w_act_b, w_out_act, imgs_g, tgt, w_out_corr, bias)

    return out[:, :num_classes]


# --------------------------------------------------------------------------- #
if __name__ == "__main__":
    # Module hyper-parameters (consistent with the PyTorch script):
    num_classes = 174
    num_segments = 3
    crop_size = 16

    N, T, C, H, W = 2, num_segments, 3, crop_size, crop_size

    key = jax.random.PRNGKey(0)
    k_x, k_act, k_corr, k_w, k_b = jax.random.split(key, 5)

    x = jax.random.normal(k_x, (N, T, C, H, W), jnp.float32)

    # Deterministic synthetic parameters.
    w_act = jax.random.normal(k_act, (C * H * W, BACKBONE_FEATURE_DIM),
                              jnp.float32) * 0.02
    w_corr_proj = jax.random.normal(k_corr, (C, CORR_EMBED_DIM), jnp.float32) * 0.1

    action_feature_dim = BACKBONE_FEATURE_DIM * num_segments
    corr_feature_dim = crop_size ** 2 // 8 // 8 * (num_segments - 1)
    feat_dim = action_feature_dim + corr_feature_dim                     # 6152
    w_out = jax.random.normal(k_w, (feat_dim, num_classes), jnp.float32) * 0.01
    b_out = jax.random.normal(k_b, (num_classes,), jnp.float32) * 0.01

    logits = action_corr_forward(x, w_act, w_corr_proj, w_out, b_out)
    logits = jax.block_until_ready(logits)

    assert logits.shape == (N, num_classes), logits.shape
    assert logits.dtype == jnp.float32
    print("KERNEL_OK")
</pallas_src>

<mosaic_0001>
module attributes {stable_mosaic.version = 11 : i64} {
  func.func @_fused_kernel(%arg0: i32, %arg1: memref<6x768xbf16, #tpu.memory_space<vmem>>, %arg2: memref<768x2048xbf16, #tpu.memory_space<vmem>>, %arg3: memref<6144x128xbf16, #tpu.memory_space<vmem>>, %arg4: memref<3x2x8x1xf32, #tpu.memory_space<vmem>>, %arg5: memref<2x3x128xf32, #tpu.memory_space<vmem>>, %arg6: memref<8x128xf32, #tpu.memory_space<vmem>>, %arg7: memref<1x128xf32, #tpu.memory_space<vmem>>, %arg8: memref<2x128xf32, #tpu.memory_space<vmem>>, %arg9: memref<2x6144xbf16, #tpu.memory_space<vmem>>, %arg10: memref<2x8xf32, #tpu.memory_space<vmem>>) attributes {dimension_semantics = [#tpu.dimension_semantics<arbitrary>], iteration_bounds = array<i64: 2>, scalar_prefetch = 0 : i64, scratch_operands = 2 : i64, tpu.core_type = #tpu.core_type<tc>, window_params = [{pipeline_mode = #tpu.pipeline_mode<synchronous>, transform_indices = @transform_0, window_bounds = array<i64: 6, 768>}, {pipeline_mode = #tpu.pipeline_mode<synchronous>, transform_indices = @transform_1, window_bounds = array<i64: 768, 2048>}, {transform_indices = @transform_2, window_bounds = array<i64: 6144, 128>}, {pipeline_mode = #tpu.pipeline_mode<synchronous>, transform_indices = @transform_3, window_bounds = array<i64: 3, 2, 8, 1>}, {pipeline_mode = #tpu.pipeline_mode<synchronous>, transform_indices = @transform_4, window_bounds = array<i64: 2, 3, 128>}, {transform_indices = @transform_5, window_bounds = array<i64: 8, 128>}, {transform_indices = @transform_6, window_bounds = array<i64: 1, 128>}, {transform_indices = @transform_7, window_bounds = array<i64: 2, 128>}]} {
    %c0_i32 = arith.constant 0 : i32
    %0 = arith.cmpi eq, %arg0, %c0_i32 : i32
    %1 = arith.extui %0 : i1 to i32
    %c0_i32_0 = arith.constant 0 : i32
    %2 = arith.cmpi ne, %1, %c0_i32_0 : i32
    scf.if %2 {
      %c0_12 = arith.constant 0 : index
      %c0_13 = arith.constant 0 : index
      %60 = vector.load %arg1[%c0_12, %c0_13] : memref<6x768xbf16, #tpu.memory_space<vmem>>, vector<6x768xbf16>
      %c0_14 = arith.constant 0 : index
      %c0_15 = arith.constant 0 : index
      %61 = vector.load %arg2[%c0_14, %c0_15] : memref<768x2048xbf16, #tpu.memory_space<vmem>>, vector<768x2048xbf16>
      %cst_16 = arith.constant dense<0.000000e+00> : vector<6x2048xf32>
      %62 = tpu.matmul %60, %61, %cst_16 {dimension_numbers = #tpu.dot_dimension_numbers<[1], [0], [0], [1], [0, 0, 1, 1], [], []>} : vector<6x768xbf16>, vector<768x2048xbf16>, vector<6x2048xf32> -> vector<6x2048xf32>
      %63 = vector.extract_strided_slice %62 {offsets = [0, 0], sizes = [2, 2048], strides = [1, 1]} : vector<6x2048xf32> to vector<2x2048xf32>
      %64 = arith.truncf %63 : vector<2x2048xf32> to vector<2x2048xbf16>
      %c0_17 = arith.constant 0 : index
      %c0_18 = arith.constant 0 : index
      %65 = vector.load %arg9[%c0_17, %c0_18] : memref<2x6144xbf16, #tpu.memory_space<vmem>>, vector<2x2048xbf16>
      tpu.vector_store %arg9[%c0_17, %c0_18], %64 {strides = array<i32>} : memref<2x6144xbf16, #tpu.memory_space<vmem>>, vector<2x2048xbf16>,
      %66 = vector.extract_strided_slice %62 {offsets = [2, 0], sizes = [2, 2048], strides = [1, 1]} : vector<6x2048xf32> to vector<2x2048xf32>
      %67 = arith.truncf %66 : vector<2x2048xf32> to vector<2x2048xbf16>
      %c0_19 = arith.constant 0 : index
      %c2048 = arith.constant 2048 : index
      %68 = vector.load %arg9[%c0_19, %c2048] : memref<2x6144xbf16, #tpu.memory_space<vmem>>, vector<2x2048xbf16>
      tpu.vector_store %arg9[%c0_19, %c2048], %67 {strides = array<i32>} : memref<2x6144xbf16, #tpu.memory_space<vmem>>, vector<2x2048xbf16>,
      %69 = vector.extract_strided_slice %62 {offsets = [4, 0], sizes = [2, 2048], strides = [1, 1]} : vector<6x2048xf32> to vector<2x2048xf32>
      %70 = arith.truncf %69 : vector<2x2048xf32> to vector<2x2048xbf16>
      %c0_20 = arith.constant 0 : index
      %c4096 = arith.constant 4096 : index
      %71 = vector.load %arg9[%c0_20, %c4096] : memref<2x6144xbf16, #tpu.memory_space<vmem>>, vector<2x2048xbf16>
      tpu.vector_store %arg9[%c0_20, %c4096], %70 {strides = array<i32>} : memref<2x6144xbf16, #tpu.memory_space<vmem>>, vector<2x2048xbf16>,
      %c0_21 = arith.constant 0 : index
      %c0_22 = arith.constant 0 : index
      %c0_23 = arith.constant 0 : index
      %c0_24 = arith.constant 0 : index
      %72 = vector.load %arg4[%c0_21, %c0_22, %c0_23, %c0_24] : memref<3x2x8x1xf32, #tpu.memory_space<vmem>>, vector<3x2x8x1xf32>
      %c0_25 = arith.constant 0 : index
      %c0_26 = arith.constant 0 : index
      %c0_27 = arith.constant 0 : index
      %73 = vector.load %arg5[%c0_25, %c0_26, %c0_27] : memref<2x3x128xf32, #tpu.memory_space<vmem>>, vector<2x3x128xf32>
      %cst_28 = arith.constant 0.000000e+00 : f32
      %74 = vector.broadcast %cst_28 : f32 to vector<2x8x128xf32>
      %75 = vector.extract_strided_slice %72 {offsets = [0, 0, 0, 0], sizes = [1, 2, 8, 1], strides = [1, 1, 1, 1]} : vector<3x2x8x1xf32> to vector<1x2x8x1xf32>
      %76 = vector.shape_cast %75 : vector<1x2x8x1xf32> to vector<2x8x1xf32>
      %77 = vector.extract_strided_slice %73 {offsets = [0, 0, 0], sizes = [2, 1, 128], strides = [1, 1, 1]} : vector<2x3x128xf32> to vector<2x1x128xf32>
      %78 = vector.shape_cast %77 : vector<2x1x128xf32> to vector<2x128xf32>
      %79 = vector.shape_cast %78 : vector<2x128xf32> to vector<2x1x128xf32>
      %80 = vector.broadcast %76 : vector<2x8x1xf32> to vector<2x8x128xf32>
      %81 = vector.broadcast %79 : vector<2x1x128xf32> to vector<2x8x128xf32>
      %82 = arith.mulf %80, %81 : vector<2x8x128xf32>
      %83 = arith.addf %74, %82 : vector<2x8x128xf32>
      %84 = vector.extract_strided_slice %72 {offsets = [1, 0, 0, 0], sizes = [1, 2, 8, 1], strides = [1, 1, 1, 1]} : vector<3x2x8x1xf32> to vector<1x2x8x1xf32>
      %85 = vector.shape_cast %84 : vector<1x2x8x1xf32> to vector<2x8x1xf32>
      %86 = vector.extract_strided_slice %73 {offsets = [0, 1, 0], sizes = [2, 1, 128], strides = [1, 1, 1]} : vector<2x3x128xf32> to vector<2x1x128xf32>
      %87 = vector.shape_cast %86 : vector<2x1x128xf32> to vector<2x128xf32>
      %88 = vector.shape_cast %87 : vector<2x128xf32> to vector<2x1x128xf32>
      %89 = vector.broadcast %85 : vector<2x8x1xf32> to vector<2x8x128xf32>
      %90 = vector.broadcast %88 : vector<2x1x128xf32> to vector<2x8x128xf32>
      %91 = arith.mulf %89, %90 : vector<2x8x128xf32>
      %92 = arith.addf %83, %91 : vector<2x8x128xf32>
      %93 = vector.extract_strided_slice %72 {offsets = [2, 0, 0, 0], sizes = [1, 2, 8, 1], strides = [1, 1, 1, 1]} : vector<3x2x8x1xf32> to vector<1x2x8x1xf32>
      %94 = vector.shape_cast %93 : vector<1x2x8x1xf32> to vector<2x8x1xf32>
      %95 = vector.extract_strided_slice %73 {offsets = [0, 2, 0], sizes = [2, 1, 128], strides = [1, 1, 1]} : vector<2x3x128xf32> to vector<2x1x128xf32>
      %96 = vector.shape_cast %95 : vector<2x1x128xf32> to vector<2x128xf32>
      %97 = vector.shape_cast %96 : vector<2x128xf32> to vector<2x1x128xf32>
      %98 = vector.broadcast %94 : vector<2x8x1xf32> to vector<2x8x128xf32>
      %99 = vector.broadcast %97 : vector<2x1x128xf32> to vector<2x8x128xf32>
      %100 = arith.mulf %98, %99 : vector<2x8x128xf32>
      %101 = arith.addf %92, %100 : vector<2x8x128xf32>
      %102 = tpu.iota {dimensions = array<i32: 2>} : vector<2x8x128xi32>
      %c4_i32 = arith.constant 4 : i32
      %103 = vector.broadcast %c4_i32 : i32 to vector<2x8x128xi32>
      %104 = arith.cmpi slt, %102, %103 : vector<2x8x128xi32>
      %cst_29 = arith.constant 0xFF800000 : f32
      %105 = vector.broadcast %cst_29 : f32 to vector<2x8x128xf32>
      %106 = arith.select %104, %101, %105 : vector<2x8x128xi1>, vector<2x8x128xf32>
      %cst_30 = arith.constant dense<0xFF800000> : vector<2x8xf32>
      %107 = vector.multi_reduction <maximumf>, %106, %cst_30 [2] : vector<2x8x128xf32> to vector<2x8xf32>
      %108 = vector.shape_cast %107 : vector<2x8xf32> to vector<2x8x1xf32>
      %109 = vector.broadcast %108 : vector<2x8x1xf32> to vector<2x8x128xf32>
      %110 = arith.cmpf oeq, %106, %109 : vector<2x8x128xf32>
      %c128_i32 = arith.constant 128 : i32
      %111 = vector.broadcast %c128_i32 : i32 to vector<2x8x128xi32>
      %112 = arith.select %110, %102, %111 : vector<2x8x128xi1>, vector<2x8x128xi32>
      %cst_31 = arith.constant dense<2147483647> : vector<2x8xi32>
      %113 = vector.multi_reduction <minsi>, %112, %cst_31 [2] : vector<2x8x128xi32> to vector<2x8xi32>
      %114 = arith.sitofp %113 : vector<2x8xi32> to vector<2x8xf32>
      %c0_32 = arith.constant 0 : index
      %c0_33 = arith.constant 0 : index
      %115 = vector.load %arg10[%c0_32, %c0_33] : memref<2x8xf32, #tpu.memory_space<vmem>>, vector<2x8xf32>
      tpu.vector_store %arg10[%c0_32, %c0_33], %114 {strides = array<i32>} : memref<2x8xf32, #tpu.memory_space<vmem>>, vector<2x8xf32>,
    } else {
    }
    %c0 = arith.constant 0 : index
    %c0_1 = arith.constant 0 : index
    %3 = vector.load %arg9[%c0, %c0_1] : memref<2x6144xbf16, #tpu.memory_space<vmem>>, vector<2x6144xbf16>
    %c0_2 = arith.constant 0 : index
    %c0_3 = arith.constant 0 : index
    %4 = vector.load %arg3[%c0_2, %c0_3] : memref<6144x128xbf16, #tpu.memory_space<vmem>>, vector<6144x128xbf16>
    %cst = arith.constant dense<0.000000e+00> : vector<2x128xf32>
    %5 = tpu.matmul %3, %4, %cst {dimension_numbers = #tpu.dot_dimension_numbers<[1], [0], [0], [1], [0, 0, 1, 1], [], []>} : vector<2x6144xbf16>, vector<6144x128xbf16>, vector<2x128xf32> -> vector<2x128xf32>
    %c0_4 = arith.constant 0 : index
    %c0_5 = arith.constant 0 : index
    %6 = vector.load %arg10[%c0_4, %c0_5] : memref<2x8xf32, #tpu.memory_space<vmem>>, vector<2x8xf32>
    %c0_6 = arith.constant 0 : index
    %c0_7 = arith.constant 0 : index
    %7 = vector.load %arg6[%c0_6, %c0_7] : memref<8x128xf32, #tpu.memory_space<vmem>>, vector<8x128xf32>
    %8 = vector.extract_strided_slice %6 {offsets = [0, 0], sizes = [2, 1], strides = [1, 1]} : vector<2x8xf32> to vector<2x1xf32>
    %9 = vector.extract_strided_slice %7 {offsets = [0, 0], sizes = [1, 128], strides = [1, 1]} : vector<8x128xf32> to vector<1x128xf32>
    %10 = vector.broadcast %8 : vector<2x1xf32> to vector<2x128xf32>
    %11 = vector.broadcast %9 : vector<1x128xf32> to vector<2x128xf32>
    %12 = arith.mulf %10, %11 : vector<2x128xf32>
    %13 = arith.addf %5, %12 : vector<2x128xf32>
    %14 = vector.extract_strided_slice %6 {offsets = [0, 1], sizes = [2, 1], strides = [1, 1]} : vector<2x8xf32> to vector<2x1xf32>
    %15 = vector.extract_strided_slice %7 {offsets = [1, 0], sizes = [1, 128], strides = [1, 1]} : vector<8x128xf32> to vector<1x128xf32>
    %16 = vector.broadcast %14 : vector<2x1xf32> to vector<2x128xf32>
    %17 = vector.broadcast %15 : vector<1x128xf32> to vector<2x128xf32>
    %18 = arith.mulf %16, %17 : vector<2x128xf32>
    %19 = arith.addf %13, %18 : vector<2x128xf32>
    %20 = vector.extract_strided_slice %6 {offsets = [0, 2], sizes = [2, 1], strides = [1, 1]} : vector<2x8xf32> to vector<2x1xf32>
    %21 = vector.extract_strided_slice %7 {offsets = [2, 0], sizes = [1, 128], strides = [1, 1]} : vector<8x128xf32> to vector<1x128xf32>
    %22 = vector.broadcast %20 : vector<2x1xf32> to vector<2x128xf32>
    %23 = vector.broadcast %21 : vector<1x128xf32> to vector<2x128xf32>
    %24 = arith.mulf %22, %23 : vector<2x128xf32>
    %25 = arith.addf %19, %24 : vector<2x128xf32>
    %26 = vector.extract_strided_slice %6 {offsets = [0, 3], sizes = [2, 1], strides = [1, 1]} : vector<2x8xf32> to vector<2x1xf32>
    %27 = vector.extract_strided_slice %7 {offsets = [3, 0], sizes = [1, 128], strides = [1, 1]} : vector<8x128xf32> to vector<1x128xf32>
    %28 = vector.broadcast %26 : vector<2x1xf32> to vector<2x128xf32>
    %29 = vector.broadcast %27 : vector<1x128xf32> to vector<2x128xf32>
    %30 = arith.mulf %28, %29 : vector<2x128xf32>
    %31 = arith.addf %25, %30 : vector<2x128xf32>
    %32 = vector.extract_strided_slice %6 {offsets = [0, 4], sizes = [2, 1], strides = [1, 1]} : vector<2x8xf32> to vector<2x1xf32>
    %33 = vector.extract_strided_slice %7 {offsets = [4, 0], sizes = [1, 128], strides = [1, 1]} : vector<8x128xf32> to vector<1x128xf32>
    %34 = vector.broadcast %32 : vector<2x1xf32> to vector<2x128xf32>
    %35 = vector.broadcast %33 : vector<1x128xf32> to vector<2x128xf32>
    %36 = arith.mulf %34, %35 : vector<2x128xf32>
    %37 = arith.addf %31, %36 : vector<2x128xf32>
    %38 = vector.extract_strided_slice %6 {offsets = [0, 5], sizes = [2, 1], strides = [1, 1]} : vector<2x8xf32> to vector<2x1xf32>
    %39 = vector.extract_strided_slice %7 {offsets = [5, 0], sizes = [1, 128], strides = [1, 1]} : vector<8x128xf32> to vector<1x128xf32>
    %40 = vector.broadcast %38 : vector<2x1xf32> to vector<2x128xf32>
    %41 = vector.broadcast %39 : vector<1x128xf32> to vector<2x128xf32>
    %42 = arith.mulf %40, %41 : vector<2x128xf32>
    %43 = arith.addf %37, %42 : vector<2x128xf32>
    %44 = vector.extract_strided_slice %6 {offsets = [0, 6], sizes = [2, 1], strides = [1, 1]} : vector<2x8xf32> to vector<2x1xf32>
    %45 = vector.extract_strided_slice %7 {offsets = [6, 0], sizes = [1, 128], strides = [1, 1]} : vector<8x128xf32> to vector<1x128xf32>
    %46 = vector.broadcast %44 : vector<2x1xf32> to vector<2x128xf32>
    %47 = vector.broadcast %45 : vector<1x128xf32> to vector<2x128xf32>
    %48 = arith.mulf %46, %47 : vector<2x128xf32>
    %49 = arith.addf %43, %48 : vector<2x128xf32>
    %50 = vector.extract_strided_slice %6 {offsets = [0, 7], sizes = [2, 1], strides = [1, 1]} : vector<2x8xf32> to vector<2x1xf32>
    %51 = vector.extract_strided_slice %7 {offsets = [7, 0], sizes = [1, 128], strides = [1, 1]} : vector<8x128xf32> to vector<1x128xf32>
    %52 = vector.broadcast %50 : vector<2x1xf32> to vector<2x128xf32>
    %53 = vector.broadcast %51 : vector<1x128xf32> to vector<2x128xf32>
    %54 = arith.mulf %52, %53 : vector<2x128xf32>
    %55 = arith.addf %49, %54 : vector<2x128xf32>
    %c0_8 = arith.constant 0 : index
    %c0_9 = arith.constant 0 : index
    %56 = vector.load %arg7[%c0_8, %c0_9] : memref<1x128xf32, #tpu.memory_space<vmem>>, vector<1x128xf32>
    %57 = vector.broadcast %56 : vector<1x128xf32> to vector<2x128xf32>
    %58 = arith.addf %55, %57 : vector<2x128xf32>
    %c0_10 = arith.constant 0 : index
    %c0_11 = arith.constant 0 : index
    %59 = vector.load %arg8[%c0_10, %c0_11] : memref<2x128xf32, #tpu.memory_space<vmem>>, vector<2x128xf32>
    tpu.vector_store %arg8[%c0_10, %c0_11], %58 {strides = array<i32>} : memref<2x128xf32, #tpu.memory_space<vmem>>, vector<2x128xf32>,
    return
  }
  func.func @transform_0(%arg0: i32) -> (i32, i32) {
    %c0_i32 = arith.constant 0 : i32
    %c0_i32_0 = arith.constant 0 : i32
    %c0_i32_1 = arith.constant 0 : i32
    return %c0_i32, %c0_i32_0 : i32, i32
  }
  func.func @transform_1(%arg0: i32) -> (i32, i32) {
    %c0_i32 = arith.constant 0 : i32
    %c0_i32_0 = arith.constant 0 : i32
    %c0_i32_1 = arith.constant 0 : i32
    return %c0_i32, %c0_i32_0 : i32, i32
  }
  func.func @transform_2(%arg0: i32) -> (i32, i32) {
    %c0_i32 = arith.constant 0 : i32
    %c0_i32_0 = arith.constant 0 : i32
    return %c0_i32, %arg0 : i32, i32
  }
  func.func @transform_3(%arg0: i32) -> (i32, i32, i32, i32) {
    %c0_i32 = arith.constant 0 : i32
    %c0_i32_0 = arith.constant 0 : i32
    %c0_i32_1 = arith.constant 0 : i32
    %c0_i32_2 = arith.constant 0 : i32
    %c0_i32_3 = arith.constant 0 : i32
    return %c0_i32, %c0_i32_0, %c0_i32_1, %c0_i32_2 : i32, i32, i32, i32
  }
  func.func @transform_4(%arg0: i32) -> (i32, i32, i32) {
    %c0_i32 = arith.constant 0 : i32
    %c0_i32_0 = arith.constant 0 : i32
    %c0_i32_1 = arith.constant 0 : i32
    %c0_i32_2 = arith.constant 0 : i32
    return %c0_i32, %c0_i32_0, %c0_i32_1 : i32, i32, i32
  }
  func.func @transform_5(%arg0: i32) -> (i32, i32) {
    %c0_i32 = arith.constant 0 : i32
    %c0_i32_0 = arith.constant 0 : i32
    return %c0_i32, %arg0 : i32, i32
  }
  func.func @transform_6(%arg0: i32) -> (i32, i32) {
    %c0_i32 = arith.constant 0 : i32
    %c0_i32_0 = arith.constant 0 : i32
    return %c0_i32, %arg0 : i32, i32
  }
  func.func @transform_7(%arg0: i32) -> (i32, i32) {
    %c0_i32 = arith.constant 0 : i32
    %c0_i32_0 = arith.constant 0 : i32
    return %c0_i32, %arg0 : i32, i32
  }
}

</mosaic_0001>

<bundles_post_ra>
// kernel: tpu_custom_call.1
= control target key start
LH: loop header
LB: loop body
LE: loop exit
PB: predicated region body
PF: predicated region fallthrough
CT: control target
= control target key end

     0   :  { %s14406_s0 = inlined_call_operand.hbm [shape: bf16[6,768], index: 0, kind: input, shape index: {}]   ;;  %s14407_s1 = inlined_call_operand.hbm [shape: bf16[768,2048], index: 1, kind: input, shape index: {}]   ;;  %s14408_s2 = inlined_call_operand.hbm [shape: bf16[6144,256], index: 2, kind: input, shape index: {}]   ;;  %s14409_s3 = inlined_call_operand.vmem [shape: f32[3,2,8,1], index: 3, kind: input, shape index: {}]   ;;  %s14410_s4 = inlined_call_operand.vmem [shape: f32[2,3,128], index: 4, kind: input, shape index: {}]   ;;  %s14411_s5 = inlined_call_operand.hbm [shape: f32[8,256], index: 5, kind: input, shape index: {}]   ;;  %s14412_s6 = inlined_call_operand.hbm [shape: f32[1,256], index: 6, kind: input, shape index: {}]   ;;  %s14413_s7 = inlined_call_operand.hbm [shape: f32[2,256], index: 7, kind: output, shape index: {}]  }
   0x1   :  { %14430 = sst [smem:[#allocation23_spill]] %s14406_s0 }
   0x2   :  { %14431 = sst [smem:[#allocation24_spill]] %s14408_s2 }
   0x3   :  { %14432 = sst [smem:[#allocation25_spill]] %s14410_s4 }
   0x4   :  { %14433 = sst [smem:[#allocation26_spill]] %s14413_s7 }
   0x5   :  { %12 = vsyncpa [#allocation5], 0 }
   0x6   :  { %13 = vsyncpa [#allocation8], 0 }
   0x7   :  { %14 = vsyncpa [#allocation6], 0 }
   0x8   :  { %16 = vsyncpa [#allocation6 + $0x1], 0  ;;  %s13422_s24 = smov 0   ;;  %s13424_s25 = smov 0  }
   0x9   :  { %s13426_s26 = smov 0   ;;  %s13428_s27 = smov 0  }
   0xa LB: > { %14434 = sst [smem:[#allocation17_spill]] %s13347_s24  ;;  %s13443_s28 = sadd.s32 4294967295, %s13359_s27   ;;  %s13359_s27 = sphi %s13428_s27, %s14470_s27   ;;  %s13355_s26 = sphi %s13426_s26, %s14472_s26   ;;  %s13351_s25 = sphi %s13424_s25, %s14474_s25   ;;  %s13347_s24 = sphi %s13422_s24, %s14473_s24  }
   0xb   : > { %14435 = sst [smem:[#allocation18_spill]] %s13355_s26  ;;  %s10934_s29 = sadd.s32 4294967294, %s13359_s27  }
   0xc   : > { %s13447_s30 = sadd.s32 1, %s13359_s27   ;;  %s71_s8 = sadd.s32 1, %s13355_s26 }
   0xd   : > { %14436 = sst [smem:[#allocation19_spill]] %s13447_s30  ;;  %s68_s9 = ssub.s32 %s13359_s27, %s13447_s30 }
   0xe   : > { %p78_p0 = scmp.ne.s32.totalorder %s13355_s26, %s13351_s25  ;;  %p69_p1 = scmp.eq.s32.totalorder %s68_s9, 0 }
   0xf   : > { %p79_p2 = scmp.eq.s32.totalorder %s13359_s27, 0  ;;  %p84_p3 = scmp.ne.s32.totalorder %s13351_s25, %s13347_s24 }
  0x10   : > { %p14414_p4 = scmp.eq.s32.totalorder %s13443_s28, 0  ;;  %p202_p7 = scmp.eq.s32.totalorder %s13443_s28, 1 }
  0x11   : > { %s13459_s10 = scalar_select %p69_p1, %s13355_s26, %s71_s8  }
  0x12   : > { %p13461_p5 = por %p79_p2, %p78_p0  ;;  %p13467_p6 = por %p14414_p4, %p84_p3 }
  0x13   : > { %14437 = sst [smem:[#allocation20_spill]] %s13459_s10  ;;  %p208_p8 = scmp.eq.s32.totalorder %s10934_s29, 1 }
  0x14   : > { %s14439_s12 = scalar_select %p13467_p6, 1, 0 }
  0x15   : > { %p10935_p9 = scmp.ge.s32.totalorder %s13359_s27, 1  ;;  %p215_p10 = scmp.lt.s32.totalorder %s13359_s27, 3 }
  0x16   : > { %p13474_p11 = por %p202_p7, %p78_p0  ;;  %p13478_p12 = por %p208_p8, %p84_p3 }
  0x17   : > { %p13482_p13 = pnand %p10935_p9, %p215_p10  ;;  %s13361_s16 = smov [#allocation4]  }
  0x18   : > { %s14440_s13 = scalar_select %p13474_p11, 1, 0 }
  0x19   : > { %s14442_s14 = scalar_select %p13478_p12, 1, 0 }
  0x1a   : > { %14441 = sst [smem:[#allocation21_spill]] %s14440_s13  ;;  %p12666_p4 = pneg %p13482_p13 }
  0x1b   : > { %14443 = sst [smem:[#allocation22_spill]] %s14442_s14  ;;  %s228_s17 = sshll.u32 %s13361_s16, 4  ;;  %s229_s17 = int_to_ptr.vmem [resolvable:$true] %s228_s17 }
  0x1c   : > { %s14444_s15 = scalar_select %p13482_p13, 1, 0 }
  0x1d   : > { %p12689_p0 = scmp.lt.s32.totalorder %s13359_s27, 2  ;;  %p14445_p7 = scmp.eq.s32.totalorder %s13443_s28, 0 }
  0x1e   : > { %s258_s20 = sand.u32 1, %s13359_s27   ;;  %s13162_s21 = scalar_lea.vmem %s229_s17, 384 }
  0x1f   : > { %p13493_p6 = pnand %p12666_p4, %p14445_p7  ;;  %p13499_p3 = pnand %p12689_p0, %p13461_p5 }
  0x20   : > { %p13163_p9 = scmp.ne.s32.totalorder %s229_s17, %s13162_s21  ;;  %p13170_p4 = scmp.lt.s32.totalorder %s229_s17, %s229_s17 }
  0x21   : > { %s14446_s18 = scalar_select %p13493_p6, 1, 0 }
  0x22   : > { %p14417_p8 = pneg %p13493_p6  ;;  %p13171_p7 = scmp.lt.s32.totalorder %s13162_s21, %s13162_s21 }
  0x24   : > { %p13165_p10 = pnand %p13163_p9, %p14417_p8  ;;  %p13172_p1 = por %p13171_p7, %p13170_p4 }
  0x26   : > { %p13166_p2 = pneg %p13165_p10 }
  0x28   : > { %p13173_p12 = pnand %p13172_p1, %p13166_p2 }
  0x2a   : > { %13176 = shalt.err (!%p13173_p12)
}
  0x2b   : > { %s14448_s0 = sld [smem:[#allocation23_spill]]  ;;  %s13515_s29 = sand.u32 1, %s13355_s26  }
  0x2c   : > { %s12648_s8 = smul.u32 3072, %s13515_s29  ;;  %s10939_s9 = sshll.u32 %s13359_s27, 6 }
  0x2d   : > { %s14449_s2 = sld [smem:[#allocation24_spill]]  ;;  %p13533_p12 = pneg %p13499_p3 }
  0x2e   : > { %s262_s10 = scalar_lea.vmem [#allocation9], %s12648_s8 }
  0x2f   : > { %s268_s22 = sshll.u32 %s262_s10, 4  ;;  %s13525_s22 = int_to_ptr.vmem [resolvable:$true] %s268_s22 }
  0x31   : > { %12669 = dma.hbm_to_vmem [thread:$0]  (!%p13493_p6), %s14448_s0, 384, %s229_s17, [#allocation5]  }
  0x32   : > { %s13527_s17 = scalar_lea.sflag [#allocation5], %s258_s20 }
  0x33   : > { %s13522_s21 = scalar_lea.hbm %s14449_s2, %s10939_s9  ;;  %s13182_s10 = scalar_lea.hbm %s14449_s2, 98304 }
  0x34   : > { %s13177_s0 = scalar_lea.hbm %s13522_s21, 49152  ;;  %p13183_p0 = scmp.lt.s32.totalorder %s13522_s21, %s14449_s2 }
  0x35   : > { %p13178_p5 = scmp.ne.s32.totalorder %s13522_s21, %s13177_s0  ;;  %p13184_p9 = scmp.lt.s32.totalorder %s13182_s10, %s13177_s0 }
  0x37   : > { %p13180_p1 = pnand %p13533_p12, %p13178_p5  ;;  %p13185_p10 = por %p13184_p9, %p13183_p0 }
  0x39   : > { %p13181_p2 = pneg %p13180_p1 }
  0x3b   : > { %p13186_p4 = pnand %p13185_p10, %p13181_p2 }
  0x3d   : > { %13189 = shalt.err (!%p13186_p4)
}
  0x3e   : > { %s13190_s20 = scalar_lea.vmem %s13525_s22, 49152  ;;  %s13362_s23 = smov [#allocation9]  }
  0x3f   : > { %p13191_p7 = scmp.ne.s32.totalorder %s13525_s22, %s13190_s20  ;;  %s13195_s9 = sshll.u32 %s13362_s23, 4  ;;  %s13196_s9 = int_to_ptr.vmem [resolvable:$false] %s13195_s9 }
  0x40   : > { %s13197_s11 = scalar_lea.vmem %s13196_s9, 98304  ;;  %p13198_p8 = scmp.lt.s32.totalorder %s13525_s22, %s13196_s9 }
  0x41   : > { %p13193_p5 = pnand %p13191_p7, %p13533_p12  ;;  %p13199_p11 = scmp.lt.s32.totalorder %s13197_s11, %s13190_s20 }
  0x43   : > { %p13194_p1 = pneg %p13193_p5  ;;  %p13200_p13 = por %p13199_p11, %p13198_p8 }
  0x45   : > { %p13201_p6 = pnand %p13200_p13, %p13194_p1 }
  0x47   : > { %13204 = shalt.err (!%p13201_p6)
}
  0x48   : > { %s13363_s0 = smov 128   ;;  %s13364_s10 = smov 64  }
  0x49   : > { %s13365_s8 = smov 4   ;;  %s10941_s23 = sshll.u32 %s13359_s27, 7 }
  0x4a   : > { %12676 = dma.hbm_to_vmem [thread:$0]  (!%p13499_p3), %s13522_s21, 49152, %s13525_s22, %s13527_s17, %s13363_s0, %s13364_s10, %s13365_s8  }
  0x4b   : > { %s14451_s16 = sshll.u32 %s13515_s29, 3  ;;  %s287_s30 = scalar_lea.hbm %s14411_s5, %s10941_s23 }
  0x4c   : > { %s282_s9 = scalar_lea.vmem [#allocation10], %s14451_s16  ;;  %s13205_s14 = scalar_lea.hbm %s287_s30, 128 }
  0x4d   : > { %s289_s20 = sshll.u32 %s282_s9, 4  ;;  %p13206_p6 = scmp.ne.s32.totalorder %s287_s30, %s13205_s14  ;;  %s290_s20 = int_to_ptr.vmem [resolvable:$true] %s289_s20 }
  0x4e   : > { %s13210_s13 = scalar_lea.hbm %s14411_s5, 256  ;;  %p13211_p8 = scmp.lt.s32.totalorder %s287_s30, %s14411_s5 }
  0x4f   : > { %p13208_p11 = pnand %p13206_p6, %p13533_p12  ;;  %p13212_p2 = scmp.lt.s32.totalorder %s13210_s13, %s13205_s14 }
  0x51   : > { %p13209_p13 = pneg %p13208_p11  ;;  %p13213_p0 = por %p13212_p2, %p13211_p8 }
  0x53   : > { %p13214_p9 = pnand %p13213_p0, %p13209_p13 }
  0x55   : > { %13217 = shalt.err (!%p13214_p9)
}
  0x56   : > { %s13218_s2 = scalar_lea.vmem %s290_s20, 128  ;;  %s13366_s22 = smov [#allocation10]  }
  0x57   : > { %p13219_p10 = scmp.ne.s32.totalorder %s290_s20, %s13218_s2  ;;  %s13223_s0 = sshll.u32 %s13366_s22, 4  ;;  %s13224_s0 = int_to_ptr.vmem [resolvable:$false] %s13223_s0 }
  0x58   : > { %s13225_s8 = scalar_lea.vmem %s13224_s0, 256  ;;  %p13226_p5 = scmp.lt.s32.totalorder %s290_s20, %s13224_s0 }
  0x59   : > { %p13221_p4 = pnand %p13219_p10, %p13533_p12  ;;  %p13227_p1 = scmp.lt.s32.totalorder %s13225_s8, %s13218_s2 }
  0x5b   : > { %p13222_p7 = pneg %p13221_p4  ;;  %p13228_p6 = por %p13227_p1, %p13226_p5 }
  0x5d   : > { %p13229_p11 = pnand %p13228_p6, %p13222_p7 }
  0x5f   : > { %13232 = shalt.err (!%p13229_p11)
}
  0x60   : > { %12679 = dma.hbm_to_vmem [thread:$0]  (!%p13499_p3), %s287_s30, 128, %s290_s20, %s13527_s17  }
  0x61   : > { %s13367_s4 = smov [#allocation7]   ;;  %s10942_s24 = sshll.u32 %s13359_s27, 4 }
  0x62   : > { %s238_s7 = sshll.u32 %s13367_s4, 4  ;;  %p14452_p8 = scmp.ne.s32.totalorder %s14446_s18, 0  ;;  %s239_s7 = int_to_ptr.vmem [resolvable:$true] %s238_s7 }
  0x63   : > { %s13244_s13 = scalar_lea.vmem %s239_s7, 98304  ;;  %p13252_p10 = scmp.lt.s32.totalorder %s239_s7, %s239_s7 }
  0x64   : > { %p13245_p13 = scmp.ne.s32.totalorder %s239_s7, %s13244_s13  ;;  %p14453_p2 = pneg %p14452_p8 }
  0x65   : > { %p13253_p4 = scmp.lt.s32.totalorder %s13244_s13, %s13244_s13 }
  0x66   : > { %p13247_p0 = pnand %p13245_p13, %p14453_p2 }
  0x67   : > { %p13254_p7 = por %p13253_p4, %p13252_p10 }
  0x68   : > { %p13248_p9 = pneg %p13247_p0 }
  0x6a   : > { %p13255_p5 = pnand %p13254_p7, %p13248_p9 }
  0x6c   : > { %13258 = shalt.err (!%p13255_p5)
}
  0x6d   : > { %s13368_s14 = smov 1024   ;;  %s304_s20 = scalar_lea.hbm %s14412_s6, %s10942_s24 }
  0x6e   : > { %12672 = dma.hbm_to_vmem [thread:$0]  (!%p14452_p8), %s14407_s1, 98304, %s239_s7, [#allocation8], %s13368_s14, %s13368_s14, %s13364_s10  }
  0x6f   : > { %s299_s11 = scalar_lea.vmem [#allocation11], %s13515_s29  ;;  %s13259_s2 = scalar_lea.hbm %s304_s20, 16 }
  0x70   : > { %s306_s21 = sshll.u32 %s299_s11, 4  ;;  %p13260_p1 = scmp.ne.s32.totalorder %s304_s20, %s13259_s2  ;;  %s307_s21 = int_to_ptr.vmem [resolvable:$true] %s306_s21 }
  0x71   : > { %s13264_s0 = scalar_lea.hbm %s14412_s6, 32  ;;  %p13265_p13 = scmp.lt.s32.totalorder %s304_s20, %s14412_s6 }
  0x72   : > { %p13262_p6 = pnand %p13260_p1, %p13533_p12  ;;  %p13266_p8 = scmp.lt.s32.totalorder %s13264_s0, %s13259_s2 }
  0x74   : > { %p13263_p11 = pneg %p13262_p6  ;;  %p13267_p2 = por %p13266_p8, %p13265_p13 }
  0x76   : > { %p13268_p0 = pnand %p13267_p2, %p13263_p11 }
  0x78   : > { %13271 = shalt.err (!%p13268_p0)
}
  0x79   : > { %s13272_s29 = scalar_lea.vmem %s307_s21, 16  ;;  %s13369_s10 = smov [#allocation11]  }
  0x7a   : > { %p13273_p9 = scmp.ne.s32.totalorder %s307_s21, %s13272_s29  ;;  %s13277_s7 = sshll.u32 %s13369_s10, 4  ;;  %s13278_s7 = int_to_ptr.vmem [resolvable:$false] %s13277_s7 }
  0x7b   : > { %s13279_s24 = scalar_lea.vmem %s13278_s7, 32  ;;  %p13280_p7 = scmp.lt.s32.totalorder %s307_s21, %s13278_s7 }
  0x7c   : > { %p13275_p10 = pnand %p13273_p9, %p13533_p12  ;;  %p13281_p5 = scmp.lt.s32.totalorder %s13279_s24, %s13272_s29 }
  0x7e   : > { %p13276_p4 = pneg %p13275_p10  ;;  %p13282_p1 = por %p13281_p5, %p13280_p7 }
  0x80   : > { %p13283_p6 = pnand %p13282_p1, %p13276_p4 }
  0x82   : > { %13286 = shalt.err (!%p13283_p6)
}
  0x83   : > { %12682 = dma.hbm_to_vmem [thread:$0]  (!%p13499_p3), %s304_s20, 16, %s307_s21, %s13527_s17  }
  0x84   : > { %p14454_p11 = scmp.ne.s32.totalorder %s14444_s15, 0 }
  0x85   : > { %p14455_p13 = scmp.eq.s32.totalorder (!%p14454_p11), %s13443_s28, 0 }
  0x86   : > { %315 = sbr.rel (%p14454_p11) target bundleno = 1760 (0x6e0), region = 48 }
  0x8b   : > { %13330 = dma.done.wait (%p14455_p13), [#allocation5], 384   ;;  %p14456_p12 = pmov %p14455_p13 }
  0x8d   : > { %13332 = vsyncadd (%p14456_p12), [#allocation5], 4294966912  ;;  %p14457_p8 = pmov %p14456_p12 }
  0x8f   : > { %13334 = dma.done.wait (%p14457_p8), [#allocation8], 98304   ;;  %p14458_p2 = pmov %p14457_p8 }
  0x90   : > { %s325_s26 = sand.u32 1, %s13443_s28   ;;  %s13615_s19 = sand.u32 1, %s13351_s25  }
  0x91   : > { %13336 = vsyncadd (%p14458_p2), [#allocation8], 4294868992  ;;  %s12649_s15 = smul.u32 3072, %s13615_s19  ;;  %s326_s17 = scalar_lea.sflag [#allocation5], %s325_s26 }
  0x92   : > { %p14459_p3 = scmp.ne.s32.totalorder %s14439_s12, 0 }
  0x93   : > { %s13618_s13 = scalar_lea.vmem [#allocation9], %s12649_s15 }
  0x94   : > { %13338 = dma.done.wait (%p14459_p3), %s326_s17, 49296  }
  0x95   : > { %13340 = vsyncadd (%p14459_p3), %s326_s17, 4294918000  ;;  %s10946_s14 = sshll.u32 %s13615_s19, 3  ;;  %s10947_s30 = sshll.u32 %s13615_s19, 1 }
  0x96   : > { %s13626_s23 = scalar_lea.vmem [#allocation10], %s10946_s14  ;;  %s346_s16 = scalar_lea.vmem [#allocation11], %s13615_s19 }
  0x97   : > { %s13629_s9 = scalar_lea.vmem [#allocation12], %s10947_s30  ;;  %p14460_p0 = scmp.ne.s32.totalorder %s13443_s28, 0 }
  0x98   : > { %s14461_s26 = sld [smem:[#allocation25_spill]] (!%p14460_p0) }
  0x99   : > { %390 = sbr.rel (%p14460_p0) target bundleno = 1144 (0x478), region = 72 }
  0x9e   : > { %v506_v0 = vld [vmem:[#allocation7 + $0x380] sm:$0xff]  ;;  %v13370_v8 = vmov 0   ;;  %v13633_v54 = vld [vmem:[#allocation4] sm:$0x77]  ;;  %v13635_v55 = vld [vmem:[#allocation4 + $0x8] sm:$0x77]  ;;  %s14462_s15 = smov %s14461_s26 }
  0x9f   : > { %v514_v1 = vld [vmem:[#allocation7 + $0x3c0] sm:$0xff]  ;;  %12742 = vset.pattern.permute.xlu0 %v13370_v8  ;;  %12743 = vset.pattern.permute.xlu1 %v13370_v8  ;;  %v13639_v59 = vcombine.high %v13633_v54, %v13633_v54  ;;  %v13643_v60 = vcombine.high %v13635_v55, %v13635_v55  ;;  %vm6312_vm5 = vcmask 1041409   ;;  %vm6315_vm6 = vcmask 58368  }
  0xa0   : > { %v762_v2 = vld [vmem:[#allocation7 + $0xb80] sm:$0xff]  ;;  %v11068_v3 = vcombine.high %v506_v0, %v514_v1  ;;  %v11067_v5 = vcombine.low %v506_v0, %v514_v1 }
  0xa1   : > { %v770_v4 = vld [vmem:[#allocation7 + $0xbc0] sm:$0xff]  ;;  %5055 = vmatprep.mubr.bf16.mxu0 %v13639_v59  ;;  %5096 = vmatprep.mubr.bf16.mxu1 %v13643_v60 }
  0xa2   : > { %v490_v6 = vld [vmem:[#allocation7 + $0x300] sm:$0xff]  ;;  %v11324_v9 = vcombine.high %v762_v2, %v770_v4  ;;  %v11323_v10 = vcombine.low %v762_v2, %v770_v4  ;;  %5023 = vmatprep.subr.bf16.mxu0 %v11068_v3 }
  0xa3   : > { %v498_v7 = vld [vmem:[#allocation7 + $0x340] sm:$0xff]  ;;  %5024 = vmatpush1.bf16.msra.mxu0 %v11067_v5 }
  0xa4   : > { %v11052_v11 = vcombine.high %v490_v6, %v498_v7  ;;  %v746_v12 = vld [vmem:[#allocation7 + $0xb00] sm:$0xff]  ;;  %5064 = vmatprep.subr.bf16.mxu1 %v11324_v9  ;;  %v11051_v19 = vcombine.low %v490_v6, %v498_v7 }
  0xa5   : > { %v754_v13 = vld [vmem:[#allocation7 + $0xb40] sm:$0xff]  ;;  %5065 = vmatpush1.bf16.msra.mxu1 %v11323_v10 }
  0xa6   : > { %v474_v14 = vld [vmem:[#allocation7 + $0x280] sm:$0xff]  ;;  %v11308_v15 = vcombine.high %v746_v12, %v754_v13  ;;  %5025 = vmatprep.subr.bf16.mxu0 %v11052_v11  ;;  %v11307_v20 = vcombine.low %v746_v12, %v754_v13 }
  0xa7   : > { %v482_v16 = vld [vmem:[#allocation7 + $0x2c0] sm:$0xff]  ;;  %5026 = vmatpush1.bf16.msra.mxu0 %v11051_v19 }
  0xa8   : > { %v730_v17 = vld [vmem:[#allocation7 + $0xa80] sm:$0xff]  ;;  %v11036_v21 = vcombine.high %v474_v14, %v482_v16  ;;  %5066 = vmatprep.subr.bf16.mxu1 %v11308_v15  ;;  %v11035_v27 = vcombine.low %v474_v14, %v482_v16 }
  0xa9   : > { %v738_v18 = vld [vmem:[#allocation7 + $0xac0] sm:$0xff]  ;;  %5067 = vmatpush1.bf16.msra.mxu1 %v11307_v20 }
  0xaa   : > { %v11292_v22 = vcombine.high %v730_v17, %v738_v18  ;;  %v458_v23 = vld [vmem:[#allocation7 + $0x200] sm:$0xff]  ;;  %5027 = vmatprep.subr.bf16.mxu0 %v11036_v21  ;;  %v11291_v28 = vcombine.low %v730_v17, %v738_v18 }
  0xab   : > { %v466_v24 = vld [vmem:[#allocation7 + $0x240] sm:$0xff]  ;;  %5028 = vmatpush1.bf16.msra.mxu0 %v11035_v27 }
  0xac   : > { %v714_v25 = vld [vmem:[#allocation7 + $0xa00] sm:$0xff]  ;;  %v11020_v29 = vcombine.high %v458_v23, %v466_v24  ;;  %5068 = vmatprep.subr.bf16.mxu1 %v11292_v22  ;;  %v11019_v35 = vcombine.low %v458_v23, %v466_v24 }
  0xad   : > { %v722_v26 = vld [vmem:[#allocation7 + $0xa40] sm:$0xff]  ;;  %5069 = vmatpush1.bf16.msra.mxu1 %v11291_v28 }
  0xae   : > { %v11276_v30 = vcombine.high %v714_v25, %v722_v26  ;;  %v442_v31 = vld [vmem:[#allocation7 + $0x180] sm:$0xff]  ;;  %5029 = vmatprep.subr.bf16.mxu0 %v11020_v29  ;;  %v11275_v36 = vcombine.low %v714_v25, %v722_v26 }
  0xaf   : > { %v450_v32 = vld [vmem:[#allocation7 + $0x1c0] sm:$0xff]  ;;  %5030 = vmatpush1.bf16.msra.mxu0 %v11019_v35 }
  0xb0   : > { %v698_v33 = vld [vmem:[#allocation7 + $0x980] sm:$0xff]  ;;  %v11004_v37 = vcombine.high %v442_v31, %v450_v32  ;;  %5070 = vmatprep.subr.bf16.mxu1 %v11276_v30  ;;  %v11003_v43 = vcombine.low %v442_v31, %v450_v32  ;;  %v6185_v31 = vld [vmem:[%s14409_s3] sm:$0xff] }
  0xb1   : > { %v706_v34 = vld [vmem:[#allocation7 + $0x9c0] sm:$0xff]  ;;  %5071 = vmatpush1.bf16.msra.mxu1 %v11275_v36  ;;  %6195 = vperm.xlu0 %12742, %v6185_v31  }
  0xb2   : > { %v11260_v38 = vcombine.high %v698_v33, %v706_v34  ;;  %v426_v39 = vld [vmem:[#allocation7 + $0x100] sm:$0xff]  ;;  %5031 = vmatprep.subr.bf16.mxu0 %v11004_v37  ;;  %v11259_v44 = vcombine.low %v698_v33, %v706_v34 }
  0xb3   : > { %v434_v40 = vld [vmem:[#allocation7 + $0x140] sm:$0xff]  ;;  %5032 = vmatpush1.bf16.msra.mxu0 %v11003_v43 }
  0xb4   : > { %v682_v41 = vld [vmem:[#allocation7 + $0x900] sm:$0xff]  ;;  %v10988_v45 = vcombine.high %v426_v39, %v434_v40  ;;  %5072 = vmatprep.subr.bf16.mxu1 %v11260_v38  ;;  %v10987_v51 = vcombine.low %v426_v39, %v434_v40 }
  0xb5   : > { %v690_v42 = vld [vmem:[#allocation7 + $0x940] sm:$0xff]  ;;  %5073 = vmatpush1.bf16.msra.mxu1 %v11259_v44 }
  0xb6   : > { %v11244_v46 = vcombine.high %v682_v41, %v690_v42  ;;  %v410_v47 = vld [vmem:[#allocation7 + $0x80] sm:$0xff]  ;;  %5033 = vmatprep.subr.bf16.mxu0 %v10988_v45  ;;  %v11243_v52 = vcombine.low %v682_v41, %v690_v42  ;;  %v6188_v42 = vld [vmem:[%s14409_s3 + $0x18] sm:$0xff] }
  0xb7   : > { %v418_v48 = vld [vmem:[#allocation7 + $0xc0] sm:$0xff]  ;;  %5034 = vmatpush1.bf16.msra.mxu0 %v10987_v51 }
  0xb8   : > { %v666_v49 = vld [vmem:[#allocation7 + $0x880] sm:$0xff]  ;;  %v10972_v53 = vcombine.high %v410_v47, %v418_v48  ;;  %5074 = vmatprep.subr.bf16.mxu1 %v11244_v46  ;;  %v10971_v63 = vcombine.low %v410_v47, %v418_v48  ;;  %v6189_v46 = vld [vmem:[%s14409_s3 + $0x20] sm:$0xff] }
  0xb9   : > { %v674_v50 = vld [vmem:[#allocation7 + $0x8c0] sm:$0xff]  ;;  %5075 = vmatpush1.bf16.msra.mxu1 %v11243_v52 }
  0xba   : > { %v11228_v56 = vcombine.high %v666_v49, %v674_v50  ;;  %v394_v57 = vld [vmem:[#allocation7] sm:$0xff]  ;;  %5035 = vmatprep.subr.bf16.mxu0 %v10972_v53  ;;  %v11227_v0 = vcombine.low %v666_v49, %v674_v50 }
  0xbb   : > { %v402_v58 = vld [vmem:[#allocation7 + $0x40] sm:$0xff]  ;;  %5036 = vmatpush1.bf16.msra.mxu0 %v10971_v63 }
  0xbc   : > { %v650_v61 = vld [vmem:[#allocation7 + $0x800] sm:$0xff]  ;;  %v10956_v1 = vcombine.high %v394_v57, %v402_v58  ;;  %5076 = vmatprep.subr.bf16.mxu1 %v11228_v56  ;;  %v10955_v7 = vcombine.low %v394_v57, %v402_v58 }
  0xbd   : > { %v658_v62 = vld [vmem:[#allocation7 + $0x840] sm:$0xff]  ;;  %5077 = vmatpush1.bf16.msra.mxu1 %v11227_v0 }
  0xbe   : > { %v11212_v2 = vcombine.high %v650_v61, %v658_v62  ;;  %v634_v3 = vld [vmem:[#allocation7 + $0x780] sm:$0xff]  ;;  %5037 = vmatprep.subr.bf16.mxu0 %v10956_v1  ;;  %v11211_v8 = vcombine.low %v650_v61, %v658_v62 }
  0xbf   : > { %v642_v4 = vld [vmem:[#allocation7 + $0x7c0] sm:$0xff]  ;;  %5038 = vmatpush1.bf16.msra.mxu0 %v10955_v7 }
  0xc0   : > { %v890_v5 = vld [vmem:[#allocation7 + $0xf80] sm:$0xff]  ;;  %v11196_v9 = vcombine.high %v634_v3, %v642_v4  ;;  %5078 = vmatprep.subr.bf16.mxu1 %v11212_v2  ;;  %v11195_v15 = vcombine.low %v634_v3, %v642_v4 }
  0xc1   : > { %v898_v6 = vld [vmem:[#allocation7 + $0xfc0] sm:$0xff]  ;;  %5079 = vmatpush1.bf16.msra.mxu1 %v11211_v8 }
  0xc2   : > { %v11452_v10 = vcombine.high %v890_v5, %v898_v6  ;;  %v618_v11 = vld [vmem:[#allocation7 + $0x700] sm:$0xff]  ;;  %5039 = vmatprep.subr.bf16.mxu0 %v11196_v9  ;;  %v11451_v16 = vcombine.low %v890_v5, %v898_v6 }
  0xc3   : > { %v626_v12 = vld [vmem:[#allocation7 + $0x740] sm:$0xff]  ;;  %5040 = vmatpush2.bf16.msra.mxu0 %v11195_v15  ;;  %v507_v15 = vld [vmem:[#allocation7 + $0x388] sm:$0xff] }
  0xc4   : > { %v874_v13 = vld [vmem:[#allocation7 + $0xf00] sm:$0xff]  ;;  %v11180_v17 = vcombine.high %v618_v11, %v626_v12  ;;  %5080 = vmatprep.subr.bf16.mxu1 %v11452_v10  ;;  %v11179_v23 = vcombine.low %v618_v11, %v626_v12 }
  0xc5   : > { %v882_v14 = vld [vmem:[#allocation7 + $0xf40] sm:$0xff]  ;;  %5081 = vmatpush2.bf16.msra.mxu1 %v11451_v16  ;;  %v515_v16 = vld [vmem:[#allocation7 + $0x3c8] sm:$0xff] }
  0xc6   : > { %v11436_v18 = vcombine.high %v874_v13, %v882_v14  ;;  %v602_v19 = vld [vmem:[#allocation7 + $0x680] sm:$0xff]  ;;  %5041 = vmatprep.subr.bf16.mxu0 %v11180_v17  ;;  %v11435_v24 = vcombine.low %v874_v13, %v882_v14 }
  0xc7   : > { %v610_v20 = vld [vmem:[#allocation7 + $0x6c0] sm:$0xff]  ;;  %5042 = vmatpush2.bf16.msra.mxu0 %v11179_v23  ;;  %v13667_v23 = vcombine.low %v13633_v54, %v13633_v54 }
  0xc8   : > { %v858_v21 = vld [vmem:[#allocation7 + $0xe80] sm:$0xff]  ;;  %v11164_v25 = vcombine.high %v602_v19, %v610_v20  ;;  %5082 = vmatprep.subr.bf16.mxu1 %v11436_v18  ;;  %v11163_v32 = vcombine.low %v602_v19, %v610_v20  ;;  %v11070_v20 = vcombine.high %v507_v15, %v515_v16 }
  0xc9   : > { %v866_v22 = vld [vmem:[#allocation7 + $0xec0] sm:$0xff]  ;;  %5083 = vmatpush2.bf16.msra.mxu1 %v11435_v24  ;;  %v491_v24 = vld [vmem:[#allocation7 + $0x308] sm:$0xff] }
  0xca   : > { %v11420_v26 = vcombine.high %v858_v21, %v866_v22  ;;  %v586_v27 = vld [vmem:[#allocation7 + $0x600] sm:$0xff]  ;;  %5043 = vmatprep.subr.bf16.mxu0 %v11164_v25  ;;  %v11419_v33 = vcombine.low %v858_v21, %v866_v22  ;;  %v499_v25 = vld [vmem:[#allocation7 + $0x348] sm:$0xff] }
  0xcb   : > { %v594_v28 = vld [vmem:[#allocation7 + $0x640] sm:$0xff]  ;;  %5044 = vmatpush2.bf16.msra.mxu0 %v11163_v32  ;;  %v11054_v31 = vcombine.high %v491_v24, %v499_v25 }
  0xcc   : > { %v842_v29 = vld [vmem:[#allocation7 + $0xe00] sm:$0xff]  ;;  %v11148_v34 = vcombine.high %v586_v27, %v594_v28  ;;  %5084 = vmatprep.subr.bf16.mxu1 %v11420_v26  ;;  %v11147_v43 = vcombine.low %v586_v27, %v594_v28  ;;  %v13669_v26 = vld [vmem:[#allocation4 + $0x10] sm:$0x77]  ;;  %v13673_v27 = vcombine.low %v13635_v55, %v13635_v55 }
  0xcd   : > { %v850_v30 = vld [vmem:[#allocation7 + $0xe40] sm:$0xff]  ;;  %5085 = vmatpush2.bf16.msra.mxu1 %v11419_v33  ;;  %v13677_v54 = vcombine.high %v13669_v26, %v13669_v26 }
  0xce   : > { %v6187_v35 = vld [vmem:[%s14409_s3 + $0x10] sm:$0xff]  ;;  %v6186_v36 = vld [vmem:[%s14409_s3 + $0x8] sm:$0xff]  ;;  %v11404_v37 = vcombine.high %v842_v29, %v850_v30  ;;  %5045 = vmatprep.subr.bf16.mxu0 %v11148_v34  ;;  %v11403_v44 = vcombine.low %v842_v29, %v850_v30  ;;  %v11069_v29 = vcombine.low %v507_v15, %v515_v16 }
  0xcf   : > { %v570_v38 = vld [vmem:[#allocation7 + $0x580] sm:$0xff]  ;;  %6217 = vperm.xlu1 %12743, %v6187_v35   ;;  %6200 = vperm.xlu0 %12742, %v6186_v36   ;;  %v475_v34 = vld [vmem:[#allocation7 + $0x288] sm:$0xff]  ;;  %v11053_v36 = vcombine.low %v491_v24, %v499_v25 }
  0xd0   : > { %v578_v39 = vld [vmem:[#allocation7 + $0x5c0] sm:$0xff]  ;;  %5086 = vmatprep.subr.bf16.mxu1 %v11404_v37  ;;  %5046 = vmatpush2.bf16.msra.mxu0 %v11147_v43  ;;  %v483_v35 = vld [vmem:[#allocation7 + $0x2c8] sm:$0xff] }
  0xd1   : > { %v826_v40 = vld [vmem:[#allocation7 + $0xd80] sm:$0xff]  ;;  %v11132_v45 = vcombine.high %v570_v38, %v578_v39  ;;  %v11131_v53 = vcombine.low %v570_v38, %v578_v39  ;;  %5087 = vmatpush2.bf16.msra.mxu1 %v11403_v44  ;;  %v11038_v38 = vcombine.high %v475_v34, %v483_v35  ;;  %v11037_v44 = vcombine.low %v475_v34, %v483_v35 }
  0xd2   : > { %v834_v41 = vld [vmem:[#allocation7 + $0xdc0] sm:$0xff] }
  0xd3   : > { %v11388_v47 = vcombine.high %v826_v40, %v834_v41  ;;  %v554_v48 = vld [vmem:[#allocation7 + $0x500] sm:$0xff]  ;;  %6222 = vperm.xlu1 %12743, %v6188_v42   ;;  %6239 = vperm.xlu0 %12742, %v6189_v46   ;;  %v11387_v56 = vcombine.low %v826_v40, %v834_v41  ;;  %v459_v41 = vld [vmem:[#allocation7 + $0x208] sm:$0xff] }
  0xd4   : > { %v562_v49 = vld [vmem:[#allocation7 + $0x540] sm:$0xff]  ;;  %5047 = vmatprep.subr.bf16.mxu0 %v11132_v45  ;;  %v467_v42 = vld [vmem:[#allocation7 + $0x248] sm:$0xff] }
  0xd5   : > { %v810_v50 = vld [vmem:[#allocation7 + $0xd00] sm:$0xff]  ;;  %v11116_v57 = vcombine.high %v554_v48, %v562_v49  ;;  %5088 = vmatprep.subr.bf16.mxu1 %v11388_v47  ;;  %5048 = vmatpush2.bf16.msra.mxu0 %v11131_v53  ;;  %v11115_v1 = vcombine.low %v554_v48, %v562_v49  ;;  %v11022_v46 = vcombine.high %v459_v41, %v467_v42  ;;  %v443_v49 = vld [vmem:[#allocation7 + $0x188] sm:$0xff] }
  0xd6   : > { %v818_v51 = vld [vmem:[#allocation7 + $0xd40] sm:$0xff]  ;;  %5089 = vmatpush2.bf16.msra.mxu1 %v11387_v56 }
  0xd7   : > { %v6190_v52 = vld [vmem:[%s14409_s3 + $0x28] sm:$0xff]  ;;  %v11372_v58 = vcombine.high %v810_v50, %v818_v51  ;;  %5049 = vmatprep.subr.bf16.mxu0 %v11116_v57  ;;  %v11371_v2 = vcombine.low %v810_v50, %v818_v51  ;;  %v451_v50 = vld [vmem:[#allocation7 + $0x1c8] sm:$0xff] }
  0xd8   : > { %v538_v61 = vld [vmem:[#allocation7 + $0x480] sm:$0xff]  ;;  %6244 = vperm.xlu1 %12743, %v6190_v52   ;;  %v11021_v52 = vcombine.low %v459_v41, %v467_v42  ;;  %v11006_v56 = vcombine.high %v443_v49, %v451_v50 }
  0xd9   : > { %v546_v62 = vld [vmem:[#allocation7 + $0x4c0] sm:$0xff]  ;;  %5090 = vmatprep.subr.bf16.mxu1 %v11372_v58  ;;  %5050 = vmatpush2.bf16.msra.mxu0 %v11115_v1 }
  0xda   : > { %v794_v63 = vld [vmem:[#allocation7 + $0xc80] sm:$0xff]  ;;  %v11100_v3 = vcombine.high %v538_v61, %v546_v62  ;;  %v11099_v9 = vcombine.low %v538_v61, %v546_v62  ;;  %5091 = vmatpush2.bf16.msra.mxu1 %v11371_v2  ;;  %v427_v61 = vld [vmem:[#allocation7 + $0x108] sm:$0xff] }
  0xdb   : > { %v802_v0 = vld [vmem:[#allocation7 + $0xcc0] sm:$0xff]  ;;  %v435_v62 = vld [vmem:[#allocation7 + $0x148] sm:$0xff] }
  0xdc   : > { %v11356_v4 = vcombine.high %v794_v63, %v802_v0  ;;  %v522_v5 = vld [vmem:[#allocation7 + $0x400] sm:$0xff]  ;;  %5051 = vmatprep.subr.bf16.mxu0 %v11100_v3  ;;  %v11355_v10 = vcombine.low %v794_v63, %v802_v0  ;;  %v11005_v0 = vcombine.low %v443_v49, %v451_v50  ;;  %v10990_v2 = vcombine.high %v427_v61, %v435_v62 }
  0xdd   : > { %v530_v6 = vld [vmem:[#allocation7 + $0x440] sm:$0xff]  ;;  %5052 = vmatpush2.bf16.msra.mxu0 %v11099_v9 }
  0xde   : > { %v778_v7 = vld [vmem:[#allocation7 + $0xc00] sm:$0xff]  ;;  %v11084_v11 = vcombine.high %v522_v5, %v530_v6  ;;  %5092 = vmatprep.subr.bf16.mxu1 %v11356_v4  ;;  %v11083_v17 = vcombine.low %v522_v5, %v530_v6  ;;  %v411_v5 = vld [vmem:[#allocation7 + $0x88] sm:$0xff] }
  0xdf   : > { %v786_v8 = vld [vmem:[#allocation7 + $0xc40] sm:$0xff]  ;;  %5093 = vmatpush2.bf16.msra.mxu1 %v11355_v10  ;;  %v419_v6 = vld [vmem:[#allocation7 + $0xc8] sm:$0xff] }
  0xe0   : > { %v11340_v12 = vcombine.high %v778_v7, %v786_v8  ;;  %v1018_v13 = vld [vmem:[#allocation7 + $0x1380] sm:$0xff]  ;;  %5053 = vmatprep.subr.bf16.mxu0 %v11084_v11  ;;  %v11339_v18 = vcombine.low %v778_v7, %v786_v8  ;;  %v10989_v8 = vcombine.low %v427_v61, %v435_v62  ;;  %v10974_v10 = vcombine.high %v411_v5, %v419_v6 }
  0xe1   : > { %v1026_v14 = vld [vmem:[#allocation7 + $0x13c0] sm:$0xff]  ;;  %5054 = vmatpush2.bf16.msra.mxu0 %v11083_v17  ;;  %v10973_v16 = vcombine.low %v411_v5, %v419_v6 }
  0xe2   : > { %v11580_v19 = vcombine.high %v1018_v13, %v1026_v14  ;;  %5094 = vmatprep.subr.bf16.mxu1 %v11340_v12  ;;  %v1002_v21 = vld [vmem:[#allocation7 + $0x1300] sm:$0xff]  ;;  %v11579_v28 = vcombine.low %v1018_v13, %v1026_v14  ;;  %v395_v13 = vld [vmem:[#allocation7 + $0x8] sm:$0xff] }
  0xe3   : > { %v1010_v22 = vld [vmem:[#allocation7 + $0x1340] sm:$0xff]  ;;  %5095 = vmatpush2.bf16.msra.mxu1 %v11339_v18  ;;  %v403_v14 = vld [vmem:[#allocation7 + $0x48] sm:$0xff] }
  0xe4   : > { %5105 = vmatprep.subr.bf16.mxu0 %v11580_v19  ;;  %v11564_v30 = vcombine.high %v1002_v21, %v1010_v22  ;;  %5146 = vmatprep.subr.bf16.mxu1 %v11070_v20  ;;  %v986_v32 = vld [vmem:[#allocation7 + $0x1280] sm:$0xff]  ;;  %v11563_v55 = vcombine.low %v1002_v21, %v1010_v22  ;;  %v10958_v18 = vcombine.high %v395_v13, %v403_v14  ;;  %v635_v21 = vld [vmem:[#allocation7 + $0x788] sm:$0xff] }
  0xe5   : > { %v994_v33 = vld [vmem:[#allocation7 + $0x12c0] sm:$0xff]  ;;  %5056 = vmatmul.mubr.bf16.vlgmr.msra.gmra.mxu0 %v13667_v23  ;;  %v643_v22 = vld [vmem:[#allocation7 + $0x7c8] sm:$0xff]  ;;  %v10957_v25 = vcombine.low %v395_v13, %v403_v14 }
  0xe6   : > { %5097 = vmatmul.mubr.bf16.vlgmr.msra.gmra.mxu1 %v13673_v27  ;;  %5106 = vmatpush1.bf16.msra.mxu0 %v11579_v28  ;;  %v11548_v37 = vcombine.high %v986_v32, %v994_v33  ;;  %v970_v39 = vld [vmem:[#allocation7 + $0x1200] sm:$0xff]  ;;  %v11547_v43 = vcombine.low %v986_v32, %v994_v33  ;;  %v619_v32 = vld [vmem:[#allocation7 + $0x708] sm:$0xff]  ;;  %v11197_v35 = vcombine.low %v635_v21, %v643_v22 }
  0xe7   : > { %5147 = vmatpush1.bf16.msra.mxu1 %v11069_v29  ;;  %5107 = vmatprep.subr.bf16.mxu0 %v11564_v30  ;;  %v978_v40 = vld [vmem:[#allocation7 + $0x1240] sm:$0xff]  ;;  %v11198_v29 = vcombine.high %v635_v21, %v643_v22  ;;  %v627_v33 = vld [vmem:[#allocation7 + $0x748] sm:$0xff] }
  0xe8   : > { %5148 = vmatprep.subr.bf16.mxu1 %v11054_v31  ;;  %5137 = vmatprep.mubr.bf16.mxu0 %v13677_v54  ;;  %v11532_v45 = vcombine.high %v970_v39, %v978_v40  ;;  %v954_v47 = vld [vmem:[#allocation7 + $0x1180] sm:$0xff]  ;;  %v11531_v51 = vcombine.low %v970_v39, %v978_v40  ;;  %v603_v39 = vld [vmem:[#allocation7 + $0x688] sm:$0xff]  ;;  %v11181_v42 = vcombine.low %v619_v32, %v627_v33 }
  0xe9   : > { %5178 = vmatprep.mubr.bf16.mxu1 %v13639_v59  ;;  %v962_v48 = vld [vmem:[#allocation7 + $0x11c0] sm:$0xff]  ;;  %v611_v40 = vld [vmem:[#allocation7 + $0x6c8] sm:$0xff] }
  0xea   : > { %5108 = vmatpush1.bf16.msra.mxu0 %v11563_v55  ;;  %v11516_v53 = vcombine.high %v954_v47, %v962_v48  ;;  %v938_v57 = vld [vmem:[#allocation7 + $0x1100] sm:$0xff]  ;;  %v11515_v63 = vcombine.low %v954_v47, %v962_v48  ;;  %v587_v47 = vld [vmem:[#allocation7 + $0x608] sm:$0xff]  ;;  %v11165_v50 = vcombine.low %v603_v39, %v611_v40 }
  0xeb   : > { %5149 = vmatpush1.bf16.msra.mxu1 %v11053_v36  ;;  %5109 = vmatprep.subr.bf16.mxu0 %v11548_v37  ;;  %v946_v58 = vld [vmem:[#allocation7 + $0x1140] sm:$0xff]  ;;  %v11182_v36 = vcombine.high %v619_v32, %v627_v33  ;;  %v595_v48 = vld [vmem:[#allocation7 + $0x648] sm:$0xff] }
  0xec   : > { %5150 = vmatprep.subr.bf16.mxu1 %v11038_v38  ;;  %v11500_v1 = vcombine.high %v938_v57, %v946_v58  ;;  %v922_v3 = vld [vmem:[#allocation7 + $0x1080] sm:$0xff]  ;;  %v11499_v7 = vcombine.low %v938_v57, %v946_v58  ;;  %v571_v57 = vld [vmem:[#allocation7 + $0x588] sm:$0xff]  ;;  %v11149_v62 = vcombine.low %v587_v47, %v595_v48 }
  0xed   : > { %v930_v4 = vld [vmem:[#allocation7 + $0x10c0] sm:$0xff]  ;;  %v579_v58 = vld [vmem:[#allocation7 + $0x5c8] sm:$0xff] }
  0xee   : > { %5110 = vmatpush1.bf16.msra.mxu0 %v11547_v43  ;;  %v11484_v9 = vcombine.high %v922_v3, %v930_v4  ;;  %v906_v11 = vld [vmem:[#allocation7 + $0x1000] sm:$0xff]  ;;  %v11483_v15 = vcombine.low %v922_v3, %v930_v4  ;;  %v555_v3 = vld [vmem:[#allocation7 + $0x508] sm:$0xff]  ;;  %v11133_v6 = vcombine.low %v571_v57, %v579_v58 }
  0xef   : > { %5151 = vmatpush1.bf16.msra.mxu1 %v11037_v44  ;;  %5111 = vmatprep.subr.bf16.mxu0 %v11532_v45  ;;  %v914_v12 = vld [vmem:[#allocation7 + $0x1040] sm:$0xff]  ;;  %v11166_v44 = vcombine.high %v603_v39, %v611_v40  ;;  %v563_v4 = vld [vmem:[#allocation7 + $0x548] sm:$0xff] }
  0xf0   : > { %5152 = vmatprep.subr.bf16.mxu1 %v11022_v46  ;;  %v11468_v17 = vcombine.high %v906_v11, %v914_v12  ;;  %v1146_v19 = vld [vmem:[#allocation7 + $0x1780] sm:$0xff]  ;;  %v11467_v24 = vcombine.low %v906_v11, %v914_v12  ;;  %v539_v11 = vld [vmem:[#allocation7 + $0x488] sm:$0xff]  ;;  %v11117_v14 = vcombine.low %v555_v3, %v563_v4 }
  0xf1   : > { %v1154_v20 = vld [vmem:[#allocation7 + $0x17c0] sm:$0xff]  ;;  %v547_v12 = vld [vmem:[#allocation7 + $0x4c8] sm:$0xff] }
  0xf2   : > { %5112 = vmatpush1.bf16.msra.mxu0 %v11531_v51  ;;  %v11708_v28 = vcombine.high %v1146_v19, %v1154_v20  ;;  %v1130_v30 = vld [vmem:[#allocation7 + $0x1700] sm:$0xff]  ;;  %v11707_v34 = vcombine.low %v1146_v19, %v1154_v20  ;;  %v523_v19 = vld [vmem:[#allocation7 + $0x408] sm:$0xff]  ;;  %v11101_v22 = vcombine.low %v539_v11, %v547_v12 }
  0xf3   : > { %5153 = vmatpush1.bf16.msra.mxu1 %v11021_v52  ;;  %5113 = vmatprep.subr.bf16.mxu0 %v11516_v53  ;;  %v1138_v31 = vld [vmem:[#allocation7 + $0x1740] sm:$0xff]  ;;  %v11150_v52 = vcombine.high %v587_v47, %v595_v48  ;;  %v531_v20 = vld [vmem:[#allocation7 + $0x448] sm:$0xff] }
  0xf4   : > { %5154 = vmatprep.subr.bf16.mxu1 %v11006_v56  ;;  %v11692_v55 = vcombine.high %v1130_v30, %v1138_v31  ;;  %v1114_v37 = vld [vmem:[#allocation7 + $0x1680] sm:$0xff]  ;;  %v11691_v41 = vcombine.low %v1130_v30, %v1138_v31  ;;  %v1019_v30 = vld [vmem:[#allocation7 + $0x1388] sm:$0xff]  ;;  %v11085_v33 = vcombine.low %v523_v19, %v531_v20 }
  0xf5   : > { %v1122_v38 = vld [vmem:[#allocation7 + $0x16c0] sm:$0xff]  ;;  %v1027_v31 = vld [vmem:[#allocation7 + $0x13c8] sm:$0xff] }
  0xf6   : > { %5114 = vmatpush1.bf16.msra.mxu0 %v11515_v63  ;;  %v11676_v43 = vcombine.high %v1114_v37, %v1122_v38  ;;  %v1098_v45 = vld [vmem:[#allocation7 + $0x1600] sm:$0xff]  ;;  %v11675_v49 = vcombine.low %v1114_v37, %v1122_v38  ;;  %v13685_v37 = vcombine.low %v13669_v26, %v13669_v26  ;;  %v1003_v38 = vld [vmem:[#allocation7 + $0x1308] sm:$0xff] }
  0xf7   : > { %5155 = vmatpush1.bf16.msra.mxu1 %v11005_v0  ;;  %5115 = vmatprep.subr.bf16.mxu0 %v11500_v1  ;;  %v1106_v46 = vld [vmem:[#allocation7 + $0x1640] sm:$0xff]  ;;  %v11134_v0 = vcombine.high %v571_v57, %v579_v58  ;;  %v1011_v39 = vld [vmem:[#allocation7 + $0x1348] sm:$0xff] }
  0xf8   : > { %5156 = vmatprep.subr.bf16.mxu1 %v10990_v2  ;;  %v11660_v51 = vcombine.high %v1098_v45, %v1106_v46  ;;  %v1082_v53 = vld [vmem:[#allocation7 + $0x1580] sm:$0xff]  ;;  %v11659_v61 = vcombine.low %v1098_v45, %v1106_v46  ;;  %v739_v45 = vld [vmem:[#allocation7 + $0xac8] sm:$0xff]  ;;  %v11565_v48 = vcombine.low %v1003_v38, %v1011_v39 }
  0xf9   : > { %v1090_v56 = vld [vmem:[#allocation7 + $0x15c0] sm:$0xff]  ;;  %v987_v46 = vld [vmem:[#allocation7 + $0x1288] sm:$0xff] }
  0xfa   : > { %5116 = vmatpush1.bf16.msra.mxu0 %v11499_v7  ;;  %v11644_v63 = vcombine.high %v1082_v53, %v1090_v56  ;;  %v1066_v1 = vld [vmem:[#allocation7 + $0x1500] sm:$0xff]  ;;  %v11643_v5 = vcombine.low %v1082_v53, %v1090_v56  ;;  %v995_v47 = vld [vmem:[#allocation7 + $0x12c8] sm:$0xff] }
  0xfb   : > { %5157 = vmatpush1.bf16.msra.mxu1 %v10989_v8  ;;  %5117 = vmatprep.subr.bf16.mxu0 %v11484_v9  ;;  %v1074_v2 = vld [vmem:[#allocation7 + $0x1540] sm:$0xff]  ;;  %v11118_v8 = vcombine.high %v555_v3, %v563_v4  ;;  %v971_v53 = vld [vmem:[#allocation7 + $0x1208] sm:$0xff]  ;;  %v11549_v58 = vcombine.low %v987_v46, %v995_v47 }
  0xfc   : > { %5158 = vmatprep.subr.bf16.mxu1 %v10974_v10  ;;  %v11628_v7 = vcombine.high %v1066_v1, %v1074_v2  ;;  %v1050_v9 = vld [vmem:[#allocation7 + $0x1480] sm:$0xff]  ;;  %v11627_v13 = vcombine.low %v1066_v1, %v1074_v2  ;;  %v979_v56 = vld [vmem:[#allocation7 + $0x1248] sm:$0xff] }
  0xfd   : > { %v1058_v10 = vld [vmem:[#allocation7 + $0x14c0] sm:$0xff]  ;;  %v955_v1 = vld [vmem:[#allocation7 + $0x1188] sm:$0xff]  ;;  %v11533_v4 = vcombine.low %v971_v53, %v979_v56 }
  0xfe   : > { %5118 = vmatpush1.bf16.msra.mxu0 %v11483_v15  ;;  %v11612_v15 = vcombine.high %v1050_v9, %v1058_v10  ;;  %v11611_v21 = vcombine.low %v1050_v9, %v1058_v10  ;;  %v963_v2 = vld [vmem:[#allocation7 + $0x11c8] sm:$0xff] }
  0xff   : > { %5159 = vmatpush1.bf16.msra.mxu1 %v10973_v16  ;;  %5119 = vmatprep.subr.bf16.mxu0 %v11468_v17  ;;  %v11102_v16 = vcombine.high %v539_v11, %v547_v12  ;;  %v1034_v17 = vld [vmem:[#allocation7 + $0x1400] sm:$0xff]  ;;  %v939_v9 = vld [vmem:[#allocation7 + $0x1108] sm:$0xff]  ;;  %v11517_v12 = vcombine.low %v955_v1, %v963_v2 }
 0x100   : > { %5160 = vmatprep.subr.bf16.mxu1 %v10958_v18  ;;  %v1042_v18 = vld [vmem:[#allocation7 + $0x1440] sm:$0xff]  ;;  %v947_v10 = vld [vmem:[#allocation7 + $0x1148] sm:$0xff] }
 0x101   : > { %v11595_v32 = vcombine.low %v1034_v17, %v1042_v18 }
 0x102   : > { %5120 = vmatpush1.bf16.msra.mxu0 %v11467_v24  ;;  %v11596_v24 = vcombine.high %v1034_v17, %v1042_v18  ;;  %v923_v17 = vld [vmem:[#allocation7 + $0x1088] sm:$0xff] }
 0x103   : > { %5161 = vmatpush1.bf16.msra.mxu1 %v10957_v25  ;;  %5121 = vmatprep.subr.bf16.mxu0 %v11708_v28  ;;  %v11086_v25 = vcombine.high %v523_v19, %v531_v20  ;;  %v763_v28 = vld [vmem:[#allocation7 + $0xb88] sm:$0xff]  ;;  %v11501_v20 = vcombine.low %v939_v9, %v947_v10 }
 0x104   : > { %5162 = vmatprep.subr.bf16.mxu1 %v11198_v29  ;;  %v771_v29 = vld [vmem:[#allocation7 + $0xbc8] sm:$0xff] }
 0x105   : > { %v11325_v40 = vcombine.low %v763_v28, %v771_v29  ;;  %v931_v18 = vld [vmem:[#allocation7 + $0x10c8] sm:$0xff] }
 0x106   : > { %5122 = vmatpush2.bf16.msra.mxu0 %v11707_v34  ;;  %v11326_v34 = vcombine.high %v763_v28, %v771_v29  ;;  %v6046_v28 = vlaneseq  ;;  %v907_v29 = vld [vmem:[#allocation7 + $0x1008] sm:$0xff] }
 0x107   : > { %5163 = vmatpush2.bf16.msra.mxu1 %v11197_v35  ;;  %5123 = vmatprep.subr.bf16.mxu0 %v11692_v55  ;;  %v11582_v35 = vcombine.high %v1019_v30, %v1027_v31  ;;  %v747_v55 = vld [vmem:[#allocation7 + $0xb08] sm:$0xff] }
 0x108   : > { %5164 = vmatprep.subr.bf16.mxu1 %v11182_v36  ;;  %v755_v36 = vld [vmem:[#allocation7 + $0xb48] sm:$0xff] }
 0x109   : > { %v11309_v26 = vcombine.low %v747_v55, %v755_v36 }
 0x10a   : > { %5124 = vmatpush2.bf16.msra.mxu0 %v11691_v41  ;;  %v11581_v41 = vcombine.low %v1019_v30, %v1027_v31  ;;  %v915_v30 = vld [vmem:[#allocation7 + $0x1048] sm:$0xff] }
 0x10b   : > { %5165 = vmatpush2.bf16.msra.mxu1 %v11181_v42  ;;  %5125 = vmatprep.subr.bf16.mxu0 %v11676_v43  ;;  %v11310_v42 = vcombine.high %v747_v55, %v755_v36  ;;  %v11566_v43 = vcombine.high %v1003_v38, %v1011_v39  ;;  %v899_v55 = vld [vmem:[#allocation7 + $0xfc8] sm:$0xff]  ;;  %v13692_v36 = vshrl.u32 %v6046_v28, 7 }
 0x10c   : > { %5166 = vmatprep.subr.bf16.mxu1 %v11166_v44  ;;  %v731_v44 = vld [vmem:[#allocation7 + $0xa88] sm:$0xff] }
 0x10d   : > { %v11293_v57 = vcombine.low %v731_v44, %v739_v45  ;;  %v1147_v38 = vld [vmem:[#allocation7 + $0x1788] sm:$0xff] }
 0x10e   : > { %5126 = vmatpush2.bf16.msra.mxu0 %v11675_v49  ;;  %v11294_v49 = vcombine.high %v731_v44, %v739_v45  ;;  %v1155_v39 = vld [vmem:[#allocation7 + $0x17c8] sm:$0xff] }
 0x10f   : > { %5167 = vmatpush2.bf16.msra.mxu1 %v11165_v50  ;;  %5127 = vmatprep.subr.bf16.mxu0 %v11660_v51  ;;  %v11550_v50 = vcombine.high %v987_v46, %v995_v47  ;;  %v715_v51 = vld [vmem:[#allocation7 + $0xa08] sm:$0xff]  ;;  %v6205_v46 = vsub.s32 0, %v13692_v36  ;;  %v6227_v47 = vsub.s32 1, %v13692_v36 }
 0x110   : > { %5168 = vmatprep.subr.bf16.mxu1 %v11150_v52  ;;  %v723_v52 = vld [vmem:[#allocation7 + $0xa48] sm:$0xff] }
 0x111   : > { %v11277_v3 = vcombine.low %v715_v51, %v723_v52  ;;  %v875_v44 = vld [vmem:[#allocation7 + $0xf08] sm:$0xff] }
 0x112   : > { %5128 = vmatpush2.bf16.msra.mxu0 %v11659_v61  ;;  %v11278_v61 = vcombine.high %v715_v51, %v723_v52  ;;  %v883_v45 = vld [vmem:[#allocation7 + $0xf48] sm:$0xff]  ;;  %v11709_v51 = vcombine.low %v1147_v38, %v1155_v39 }
 0x113   : > { %5169 = vmatpush2.bf16.msra.mxu1 %v11149_v62  ;;  %5129 = vmatprep.subr.bf16.mxu0 %v11644_v63  ;;  %v11534_v62 = vcombine.high %v971_v53, %v979_v56  ;;  %v699_v63 = vld [vmem:[#allocation7 + $0x988] sm:$0xff]  ;;  %v11438_v52 = vcombine.high %v875_v44, %v883_v45  ;;  %v6192_v53 = vld [vmem:[%s14462_s15 + $0x4] sm:$0x7] }
 0x114   : > { %5170 = vmatprep.subr.bf16.mxu1 %v11134_v0  ;;  %v707_v0 = vld [vmem:[#allocation7 + $0x9c8] sm:$0xff] }
 0x115   : > { %v11261_v11 = vcombine.low %v699_v63, %v707_v0 }
 0x116   : > { %5130 = vmatpush2.bf16.msra.mxu0 %v11643_v5  ;;  %v11262_v5 = vcombine.high %v699_v63, %v707_v0  ;;  %v1115_v63 = vld [vmem:[#allocation7 + $0x1688] sm:$0xff] }
 0x117   : > { %5171 = vmatpush2.bf16.msra.mxu1 %v11133_v6  ;;  %5131 = vmatprep.subr.bf16.mxu0 %v11628_v7  ;;  %v11518_v6 = vcombine.high %v955_v1, %v963_v2  ;;  %v683_v7 = vld [vmem:[#allocation7 + $0x908] sm:$0xff]  ;;  %v11437_v2 = vcombine.low %v875_v44, %v883_v45 }
 0x118   : > { %5172 = vmatprep.subr.bf16.mxu1 %v11118_v8  ;;  %v691_v8 = vld [vmem:[#allocation7 + $0x948] sm:$0xff] }
 0x119   : > { %v11245_v19 = vcombine.low %v683_v7, %v691_v8  ;;  %v1123_v0 = vld [vmem:[#allocation7 + $0x16c8] sm:$0xff] }
 0x11a   : > { %5132 = vmatpush2.bf16.msra.mxu0 %v11627_v13  ;;  %v11246_v13 = vcombine.high %v683_v7, %v691_v8  ;;  %v11678_v8 = vcombine.high %v1115_v63, %v1123_v0  ;;  %v811_v44 = vld [vmem:[#allocation7 + $0xd08] sm:$0xff] }
 0x11b   : > { %5173 = vmatpush2.bf16.msra.mxu1 %v11117_v14  ;;  %5133 = vmatprep.subr.bf16.mxu0 %v11612_v15  ;;  %v11502_v14 = vcombine.high %v939_v9, %v947_v10  ;;  %v667_v15 = vld [vmem:[#allocation7 + $0x888] sm:$0xff] }
 0x11c   : > { %5174 = vmatprep.subr.bf16.mxu1 %v11102_v16  ;;  %v675_v16 = vld [vmem:[#allocation7 + $0x8c8] sm:$0xff] }
 0x11d   : > { %v11229_v31 = vcombine.low %v667_v15, %v675_v16  ;;  %v843_v9 = vld [vmem:[#allocation7 + $0xe08] sm:$0xff] }
 0x11e   : > { %5134 = vmatpush2.bf16.msra.mxu0 %v11611_v21  ;;  %v11230_v21 = vcombine.high %v667_v15, %v675_v16  ;;  %v851_v10 = vld [vmem:[#allocation7 + $0xe48] sm:$0xff] }
 0x11f   : > { %5175 = vmatpush2.bf16.msra.mxu1 %v11101_v22  ;;  %5135 = vmatprep.subr.bf16.mxu0 %v11596_v24  ;;  %v11486_v22 = vcombine.high %v923_v17, %v931_v18  ;;  %v651_v24 = vld [vmem:[#allocation7 + $0x808] sm:$0xff] }
 0x120   : > { %5176 = vmatprep.subr.bf16.mxu1 %v11086_v25  ;;  %v659_v25 = vld [vmem:[#allocation7 + $0x848] sm:$0xff] }
 0x121   : > { %v1107_v15 = vld [vmem:[#allocation7 + $0x1648] sm:$0xff] }
 0x122   : > { %5136 = vmatpush2.bf16.msra.mxu0 %v11595_v32  ;;  %v11485_v32 = vcombine.low %v923_v17, %v931_v18  ;;  %v819_v45 = vld [vmem:[#allocation7 + $0xd48] sm:$0xff] }
 0x123   : > { %5177 = vmatpush2.bf16.msra.mxu1 %v11085_v33  ;;  %5187 = vmatprep.subr.bf16.mxu0 %v11326_v34  ;;  %v11214_v33 = vcombine.high %v651_v24, %v659_v25  ;;  %v11470_v34 = vcombine.high %v907_v29, %v915_v30 }
 0x124   : > { %5228 = vmatprep.subr.bf16.mxu1 %v11582_v35  ;;  %v891_v35 = vld [vmem:[#allocation7 + $0xf88] sm:$0xff] }
 0x125   : > { %5138 = vmatmul.mubr.bf16.vlgmr.msra.gmra.mxu0 %v13685_v37 }
 0x126   : > { %5179 = vmatmul.mubr.bf16.vlgmr.msra.gmra.mxu1 %v13667_v23  ;;  %5188 = vmatpush1.bf16.msra.mxu0 %v11325_v40  ;;  %v11213_v40 = vcombine.low %v651_v24, %v659_v25  ;;  %v13704_v24 = vand.u32 127, %v6046_v28 }
 0x127   : > { %5229 = vmatpush1.bf16.msra.mxu1 %v11581_v41  ;;  %5189 = vmatprep.subr.bf16.mxu0 %v11310_v42  ;;  %v11469_v41 = vcombine.low %v907_v29, %v915_v30  ;;  %v11454_v42 = vcombine.high %v891_v35, %v899_v55  ;;  %v827_v29 = vld [vmem:[#allocation7 + $0xd88] sm:$0xff] }
 0x128   : > { %5230 = vmatprep.subr.bf16.mxu1 %v11566_v43  ;;  %5219 = vmatprep.mubr.bf16.mxu0 %v13643_v60  ;;  %v11710_v43 = vcombine.high %v1147_v38, %v1155_v39  ;;  %v835_v30 = vld [vmem:[#allocation7 + $0xdc8] sm:$0xff]  ;;  %v11405_v38 = vcombine.low %v843_v9, %v851_v10  ;;  %vm6261_vm0 = vcmp.lt.s32.totalorder %v13704_v24, 4 }
 0x129   : > { %5260 = vmatprep.mubr.bf16.mxu1 %v13677_v54 }
 0x12a   : > { %5190 = vmatpush1.bf16.msra.mxu0 %v11309_v26  ;;  %v1131_v26 = vld [vmem:[#allocation7 + $0x1708] sm:$0xff] }
 0x12b   : > { %5231 = vmatpush1.bf16.msra.mxu1 %v11565_v48  ;;  %5191 = vmatprep.subr.bf16.mxu0 %v11294_v49  ;;  %v1139_v48 = vld [vmem:[#allocation7 + $0x1748] sm:$0xff]  ;;  %v6191_v49 = vld [vmem:[%s14461_s26] sm:$0x7] }
 0x12c   : > { %5232 = vmatprep.subr.bf16.mxu1 %v11550_v50  ;;  %v11453_v50 = vcombine.low %v891_v35, %v899_v55  ;;  %v11694_v56 = vcombine.high %v1131_v26, %v1139_v48  ;;  %v6196_v1 = vpop.permute.xlu0 %6195  ;;  %v1091_v35 = vld [vmem:[#allocation7 + $0x15c8] sm:$0xff] }
 0x12e   : > { %5192 = vmatpush1.bf16.msra.mxu0 %v11293_v57  ;;  %v859_v57 = vld [vmem:[#allocation7 + $0xe88] sm:$0xff] }
 0x12f   : > { %5233 = vmatpush1.bf16.msra.mxu1 %v11549_v58  ;;  %5193 = vmatprep.subr.bf16.mxu0 %v11278_v61  ;;  %v867_v58 = vld [vmem:[#allocation7 + $0xec8] sm:$0xff]  ;;  %v6206_v61 = vrot.slane %v6191_v49, %v6205_v46 }
 0x130   : > { %5234 = vmatprep.subr.bf16.mxu1 %v11534_v62  ;;  %v6228_v62 = vrot.slane %v6191_v49, %v6227_v47  ;;  %v11421_v17 = vcombine.low %v859_v57, %v867_v58 }
 0x132   : > { %5194 = vmatpush1.bf16.msra.mxu0 %v11277_v3  ;;  %v6210_v3 = vrot.slane %v6192_v53, %v6205_v46 }
 0x133   : > { %5235 = vmatpush1.bf16.msra.mxu1 %v11533_v4  ;;  %5195 = vmatprep.subr.bf16.mxu0 %v11262_v5  ;;  %v6249_v4 = vsub.s32 2, %v13692_v36  ;;  %v11693_v5 = vcombine.low %v1131_v26, %v1139_v48  ;;  %v1067_v26 = vld [vmem:[#allocation7 + $0x1508] sm:$0xff] }
 0x134   : > { %5236 = vmatprep.subr.bf16.mxu1 %v11518_v6  ;;  %v11422_v6 = vcombine.high %v859_v57, %v867_v58  ;;  %v1075_v48 = vld [vmem:[#allocation7 + $0x1548] sm:$0xff] }
 0x135   : > { %v795_v57 = vld [vmem:[#allocation7 + $0xc88] sm:$0xff] }
 0x136   : > { %5196 = vmatpush1.bf16.msra.mxu0 %v11261_v11  ;;  %v6211_v11 = vmul.f32 %v6206_v61, %v6196_v1  ;;  %v803_v58 = vld [vmem:[#allocation7 + $0xcc8] sm:$0xff]  ;;  %v11629_v1 = vcombine.low %v1067_v26, %v1075_v48 }
 0x137   : > { %5237 = vmatpush1.bf16.msra.mxu1 %v11517_v12  ;;  %5197 = vmatprep.subr.bf16.mxu0 %v11246_v13  ;;  %v6232_v13 = vrot.slane %v6192_v53, %v6227_v47 }
 0x138   : > { %5238 = vmatprep.subr.bf16.mxu1 %v11502_v14  ;;  %v1099_v14 = vld [vmem:[#allocation7 + $0x1608] sm:$0xff] }
 0x139   : > { %v11662_v25 = vcombine.high %v1099_v14, %v1107_v15 }
 0x13a   : > { %5198 = vmatpush1.bf16.msra.mxu0 %v11245_v19  ;;  %v6250_v19 = vrot.slane %v6191_v49, %v6249_v4  ;;  %v11389_v49 = vcombine.low %v827_v29, %v835_v30 }
 0x13b   : > { %5239 = vmatpush1.bf16.msra.mxu1 %v11501_v20  ;;  %5199 = vmatprep.subr.bf16.mxu0 %v11230_v21  ;;  %v11677_v20 = vcombine.low %v1115_v63, %v1123_v0  ;;  %v11406_v21 = vcombine.high %v843_v9, %v851_v10  ;;  %v1059_v63 = vld [vmem:[#allocation7 + $0x14c8] sm:$0xff]  ;;  %v11373_v0 = vcombine.low %v811_v44, %v819_v45 }
 0x13c   : > { %5240 = vmatprep.subr.bf16.mxu1 %v11486_v22 }
 0x13e   : > { %5200 = vmatpush1.bf16.msra.mxu0 %v11229_v31 }
 0x13f   : > { %5241 = vmatpush1.bf16.msra.mxu1 %v11485_v32  ;;  %5201 = vmatprep.subr.bf16.mxu0 %v11214_v33  ;;  %v6254_v33 = vrot.slane %v6192_v53, %v6249_v4  ;;  %v11374_v53 = vcombine.high %v811_v44, %v819_v45  ;;  %v779_v4 = vld [vmem:[#allocation7 + $0xc08] sm:$0xff]  ;;  %v724_v44 = vld [vmem:[#allocation7 + $0xa50] sm:$0xff] }
 0x140   : > { %5242 = vmatprep.subr.bf16.mxu1 %v11470_v34  ;;  %v1083_v34 = vld [vmem:[#allocation7 + $0x1588] sm:$0xff] }
 0x142   : > { %5202 = vmatpush1.bf16.msra.mxu0 %v11213_v40 }
 0x143   : > { %5243 = vmatpush1.bf16.msra.mxu1 %v11469_v41  ;;  %5203 = vmatprep.subr.bf16.mxu0 %v11454_v42  ;;  %v11661_v41 = vcombine.low %v1099_v14, %v1107_v15  ;;  %v11390_v42 = vcombine.high %v827_v29, %v835_v30  ;;  %v764_v14 = vld [vmem:[#allocation7 + $0xb90] sm:$0xff] }
 0x144   : > { %5244 = vmatprep.subr.bf16.mxu1 %v11710_v43  ;;  %v11646_v43 = vcombine.high %v1083_v34, %v1091_v35  ;;  %v772_v15 = vld [vmem:[#allocation7 + $0xbd0] sm:$0xff] }
 0x145   : > { %v11327_v30 = vcombine.low %v764_v14, %v772_v15 }
 0x146   : > { %5204 = vmatpush2.bf16.msra.mxu0 %v11453_v50 }
 0x147   : > { %5245 = vmatpush2.bf16.msra.mxu1 %v11709_v51  ;;  %5205 = vmatprep.subr.bf16.mxu0 %v11438_v52  ;;  %v11645_v52 = vcombine.low %v1083_v34, %v1091_v35  ;;  %v484_v34 = vld [vmem:[#allocation7 + $0x2d0] sm:$0xff] }
 0x148   : > { %5246 = vmatprep.subr.bf16.mxu1 %v11694_v56  ;;  %v11630_v56 = vcombine.high %v1067_v26, %v1075_v48  ;;  %v732_v35 = vld [vmem:[#allocation7 + $0xa90] sm:$0xff] }
 0x149   : > { %v444_v48 = vld [vmem:[#allocation7 + $0x190] sm:$0xff] }
 0x14a   : > { %v6218_v7 = vpop.permute.xlu1 %6217  ;;  %v6201_v16 = vpop.permute.xlu0 %6200  ;;  %5206 = vmatpush2.bf16.msra.mxu0 %v11437_v2  ;;  %v11358_v2 = vcombine.high %v795_v57, %v803_v58 }
 0x14b   : > { %v6233_v12 = vmul.f32 %v6228_v62, %v6218_v7  ;;  %v6212_v18 = vmul.f32 %v6210_v3, %v6201_v16  ;;  %5247 = vmatpush2.bf16.msra.mxu1 %v11693_v5  ;;  %5207 = vmatprep.subr.bf16.mxu0 %v11422_v6  ;;  %v1051_v62 = vld [vmem:[#allocation7 + $0x1488] sm:$0xff] }
 0x14c   : > { %5248 = vmatprep.subr.bf16.mxu1 %v11678_v8  ;;  %v11614_v3 = vcombine.high %v1051_v62, %v1059_v63  ;;  %v787_v5 = vld [vmem:[#allocation7 + $0xc48] sm:$0xff]  ;;  %v11357_v8 = vcombine.low %v795_v57, %v803_v58  ;;  %v11613_v9 = vcombine.low %v1051_v62, %v1059_v63  ;;  %v428_v62 = vld [vmem:[#allocation7 + $0x110] sm:$0xff] }
 0x14d   : > { %v6235_v31 = vadd.f32 %v6233_v12, %v6211_v11  ;;  %v1035_v6 = vld [vmem:[#allocation7 + $0x1408] sm:$0xff]  ;;  %v11342_v10 = vcombine.high %v779_v4, %v787_v5  ;;  %v508_v12 = vld [vmem:[#allocation7 + $0x390] sm:$0xff]  ;;  %v11341_v16 = vcombine.low %v779_v4, %v787_v5 }
 0x14e   : > { %v6223_v22 = vpop.permute.xlu1 %6222  ;;  %v6240_v55 = vpop.permute.xlu0 %6239  ;;  %5208 = vmatpush2.bf16.msra.mxu0 %v11421_v17  ;;  %v1043_v7 = vld [vmem:[#allocation7 + $0x1448] sm:$0xff]  ;;  %v436_v63 = vld [vmem:[#allocation7 + $0x150] sm:$0xff] }
 0x14f   : > { %v6234_v32 = vmul.f32 %v6232_v13, %v6223_v22  ;;  %v6255_v40 = vmul.f32 %v6250_v19, %v6240_v55  ;;  %5249 = vmatpush2.bf16.msra.mxu1 %v11677_v20  ;;  %5209 = vmatprep.subr.bf16.mxu0 %v11406_v21  ;;  %v11598_v11 = vcombine.high %v1035_v6, %v1043_v7  ;;  %v516_v13 = vld [vmem:[#allocation7 + $0x3d0] sm:$0xff] }
 0x150   : > { %5250 = vmatprep.subr.bf16.mxu1 %v11662_v25  ;;  %v11597_v17 = vcombine.low %v1035_v6, %v1043_v7  ;;  %v11328_v19 = vcombine.high %v764_v14, %v772_v15  ;;  %v492_v20 = vld [vmem:[#allocation7 + $0x310] sm:$0xff]  ;;  %v11071_v29 = vcombine.low %v508_v12, %v516_v13  ;;  %v10992_v4 = vcombine.high %v428_v62, %v436_v63 }
 0x151   : > { %v6236_v39 = vadd.f32 %v6234_v32, %v6212_v18  ;;  %v6257_v47 = vadd.f32 %v6255_v40, %v6235_v31  ;;  %v11072_v18 = vcombine.high %v508_v12, %v516_v13  ;;  %v500_v21 = vld [vmem:[#allocation7 + $0x350] sm:$0xff] }
 0x152   : > { %5210 = vmatpush2.bf16.msra.mxu0 %v11405_v38  ;;  %v748_v22 = vld [vmem:[#allocation7 + $0xb10] sm:$0xff]  ;;  %v11056_v31 = vcombine.high %v492_v20, %v500_v21  ;;  %v11055_v38 = vcombine.low %v492_v20, %v500_v21 }
 0x153   : > { %v6245_v28 = vpop.permute.xlu1 %6244  ;;  %v13709_v50 = vsel %vm6261_vm0, %v6257_v47, -inf  ;;  %5251 = vmatpush2.bf16.msra.mxu1 %v11661_v41  ;;  %5211 = vmatprep.subr.bf16.mxu0 %v11390_v42  ;;  %v756_v25 = vld [vmem:[#allocation7 + $0xb50] sm:$0xff] }
 0x154   : > { %v6256_v46 = vmul.f32 %v6254_v33, %v6245_v28  ;;  %5252 = vmatprep.subr.bf16.mxu1 %v11646_v43  ;;  %6264 = vmax.xlane.f32.xlu0 %v13709_v50  ;;  %v11312_v32 = vcombine.high %v748_v22, %v756_v25  ;;  %v476_v33 = vld [vmem:[#allocation7 + $0x290] sm:$0xff] }
 0x155   : > { %v740_v55 = vld [vmem:[#allocation7 + $0xad0] sm:$0xff]  ;;  %v11040_v40 = vcombine.high %v476_v33, %v484_v34  ;;  %v11039_v45 = vcombine.low %v476_v33, %v484_v34 }
 0x156   : > { %v6258_v51 = vadd.f32 %v6256_v46, %v6236_v39  ;;  %5212 = vmatpush2.bf16.msra.mxu0 %v11389_v49  ;;  %v11311_v39 = vcombine.low %v748_v22, %v756_v25  ;;  %v11296_v41 = vcombine.high %v732_v35, %v740_v55  ;;  %v460_v42 = vld [vmem:[#allocation7 + $0x210] sm:$0xff]  ;;  %v11295_v46 = vcombine.low %v732_v35, %v740_v55 }
 0x157   : > { %5253 = vmatpush2.bf16.msra.mxu1 %v11645_v52  ;;  %5213 = vmatprep.subr.bf16.mxu0 %v11374_v53  ;;  %v468_v28 = vld [vmem:[#allocation7 + $0x250] sm:$0xff] }
 0x158   : > { %v13714_v61 = vsel %vm6261_vm0, %v6258_v51, -inf  ;;  %5254 = vmatprep.subr.bf16.mxu1 %v11630_v56  ;;  %v716_v43 = vld [vmem:[#allocation7 + $0xa10] sm:$0xff]  ;;  %v11024_v47 = vcombine.high %v460_v42, %v468_v28  ;;  %v11023_v53 = vcombine.low %v460_v42, %v468_v28 }
 0x159   : > { %6266 = vmax.xlane.f32.xlu1 %v13714_v61  ;;  %v11280_v26 = vcombine.high %v716_v43, %v724_v44  ;;  %v452_v49 = vld [vmem:[#allocation7 + $0x1d0] sm:$0xff]  ;;  %v11279_v56 = vcombine.low %v716_v43, %v724_v44 }
 0x15a   : > { %5214 = vmatpush2.bf16.msra.mxu0 %v11373_v0  ;;  %v700_v51 = vld [vmem:[#allocation7 + $0x990] sm:$0xff]  ;;  %v11008_v57 = vcombine.high %v444_v48, %v452_v49 }
 0x15b   : > { %5255 = vmatpush2.bf16.msra.mxu1 %v11629_v1  ;;  %5215 = vmatprep.subr.bf16.mxu0 %v11358_v2  ;;  %v708_v52 = vld [vmem:[#allocation7 + $0x9d0] sm:$0xff]  ;;  %v11007_v2 = vcombine.low %v444_v48, %v452_v49 }
 0x15c   : > { %5256 = vmatprep.subr.bf16.mxu1 %v11614_v3  ;;  %v11264_v58 = vcombine.high %v700_v51, %v708_v52  ;;  %v684_v0 = vld [vmem:[#allocation7 + $0x910] sm:$0xff]  ;;  %v11263_v3 = vcombine.low %v700_v51, %v708_v52 }
 0x15d   : > { %v692_v1 = vld [vmem:[#allocation7 + $0x950] sm:$0xff] }
 0x15e   : > { %5216 = vmatpush2.bf16.msra.mxu0 %v11357_v8  ;;  %v11248_v5 = vcombine.high %v684_v0, %v692_v1  ;;  %v412_v6 = vld [vmem:[#allocation7 + $0x90] sm:$0xff] }
 0x15f   : > { %5257 = vmatpush2.bf16.msra.mxu1 %v11613_v9  ;;  %5217 = vmatprep.subr.bf16.mxu0 %v11342_v10  ;;  %v420_v7 = vld [vmem:[#allocation7 + $0xd0] sm:$0xff]  ;;  %v10991_v10 = vcombine.low %v428_v62, %v436_v63 }
 0x160   : > { %5258 = vmatprep.subr.bf16.mxu1 %v11598_v11  ;;  %v668_v8 = vld [vmem:[#allocation7 + $0x890] sm:$0xff]  ;;  %v11247_v11 = vcombine.low %v684_v0, %v692_v1  ;;  %v10976_v12 = vcombine.high %v412_v6, %v420_v7 }
 0x161   : > { %v676_v9 = vld [vmem:[#allocation7 + $0x8d0] sm:$0xff] }
 0x162   : > { %5218 = vmatpush2.bf16.msra.mxu0 %v11341_v16  ;;  %v11232_v13 = vcombine.high %v668_v8, %v676_v9  ;;  %v396_v14 = vld [vmem:[#allocation7 + $0x10] sm:$0xff] }
 0x163   : > { %5259 = vmatpush2.bf16.msra.mxu1 %v11597_v17  ;;  %5269 = vmatprep.subr.bf16.mxu0 %v11072_v18  ;;  %v404_v15 = vld [vmem:[#allocation7 + $0x50] sm:$0xff]  ;;  %v10975_v18 = vcombine.low %v412_v6, %v420_v7 }
 0x164   : > { %5310 = vmatprep.subr.bf16.mxu1 %v11328_v19  ;;  %v652_v16 = vld [vmem:[#allocation7 + $0x810] sm:$0xff]  ;;  %v11231_v19 = vcombine.low %v668_v8, %v676_v9  ;;  %v10960_v20 = vcombine.high %v396_v14, %v404_v15 }
 0x165   : > { %5220 = vmatmul.mubr.bf16.vlgmr.msra.gmra.mxu0 %v13673_v27  ;;  %v660_v17 = vld [vmem:[#allocation7 + $0x850] sm:$0xff] }
 0x166   : > { %5261 = vmatmul.mubr.bf16.vlgmr.msra.gmra.mxu1 %v13685_v37  ;;  %5270 = vmatpush1.bf16.msra.mxu0 %v11071_v29  ;;  %v11216_v21 = vcombine.high %v652_v16, %v660_v17  ;;  %v636_v22 = vld [vmem:[#allocation7 + $0x790] sm:$0xff] }
 0x167   : > { %5311 = vmatpush1.bf16.msra.mxu1 %v11327_v30  ;;  %5271 = vmatprep.subr.bf16.mxu0 %v11056_v31  ;;  %v644_v25 = vld [vmem:[#allocation7 + $0x7d0] sm:$0xff]  ;;  %v10959_v31 = vcombine.low %v396_v14, %v404_v15 }
 0x168   : > { %5312 = vmatprep.subr.bf16.mxu1 %v11312_v32  ;;  %5301 = vmatprep.mubr.bf16.mxu0 %v13639_v59  ;;  %v892_v29 = vld [vmem:[#allocation7 + $0xf90] sm:$0xff]  ;;  %v11215_v32 = vcombine.low %v652_v16, %v660_v17  ;;  %v11200_v33 = vcombine.high %v636_v22, %v644_v25 }
 0x169   : > { %5342 = vmatprep.mubr.bf16.mxu1 %v13643_v60  ;;  %v900_v30 = vld [vmem:[#allocation7 + $0xfd0] sm:$0xff] }
 0x16a   : > { %5272 = vmatpush1.bf16.msra.mxu0 %v11055_v38  ;;  %v11456_v34 = vcombine.high %v892_v29, %v900_v30  ;;  %v620_v35 = vld [vmem:[#allocation7 + $0x710] sm:$0xff] }
 0x16b   : > { %5313 = vmatpush1.bf16.msra.mxu1 %v11311_v39  ;;  %5273 = vmatprep.subr.bf16.mxu0 %v11040_v40  ;;  %v628_v55 = vld [vmem:[#allocation7 + $0x750] sm:$0xff]  ;;  %v11199_v40 = vcombine.low %v636_v22, %v644_v25 }
 0x16c   : > { %5314 = vmatprep.subr.bf16.mxu1 %v11296_v41  ;;  %v876_v38 = vld [vmem:[#allocation7 + $0xf10] sm:$0xff]  ;;  %v11455_v41 = vcombine.low %v892_v29, %v900_v30  ;;  %v11184_v42 = vcombine.high %v620_v35, %v628_v55 }
 0x16d   : > { %v884_v39 = vld [vmem:[#allocation7 + $0xf50] sm:$0xff] }
 0x16e   : > { %5274 = vmatpush1.bf16.msra.mxu0 %v11039_v45  ;;  %v11440_v28 = vcombine.high %v876_v38, %v884_v39  ;;  %v604_v43 = vld [vmem:[#allocation7 + $0x690] sm:$0xff] }
 0x16f   : > { %5315 = vmatpush1.bf16.msra.mxu1 %v11295_v46  ;;  %5275 = vmatprep.subr.bf16.mxu0 %v11024_v47  ;;  %v612_v44 = vld [vmem:[#allocation7 + $0x6d0] sm:$0xff]  ;;  %v11183_v47 = vcombine.low %v620_v35, %v628_v55 }
 0x170   : > { %5316 = vmatprep.subr.bf16.mxu1 %v11280_v26  ;;  %v860_v45 = vld [vmem:[#allocation7 + $0xe90] sm:$0xff]  ;;  %v11439_v26 = vcombine.low %v876_v38, %v884_v39  ;;  %v11168_v48 = vcombine.high %v604_v43, %v612_v44 }
 0x171   : > { %v868_v46 = vld [vmem:[#allocation7 + $0xed0] sm:$0xff] }
 0x172   : > { %5276 = vmatpush1.bf16.msra.mxu0 %v11023_v53  ;;  %v11424_v49 = vcombine.high %v860_v45, %v868_v46  ;;  %v588_v51 = vld [vmem:[#allocation7 + $0x610] sm:$0xff] }
 0x173   : > { %5317 = vmatpush1.bf16.msra.mxu1 %v11279_v56  ;;  %5277 = vmatprep.subr.bf16.mxu0 %v11008_v57  ;;  %v596_v52 = vld [vmem:[#allocation7 + $0x650] sm:$0xff]  ;;  %v11167_v57 = vcombine.low %v604_v43, %v612_v44 }
 0x174   : > { %5318 = vmatprep.subr.bf16.mxu1 %v11264_v58  ;;  %v844_v53 = vld [vmem:[#allocation7 + $0xe10] sm:$0xff]  ;;  %v11423_v58 = vcombine.low %v860_v45, %v868_v46  ;;  %v11152_v62 = vcombine.high %v588_v51, %v596_v52 }
 0x175   : > { %v852_v56 = vld [vmem:[#allocation7 + $0xe50] sm:$0xff] }
 0x176   : > { %5278 = vmatpush1.bf16.msra.mxu0 %v11007_v2  ;;  %v11408_v63 = vcombine.high %v844_v53, %v852_v56  ;;  %v572_v0 = vld [vmem:[#allocation7 + $0x590] sm:$0xff] }
 0x177   : > { %5319 = vmatpush1.bf16.msra.mxu1 %v11263_v3  ;;  %5279 = vmatprep.subr.bf16.mxu0 %v10992_v4  ;;  %v580_v1 = vld [vmem:[#allocation7 + $0x5d0] sm:$0xff]  ;;  %v11151_v4 = vcombine.low %v588_v51, %v596_v52 }
 0x178   : > { %5320 = vmatprep.subr.bf16.mxu1 %v11248_v5  ;;  %v828_v2 = vld [vmem:[#allocation7 + $0xd90] sm:$0xff]  ;;  %v11407_v5 = vcombine.low %v844_v53, %v852_v56  ;;  %v11136_v6 = vcombine.high %v572_v0, %v580_v1 }
 0x179   : > { %v836_v3 = vld [vmem:[#allocation7 + $0xdd0] sm:$0xff] }
 0x17a   : > { %5280 = vmatpush1.bf16.msra.mxu0 %v10991_v10  ;;  %v11392_v7 = vcombine.high %v828_v2, %v836_v3  ;;  %v556_v8 = vld [vmem:[#allocation7 + $0x510] sm:$0xff] }
 0x17b   : > { %5321 = vmatpush1.bf16.msra.mxu1 %v11247_v11  ;;  %5281 = vmatprep.subr.bf16.mxu0 %v10976_v12  ;;  %v564_v9 = vld [vmem:[#allocation7 + $0x550] sm:$0xff]  ;;  %v11135_v12 = vcombine.low %v572_v0, %v580_v1 }
 0x17c   : > { %5322 = vmatprep.subr.bf16.mxu1 %v11232_v13  ;;  %v812_v10 = vld [vmem:[#allocation7 + $0xd10] sm:$0xff]  ;;  %v11391_v13 = vcombine.low %v828_v2, %v836_v3  ;;  %v11120_v14 = vcombine.high %v556_v8, %v564_v9 }
 0x17d   : > { %v820_v11 = vld [vmem:[#allocation7 + $0xd50] sm:$0xff] }
 0x17e   : > { %5282 = vmatpush1.bf16.msra.mxu0 %v10975_v18  ;;  %v11376_v15 = vcombine.high %v812_v10, %v820_v11  ;;  %v540_v16 = vld [vmem:[#allocation7 + $0x490] sm:$0xff] }
 0x17f   : > { %5323 = vmatpush1.bf16.msra.mxu1 %v11231_v19  ;;  %5283 = vmatprep.subr.bf16.mxu0 %v10960_v20  ;;  %v548_v17 = vld [vmem:[#allocation7 + $0x4d0] sm:$0xff]  ;;  %v11119_v20 = vcombine.low %v556_v8, %v564_v9 }
 0x180   : > { %5324 = vmatprep.subr.bf16.mxu1 %v11216_v21  ;;  %v796_v18 = vld [vmem:[#allocation7 + $0xc90] sm:$0xff]  ;;  %v11375_v21 = vcombine.low %v812_v10, %v820_v11  ;;  %v11104_v22 = vcombine.high %v540_v16, %v548_v17  ;;  %v461_v11 = vld [vmem:[#allocation7 + $0x218] sm:$0xff] }
 0x181   : > { %v804_v19 = vld [vmem:[#allocation7 + $0xcd0] sm:$0xff] }
 0x182   : > { %5284 = vmatpush1.bf16.msra.mxu0 %v10959_v31  ;;  %v11360_v25 = vcombine.high %v796_v18, %v804_v19  ;;  %v524_v29 = vld [vmem:[#allocation7 + $0x410] sm:$0xff] }
 0x183   : > { %5325 = vmatpush1.bf16.msra.mxu1 %v11215_v32  ;;  %5285 = vmatprep.subr.bf16.mxu0 %v11200_v33  ;;  %v532_v30 = vld [vmem:[#allocation7 + $0x450] sm:$0xff]  ;;  %v11103_v33 = vcombine.low %v540_v16, %v548_v17 }
 0x184   : > { %5326 = vmatprep.subr.bf16.mxu1 %v11456_v34  ;;  %v780_v31 = vld [vmem:[#allocation7 + $0xc10] sm:$0xff]  ;;  %v11359_v34 = vcombine.low %v796_v18, %v804_v19  ;;  %v11088_v35 = vcombine.high %v524_v29, %v532_v30 }
 0x185   : > { %v788_v32 = vld [vmem:[#allocation7 + $0xc50] sm:$0xff] }
 0x186   : > { %5286 = vmatpush2.bf16.msra.mxu0 %v11199_v40  ;;  %v11344_v55 = vcombine.high %v780_v31, %v788_v32  ;;  %v1020_v38 = vld [vmem:[#allocation7 + $0x1390] sm:$0xff]  ;;  %v509_v40 = vld [vmem:[#allocation7 + $0x398] sm:$0xff] }
 0x187   : > { %5327 = vmatpush2.bf16.msra.mxu1 %v11455_v41  ;;  %5287 = vmatprep.subr.bf16.mxu0 %v11184_v42  ;;  %v1028_v39 = vld [vmem:[#allocation7 + $0x13d0] sm:$0xff]  ;;  %v517_v41 = vld [vmem:[#allocation7 + $0x3d8] sm:$0xff]  ;;  %v11087_v42 = vcombine.low %v524_v29, %v532_v30 }
 0x188   : > { %5328 = vmatprep.subr.bf16.mxu1 %v11440_v28  ;;  %v11343_v28 = vcombine.low %v780_v31, %v788_v32  ;;  %v11584_v43 = vcombine.high %v1020_v38, %v1028_v39  ;;  %v11074_v44 = vcombine.high %v509_v40, %v517_v41  ;;  %v1004_v45 = vld [vmem:[#allocation7 + $0x1310] sm:$0xff] }
 0x189   : > { %v1012_v46 = vld [vmem:[#allocation7 + $0x1350] sm:$0xff] }
 0x18a   : > { %5288 = vmatpush2.bf16.msra.mxu0 %v11183_v47  ;;  %v493_v47 = vld [vmem:[#allocation7 + $0x318] sm:$0xff]  ;;  %v11568_v51 = vcombine.high %v1004_v45, %v1012_v46  ;;  %v988_v53 = vld [vmem:[#allocation7 + $0x1290] sm:$0xff]  ;;  %v11567_v0 = vcombine.low %v1004_v45, %v1012_v46 }
 0x18b   : > { %5329 = vmatpush2.bf16.msra.mxu1 %v11439_v26  ;;  %5289 = vmatprep.subr.bf16.mxu0 %v11168_v48  ;;  %v501_v26 = vld [vmem:[#allocation7 + $0x358] sm:$0xff]  ;;  %v11583_v48 = vcombine.low %v1020_v38, %v1028_v39  ;;  %v996_v56 = vld [vmem:[#allocation7 + $0x12d0] sm:$0xff] }
 0x18c   : > { %5330 = vmatprep.subr.bf16.mxu1 %v11424_v49  ;;  %v11073_v49 = vcombine.low %v509_v40, %v517_v41  ;;  %v11058_v52 = vcombine.high %v493_v47, %v501_v26  ;;  %v11057_v3 = vcombine.low %v493_v47, %v501_v26  ;;  %v980_v8 = vld [vmem:[#allocation7 + $0x1250] sm:$0xff] }
 0x18e   : > { %5290 = vmatpush2.bf16.msra.mxu0 %v11167_v57 }
 0x18f   : > { %5331 = vmatpush2.bf16.msra.mxu1 %v11423_v58  ;;  %5291 = vmatprep.subr.bf16.mxu0 %v11152_v62  ;;  %v477_v58 = vld [vmem:[#allocation7 + $0x298] sm:$0xff] }
 0x190   : > { %5332 = vmatprep.subr.bf16.mxu1 %v11408_v63  ;;  %v485_v62 = vld [vmem:[#allocation7 + $0x2d8] sm:$0xff] }
 0x191   : > { %v11041_v16 = vcombine.low %v477_v58, %v485_v62 }
 0x192   : > { %5292 = vmatpush2.bf16.msra.mxu0 %v11151_v4  ;;  %v11552_v4 = vcombine.high %v988_v53, %v996_v56 }
 0x193   : > { %5333 = vmatpush2.bf16.msra.mxu1 %v11407_v5  ;;  %5293 = vmatprep.subr.bf16.mxu0 %v11136_v6  ;;  %v11042_v6 = vcombine.high %v477_v58, %v485_v62  ;;  %v1148_v62 = vld [vmem:[#allocation7 + $0x1790] sm:$0xff] }
 0x194   : > { %5334 = vmatprep.subr.bf16.mxu1 %v11392_v7  ;;  %v972_v7 = vld [vmem:[#allocation7 + $0x1210] sm:$0xff] }
 0x195   : > { %v11536_v17 = vcombine.high %v972_v7, %v980_v8  ;;  %v11535_v29 = vcombine.low %v972_v7, %v980_v8  ;;  %v1132_v7 = vld [vmem:[#allocation7 + $0x1710] sm:$0xff] }
 0x196   : > { %5294 = vmatpush2.bf16.msra.mxu0 %v11135_v12  ;;  %v469_v12 = vld [vmem:[#allocation7 + $0x258] sm:$0xff]  ;;  %v1140_v8 = vld [vmem:[#allocation7 + $0x1750] sm:$0xff] }
 0x197   : > { %5335 = vmatpush2.bf16.msra.mxu1 %v11391_v13  ;;  %5295 = vmatprep.subr.bf16.mxu0 %v11120_v14  ;;  %v11551_v14 = vcombine.low %v988_v53, %v996_v56  ;;  %v11026_v19 = vcombine.high %v461_v11, %v469_v12  ;;  %v11025_v30 = vcombine.low %v461_v11, %v469_v12  ;;  %v629_v11 = vld [vmem:[#allocation7 + $0x758] sm:$0xff] }
 0x198   : > { %5336 = vmatprep.subr.bf16.mxu1 %v11376_v15 }
 0x19a   : > { %5296 = vmatpush2.bf16.msra.mxu0 %v11119_v20  ;;  %v956_v20 = vld [vmem:[#allocation7 + $0x1190] sm:$0xff] }
 0x19b   : > { %5337 = vmatpush2.bf16.msra.mxu1 %v11375_v21  ;;  %5297 = vmatprep.subr.bf16.mxu0 %v11104_v22  ;;  %v964_v21 = vld [vmem:[#allocation7 + $0x11d0] sm:$0xff]  ;;  %v445_v22 = vld [vmem:[#allocation7 + $0x198] sm:$0xff] }
 0x19c   : > { %5338 = vmatprep.subr.bf16.mxu1 %v11360_v25  ;;  %v453_v25 = vld [vmem:[#allocation7 + $0x1d8] sm:$0xff]  ;;  %v11520_v31 = vcombine.high %v956_v20, %v964_v21  ;;  %v11519_v38 = vcombine.low %v956_v20, %v964_v21  ;;  %v11695_v20 = vcombine.low %v1132_v7, %v1140_v8 }
 0x19d   : > { %v11010_v32 = vcombine.high %v445_v22, %v453_v25  ;;  %v11009_v39 = vcombine.low %v445_v22, %v453_v25 }
 0x19e   : > { %5298 = vmatpush2.bf16.msra.mxu0 %v11103_v33  ;;  %v940_v33 = vld [vmem:[#allocation7 + $0x1110] sm:$0xff] }
 0x19f   : > { %5339 = vmatpush2.bf16.msra.mxu1 %v11359_v34  ;;  %5299 = vmatprep.subr.bf16.mxu0 %v11088_v35  ;;  %v948_v34 = vld [vmem:[#allocation7 + $0x1150] sm:$0xff]  ;;  %v429_v35 = vld [vmem:[#allocation7 + $0x118] sm:$0xff] }
 0x1a0   : > { %5340 = vmatprep.subr.bf16.mxu1 %v11344_v55  ;;  %v437_v55 = vld [vmem:[#allocation7 + $0x158] sm:$0xff]  ;;  %v11504_v40 = vcombine.high %v940_v33, %v948_v34  ;;  %v11503_v45 = vcombine.low %v940_v33, %v948_v34 }
 0x1a1   : > { %v10994_v41 = vcombine.high %v429_v35, %v437_v55  ;;  %v10993_v46 = vcombine.low %v429_v35, %v437_v55 }
 0x1a2   : > { %5300 = vmatpush2.bf16.msra.mxu0 %v11087_v42  ;;  %v924_v42 = vld [vmem:[#allocation7 + $0x1090] sm:$0xff] }
 0x1a3   : > { %5341 = vmatpush2.bf16.msra.mxu1 %v11343_v28  ;;  %5351 = vmatprep.subr.bf16.mxu0 %v11584_v43  ;;  %v932_v28 = vld [vmem:[#allocation7 + $0x10d0] sm:$0xff]  ;;  %v413_v43 = vld [vmem:[#allocation7 + $0x98] sm:$0xff] }
 0x1a4   : > { %5392 = vmatprep.subr.bf16.mxu1 %v11074_v44  ;;  %v421_v44 = vld [vmem:[#allocation7 + $0xd8] sm:$0xff]  ;;  %v11488_v47 = vcombine.high %v924_v42, %v932_v28  ;;  %v11487_v53 = vcombine.low %v924_v42, %v932_v28 }
 0x1a5   : > { %v5057_v57 = vpop.f32.mrf.mxu0  ;;  %5302 = vmatmul.mubr.bf16.vlgmr.msra.gmra.mxu0 %v13667_v23  ;;  %v10978_v26 = vcombine.high %v413_v43, %v421_v44  ;;  %v10977_v56 = vcombine.low %v413_v43, %v421_v44 }
 0x1a6   : > { %v5098_v63 = vpop.f32.mrf.mxu1  ;;  %5343 = vmatmul.mubr.bf16.vlgmr.msra.gmra.mxu1 %v13673_v27  ;;  %5352 = vmatpush1.bf16.msra.mxu0 %v11583_v48  ;;  %v908_v48 = vld [vmem:[#allocation7 + $0x1010] sm:$0xff] }
 0x1a7   : > { %v13723_v1 = vadd.f32 %v5098_v63, %v5057_v57  ;;  %5393 = vmatpush1.bf16.msra.mxu1 %v11073_v49  ;;  %v5059_v2 = vpop.f32.mrf.mxu0  ;;  %5353 = vmatprep.subr.bf16.mxu0 %v11568_v51  ;;  %v916_v49 = vld [vmem:[#allocation7 + $0x1050] sm:$0xff]  ;;  %v397_v51 = vld [vmem:[#allocation7 + $0x18] sm:$0xff] }
 0x1a8   : > { %v5100_v5 = vpop.f32.mrf.mxu1  ;;  %5394 = vmatprep.subr.bf16.mxu1 %v11058_v52  ;;  %5383 = vmatprep.mubr.bf16.mxu0 %v13677_v54  ;;  %v405_v52 = vld [vmem:[#allocation7 + $0x58] sm:$0xff]  ;;  %v11472_v57 = vcombine.high %v908_v48, %v916_v49  ;;  %v1156_v63 = vld [vmem:[#allocation7 + $0x17d0] sm:$0xff] }
 0x1a9   : > { %v13726_v9 = vadd.f32 %v5100_v5, %v5059_v2  ;;  %v5061_v10 = vpop.f32.mrf.mxu0  ;;  %5424 = vmatprep.mubr.bf16.mxu1 %v13639_v59  ;;  %v10962_v58 = vcombine.high %v397_v51, %v405_v52  ;;  %v645_v2 = vld [vmem:[#allocation7 + $0x7d8] sm:$0xff]  ;;  %v11712_v5 = vcombine.high %v1148_v62, %v1156_v63  ;;  %v11711_v12 = vcombine.low %v1148_v62, %v1156_v63 }
 0x1aa   : > { %v5102_v13 = vpop.f32.mrf.mxu1  ;;  %5354 = vmatpush1.bf16.msra.mxu0 %v11567_v0  ;;  %v637_v0 = vld [vmem:[#allocation7 + $0x798] sm:$0xff] }
 0x1ab   : > { %5395 = vmatpush1.bf16.msra.mxu1 %v11057_v3  ;;  %v5062_v15 = vpop.f32.mrf.mxu0  ;;  %5355 = vmatprep.subr.bf16.mxu0 %v11552_v4  ;;  %v11471_v3 = vcombine.low %v908_v48, %v916_v49  ;;  %v10961_v4 = vcombine.low %v397_v51, %v405_v52  ;;  %v621_v10 = vld [vmem:[#allocation7 + $0x718] sm:$0xff]  ;;  %v11201_v13 = vcombine.low %v637_v0, %v645_v2 }
 0x1ac   : > { %v5103_v18 = vpop.f32.mrf.mxu1  ;;  %5396 = vmatprep.subr.bf16.mxu1 %v11042_v6  ;;  %v11202_v6 = vcombine.high %v637_v0, %v645_v2  ;;  %v11186_v15 = vcombine.high %v621_v10, %v629_v11  ;;  %v11185_v21 = vcombine.low %v621_v10, %v629_v11 }
 0x1ad   : > { %v605_v18 = vld [vmem:[#allocation7 + $0x698] sm:$0xff] }
 0x1ae   : > { %5356 = vmatpush1.bf16.msra.mxu0 %v11551_v14  ;;  %v11696_v14 = vcombine.high %v1132_v7, %v1140_v8 }
 0x1af   : > { %5397 = vmatpush1.bf16.msra.mxu1 %v11041_v16  ;;  %5357 = vmatprep.subr.bf16.mxu0 %v11536_v17  ;;  %v1116_v16 = vld [vmem:[#allocation7 + $0x1690] sm:$0xff] }
 0x1b0   : > { %5398 = vmatprep.subr.bf16.mxu1 %v11026_v19  ;;  %v1124_v17 = vld [vmem:[#allocation7 + $0x16d0] sm:$0xff]  ;;  %v613_v19 = vld [vmem:[#allocation7 + $0x6d8] sm:$0xff] }
 0x1b1   : > { %v11680_v22 = vcombine.high %v1116_v16, %v1124_v17  ;;  %v11170_v25 = vcombine.high %v605_v18, %v613_v19  ;;  %v11679_v33 = vcombine.low %v1116_v16, %v1124_v17  ;;  %v11169_v34 = vcombine.low %v605_v18, %v613_v19 }
 0x1b2   : > { %5358 = vmatpush1.bf16.msra.mxu0 %v11535_v29  ;;  %v1100_v29 = vld [vmem:[#allocation7 + $0x1610] sm:$0xff] }
 0x1b3   : > { %5399 = vmatpush1.bf16.msra.mxu1 %v11025_v30  ;;  %5359 = vmatprep.subr.bf16.mxu0 %v11520_v31  ;;  %v1108_v30 = vld [vmem:[#allocation7 + $0x1650] sm:$0xff]  ;;  %v589_v31 = vld [vmem:[#allocation7 + $0x618] sm:$0xff] }
 0x1b4   : > { %5400 = vmatprep.subr.bf16.mxu1 %v11010_v32  ;;  %v597_v32 = vld [vmem:[#allocation7 + $0x658] sm:$0xff]  ;;  %v11664_v35 = vcombine.high %v1100_v29, %v1108_v30  ;;  %v11663_v42 = vcombine.low %v1100_v29, %v1108_v30 }
 0x1b5   : > { %v11154_v55 = vcombine.high %v589_v31, %v597_v32  ;;  %v11153_v28 = vcombine.low %v589_v31, %v597_v32  ;;  %v757_v29 = vld [vmem:[#allocation7 + $0xb58] sm:$0xff] }
 0x1b6   : > { %5360 = vmatpush1.bf16.msra.mxu0 %v11519_v38  ;;  %v1084_v38 = vld [vmem:[#allocation7 + $0x1590] sm:$0xff]  ;;  %v1013_v32 = vld [vmem:[#allocation7 + $0x1358] sm:$0xff] }
 0x1b7   : > { %5401 = vmatpush1.bf16.msra.mxu1 %v11009_v39  ;;  %5361 = vmatprep.subr.bf16.mxu0 %v11504_v40  ;;  %v1092_v39 = vld [vmem:[#allocation7 + $0x15d0] sm:$0xff]  ;;  %v573_v40 = vld [vmem:[#allocation7 + $0x598] sm:$0xff] }
 0x1b8   : > { %5402 = vmatprep.subr.bf16.mxu1 %v10994_v41  ;;  %v581_v41 = vld [vmem:[#allocation7 + $0x5d8] sm:$0xff]  ;;  %v11648_v43 = vcombine.high %v1084_v38, %v1092_v39  ;;  %v11647_v48 = vcombine.low %v1084_v38, %v1092_v39 }
 0x1b9   : > { %v11138_v44 = vcombine.high %v573_v40, %v581_v41  ;;  %v11137_v49 = vcombine.low %v573_v40, %v581_v41  ;;  %v733_v39 = vld [vmem:[#allocation7 + $0xa98] sm:$0xff] }
 0x1ba   : > { %5362 = vmatpush1.bf16.msra.mxu0 %v11503_v45  ;;  %v1068_v45 = vld [vmem:[#allocation7 + $0x1510] sm:$0xff]  ;;  %v741_v40 = vld [vmem:[#allocation7 + $0xad8] sm:$0xff] }
 0x1bb   : > { %5403 = vmatpush1.bf16.msra.mxu1 %v10993_v46  ;;  %5363 = vmatprep.subr.bf16.mxu0 %v11488_v47  ;;  %v1076_v46 = vld [vmem:[#allocation7 + $0x1550] sm:$0xff]  ;;  %v557_v47 = vld [vmem:[#allocation7 + $0x518] sm:$0xff] }
 0x1bc   : > { %5404 = vmatprep.subr.bf16.mxu1 %v10978_v26  ;;  %v565_v26 = vld [vmem:[#allocation7 + $0x558] sm:$0xff]  ;;  %v11632_v51 = vcombine.high %v1068_v45, %v1076_v46  ;;  %v11631_v62 = vcombine.low %v1068_v45, %v1076_v46 }
 0x1bd   : > { %v11122_v52 = vcombine.high %v557_v47, %v565_v26  ;;  %v11121_v63 = vcombine.low %v557_v47, %v565_v26 }
 0x1be   : > { %5364 = vmatpush1.bf16.msra.mxu0 %v11487_v53  ;;  %v1052_v53 = vld [vmem:[#allocation7 + $0x1490] sm:$0xff] }
 0x1bf   : > { %5405 = vmatpush1.bf16.msra.mxu1 %v10977_v56  ;;  %5365 = vmatprep.subr.bf16.mxu0 %v11472_v57  ;;  %v1060_v56 = vld [vmem:[#allocation7 + $0x14d0] sm:$0xff]  ;;  %v541_v57 = vld [vmem:[#allocation7 + $0x498] sm:$0xff] }
 0x1c0   : > { %5406 = vmatprep.subr.bf16.mxu1 %v10962_v58  ;;  %v549_v58 = vld [vmem:[#allocation7 + $0x4d8] sm:$0xff]  ;;  %v11616_v0 = vcombine.high %v1052_v53, %v1060_v56  ;;  %v11615_v7 = vcombine.low %v1052_v53, %v1060_v56 }
 0x1c1   : > { %v11106_v2 = vcombine.high %v541_v57, %v549_v58  ;;  %v11105_v8 = vcombine.low %v541_v57, %v549_v58  ;;  %v725_v53 = vld [vmem:[#allocation7 + $0xa58] sm:$0xff] }
 0x1c2   : > { %5366 = vmatpush1.bf16.msra.mxu0 %v11471_v3  ;;  %v1036_v3 = vld [vmem:[#allocation7 + $0x1410] sm:$0xff]  ;;  %v973_v57 = vld [vmem:[#allocation7 + $0x1218] sm:$0xff] }
 0x1c3   : > { %5407 = vmatpush1.bf16.msra.mxu1 %v10961_v4  ;;  %5367 = vmatprep.subr.bf16.mxu0 %v11712_v5  ;;  %v1044_v4 = vld [vmem:[#allocation7 + $0x1450] sm:$0xff]  ;;  %v525_v5 = vld [vmem:[#allocation7 + $0x418] sm:$0xff] }
 0x1c4   : > { %5408 = vmatprep.subr.bf16.mxu1 %v11202_v6  ;;  %v533_v6 = vld [vmem:[#allocation7 + $0x458] sm:$0xff]  ;;  %v11600_v10 = vcombine.high %v1036_v3, %v1044_v4  ;;  %v11599_v17 = vcombine.low %v1036_v3, %v1044_v4 }
 0x1c5   : > { %v11090_v11 = vcombine.high %v525_v5, %v533_v6  ;;  %v11089_v19 = vcombine.low %v525_v5, %v533_v6  ;;  %v981_v58 = vld [vmem:[#allocation7 + $0x1258] sm:$0xff] }
 0x1c6   : > { %5368 = vmatpush2.bf16.msra.mxu0 %v11711_v12  ;;  %v765_v12 = vld [vmem:[#allocation7 + $0xb98] sm:$0xff]  ;;  %v11538_v5 = vcombine.high %v973_v57, %v981_v58 }
 0x1c7   : > { %5409 = vmatpush2.bf16.msra.mxu1 %v11201_v13  ;;  %5369 = vmatprep.subr.bf16.mxu0 %v11696_v14  ;;  %v773_v13 = vld [vmem:[#allocation7 + $0xbd8] sm:$0xff] }
 0x1c8   : > { %5410 = vmatprep.subr.bf16.mxu1 %v11186_v15  ;;  %v1021_v14 = vld [vmem:[#allocation7 + $0x1398] sm:$0xff] }
 0x1c9   : > { %v1029_v15 = vld [vmem:[#allocation7 + $0x13d8] sm:$0xff] }
 0x1ca   : > { %5370 = vmatpush2.bf16.msra.mxu0 %v11695_v20  ;;  %v11330_v20 = vcombine.high %v765_v12, %v773_v13  ;;  %v701_v6 = vld [vmem:[#allocation7 + $0x998] sm:$0xff] }
 0x1cb   : > { %5411 = vmatpush2.bf16.msra.mxu1 %v11185_v21  ;;  %5371 = vmatprep.subr.bf16.mxu0 %v11680_v22  ;;  %v11586_v22 = vcombine.high %v1021_v14, %v1029_v15 }
 0x1cc   : > { %5412 = vmatprep.subr.bf16.mxu1 %v11170_v25  ;;  %v749_v25 = vld [vmem:[#allocation7 + $0xb18] sm:$0xff] }
 0x1cd   : > { %v11313_v46 = vcombine.low %v749_v25, %v757_v29 }
 0x1ce   : > { %5372 = vmatpush2.bf16.msra.mxu0 %v11679_v33 }
 0x1cf   : > { %5413 = vmatpush2.bf16.msra.mxu1 %v11169_v34  ;;  %5373 = vmatprep.subr.bf16.mxu0 %v11664_v35  ;;  %v11329_v34 = vcombine.low %v765_v12, %v773_v13  ;;  %v11537_v12 = vcombine.low %v973_v57, %v981_v58 }
 0x1d0   : > { %5414 = vmatprep.subr.bf16.mxu1 %v11154_v55  ;;  %v11314_v55 = vcombine.high %v749_v25, %v757_v29  ;;  %v669_v29 = vld [vmem:[#allocation7 + $0x898] sm:$0xff] }
 0x1d2   : > { %5374 = vmatpush2.bf16.msra.mxu0 %v11663_v42  ;;  %v989_v42 = vld [vmem:[#allocation7 + $0x1298] sm:$0xff] }
 0x1d3   : > { %5415 = vmatpush2.bf16.msra.mxu1 %v11153_v28  ;;  %5375 = vmatprep.subr.bf16.mxu0 %v11648_v43  ;;  %v997_v28 = vld [vmem:[#allocation7 + $0x12d8] sm:$0xff] }
 0x1d4   : > { %5416 = vmatprep.subr.bf16.mxu1 %v11138_v44 }
 0x1d6   : > { %5376 = vmatpush2.bf16.msra.mxu0 %v11647_v48  ;;  %v11298_v48 = vcombine.high %v733_v39, %v741_v40 }
 0x1d7   : > { %5417 = vmatpush2.bf16.msra.mxu1 %v11137_v49  ;;  %5377 = vmatprep.subr.bf16.mxu0 %v11632_v51 }
 0x1d8   : > { %5418 = vmatprep.subr.bf16.mxu1 %v11122_v52  ;;  %v11554_v52 = vcombine.high %v989_v42, %v997_v28 }
 0x1da   : > { %5378 = vmatpush2.bf16.msra.mxu0 %v11631_v62 }
 0x1db   : > { %5419 = vmatpush2.bf16.msra.mxu1 %v11121_v63  ;;  %5379 = vmatprep.subr.bf16.mxu0 %v11616_v0  ;;  %v11297_v63 = vcombine.low %v733_v39, %v741_v40  ;;  %v661_v39 = vld [vmem:[#allocation7 + $0x858] sm:$0xff] }
 0x1dc   : > { %5420 = vmatprep.subr.bf16.mxu1 %v11106_v2  ;;  %v11553_v2 = vcombine.low %v989_v42, %v997_v28  ;;  %v909_v40 = vld [vmem:[#allocation7 + $0x1018] sm:$0xff] }
 0x1dd   : > { %v6265_v16 = vpop.xlane.xlu0 %6264 }
 0x1de   : > { %5380 = vmatpush2.bf16.msra.mxu0 %v11615_v7  ;;  %vm6268_vm1 = vcmp.eq.f32.partialorder %v13709_v50, %v6265_v16  ;;  %v1005_v50 = vld [vmem:[#allocation7 + $0x1318] sm:$0xff] }
 0x1df   : > { %5421 = vmatpush2.bf16.msra.mxu1 %v11105_v8  ;;  %5381 = vmatprep.subr.bf16.mxu0 %v11600_v10  ;;  %v13731_v21 = vsel %vm6268_vm1, %v13704_v24, 128  ;;  %v11570_v38 = vcombine.high %v1005_v50, %v1013_v32  ;;  %v11569_v26 = vcombine.low %v1005_v50, %v1013_v32  ;;  %v709_v7 = vld [vmem:[#allocation7 + $0x9d8] sm:$0xff] }
 0x1e0   : > { %5422 = vmatprep.subr.bf16.mxu1 %v11090_v11  ;;  %v6273_v31 = vshra.s32 %v13731_v21, 16  ;;  %v957_v8 = vld [vmem:[#allocation7 + $0x1198] sm:$0xff]  ;;  %v11266_v13 = vcombine.high %v701_v6, %v709_v7 }
 0x1e1   : > { %v965_v10 = vld [vmem:[#allocation7 + $0x11d8] sm:$0xff] }
 0x1e2   : > { %v6267_v18 = vpop.xlane.xlu1 %6266  ;;  %5382 = vmatpush2.bf16.msra.mxu0 %v11599_v17  ;;  %v13739_v35 = vcvt.s32.f32 %v6273_v31  ;;  %v693_v16 = vld [vmem:[#allocation7 + $0x958] sm:$0xff] }
 0x1e3   : > { %vm6269_vm2 = vcmp.eq.f32.partialorder %v13714_v61, %v6267_v18  ;;  %5423 = vmatpush2.bf16.msra.mxu1 %v11089_v19  ;;  %5433 = vmatprep.subr.bf16.mxu0 %v11330_v20  ;;  %v11585_v61 = vcombine.low %v1021_v14, %v1029_v15  ;;  %v11522_v14 = vcombine.high %v957_v8, %v965_v10  ;;  %v685_v15 = vld [vmem:[#allocation7 + $0x918] sm:$0xff] }
 0x1e4   : > { %v13735_v30 = vsel %vm6269_vm2, %v13704_v24, 128  ;;  %5474 = vmatprep.subr.bf16.mxu1 %v11586_v22  ;;  %6276 = vmin.xlane.f32.xlu0 %v13739_v35  ;;  %v941_v17 = vld [vmem:[#allocation7 + $0x1118] sm:$0xff]  ;;  %v11265_v19 = vcombine.low %v701_v6, %v709_v7  ;;  %v11521_v20 = vcombine.low %v957_v8, %v965_v10  ;;  %v11250_v22 = vcombine.high %v685_v15, %v693_v16 }
 0x1e5   : > { %v6287_v33 = vshra.s32 %v13735_v30, 16  ;;  %v5139_v41 = vpop.f32.mrf.mxu0  ;;  %5384 = vmatmul.mubr.bf16.vlgmr.msra.gmra.mxu0 %v13685_v37  ;;  %v949_v18 = vld [vmem:[#allocation7 + $0x1158] sm:$0xff] }
 0x1e6   : > { %v13746_v44 = vadd.f32 %v5139_v41, %v13723_v1  ;;  %v13748_v45 = vpop.f32.mrf.mxu1  ;;  %5425 = vmatmul.mubr.bf16.vlgmr.msra.gmra.mxu1 %v13667_v23  ;;  %5434 = vmatpush1.bf16.msra.mxu0 %v11329_v34  ;;  %v717_v1 = vld [vmem:[#allocation7 + $0xa18] sm:$0xff]  ;;  %v11506_v25 = vcombine.high %v941_v17, %v949_v18  ;;  %v11505_v34 = vcombine.low %v941_v17, %v949_v18 }
 0x1e7   : > { %v13743_v43 = vcvt.s32.f32 %v6287_v33  ;;  %5475 = vmatpush1.bf16.msra.mxu1 %v11585_v61  ;;  %v5141_v47 = vpop.f32.mrf.mxu0  ;;  %5435 = vmatprep.subr.bf16.mxu0 %v11314_v55  ;;  %v11282_v3 = vcombine.high %v717_v1, %v725_v53  ;;  %v11281_v11 = vcombine.low %v717_v1, %v725_v53  ;;  %v677_v31 = vld [vmem:[#allocation7 + $0x8d8] sm:$0xff]  ;;  %v11249_v33 = vcombine.low %v685_v15, %v693_v16 }
 0x1e8   : > { %v13752_v49 = vadd.f32 %v5141_v47, %v13726_v9  ;;  %v13754_v51 = vpop.f32.mrf.mxu1  ;;  %5476 = vmatprep.subr.bf16.mxu1 %v11570_v38  ;;  %5465 = vmatprep.mubr.bf16.mxu0 %v13643_v60  ;;  %v925_v50 = vld [vmem:[#allocation7 + $0x1098] sm:$0xff]  ;;  %v11234_v61 = vcombine.high %v669_v29, %v677_v31  ;;  %v11233_v42 = vcombine.low %v669_v29, %v677_v31 }
 0x1e9   : > { %v5143_v56 = vpop.f32.mrf.mxu0  ;;  %5506 = vmatprep.mubr.bf16.mxu1 %v13677_v54  ;;  %6290 = vmin.xlane.f32.xlu0 %v13743_v43  ;;  %v933_v32 = vld [vmem:[#allocation7 + $0x10d8] sm:$0xff] }
 0x1ea   : > { %v11723_v62 = vpack.c.bf16 %v13752_v49, %v13746_v44  ;;  %v5184_v9 = vpop.f32.mrf.mxu1  ;;  %5436 = vmatpush1.bf16.msra.mxu0 %v11313_v46  ;;  %v11490_v55 = vcombine.high %v925_v50, %v933_v32  ;;  %v653_v38 = vld [vmem:[#allocation7 + $0x818] sm:$0xff]  ;;  %v11489_v28 = vcombine.low %v925_v50, %v933_v32  ;;  %v430_v44 = vld [vmem:[#allocation7 + $0x120] sm:$0xff] }
 0x1eb   : > { %5477 = vmatpush1.bf16.msra.mxu1 %v11569_v26  ;;  %v5144_v0 = vpop.f32.mrf.mxu0  ;;  %5437 = vmatprep.subr.bf16.mxu0 %v11298_v48  ;;  %v917_v41 = vld [vmem:[#allocation7 + $0x1058] sm:$0xff]  ;;  %v11218_v46 = vcombine.high %v653_v38, %v661_v39  ;;  %v11217_v53 = vcombine.low %v653_v38, %v661_v39  ;;  %v438_v49 = vld [vmem:[#allocation7 + $0x160] sm:$0xff] }
 0x1ec   : > { %v5185_v4 = vpop.f32.mrf.mxu1  ;;  %5478 = vmatprep.subr.bf16.mxu1 %v11554_v52  ;;  %v11474_v47 = vcombine.high %v909_v40, %v917_v41  ;;  %v893_v26 = vld [vmem:[#allocation7 + $0xf98] sm:$0xff]  ;;  %v11473_v56 = vcombine.low %v909_v40, %v917_v41 }
 0x1ed   : > { %v901_v48 = vld [vmem:[#allocation7 + $0xfd8] sm:$0xff] }
 0x1ee   : > { %5438 = vmatpush1.bf16.msra.mxu0 %v11297_v63  ;;  %v1149_v52 = vld [vmem:[#allocation7 + $0x1798] sm:$0xff]  ;;  %v11458_v57 = vcombine.high %v893_v26, %v901_v48 }
 0x1ef   : > { %5479 = vmatpush1.bf16.msra.mxu1 %v11553_v2  ;;  %5439 = vmatprep.subr.bf16.mxu0 %v11282_v3  ;;  %v1157_v1 = vld [vmem:[#allocation7 + $0x17d8] sm:$0xff]  ;;  %v11457_v3 = vcombine.low %v893_v26, %v901_v48 }
 0x1f0   : > { %5480 = vmatprep.subr.bf16.mxu1 %v11538_v5  ;;  %v11714_v58 = vcombine.high %v1149_v52, %v1157_v1  ;;  %v877_v9 = vld [vmem:[#allocation7 + $0xf18] sm:$0xff]  ;;  %v11713_v4 = vcombine.low %v1149_v52, %v1157_v1 }
 0x1f1   : > { %v885_v63 = vld [vmem:[#allocation7 + $0xf58] sm:$0xff] }
 0x1f2   : > { %5440 = vmatpush1.bf16.msra.mxu0 %v11281_v11  ;;  %v1133_v0 = vld [vmem:[#allocation7 + $0x1718] sm:$0xff]  ;;  %v11442_v5 = vcombine.high %v877_v9, %v885_v63 }
 0x1f3   : > { %5481 = vmatpush1.bf16.msra.mxu1 %v11537_v12  ;;  %5441 = vmatprep.subr.bf16.mxu0 %v11266_v13  ;;  %v1141_v2 = vld [vmem:[#allocation7 + $0x1758] sm:$0xff]  ;;  %v11441_v12 = vcombine.low %v877_v9, %v885_v63 }
 0x1f4   : > { %5482 = vmatprep.subr.bf16.mxu1 %v11522_v14  ;;  %v11698_v6 = vcombine.high %v1133_v0, %v1141_v2  ;;  %v861_v7 = vld [vmem:[#allocation7 + $0xe98] sm:$0xff]  ;;  %v11697_v13 = vcombine.low %v1133_v0, %v1141_v2 }
 0x1f5   : > { %v869_v8 = vld [vmem:[#allocation7 + $0xed8] sm:$0xff] }
 0x1f6   : > { %5442 = vmatpush1.bf16.msra.mxu0 %v11265_v19  ;;  %v1117_v10 = vld [vmem:[#allocation7 + $0x1698] sm:$0xff]  ;;  %v11426_v14 = vcombine.high %v861_v7, %v869_v8 }
 0x1f7   : > { %5483 = vmatpush1.bf16.msra.mxu1 %v11521_v20  ;;  %5443 = vmatprep.subr.bf16.mxu0 %v11250_v22  ;;  %v1125_v11 = vld [vmem:[#allocation7 + $0x16d8] sm:$0xff]  ;;  %v11425_v20 = vcombine.low %v861_v7, %v869_v8  ;;  %v510_v8 = vld [vmem:[#allocation7 + $0x3a0] sm:$0xff] }
 0x1f8   : > { %5484 = vmatprep.subr.bf16.mxu1 %v11506_v25  ;;  %v11682_v15 = vcombine.high %v1117_v10, %v1125_v11  ;;  %v845_v16 = vld [vmem:[#allocation7 + $0xe18] sm:$0xff]  ;;  %v11681_v22 = vcombine.low %v1117_v10, %v1125_v11  ;;  %v518_v10 = vld [vmem:[#allocation7 + $0x3e0] sm:$0xff] }
 0x1f9   : > { %v853_v17 = vld [vmem:[#allocation7 + $0xe58] sm:$0xff]  ;;  %v766_v11 = vld [vmem:[#allocation7 + $0xba0] sm:$0xff] }
 0x1fa   : > { %5444 = vmatpush1.bf16.msra.mxu0 %v11249_v33  ;;  %v1101_v18 = vld [vmem:[#allocation7 + $0x1618] sm:$0xff]  ;;  %v11410_v25 = vcombine.high %v845_v16, %v853_v17 }
 0x1fb   : > { %5485 = vmatpush1.bf16.msra.mxu1 %v11505_v34  ;;  %5445 = vmatprep.subr.bf16.mxu0 %v11234_v61  ;;  %v1109_v19 = vld [vmem:[#allocation7 + $0x1658] sm:$0xff]  ;;  %v11409_v34 = vcombine.low %v845_v16, %v853_v17  ;;  %v494_v17 = vld [vmem:[#allocation7 + $0x320] sm:$0xff] }
 0x1fc   : > { %5486 = vmatprep.subr.bf16.mxu1 %v11490_v55  ;;  %v11666_v29 = vcombine.high %v1101_v18, %v1109_v19  ;;  %v829_v31 = vld [vmem:[#allocation7 + $0xd98] sm:$0xff]  ;;  %v11665_v61 = vcombine.low %v1101_v18, %v1109_v19  ;;  %v502_v18 = vld [vmem:[#allocation7 + $0x360] sm:$0xff] }
 0x1fd   : > { %v837_v50 = vld [vmem:[#allocation7 + $0xdd8] sm:$0xff]  ;;  %v750_v19 = vld [vmem:[#allocation7 + $0xb20] sm:$0xff] }
 0x1fe   : > { %5446 = vmatpush1.bf16.msra.mxu0 %v11233_v42  ;;  %v1085_v32 = vld [vmem:[#allocation7 + $0x1598] sm:$0xff]  ;;  %v11394_v55 = vcombine.high %v829_v31, %v837_v50 }
 0x1ff   : > { %5487 = vmatpush1.bf16.msra.mxu1 %v11489_v28  ;;  %5447 = vmatprep.subr.bf16.mxu0 %v11218_v46  ;;  %v1093_v33 = vld [vmem:[#allocation7 + $0x15d8] sm:$0xff]  ;;  %v11393_v28 = vcombine.low %v829_v31, %v837_v50  ;;  %v11060_v50 = vcombine.high %v494_v17, %v502_v18 }
 0x200   : > { %5488 = vmatprep.subr.bf16.mxu1 %v11474_v47  ;;  %v11650_v38 = vcombine.high %v1085_v32, %v1093_v33  ;;  %v813_v39 = vld [vmem:[#allocation7 + $0xd18] sm:$0xff]  ;;  %v11649_v46 = vcombine.low %v1085_v32, %v1093_v33  ;;  %v478_v33 = vld [vmem:[#allocation7 + $0x2a0] sm:$0xff] }
 0x201   : > { %v821_v40 = vld [vmem:[#allocation7 + $0xd58] sm:$0xff] }
 0x202   : > { %5448 = vmatpush1.bf16.msra.mxu0 %v11217_v53  ;;  %v1069_v41 = vld [vmem:[#allocation7 + $0x1518] sm:$0xff]  ;;  %v11378_v47 = vcombine.high %v813_v39, %v821_v40 }
 0x203   : > { %5489 = vmatpush1.bf16.msra.mxu1 %v11473_v56  ;;  %5449 = vmatprep.subr.bf16.mxu0 %v11458_v57  ;;  %v1077_v42 = vld [vmem:[#allocation7 + $0x1558] sm:$0xff]  ;;  %v11377_v56 = vcombine.low %v813_v39, %v821_v40 }
 0x204   : > { %5490 = vmatprep.subr.bf16.mxu1 %v11714_v58  ;;  %v11634_v26 = vcombine.high %v1069_v41, %v1077_v42  ;;  %v797_v48 = vld [vmem:[#allocation7 + $0xc98] sm:$0xff]  ;;  %v11633_v57 = vcombine.low %v1069_v41, %v1077_v42  ;;  %v11059_v42 = vcombine.low %v494_v17, %v502_v18 }
 0x205   : > { %v805_v52 = vld [vmem:[#allocation7 + $0xcd8] sm:$0xff] }
 0x206   : > { %5450 = vmatpush2.bf16.msra.mxu0 %v11457_v3  ;;  %v1053_v1 = vld [vmem:[#allocation7 + $0x1498] sm:$0xff]  ;;  %v11362_v58 = vcombine.high %v797_v48, %v805_v52 }
 0x207   : > { %5491 = vmatpush2.bf16.msra.mxu1 %v11713_v4  ;;  %5451 = vmatprep.subr.bf16.mxu0 %v11442_v5  ;;  %v1061_v53 = vld [vmem:[#allocation7 + $0x14d8] sm:$0xff]  ;;  %v11361_v4 = vcombine.low %v797_v48, %v805_v52 }
 0x208   : > { %5492 = vmatprep.subr.bf16.mxu1 %v11698_v6  ;;  %v11618_v9 = vcombine.high %v1053_v1, %v1061_v53  ;;  %v781_v63 = vld [vmem:[#allocation7 + $0xc18] sm:$0xff]  ;;  %v11617_v5 = vcombine.low %v1053_v1, %v1061_v53  ;;  %v462_v53 = vld [vmem:[#allocation7 + $0x220] sm:$0xff] }
 0x209   : > { %v789_v0 = vld [vmem:[#allocation7 + $0xc58] sm:$0xff] }
 0x20a   : > { %5452 = vmatpush2.bf16.msra.mxu0 %v11441_v12  ;;  %v1037_v2 = vld [vmem:[#allocation7 + $0x1418] sm:$0xff]  ;;  %v11346_v6 = vcombine.high %v781_v63, %v789_v0  ;;  %v774_v12 = vld [vmem:[#allocation7 + $0xbe0] sm:$0xff] }
 0x20b   : > { %5493 = vmatpush2.bf16.msra.mxu1 %v11697_v13  ;;  %5453 = vmatprep.subr.bf16.mxu0 %v11426_v14  ;;  %v1045_v3 = vld [vmem:[#allocation7 + $0x1458] sm:$0xff]  ;;  %v11345_v13 = vcombine.low %v781_v63, %v789_v0  ;;  %v11332_v16 = vcombine.high %v766_v11, %v774_v12  ;;  %v11331_v31 = vcombine.low %v766_v11, %v774_v12  ;;  %v702_v11 = vld [vmem:[#allocation7 + $0x9a0] sm:$0xff] }
 0x20c   : > { %5494 = vmatprep.subr.bf16.mxu1 %v11682_v15  ;;  %v11602_v7 = vcombine.high %v1037_v2, %v1045_v3  ;;  %v11601_v14 = vcombine.low %v1037_v2, %v1045_v3  ;;  %v11076_v15 = vcombine.high %v510_v8, %v518_v10  ;;  %v710_v12 = vld [vmem:[#allocation7 + $0x9e0] sm:$0xff] }
 0x20e   : > { %5454 = vmatpush2.bf16.msra.mxu0 %v11425_v20  ;;  %v758_v20 = vld [vmem:[#allocation7 + $0xb60] sm:$0xff] }
 0x20f   : > { %5495 = vmatpush2.bf16.msra.mxu1 %v11681_v22  ;;  %5455 = vmatprep.subr.bf16.mxu0 %v11410_v25  ;;  %v13371_v22 = vmov 1966171168   ;;  %v11316_v32 = vcombine.high %v750_v19, %v758_v20 }
 0x210   : > { %5496 = vmatprep.subr.bf16.mxu1 %v11666_v29  ;;  %v6044_v25 = vunpack.c.l.s4 %v13371_v22  ;;  %v11075_v29 = vcombine.low %v510_v8, %v518_v10  ;;  %v446_v8 = vld [vmem:[#allocation7 + $0x1a0] sm:$0xff] }
 0x211   : > { %v454_v10 = vld [vmem:[#allocation7 + $0x1e0] sm:$0xff] }
 0x212   : > { %5456 = vmatpush2.bf16.msra.mxu0 %v11409_v34  ;;  %v486_v34 = vld [vmem:[#allocation7 + $0x2e0] sm:$0xff]  ;;  %v6045_v39 = vunpack.c.0.s8 %v6044_v25  ;;  %v11012_v17 = vcombine.high %v446_v8, %v454_v10  ;;  %v11011_v25 = vcombine.low %v446_v8, %v454_v10 }
 0x213   : > { %5497 = vmatpush2.bf16.msra.mxu1 %v11665_v61  ;;  %5457 = vmatprep.subr.bf16.mxu0 %v11394_v55  ;;  %v734_v55 = vld [vmem:[#allocation7 + $0xaa0] sm:$0xff]  ;;  %v11043_v2 = vcombine.low %v478_v33, %v486_v34 }
 0x214   : > { %5498 = vmatprep.subr.bf16.mxu1 %v11650_v38  ;;  %v742_v38 = vld [vmem:[#allocation7 + $0xae0] sm:$0xff] }
 0x215   : > { %v11300_v1 = vcombine.high %v734_v55, %v742_v38  ;;  %v11299_v3 = vcombine.low %v734_v55, %v742_v38  ;;  %v694_v22 = vld [vmem:[#allocation7 + $0x960] sm:$0xff]  ;;  %v10995_v55 = vcombine.low %v430_v44, %v438_v49 }
 0x216   : > { %5458 = vmatpush2.bf16.msra.mxu0 %v11393_v28  ;;  %v606_v10 = vld [vmem:[#allocation7 + $0x6a0] sm:$0xff] }
 0x217   : > { %5499 = vmatpush2.bf16.msra.mxu1 %v11649_v46  ;;  %5459 = vmatprep.subr.bf16.mxu0 %v11378_v47  ;;  %v11315_v46 = vcombine.low %v750_v19, %v758_v20  ;;  %v11044_v47 = vcombine.high %v478_v33, %v486_v34  ;;  %v11268_v20 = vcombine.high %v702_v11, %v710_v12  ;;  %v422_v33 = vld [vmem:[#allocation7 + $0xe0] sm:$0xff] }
 0x218   : > { %5500 = vmatprep.subr.bf16.mxu1 %v11634_v26  ;;  %v670_v34 = vld [vmem:[#allocation7 + $0x8a0] sm:$0xff] }
 0x21a   : > { %5460 = vmatpush2.bf16.msra.mxu0 %v11377_v56  ;;  %v470_v56 = vld [vmem:[#allocation7 + $0x260] sm:$0xff] }
 0x21b   : > { %5501 = vmatpush2.bf16.msra.mxu1 %v11633_v57  ;;  %5461 = vmatprep.subr.bf16.mxu0 %v11362_v58  ;;  %v718_v57 = vld [vmem:[#allocation7 + $0xa20] sm:$0xff] }
 0x21c   : > { %5502 = vmatprep.subr.bf16.mxu1 %v11618_v9  ;;  %v726_v58 = vld [vmem:[#allocation7 + $0xa60] sm:$0xff]  ;;  %v13768_v9 = vsub.s32 %v6045_v39, %v13692_v36 }
 0x21e   : > { %5462 = vmatpush2.bf16.msra.mxu0 %v11361_v4  ;;  %v11028_v4 = vcombine.high %v462_v53, %v470_v56 }
 0x21f   : > { %5503 = vmatpush2.bf16.msra.mxu1 %v11617_v5  ;;  %5463 = vmatprep.subr.bf16.mxu0 %v11346_v6 }
 0x220   : > { %5504 = vmatprep.subr.bf16.mxu1 %v11602_v7  ;;  %v11284_v7 = vcombine.high %v718_v57, %v726_v58 }
 0x222   : > { %5464 = vmatpush2.bf16.msra.mxu0 %v11345_v13  ;;  %v13774_v13 = vrot.slane %v11723_v62, %v13768_v9  ;;  %v686_v62 = vld [vmem:[#allocation7 + $0x920] sm:$0xff] }
 0x223   : > { %5505 = vmatpush2.bf16.msra.mxu1 %v11601_v14  ;;  %5515 = vmatprep.subr.bf16.mxu0 %v11076_v15  ;;  %v11027_v15 = vcombine.low %v462_v53, %v470_v56  ;;  %v11251_v38 = vcombine.low %v686_v62, %v694_v22  ;;  %v646_v53 = vld [vmem:[#allocation7 + $0x7e0] sm:$0xff] }
 0x224   : > { %5556 = vmatprep.subr.bf16.mxu1 %v11332_v16  ;;  %v11283_v16 = vcombine.low %v718_v57, %v726_v58  ;;  %v894_v56 = vld [vmem:[#allocation7 + $0xfa0] sm:$0xff] }
 0x225   : > { %v5221_v61 = vpop.f32.mrf.mxu0  ;;  %5466 = vmatmul.mubr.bf16.vlgmr.msra.gmra.mxu0 %v13673_v27 }
 0x226   : > { %v5222_v40 = vadd.f32 %v5221_v61, %v13748_v45  ;;  %v5262_v41 = vpop.f32.mrf.mxu1  ;;  %5507 = vmatmul.mubr.bf16.vlgmr.msra.gmra.mxu1 %v13685_v37  ;;  %5516 = vmatpush1.bf16.msra.mxu0 %v11075_v29  ;;  %v11267_v29 = vcombine.low %v702_v11, %v710_v12  ;;  %v678_v61 = vld [vmem:[#allocation7 + $0x8e0] sm:$0xff] }
 0x227   : > { %5557 = vmatpush1.bf16.msra.mxu1 %v11331_v31  ;;  %v5223_v28 = vpop.f32.mrf.mxu0  ;;  %5517 = vmatprep.subr.bf16.mxu0 %v11060_v50  ;;  %v10996_v31 = vcombine.high %v430_v44, %v438_v49  ;;  %v11252_v50 = vcombine.high %v686_v62, %v694_v22  ;;  %v614_v11 = vld [vmem:[#allocation7 + $0x6e0] sm:$0xff] }
 0x228   : > { %v5263_v26 = vadd.f32 %v5262_v41, %v5222_v40  ;;  %v5224_v48 = vadd.f32 %v5223_v28, %v13754_v51  ;;  %v5264_v52 = vpop.f32.mrf.mxu1  ;;  %5558 = vmatprep.subr.bf16.mxu1 %v11316_v32  ;;  %5547 = vmatprep.mubr.bf16.mxu0 %v13639_v59  ;;  %v414_v32 = vld [vmem:[#allocation7 + $0xa0] sm:$0xff]  ;;  %v11236_v40 = vcombine.high %v670_v34, %v678_v61 }
 0x229   : > { %v5225_v45 = vpop.f32.mrf.mxu0  ;;  %5588 = vmatprep.mubr.bf16.mxu1 %v13643_v60  ;;  %v10980_v39 = vcombine.high %v414_v32, %v422_v33  ;;  %v398_v41 = vld [vmem:[#allocation7 + $0x20] sm:$0xff] }
 0x22a   : > { %v5265_v63 = vadd.f32 %v5264_v52, %v5224_v48  ;;  %v5266_v0 = vpop.f32.mrf.mxu1  ;;  %5518 = vmatpush1.bf16.msra.mxu0 %v11059_v42  ;;  %v406_v42 = vld [vmem:[#allocation7 + $0x60] sm:$0xff] }
 0x22b   : > { %5559 = vmatpush1.bf16.msra.mxu1 %v11315_v46  ;;  %v5226_v51 = vpop.f32.mrf.mxu0  ;;  %5519 = vmatprep.subr.bf16.mxu0 %v11044_v47  ;;  %v654_v28 = vld [vmem:[#allocation7 + $0x820] sm:$0xff]  ;;  %v10979_v47 = vcombine.low %v414_v32, %v422_v33  ;;  %v10964_v48 = vcombine.high %v398_v41, %v406_v42  ;;  %v10963_v57 = vcombine.low %v398_v41, %v406_v42 }
 0x22c   : > { %v11724_v5 = vpack.c.bf16 %v5265_v63, %v5263_v26  ;;  %v5267_v6 = vpop.f32.mrf.mxu1  ;;  %5560 = vmatprep.subr.bf16.mxu1 %v11300_v1  ;;  %v662_v46 = vld [vmem:[#allocation7 + $0x860] sm:$0xff]  ;;  %v11235_v26 = vcombine.low %v670_v34, %v678_v61 }
 0x22d   : > { %v11220_v52 = vcombine.high %v654_v28, %v662_v46  ;;  %v638_v1 = vld [vmem:[#allocation7 + $0x7a0] sm:$0xff]  ;;  %v11219_v58 = vcombine.low %v654_v28, %v662_v46 }
 0x22e   : > { %v13777_v14 = vrot.slane %v11724_v5, %v13768_v9  ;;  %5520 = vmatpush1.bf16.msra.mxu0 %v11043_v2  ;;  %v902_v45 = vld [vmem:[#allocation7 + $0xfe0] sm:$0xff]  ;;  %v11204_v63 = vcombine.high %v638_v1, %v646_v53  ;;  %v11203_v5 = vcombine.low %v638_v1, %v646_v53 }
 0x22f   : > { %5561 = vmatpush1.bf16.msra.mxu1 %v11299_v3  ;;  %5521 = vmatprep.subr.bf16.mxu0 %v11028_v4  ;;  %v11460_v0 = vcombine.high %v894_v56, %v902_v45  ;;  %v622_v2 = vld [vmem:[#allocation7 + $0x720] sm:$0xff]  ;;  %v11459_v6 = vcombine.low %v894_v56, %v902_v45 }
 0x230   : > { %v6071_v18 = vcombine.low %v13774_v13, %v13777_v14  ;;  %v6141_v19 = vcombine.high %v13774_v13, %v13777_v14  ;;  %5562 = vmatprep.subr.bf16.mxu1 %v11284_v7  ;;  %v630_v51 = vld [vmem:[#allocation7 + $0x760] sm:$0xff]  ;;  %v424_v13 = vld [vmem:[#allocation7 + $0xf0] sm:$0xff] }
 0x231   : > { %v878_v3 = vld [vmem:[#allocation7 + $0xf20] sm:$0xff]  ;;  %v11188_v7 = vcombine.high %v622_v2, %v630_v51  ;;  %v672_v14 = vld [vmem:[#allocation7 + $0x8b0] sm:$0xff] }
 0x232   : > { %5522 = vmatpush1.bf16.msra.mxu0 %v11027_v15  ;;  %v886_v4 = vld [vmem:[#allocation7 + $0xf60] sm:$0xff] }
 0x233   : > { %5563 = vmatpush1.bf16.msra.mxu1 %v11283_v16  ;;  %5523 = vmatprep.subr.bf16.mxu0 %v11012_v17  ;;  %v11444_v8 = vcombine.high %v878_v3, %v886_v4  ;;  %v862_v12 = vld [vmem:[#allocation7 + $0xea0] sm:$0xff]  ;;  %v11187_v16 = vcombine.low %v622_v2, %v630_v51  ;;  %v11443_v17 = vcombine.low %v878_v3, %v886_v4 }
 0x234   : > { %5564 = vmatprep.subr.bf16.mxu1 %v11268_v20  ;;  %v870_v15 = vld [vmem:[#allocation7 + $0xee0] sm:$0xff]  ;;  %v11172_v20 = vcombine.high %v606_v10, %v614_v11 }
 0x235   : > { %v11428_v44 = vcombine.high %v862_v12, %v870_v15  ;;  %v590_v49 = vld [vmem:[#allocation7 + $0x620] sm:$0xff] }
 0x236   : > { %5524 = vmatpush1.bf16.msra.mxu0 %v11011_v25  ;;  %v598_v62 = vld [vmem:[#allocation7 + $0x660] sm:$0xff] }
 0x237   : > { %5565 = vmatpush1.bf16.msra.mxu1 %v11267_v29  ;;  %5525 = vmatprep.subr.bf16.mxu0 %v10996_v31  ;;  %v846_v22 = vld [vmem:[#allocation7 + $0xe20] sm:$0xff]  ;;  %v11171_v29 = vcombine.low %v606_v10, %v614_v11  ;;  %v11427_v31 = vcombine.low %v862_v12, %v870_v15  ;;  %v511_v15 = vld [vmem:[#allocation7 + $0x3a8] sm:$0xff] }
 0x238   : > { %5566 = vmatprep.subr.bf16.mxu1 %v11252_v50  ;;  %v854_v25 = vld [vmem:[#allocation7 + $0xe60] sm:$0xff]  ;;  %v11156_v50 = vcombine.high %v590_v49, %v598_v62 }
 0x239   : > { %v11412_v32 = vcombine.high %v846_v22, %v854_v25  ;;  %v574_v33 = vld [vmem:[#allocation7 + $0x5a0] sm:$0xff] }
 0x23a   : > { %5526 = vmatpush1.bf16.msra.mxu0 %v10995_v55  ;;  %v582_v34 = vld [vmem:[#allocation7 + $0x5e0] sm:$0xff] }
 0x23b   : > { %5567 = vmatpush1.bf16.msra.mxu1 %v11251_v38  ;;  %5527 = vmatprep.subr.bf16.mxu0 %v10980_v39  ;;  %v830_v61 = vld [vmem:[#allocation7 + $0xda0] sm:$0xff]  ;;  %v11155_v38 = vcombine.low %v590_v49, %v598_v62  ;;  %v11411_v39 = vcombine.low %v846_v22, %v854_v25  ;;  %v495_v25 = vld [vmem:[#allocation7 + $0x328] sm:$0xff] }
 0x23c   : > { %5568 = vmatprep.subr.bf16.mxu1 %v11236_v40  ;;  %v838_v55 = vld [vmem:[#allocation7 + $0xde0] sm:$0xff]  ;;  %v11140_v40 = vcombine.high %v574_v33, %v582_v34 }
 0x23d   : > { %v11396_v41 = vcombine.high %v830_v61, %v838_v55  ;;  %v558_v42 = vld [vmem:[#allocation7 + $0x520] sm:$0xff] }
 0x23e   : > { %5528 = vmatpush1.bf16.msra.mxu0 %v10979_v47  ;;  %v566_v28 = vld [vmem:[#allocation7 + $0x560] sm:$0xff] }
 0x23f   : > { %5569 = vmatpush1.bf16.msra.mxu1 %v11235_v26  ;;  %5529 = vmatprep.subr.bf16.mxu0 %v10964_v48  ;;  %v814_v46 = vld [vmem:[#allocation7 + $0xd20] sm:$0xff]  ;;  %v11139_v26 = vcombine.low %v574_v33, %v582_v34  ;;  %v11395_v48 = vcombine.low %v830_v61, %v838_v55 }
 0x240   : > { %5570 = vmatprep.subr.bf16.mxu1 %v11220_v52  ;;  %v822_v47 = vld [vmem:[#allocation7 + $0xd60] sm:$0xff]  ;;  %v11124_v52 = vcombine.high %v558_v42, %v566_v28 }
 0x241   : > { %v11380_v1 = vcombine.high %v814_v46, %v822_v47  ;;  %v542_v53 = vld [vmem:[#allocation7 + $0x4a0] sm:$0xff] }
 0x242   : > { %5530 = vmatpush1.bf16.msra.mxu0 %v10963_v57  ;;  %v550_v56 = vld [vmem:[#allocation7 + $0x4e0] sm:$0xff] }
 0x243   : > { %5571 = vmatpush1.bf16.msra.mxu1 %v11219_v58  ;;  %5531 = vmatprep.subr.bf16.mxu0 %v11204_v63  ;;  %v798_v45 = vld [vmem:[#allocation7 + $0xca0] sm:$0xff]  ;;  %v11123_v58 = vcombine.low %v558_v42, %v566_v28  ;;  %v11379_v63 = vcombine.low %v814_v46, %v822_v47  ;;  %v6272_v42 = vand.u32 65535, %v13731_v21 }
 0x244   : > { %5572 = vmatprep.subr.bf16.mxu1 %v11460_v0  ;;  %v806_v57 = vld [vmem:[#allocation7 + $0xce0] sm:$0xff]  ;;  %v11108_v0 = vcombine.high %v542_v53, %v550_v56 }
 0x245   : > { %v11364_v2 = vcombine.high %v798_v45, %v806_v57  ;;  %v526_v51 = vld [vmem:[#allocation7 + $0x420] sm:$0xff] }
 0x246   : > { %5532 = vmatpush2.bf16.msra.mxu0 %v11203_v5  ;;  %v534_v3 = vld [vmem:[#allocation7 + $0x460] sm:$0xff] }
 0x247   : > { %5573 = vmatpush2.bf16.msra.mxu1 %v11459_v6  ;;  %5533 = vmatprep.subr.bf16.mxu0 %v11188_v7  ;;  %v782_v4 = vld [vmem:[#allocation7 + $0xc20] sm:$0xff]  ;;  %v11107_v6 = vcombine.low %v542_v53, %v550_v56  ;;  %v11363_v7 = vcombine.low %v798_v45, %v806_v57  ;;  %v463_v57 = vld [vmem:[#allocation7 + $0x228] sm:$0xff] }
 0x248   : > { %5574 = vmatprep.subr.bf16.mxu1 %v11444_v8  ;;  %v790_v5 = vld [vmem:[#allocation7 + $0xc60] sm:$0xff]  ;;  %v11092_v8 = vcombine.high %v526_v51, %v534_v3 }
 0x249   : > { %v11348_v10 = vcombine.high %v782_v4, %v790_v5  ;;  %v1022_v11 = vld [vmem:[#allocation7 + $0x13a0] sm:$0xff] }
 0x24a   : > { %5534 = vmatpush2.bf16.msra.mxu0 %v11187_v16  ;;  %v1030_v12 = vld [vmem:[#allocation7 + $0x13e0] sm:$0xff]  ;;  %v519_v16 = vld [vmem:[#allocation7 + $0x3e8] sm:$0xff] }
 0x24b   : > { %5575 = vmatpush2.bf16.msra.mxu1 %v11443_v17  ;;  %5535 = vmatprep.subr.bf16.mxu0 %v11172_v20  ;;  %v11091_v17 = vcombine.low %v526_v51, %v534_v3  ;;  %v11347_v20 = vcombine.low %v782_v4, %v790_v5  ;;  %v11078_v49 = vcombine.high %v511_v15, %v519_v16  ;;  %v1006_v62 = vld [vmem:[#allocation7 + $0x1320] sm:$0xff]  ;;  %v6274_v3 = vcvt.s32.f32 %v6272_v42 }
 0x24c   : > { %5576 = vmatprep.subr.bf16.mxu1 %v11428_v44  ;;  %v11588_v44 = vcombine.high %v1022_v11, %v1030_v12  ;;  %v1014_v22 = vld [vmem:[#allocation7 + $0x1360] sm:$0xff]  ;;  %v6286_v4 = vand.u32 65535, %v13735_v30 }
 0x24d   : > { %v990_v34 = vld [vmem:[#allocation7 + $0x12a0] sm:$0xff] }
 0x24e   : > { %5536 = vmatpush2.bf16.msra.mxu0 %v11171_v29  ;;  %v503_v29 = vld [vmem:[#allocation7 + $0x368] sm:$0xff]  ;;  %v998_v61 = vld [vmem:[#allocation7 + $0x12e0] sm:$0xff] }
 0x24f   : > { %5577 = vmatpush2.bf16.msra.mxu1 %v11427_v31  ;;  %5537 = vmatprep.subr.bf16.mxu0 %v11156_v50  ;;  %v11587_v31 = vcombine.low %v1022_v11, %v1030_v12  ;;  %v11077_v50 = vcombine.low %v511_v15, %v519_v16  ;;  %v11062_v33 = vcombine.high %v495_v25, %v503_v29  ;;  %v982_v53 = vld [vmem:[#allocation7 + $0x1260] sm:$0xff]  ;;  %v455_v11 = vld [vmem:[#allocation7 + $0x1e8] sm:$0xff] }
 0x250   : > { %5578 = vmatprep.subr.bf16.mxu1 %v11412_v32  ;;  %v11572_v32 = vcombine.high %v1006_v62, %v1014_v22  ;;  %v11061_v47 = vcombine.low %v495_v25, %v503_v29  ;;  %v439_v25 = vld [vmem:[#allocation7 + $0x168] sm:$0xff] }
 0x252   : > { %5538 = vmatpush2.bf16.msra.mxu0 %v11155_v38  ;;  %v479_v38 = vld [vmem:[#allocation7 + $0x2a8] sm:$0xff] }
 0x253   : > { %5579 = vmatpush2.bf16.msra.mxu1 %v11411_v39  ;;  %5539 = vmatprep.subr.bf16.mxu0 %v11140_v40  ;;  %v487_v39 = vld [vmem:[#allocation7 + $0x2e8] sm:$0xff] }
 0x254   : > { %5580 = vmatprep.subr.bf16.mxu1 %v11396_v41  ;;  %v11571_v41 = vcombine.low %v1006_v62, %v1014_v22  ;;  %v6288_v62 = vcvt.s32.f32 %v6286_v4  ;;  %v431_v22 = vld [vmem:[#allocation7 + $0x128] sm:$0xff]  ;;  %v1142_v4 = vld [vmem:[#allocation7 + $0x1760] sm:$0xff] }
 0x256   : > { %5540 = vmatpush2.bf16.msra.mxu0 %v11139_v26  ;;  %v11556_v26 = vcombine.high %v990_v34, %v998_v61 }
 0x257   : > { %5581 = vmatpush2.bf16.msra.mxu1 %v11395_v48  ;;  %5541 = vmatprep.subr.bf16.mxu0 %v11124_v52  ;;  %v11046_v52 = vcombine.high %v479_v38, %v487_v39 }
 0x258   : > { %5582 = vmatprep.subr.bf16.mxu1 %v11380_v1  ;;  %v974_v1 = vld [vmem:[#allocation7 + $0x1220] sm:$0xff] }
 0x259   : > { %v11540_v51 = vcombine.high %v974_v1, %v982_v53  ;;  %v11539_v15 = vcombine.low %v974_v1, %v982_v53 }
 0x25a   : > { %5542 = vmatpush2.bf16.msra.mxu0 %v11123_v58  ;;  %v471_v58 = vld [vmem:[#allocation7 + $0x268] sm:$0xff] }
 0x25b   : > { %5583 = vmatpush2.bf16.msra.mxu1 %v11379_v63  ;;  %5543 = vmatprep.subr.bf16.mxu0 %v11108_v0  ;;  %v11555_v63 = vcombine.low %v990_v34, %v998_v61  ;;  %v11029_v16 = vcombine.low %v463_v57, %v471_v58  ;;  %v934_v34 = vld [vmem:[#allocation7 + $0x10e0] sm:$0xff] }
 0x25c   : > { %5584 = vmatprep.subr.bf16.mxu1 %v11364_v2  ;;  %v11045_v2 = vcombine.low %v479_v38, %v487_v39  ;;  %v423_v38 = vld [vmem:[#allocation7 + $0xe8] sm:$0xff] }
 0x25e   : > { %5544 = vmatpush2.bf16.msra.mxu0 %v11107_v6  ;;  %v11030_v6 = vcombine.high %v463_v57, %v471_v58  ;;  %v1158_v57 = vld [vmem:[#allocation7 + $0x17e0] sm:$0xff]  ;;  %v639_v58 = vld [vmem:[#allocation7 + $0x7a8] sm:$0xff] }
 0x25f   : > { %5585 = vmatpush2.bf16.msra.mxu1 %v11363_v7  ;;  %5545 = vmatprep.subr.bf16.mxu0 %v11092_v8  ;;  %v958_v7 = vld [vmem:[#allocation7 + $0x11a0] sm:$0xff] }
 0x260   : > { %5586 = vmatprep.subr.bf16.mxu1 %v11348_v10  ;;  %v966_v8 = vld [vmem:[#allocation7 + $0x11e0] sm:$0xff]  ;;  %v447_v10 = vld [vmem:[#allocation7 + $0x1a8] sm:$0xff] }
 0x261   : > { %v11014_v30 = vcombine.high %v447_v10, %v455_v11  ;;  %v11523_v29 = vcombine.low %v958_v7, %v966_v8 }
 0x262   : > { %5546 = vmatpush2.bf16.msra.mxu0 %v11091_v17  ;;  %v11524_v17 = vcombine.high %v958_v7, %v966_v8 }
 0x263   : > { %5587 = vmatpush2.bf16.msra.mxu1 %v11347_v20  ;;  %5597 = vmatprep.subr.bf16.mxu0 %v11588_v44  ;;  %v942_v44 = vld [vmem:[#allocation7 + $0x1120] sm:$0xff] }
 0x264   : > { %5638 = vmatprep.subr.bf16.mxu1 %v11078_v49  ;;  %v950_v49 = vld [vmem:[#allocation7 + $0x1160] sm:$0xff] }
 0x265   : > { %v5303_v55 = vpop.f32.mrf.mxu0  ;;  %5548 = vmatmul.mubr.bf16.vlgmr.msra.gmra.mxu0 %v13667_v23  ;;  %v11507_v39 = vcombine.low %v942_v44, %v950_v49 }
 0x266   : > { %v5344_v40 = vpop.f32.mrf.mxu1  ;;  %5589 = vmatmul.mubr.bf16.vlgmr.msra.gmra.mxu1 %v13673_v27  ;;  %5598 = vmatpush1.bf16.msra.mxu0 %v11587_v31 }
 0x267   : > { %v13786_v28 = vadd.f32 %v5344_v40, %v5303_v55  ;;  %5639 = vmatpush1.bf16.msra.mxu1 %v11077_v50  ;;  %v5305_v46 = vpop.f32.mrf.mxu0  ;;  %5599 = vmatprep.subr.bf16.mxu0 %v11572_v32  ;;  %v11508_v50 = vcombine.high %v942_v44, %v950_v49  ;;  %v10998_v32 = vcombine.high %v431_v22, %v439_v25  ;;  %v415_v55 = vld [vmem:[#allocation7 + $0xa8] sm:$0xff] }
 0x268   : > { %v5346_v48 = vpop.f32.mrf.mxu1  ;;  %5640 = vmatprep.subr.bf16.mxu1 %v11062_v33  ;;  %5629 = vmatprep.mubr.bf16.mxu0 %v13677_v54  ;;  %v926_v33 = vld [vmem:[#allocation7 + $0x10a0] sm:$0xff]  ;;  %v10997_v40 = vcombine.low %v431_v22, %v439_v25  ;;  %v10982_v42 = vcombine.high %v415_v55, %v423_v38 }
 0x269   : > { %v13789_v56 = vadd.f32 %v5346_v48, %v5305_v46  ;;  %v5307_v45 = vpop.f32.mrf.mxu0  ;;  %5670 = vmatprep.mubr.bf16.mxu1 %v13639_v59  ;;  %v910_v46 = vld [vmem:[#allocation7 + $0x1020] sm:$0xff]  ;;  %v11491_v48 = vcombine.low %v926_v33, %v934_v34 }
 0x26a   : > { %v5348_v21 = vpop.f32.mrf.mxu1  ;;  %5600 = vmatpush1.bf16.msra.mxu0 %v11571_v41  ;;  %v11492_v41 = vcombine.high %v926_v33, %v934_v34  ;;  %v1150_v45 = vld [vmem:[#allocation7 + $0x17a0] sm:$0xff] }
 0x26b   : > { %5641 = vmatpush1.bf16.msra.mxu1 %v11061_v47  ;;  %v5308_v0 = vpop.f32.mrf.mxu0  ;;  %5601 = vmatprep.subr.bf16.mxu0 %v11556_v26  ;;  %v918_v47 = vld [vmem:[#allocation7 + $0x1060] sm:$0xff]  ;;  %v399_v26 = vld [vmem:[#allocation7 + $0x28] sm:$0xff]  ;;  %v11715_v7 = vcombine.low %v1150_v45, %v1158_v57 }
 0x26c   : > { %v5349_v5 = vpop.f32.mrf.mxu1  ;;  %5642 = vmatprep.subr.bf16.mxu1 %v11046_v52  ;;  %v10981_v52 = vcombine.low %v415_v55, %v423_v38  ;;  %v11476_v1 = vcombine.high %v910_v46, %v918_v47  ;;  %v647_v21 = vld [vmem:[#allocation7 + $0x7e8] sm:$0xff]  ;;  %v1102_v22 = vld [vmem:[#allocation7 + $0x1620] sm:$0xff] }
 0x26d   : > { %v13793_v12 = vpop.xlane.xlu0 %6276  ;;  %v623_v5 = vld [vmem:[#allocation7 + $0x728] sm:$0xff]  ;;  %v11205_v8 = vcombine.low %v639_v58, %v647_v21  ;;  %v1110_v25 = vld [vmem:[#allocation7 + $0x1660] sm:$0xff] }
 0x26e   : > { %5602 = vmatpush1.bf16.msra.mxu0 %v11555_v63  ;;  %vm6278_vm3 = vcmp.eq.f32.partialorder %v13739_v35, %v13793_v12  ;;  %v11013_v35 = vcombine.low %v447_v10, %v455_v11  ;;  %v11475_v63 = vcombine.low %v910_v46, %v918_v47  ;;  %v11668_v33 = vcombine.high %v1102_v22, %v1110_v25  ;;  %v1094_v55 = vld [vmem:[#allocation7 + $0x15e0] sm:$0xff]  ;;  %v575_v38 = vld [vmem:[#allocation7 + $0x5a8] sm:$0xff] }
 0x26f   : > { %5643 = vmatpush1.bf16.msra.mxu1 %v11045_v2  ;;  %5603 = vmatprep.subr.bf16.mxu0 %v11540_v51  ;;  %v6279_v20 = vsel %vm6278_vm3, %v6274_v3, inf  ;;  %v11716_v2 = vcombine.high %v1150_v45, %v1158_v57  ;;  %v11206_v51 = vcombine.high %v639_v58, %v647_v21  ;;  %v1134_v3 = vld [vmem:[#allocation7 + $0x1720] sm:$0xff]  ;;  %v543_v21 = vld [vmem:[#allocation7 + $0x4a8] sm:$0xff] }
 0x270   : > { %5644 = vmatprep.subr.bf16.mxu1 %v11030_v6  ;;  %6280 = vmin.xlane.f32.xlu1 %v6279_v20  ;;  %v631_v6 = vld [vmem:[#allocation7 + $0x768] sm:$0xff]  ;;  %v11700_v10 = vcombine.high %v1134_v3, %v1142_v4  ;;  %v1070_v47 = vld [vmem:[#allocation7 + $0x1520] sm:$0xff] }
 0x271   : > { %v11190_v11 = vcombine.high %v623_v5, %v631_v6  ;;  %v615_v20 = vld [vmem:[#allocation7 + $0x6e8] sm:$0xff]  ;;  %v11189_v44 = vcombine.low %v623_v5, %v631_v6  ;;  %v1054_v57 = vld [vmem:[#allocation7 + $0x14a0] sm:$0xff] }
 0x272   : > { %5604 = vmatpush1.bf16.msra.mxu0 %v11539_v15  ;;  %v13797_v31 = vpop.xlane.xlu0 %6290  ;;  %v1118_v15 = vld [vmem:[#allocation7 + $0x16a0] sm:$0xff]  ;;  %v527_v6 = vld [vmem:[#allocation7 + $0x428] sm:$0xff] }
 0x273   : > { %5645 = vmatpush1.bf16.msra.mxu1 %v11029_v16  ;;  %5605 = vmatprep.subr.bf16.mxu0 %v11524_v17  ;;  %vm6292_vm4 = vcmp.eq.f32.partialorder %v13743_v43, %v13797_v31  ;;  %v407_v43 = vld [vmem:[#allocation7 + $0x68] sm:$0xff]  ;;  %v1126_v16 = vld [vmem:[#allocation7 + $0x16e0] sm:$0xff] }
 0x274   : > { %5646 = vmatprep.subr.bf16.mxu1 %v11014_v30  ;;  %v6293_v61 = vsel %vm6292_vm4, %v6288_v62, inf  ;;  %v10966_v53 = vcombine.high %v399_v26, %v407_v43  ;;  %v10965_v0 = vcombine.low %v399_v26, %v407_v43  ;;  %v607_v17 = vld [vmem:[#allocation7 + $0x6a8] sm:$0xff]  ;;  %v11699_v30 = vcombine.low %v1134_v3, %v1142_v4  ;;  %v1078_v26 = vld [vmem:[#allocation7 + $0x1560] sm:$0xff] }
 0x275   : > { %6294 = vmin.xlane.f32.xlu0 %v6293_v61  ;;  %v11684_v49 = vcombine.high %v1118_v15, %v1126_v16  ;;  %v11174_v62 = vcombine.high %v607_v17, %v615_v20  ;;  %v1086_v61 = vld [vmem:[#allocation7 + $0x15a0] sm:$0xff]  ;;  %v559_v43 = vld [vmem:[#allocation7 + $0x528] sm:$0xff] }
 0x276   : > { %5606 = vmatpush1.bf16.msra.mxu0 %v11523_v29  ;;  %v591_v29 = vld [vmem:[#allocation7 + $0x628] sm:$0xff]  ;;  %v1062_v58 = vld [vmem:[#allocation7 + $0x14e0] sm:$0xff] }
 0x277   : > { %5647 = vmatpush1.bf16.msra.mxu1 %v11013_v35  ;;  %5607 = vmatprep.subr.bf16.mxu0 %v11508_v50  ;;  %v599_v35 = vld [vmem:[#allocation7 + $0x668] sm:$0xff]  ;;  %v11683_v50 = vcombine.low %v1118_v15, %v1126_v16  ;;  %v1038_v4 = vld [vmem:[#allocation7 + $0x1420] sm:$0xff] }
 0x278   : > { %5648 = vmatprep.subr.bf16.mxu1 %v10998_v32  ;;  %v11173_v32 = vcombine.low %v607_v17, %v615_v20  ;;  %v11158_v34 = vcombine.high %v591_v29, %v599_v35  ;;  %v1046_v5 = vld [vmem:[#allocation7 + $0x1460] sm:$0xff]  ;;  %v767_v16 = vld [vmem:[#allocation7 + $0xba8] sm:$0xff] }
 0x279   : > { %v775_v17 = vld [vmem:[#allocation7 + $0xbe8] sm:$0xff] }
 0x27a   : > { %5608 = vmatpush1.bf16.msra.mxu0 %v11507_v39  ;;  %v583_v39 = vld [vmem:[#allocation7 + $0x5e8] sm:$0xff] }
 0x27b   : > { %5649 = vmatpush1.bf16.msra.mxu1 %v10997_v40  ;;  %5609 = vmatprep.subr.bf16.mxu0 %v11492_v41  ;;  %v11667_v40 = vcombine.low %v1102_v22, %v1110_v25  ;;  %v11157_v41 = vcombine.low %v591_v29, %v599_v35  ;;  %v11142_v46 = vcombine.high %v575_v38, %v583_v39  ;;  %v1023_v20 = vld [vmem:[#allocation7 + $0x13a8] sm:$0xff] }
 0x27c   : > { %5650 = vmatprep.subr.bf16.mxu1 %v10982_v42  ;;  %v11652_v42 = vcombine.high %v1086_v61, %v1094_v55  ;;  %v751_v25 = vld [vmem:[#allocation7 + $0xb28] sm:$0xff] }
 0x27d   : > { %v759_v29 = vld [vmem:[#allocation7 + $0xb68] sm:$0xff] }
 0x27e   : > { %5610 = vmatpush1.bf16.msra.mxu0 %v11491_v48  ;;  %v567_v48 = vld [vmem:[#allocation7 + $0x568] sm:$0xff] }
 0x27f   : > { %5651 = vmatpush1.bf16.msra.mxu1 %v10981_v52  ;;  %5611 = vmatprep.subr.bf16.mxu0 %v11476_v1  ;;  %v11651_v52 = vcombine.low %v1086_v61, %v1094_v55  ;;  %v11141_v1 = vcombine.low %v575_v38, %v583_v39  ;;  %v11126_v45 = vcombine.high %v559_v43, %v567_v48  ;;  %v1007_v35 = vld [vmem:[#allocation7 + $0x1328] sm:$0xff] }
 0x280   : > { %5652 = vmatprep.subr.bf16.mxu1 %v10966_v53  ;;  %v11636_v53 = vcombine.high %v1070_v47, %v1078_v26  ;;  %v735_v55 = vld [vmem:[#allocation7 + $0xaa8] sm:$0xff] }
 0x281   : > { %v743_v38 = vld [vmem:[#allocation7 + $0xae8] sm:$0xff] }
 0x282   : > { %5612 = vmatpush1.bf16.msra.mxu0 %v11475_v63  ;;  %v551_v63 = vld [vmem:[#allocation7 + $0x4e8] sm:$0xff] }
 0x283   : > { %5653 = vmatpush1.bf16.msra.mxu1 %v10965_v0  ;;  %5613 = vmatprep.subr.bf16.mxu0 %v11716_v2  ;;  %v11635_v0 = vcombine.low %v1070_v47, %v1078_v26  ;;  %v11125_v2 = vcombine.low %v559_v43, %v567_v48  ;;  %v11110_v3 = vcombine.high %v543_v21, %v551_v63 }
 0x284   : > { %5654 = vmatprep.subr.bf16.mxu1 %v11206_v51  ;;  %v11620_v51 = vcombine.high %v1054_v57, %v1062_v58  ;;  %v11317_v47 = vcombine.low %v751_v25, %v759_v29  ;;  %v11302_v48 = vcombine.high %v735_v55, %v743_v38 }
 0x286   : > { %5614 = vmatpush2.bf16.msra.mxu0 %v11715_v7  ;;  %v535_v7 = vld [vmem:[#allocation7 + $0x468] sm:$0xff] }
 0x287   : > { %5655 = vmatpush2.bf16.msra.mxu1 %v11205_v8  ;;  %5615 = vmatprep.subr.bf16.mxu0 %v11700_v10  ;;  %v11619_v8 = vcombine.low %v1054_v57, %v1062_v58  ;;  %v11109_v10 = vcombine.low %v543_v21, %v551_v63  ;;  %v11094_v15 = vcombine.high %v527_v6, %v535_v7  ;;  %v975_v58 = vld [vmem:[#allocation7 + $0x1228] sm:$0xff] }
 0x288   : > { %5656 = vmatprep.subr.bf16.mxu1 %v11190_v11  ;;  %v11604_v11 = vcombine.high %v1038_v4, %v1046_v5  ;;  %v983_v21 = vld [vmem:[#allocation7 + $0x1268] sm:$0xff] }
 0x28a   : > { %5616 = vmatpush2.bf16.msra.mxu0 %v11699_v30  ;;  %v1031_v30 = vld [vmem:[#allocation7 + $0x13e8] sm:$0xff] }
 0x28b   : > { %5657 = vmatpush2.bf16.msra.mxu1 %v11189_v44  ;;  %5617 = vmatprep.subr.bf16.mxu0 %v11684_v49  ;;  %v11603_v44 = vcombine.low %v1038_v4, %v1046_v5  ;;  %v11093_v49 = vcombine.low %v527_v6, %v535_v7  ;;  %v11590_v22 = vcombine.high %v1023_v20, %v1031_v30  ;;  %v703_v6 = vld [vmem:[#allocation7 + $0x9a8] sm:$0xff] }
 0x28c   : > { %5658 = vmatprep.subr.bf16.mxu1 %v11174_v62  ;;  %v11334_v62 = vcombine.high %v767_v16, %v775_v17  ;;  %v11542_v5 = vcombine.high %v975_v58, %v983_v21  ;;  %v711_v7 = vld [vmem:[#allocation7 + $0x9e8] sm:$0xff] }
 0x28e   : > { %5618 = vmatpush2.bf16.msra.mxu0 %v11683_v50  ;;  %v1015_v50 = vld [vmem:[#allocation7 + $0x1368] sm:$0xff] }
 0x28f   : > { %5659 = vmatpush2.bf16.msra.mxu1 %v11173_v32  ;;  %5619 = vmatprep.subr.bf16.mxu0 %v11668_v33  ;;  %v11333_v32 = vcombine.low %v767_v16, %v775_v17  ;;  %v11589_v33 = vcombine.low %v1023_v20, %v1031_v30  ;;  %v11574_v61 = vcombine.high %v1007_v35, %v1015_v50  ;;  %v687_v20 = vld [vmem:[#allocation7 + $0x928] sm:$0xff] }
 0x290   : > { %5660 = vmatprep.subr.bf16.mxu1 %v11158_v34  ;;  %v11318_v34 = vcombine.high %v751_v25, %v759_v29  ;;  %v11573_v43 = vcombine.low %v1007_v35, %v1015_v50  ;;  %v11270_v16 = vcombine.high %v703_v6, %v711_v7  ;;  %v695_v30 = vld [vmem:[#allocation7 + $0x968] sm:$0xff] }
 0x291   : > { %v11254_v25 = vcombine.high %v687_v20, %v695_v30  ;;  %v671_v35 = vld [vmem:[#allocation7 + $0x8a8] sm:$0xff] }
 0x292   : > { %5620 = vmatpush2.bf16.msra.mxu0 %v11667_v40  ;;  %v991_v40 = vld [vmem:[#allocation7 + $0x12a8] sm:$0xff] }
 0x293   : > { %5661 = vmatpush2.bf16.msra.mxu1 %v11157_v41  ;;  %5621 = vmatprep.subr.bf16.mxu0 %v11652_v42  ;;  %v999_v41 = vld [vmem:[#allocation7 + $0x12e8] sm:$0xff] }
 0x294   : > { %5662 = vmatprep.subr.bf16.mxu1 %v11142_v46  ;;  %v679_v50 = vld [vmem:[#allocation7 + $0x8e8] sm:$0xff] }
 0x296   : > { %5622 = vmatpush2.bf16.msra.mxu0 %v11651_v52 }
 0x297   : > { %5663 = vmatpush2.bf16.msra.mxu1 %v11141_v1  ;;  %5623 = vmatprep.subr.bf16.mxu0 %v11636_v53  ;;  %v11558_v53 = vcombine.high %v991_v40, %v999_v41 }
 0x298   : > { %5664 = vmatprep.subr.bf16.mxu1 %v11126_v45  ;;  %v727_v45 = vld [vmem:[#allocation7 + $0xa68] sm:$0xff] }
 0x29a   : > { %5624 = vmatpush2.bf16.msra.mxu0 %v11635_v0 }
 0x29b   : > { %5665 = vmatpush2.bf16.msra.mxu1 %v11125_v2  ;;  %5625 = vmatprep.subr.bf16.mxu0 %v11620_v51  ;;  %v11557_v51 = vcombine.low %v991_v40, %v999_v41  ;;  %v663_v40 = vld [vmem:[#allocation7 + $0x868] sm:$0xff] }
 0x29c   : > { %5666 = vmatprep.subr.bf16.mxu1 %v11110_v3  ;;  %v911_v41 = vld [vmem:[#allocation7 + $0x1028] sm:$0xff] }
 0x29e   : > { %5626 = vmatpush2.bf16.msra.mxu0 %v11619_v8  ;;  %v959_v8 = vld [vmem:[#allocation7 + $0x11a8] sm:$0xff] }
 0x29f   : > { %5667 = vmatpush2.bf16.msra.mxu1 %v11109_v10  ;;  %5627 = vmatprep.subr.bf16.mxu0 %v11604_v11  ;;  %v967_v10 = vld [vmem:[#allocation7 + $0x11e8] sm:$0xff] }
 0x2a0   : > { %5668 = vmatprep.subr.bf16.mxu1 %v11094_v15  ;;  %v11541_v15 = vcombine.low %v975_v58, %v983_v21  ;;  %v11526_v17 = vcombine.high %v959_v8, %v967_v10  ;;  %v1159_v58 = vld [vmem:[#allocation7 + $0x17e8] sm:$0xff] }
 0x2a2   : > { %5628 = vmatpush2.bf16.msra.mxu0 %v11603_v44  ;;  %v943_v44 = vld [vmem:[#allocation7 + $0x1128] sm:$0xff] }
 0x2a3   : > { %5669 = vmatpush2.bf16.msra.mxu1 %v11093_v49  ;;  %5679 = vmatprep.subr.bf16.mxu0 %v11334_v62  ;;  %v951_v49 = vld [vmem:[#allocation7 + $0x1168] sm:$0xff]  ;;  %v11269_v62 = vcombine.low %v703_v6, %v711_v7 }
 0x2a4   : > { %5720 = vmatprep.subr.bf16.mxu1 %v11590_v22  ;;  %v11525_v22 = vcombine.low %v959_v8, %v967_v10  ;;  %v11510_v29 = vcombine.high %v943_v44, %v951_v49 }
 0x2a5   : > { %v5385_v39 = vpop.f32.mrf.mxu0  ;;  %5630 = vmatmul.mubr.bf16.vlgmr.msra.gmra.mxu0 %v13685_v37 }
 0x2a6   : > { %v13803_v42 = vadd.f32 %v5385_v39, %v13786_v28  ;;  %v13805_v46 = vpop.f32.mrf.mxu1  ;;  %5671 = vmatmul.mubr.bf16.vlgmr.msra.gmra.mxu1 %v13667_v23  ;;  %5680 = vmatpush1.bf16.msra.mxu0 %v11333_v32  ;;  %v719_v28 = vld [vmem:[#allocation7 + $0xa28] sm:$0xff] }
 0x2a7   : > { %5721 = vmatpush1.bf16.msra.mxu1 %v11589_v33  ;;  %v5387_v26 = vpop.f32.mrf.mxu0  ;;  %5681 = vmatprep.subr.bf16.mxu0 %v11318_v34  ;;  %v11286_v3 = vcombine.high %v719_v28, %v727_v45  ;;  %v11285_v11 = vcombine.low %v719_v28, %v727_v45  ;;  %v927_v32 = vld [vmem:[#allocation7 + $0x10a8] sm:$0xff]  ;;  %v11253_v34 = vcombine.low %v687_v20, %v695_v30 }
 0x2a8   : > { %v13809_v52 = vadd.f32 %v5387_v26, %v13789_v56  ;;  %v13811_v1 = vpop.f32.mrf.mxu1  ;;  %5722 = vmatprep.subr.bf16.mxu1 %v11574_v61  ;;  %5711 = vmatprep.mubr.bf16.mxu0 %v13643_v60  ;;  %v11301_v56 = vcombine.low %v735_v55, %v743_v38  ;;  %v935_v33 = vld [vmem:[#allocation7 + $0x10e8] sm:$0xff]  ;;  %v11509_v61 = vcombine.low %v943_v44, %v951_v49 }
 0x2a9   : > { %v5389_v57 = vpop.f32.mrf.mxu0  ;;  %5752 = vmatprep.mubr.bf16.mxu1 %v13677_v54  ;;  %v11238_v55 = vcombine.high %v671_v35, %v679_v50  ;;  %v11494_v38 = vcombine.high %v927_v32, %v935_v33  ;;  %v655_v39 = vld [vmem:[#allocation7 + $0x828] sm:$0xff]  ;;  %v11237_v26 = vcombine.low %v671_v35, %v679_v50 }
 0x2aa   : > { %v11725_v63 = vpack.c.bf16 %v13809_v52, %v13803_v42  ;;  %v5430_v0 = vpop.f32.mrf.mxu1  ;;  %5682 = vmatpush1.bf16.msra.mxu0 %v11317_v47  ;;  %v919_v47 = vld [vmem:[#allocation7 + $0x1068] sm:$0xff]  ;;  %v11221_v21 = vcombine.low %v655_v39, %v663_v40  ;;  %v6079_v42 = vrot.slane %v6071_v18, %v13768_v9  ;;  %v688_v52 = vld [vmem:[#allocation7 + $0x930] sm:$0xff] }
 0x2ab   : > { %5723 = vmatpush1.bf16.msra.mxu1 %v11573_v43  ;;  %v5390_v2 = vpop.f32.mrf.mxu0  ;;  %5683 = vmatprep.subr.bf16.mxu0 %v11302_v48  ;;  %v11493_v43 = vcombine.low %v927_v32, %v935_v33  ;;  %v11222_v48 = vcombine.high %v655_v39, %v663_v40  ;;  %v895_v28 = vld [vmem:[#allocation7 + $0xfa8] sm:$0xff]  ;;  %v11477_v0 = vcombine.low %v911_v41, %v919_v47 }
 0x2ac   : > { %v5431_v4 = vpop.f32.mrf.mxu1  ;;  %5724 = vmatprep.subr.bf16.mxu1 %v11558_v53  ;;  %v11478_v53 = vcombine.high %v911_v41, %v919_v47  ;;  %v903_v45 = vld [vmem:[#allocation7 + $0xfe8] sm:$0xff] }
 0x2ad   : > { %v1151_v57 = vld [vmem:[#allocation7 + $0x17a8] sm:$0xff]  ;;  %v11461_v6 = vcombine.low %v895_v28, %v903_v45 }
 0x2ae   : > { %5684 = vmatpush1.bf16.msra.mxu0 %v11301_v56  ;;  %v11462_v56 = vcombine.high %v895_v28, %v903_v45  ;;  %v11718_v2 = vcombine.high %v1151_v57, %v1159_v58  ;;  %v1135_v4 = vld [vmem:[#allocation7 + $0x1728] sm:$0xff]  ;;  %v11717_v7 = vcombine.low %v1151_v57, %v1159_v58 }
 0x2af   : > { %5725 = vmatpush1.bf16.msra.mxu1 %v11557_v51  ;;  %5685 = vmatprep.subr.bf16.mxu0 %v11286_v3  ;;  %v879_v51 = vld [vmem:[#allocation7 + $0xf28] sm:$0xff] }
 0x2b0   : > { %5726 = vmatprep.subr.bf16.mxu1 %v11542_v5  ;;  %v887_v3 = vld [vmem:[#allocation7 + $0xf68] sm:$0xff] }
 0x2b1   : > { %v1143_v5 = vld [vmem:[#allocation7 + $0x1768] sm:$0xff]  ;;  %v11446_v8 = vcombine.high %v879_v51, %v887_v3  ;;  %v11445_v20 = vcombine.low %v879_v51, %v887_v3 }
 0x2b2   : > { %5686 = vmatpush1.bf16.msra.mxu0 %v11285_v11  ;;  %v11702_v10 = vcombine.high %v1135_v4, %v1143_v5  ;;  %v863_v11 = vld [vmem:[#allocation7 + $0xea8] sm:$0xff]  ;;  %v11701_v30 = vcombine.low %v1135_v4, %v1143_v5 }
 0x2b3   : > { %5727 = vmatpush1.bf16.msra.mxu1 %v11541_v15  ;;  %5687 = vmatprep.subr.bf16.mxu0 %v11270_v16  ;;  %v871_v15 = vld [vmem:[#allocation7 + $0xee8] sm:$0xff] }
 0x2b4   : > { %5728 = vmatprep.subr.bf16.mxu1 %v11526_v17  ;;  %v1119_v16 = vld [vmem:[#allocation7 + $0x16a8] sm:$0xff]  ;;  %v11430_v44 = vcombine.high %v863_v11, %v871_v15  ;;  %v11429_v35 = vcombine.low %v863_v11, %v871_v15 }
 0x2b5   : > { %v1127_v17 = vld [vmem:[#allocation7 + $0x16e8] sm:$0xff] }
 0x2b6   : > { %5688 = vmatpush1.bf16.msra.mxu0 %v11269_v62  ;;  %v11686_v49 = vcombine.high %v1119_v16, %v1127_v17  ;;  %v847_v62 = vld [vmem:[#allocation7 + $0xe28] sm:$0xff]  ;;  %v11685_v50 = vcombine.low %v1119_v16, %v1127_v17 }
 0x2b7   : > { %5729 = vmatpush1.bf16.msra.mxu1 %v11525_v22  ;;  %5689 = vmatprep.subr.bf16.mxu0 %v11254_v25  ;;  %v855_v22 = vld [vmem:[#allocation7 + $0xe68] sm:$0xff] }
 0x2b8   : > { %5730 = vmatprep.subr.bf16.mxu1 %v11510_v29  ;;  %v1103_v25 = vld [vmem:[#allocation7 + $0x1628] sm:$0xff]  ;;  %v11414_v32 = vcombine.high %v847_v62, %v855_v22  ;;  %v11413_v39 = vcombine.low %v847_v62, %v855_v22 }
 0x2b9   : > { %v1111_v29 = vld [vmem:[#allocation7 + $0x1668] sm:$0xff] }
 0x2ba   : > { %5690 = vmatpush1.bf16.msra.mxu0 %v11253_v34  ;;  %v11670_v33 = vcombine.high %v1103_v25, %v1111_v29  ;;  %v831_v34 = vld [vmem:[#allocation7 + $0xda8] sm:$0xff]  ;;  %v11669_v40 = vcombine.low %v1103_v25, %v1111_v29 }
 0x2bb   : > { %5731 = vmatpush1.bf16.msra.mxu1 %v11509_v61  ;;  %5691 = vmatprep.subr.bf16.mxu0 %v11238_v55  ;;  %v839_v61 = vld [vmem:[#allocation7 + $0xde8] sm:$0xff] }
 0x2bc   : > { %5732 = vmatprep.subr.bf16.mxu1 %v11494_v38  ;;  %v1087_v55 = vld [vmem:[#allocation7 + $0x15a8] sm:$0xff]  ;;  %v11398_v41 = vcombine.high %v831_v34, %v839_v61  ;;  %v11397_v28 = vcombine.low %v831_v34, %v839_v61 }
 0x2bd   : > { %v1095_v38 = vld [vmem:[#allocation7 + $0x15e8] sm:$0xff] }
 0x2be   : > { %5692 = vmatpush1.bf16.msra.mxu0 %v11237_v26  ;;  %v11654_v47 = vcombine.high %v1087_v55, %v1095_v38  ;;  %v815_v26 = vld [vmem:[#allocation7 + $0xd28] sm:$0xff]  ;;  %v11653_v45 = vcombine.low %v1087_v55, %v1095_v38 }
 0x2bf   : > { %5733 = vmatpush1.bf16.msra.mxu1 %v11493_v43  ;;  %5693 = vmatprep.subr.bf16.mxu0 %v11222_v48  ;;  %v823_v43 = vld [vmem:[#allocation7 + $0xd68] sm:$0xff] }
 0x2c0   : > { %5734 = vmatprep.subr.bf16.mxu1 %v11478_v53  ;;  %v1071_v48 = vld [vmem:[#allocation7 + $0x1528] sm:$0xff]  ;;  %v11382_v57 = vcombine.high %v815_v26, %v823_v43  ;;  %v11381_v51 = vcombine.low %v815_v26, %v823_v43  ;;  %v744_v26 = vld [vmem:[#allocation7 + $0xaf0] sm:$0xff] }
 0x2c1   : > { %v1079_v53 = vld [vmem:[#allocation7 + $0x1568] sm:$0xff] }
 0x2c2   : > { %5694 = vmatpush1.bf16.msra.mxu0 %v11221_v21  ;;  %v11638_v58 = vcombine.high %v1071_v48, %v1079_v53  ;;  %v799_v21 = vld [vmem:[#allocation7 + $0xca8] sm:$0xff]  ;;  %v11637_v3 = vcombine.low %v1071_v48, %v1079_v53 }
 0x2c3   : > { %5735 = vmatpush1.bf16.msra.mxu1 %v11477_v0  ;;  %5695 = vmatprep.subr.bf16.mxu0 %v11462_v56  ;;  %v807_v0 = vld [vmem:[#allocation7 + $0xce8] sm:$0xff] }
 0x2c4   : > { %5736 = vmatprep.subr.bf16.mxu1 %v11718_v2  ;;  %v1055_v56 = vld [vmem:[#allocation7 + $0x14a8] sm:$0xff]  ;;  %v11366_v4 = vcombine.high %v799_v21, %v807_v0  ;;  %v11365_v11 = vcombine.low %v799_v21, %v807_v0 }
 0x2c5   : > { %v1063_v2 = vld [vmem:[#allocation7 + $0x14e8] sm:$0xff] }
 0x2c6   : > { %5696 = vmatpush2.bf16.msra.mxu0 %v11461_v6  ;;  %v11622_v5 = vcombine.high %v1055_v56, %v1063_v2  ;;  %v783_v6 = vld [vmem:[#allocation7 + $0xc28] sm:$0xff]  ;;  %v11621_v15 = vcombine.low %v1055_v56, %v1063_v2  ;;  %v464_v56 = vld [vmem:[#allocation7 + $0x230] sm:$0xff] }
 0x2c7   : > { %5737 = vmatpush2.bf16.msra.mxu1 %v11717_v7  ;;  %5697 = vmatprep.subr.bf16.mxu0 %v11446_v8  ;;  %v791_v7 = vld [vmem:[#allocation7 + $0xc68] sm:$0xff]  ;;  %v472_v2 = vld [vmem:[#allocation7 + $0x270] sm:$0xff] }
 0x2c8   : > { %5738 = vmatprep.subr.bf16.mxu1 %v11702_v10  ;;  %v1039_v8 = vld [vmem:[#allocation7 + $0x1428] sm:$0xff]  ;;  %v11350_v16 = vcombine.high %v783_v6, %v791_v7  ;;  %v11349_v62 = vcombine.low %v783_v6, %v791_v7 }
 0x2c9   : > { %v1047_v10 = vld [vmem:[#allocation7 + $0x1468] sm:$0xff] }
 0x2ca   : > { %5698 = vmatpush2.bf16.msra.mxu0 %v11445_v20  ;;  %v11606_v17 = vcombine.high %v1039_v8, %v1047_v10  ;;  %v512_v20 = vld [vmem:[#allocation7 + $0x3b0] sm:$0xff]  ;;  %v11605_v22 = vcombine.low %v1039_v8, %v1047_v10  ;;  %v11032_v10 = vcombine.high %v464_v56, %v472_v2 }
 0x2cb   : > { %5739 = vmatpush2.bf16.msra.mxu1 %v11701_v30  ;;  %5699 = vmatprep.subr.bf16.mxu0 %v11430_v44  ;;  %v520_v30 = vld [vmem:[#allocation7 + $0x3f0] sm:$0xff] }
 0x2cc   : > { %5740 = vmatprep.subr.bf16.mxu1 %v11686_v49  ;;  %v768_v44 = vld [vmem:[#allocation7 + $0xbb0] sm:$0xff]  ;;  %v11080_v25 = vcombine.high %v512_v20, %v520_v30  ;;  %v11079_v34 = vcombine.low %v512_v20, %v520_v30 }
 0x2cd   : > { %v776_v49 = vld [vmem:[#allocation7 + $0xbf0] sm:$0xff] }
 0x2ce   : > { %5700 = vmatpush2.bf16.msra.mxu0 %v11429_v35  ;;  %v11336_v29 = vcombine.high %v768_v44, %v776_v49  ;;  %v496_v35 = vld [vmem:[#allocation7 + $0x330] sm:$0xff]  ;;  %v11335_v61 = vcombine.low %v768_v44, %v776_v49  ;;  %v6063_v49 = vrot.slane %v11725_v63, %v13768_v9 }
 0x2cf   : > { %5741 = vmatpush2.bf16.msra.mxu1 %v11685_v50  ;;  %5701 = vmatprep.subr.bf16.mxu0 %v11414_v32  ;;  %v504_v50 = vld [vmem:[#allocation7 + $0x370] sm:$0xff] }
 0x2d0   : > { %5742 = vmatprep.subr.bf16.mxu1 %v11670_v33  ;;  %v752_v32 = vld [vmem:[#allocation7 + $0xb30] sm:$0xff]  ;;  %v11064_v55 = vcombine.high %v496_v35, %v504_v50  ;;  %v11063_v53 = vcombine.low %v496_v35, %v504_v50 }
 0x2d1   : > { %v760_v33 = vld [vmem:[#allocation7 + $0xb70] sm:$0xff] }
 0x2d2   : > { %5702 = vmatpush2.bf16.msra.mxu0 %v11413_v39  ;;  %v11320_v38 = vcombine.high %v752_v32, %v760_v33  ;;  %v480_v39 = vld [vmem:[#allocation7 + $0x2b0] sm:$0xff] }
 0x2d3   : > { %5743 = vmatpush2.bf16.msra.mxu1 %v11669_v40  ;;  %5703 = vmatprep.subr.bf16.mxu0 %v11398_v41  ;;  %v488_v40 = vld [vmem:[#allocation7 + $0x2f0] sm:$0xff] }
 0x2d4   : > { %5744 = vmatprep.subr.bf16.mxu1 %v11654_v47  ;;  %v736_v47 = vld [vmem:[#allocation7 + $0xab0] sm:$0xff]  ;;  %v11047_v7 = vcombine.low %v480_v39, %v488_v40 }
 0x2d5   : > { %v11304_v0 = vcombine.high %v736_v47, %v744_v26  ;;  %v456_v20 = vld [vmem:[#allocation7 + $0x1f0] sm:$0xff] }
 0x2d6   : > { %5704 = vmatpush2.bf16.msra.mxu0 %v11397_v28  ;;  %v704_v30 = vld [vmem:[#allocation7 + $0x9b0] sm:$0xff] }
 0x2d7   : > { %5745 = vmatpush2.bf16.msra.mxu1 %v11653_v45  ;;  %5705 = vmatprep.subr.bf16.mxu0 %v11382_v57  ;;  %v11319_v45 = vcombine.low %v752_v32, %v760_v33  ;;  %v11048_v57 = vcombine.high %v480_v39, %v488_v40  ;;  %v712_v44 = vld [vmem:[#allocation7 + $0x9f0] sm:$0xff]  ;;  %v6283_v40 = vcvt.f32.s32 %v13793_v12 }
 0x2d8   : > { %5746 = vmatprep.subr.bf16.mxu1 %v11638_v58  ;;  %v11272_v32 = vcombine.high %v704_v30, %v712_v44  ;;  %v432_v33 = vld [vmem:[#allocation7 + $0x130] sm:$0xff] }
 0x2d9   : > { %v696_v63 = vld [vmem:[#allocation7 + $0x970] sm:$0xff] }
 0x2da   : > { %5706 = vmatpush2.bf16.msra.mxu0 %v11381_v51  ;;  %v720_v51 = vld [vmem:[#allocation7 + $0xa30] sm:$0xff]  ;;  %v11255_v12 = vcombine.low %v688_v52, %v696_v63 }
 0x2db   : > { %5747 = vmatpush2.bf16.msra.mxu1 %v11637_v3  ;;  %5707 = vmatprep.subr.bf16.mxu0 %v11366_v4  ;;  %v728_v3 = vld [vmem:[#allocation7 + $0xa70] sm:$0xff] }
 0x2dc   : > { %5748 = vmatprep.subr.bf16.mxu1 %v11622_v5 }
 0x2de   : > { %5708 = vmatpush2.bf16.msra.mxu0 %v11365_v11 }
 0x2df   : > { %5749 = vmatpush2.bf16.msra.mxu1 %v11621_v15  ;;  %5709 = vmatprep.subr.bf16.mxu0 %v11350_v16  ;;  %v11288_v16 = vcombine.high %v720_v51, %v728_v3 }
 0x2e0   : > { %5750 = vmatprep.subr.bf16.mxu1 %v11606_v17  ;;  %v448_v17 = vld [vmem:[#allocation7 + $0x1b0] sm:$0xff] }
 0x2e1   : > { %v11015_v39 = vcombine.low %v448_v17, %v456_v20 }
 0x2e2   : > { %5710 = vmatpush2.bf16.msra.mxu0 %v11349_v62 }
 0x2e3   : > { %5751 = vmatpush2.bf16.msra.mxu1 %v11605_v22  ;;  %5761 = vmatprep.subr.bf16.mxu0 %v11080_v25  ;;  %v11031_v22 = vcombine.low %v464_v56, %v472_v2  ;;  %v11287_v25 = vcombine.low %v720_v51, %v728_v3  ;;  %v6297_v56 = vcvt.f32.s32 %v13797_v31  ;;  %v656_v2 = vld [vmem:[#allocation7 + $0x830] sm:$0xff] }
 0x2e4   : > { %5802 = vmatprep.subr.bf16.mxu1 %v11336_v29  ;;  %v11016_v29 = vcombine.high %v448_v17, %v456_v20 }
 0x2e5   : > { %v5467_v41 = vpop.f32.mrf.mxu0  ;;  %5712 = vmatmul.mubr.bf16.vlgmr.msra.gmra.mxu0 %v13673_v27 }
 0x2e6   : > { %v5468_v43 = vadd.f32 %v5467_v41, %v13805_v46  ;;  %v5508_v48 = vpop.f32.mrf.mxu1  ;;  %5753 = vmatmul.mubr.bf16.vlgmr.msra.gmra.mxu1 %v13685_v37  ;;  %5762 = vmatpush1.bf16.msra.mxu0 %v11079_v34  ;;  %v440_v34 = vld [vmem:[#allocation7 + $0x170] sm:$0xff]  ;;  %v11271_v41 = vcombine.low %v704_v30, %v712_v44  ;;  %v6306_v44 = vsub.s32 %v13704_v24, %v13692_v36 }
 0x2e7   : > { %5803 = vmatpush1.bf16.msra.mxu1 %v11335_v61  ;;  %v5469_v28 = vpop.f32.mrf.mxu0  ;;  %5763 = vmatprep.subr.bf16.mxu0 %v11064_v55  ;;  %v6149_v61 = vrot.slane %v6141_v19, %v13768_v9  ;;  %v680_v19 = vld [vmem:[#allocation7 + $0x8f0] sm:$0xff] }
 0x2e8   : > { %v5470_v58 = vadd.f32 %v5469_v28, %v13811_v1  ;;  %v5510_v21 = vpop.f32.mrf.mxu1  ;;  %5804 = vmatprep.subr.bf16.mxu1 %v11320_v38  ;;  %5793 = vmatprep.mubr.bf16.mxu0 %v13639_v59  ;;  %v5509_v4 = vadd.f32 %v5508_v48, %v5468_v43  ;;  %v11303_v1 = vcombine.low %v736_v47, %v744_v26  ;;  %v608_v36 = vld [vmem:[#allocation7 + $0x6b0] sm:$0xff] }
 0x2e9   : > { %v5471_v46 = vpop.f32.mrf.mxu0  ;;  %5834 = vmatprep.mubr.bf16.mxu1 %v13643_v60  ;;  %v11000_v47 = vcombine.high %v432_v33, %v440_v34  ;;  %v11256_v48 = vcombine.high %v688_v52, %v696_v63  ;;  %v10999_v28 = vcombine.low %v432_v33, %v440_v34  ;;  %v616_v24 = vld [vmem:[#allocation7 + $0x6f0] sm:$0xff] }
 0x2ea   : > { %v5511_v5 = vadd.f32 %v5510_v21, %v5470_v58  ;;  %v5512_v6 = vpop.f32.mrf.mxu1  ;;  %5764 = vmatpush1.bf16.msra.mxu0 %v11063_v53  ;;  %v416_v53 = vld [vmem:[#allocation7 + $0xb0] sm:$0xff]  ;;  %v11240_v58 = vcombine.high %v672_v14, %v680_v19 }
 0x2eb   : > { %5805 = vmatpush1.bf16.msra.mxu1 %v11319_v45  ;;  %v5472_v8 = vpop.f32.mrf.mxu0  ;;  %5765 = vmatprep.subr.bf16.mxu0 %v11048_v57  ;;  %v10984_v45 = vcombine.high %v416_v53, %v424_v13  ;;  %v6284_v57 = vshll.u32 %v6283_v40, 16  ;;  %v400_v21 = vld [vmem:[#allocation7 + $0x30] sm:$0xff]  ;;  %v10983_v3 = vcombine.low %v416_v53, %v424_v13 }
 0x2ec   : > { %v11726_v11 = vpack.c.bf16 %v5511_v5, %v5509_v4  ;;  %v5513_v15 = vpop.f32.mrf.mxu1  ;;  %5806 = vmatprep.subr.bf16.mxu1 %v11304_v0  ;;  %v408_v0 = vld [vmem:[#allocation7 + $0x70] sm:$0xff]  ;;  %v11239_v5 = vcombine.low %v672_v14, %v680_v19  ;;  %v11175_v14 = vcombine.low %v608_v36, %v616_v24 }
 0x2ed   : > { %v664_v46 = vld [vmem:[#allocation7 + $0x870] sm:$0xff]  ;;  %v10968_v6 = vcombine.high %v400_v21, %v408_v0  ;;  %v10967_v31 = vcombine.low %v400_v21, %v408_v0 }
 0x2ee   : > { %v6070_v62 = vrot.slane %v11726_v11, %v13768_v9  ;;  %5766 = vmatpush1.bf16.msra.mxu0 %v11047_v7  ;;  %v11224_v7 = vcombine.high %v656_v2, %v664_v46  ;;  %v640_v8 = vld [vmem:[#allocation7 + $0x7b0] sm:$0xff]  ;;  %v6298_v11 = vshll.u32 %v6297_v56, 16  ;;  %v11223_v17 = vcombine.low %v656_v2, %v664_v46 }
 0x2ef   : > { %5807 = vmatpush1.bf16.msra.mxu1 %v11303_v1  ;;  %5767 = vmatprep.subr.bf16.mxu0 %v11032_v10  ;;  %v648_v1 = vld [vmem:[#allocation7 + $0x7f0] sm:$0xff] }
 0x2f0   : > { %v6072_v35 = vcombine.low %v6063_v49, %v6070_v62  ;;  %v6142_v50 = vcombine.high %v6063_v49, %v6070_v62  ;;  %5808 = vmatprep.subr.bf16.mxu1 %v11288_v16  ;;  %v896_v15 = vld [vmem:[#allocation7 + $0xfb0] sm:$0xff]  ;;  %v11208_v30 = vcombine.high %v640_v8, %v648_v1  ;;  %v11207_v33 = vcombine.low %v640_v8, %v648_v1 }
 0x2f1   : > { %v904_v16 = vld [vmem:[#allocation7 + $0xff0] sm:$0xff] }
 0x2f2   : > { %v6086_v55 = vrot.slane %v6072_v35, %v13768_v9  ;;  %v6156_v38 = vrot.slane %v6142_v50, %v13768_v9  ;;  %5768 = vmatpush1.bf16.msra.mxu0 %v11031_v22  ;;  %v11464_v22 = vcombine.high %v896_v15, %v904_v16  ;;  %v880_v35 = vld [vmem:[#allocation7 + $0xf30] sm:$0xff]  ;;  %v11463_v34 = vcombine.low %v896_v15, %v904_v16 }
 0x2f3   : > { %5809 = vmatpush1.bf16.msra.mxu1 %v11287_v25  ;;  %5769 = vmatprep.subr.bf16.mxu0 %v11016_v29  ;;  %v624_v25 = vld [vmem:[#allocation7 + $0x730] sm:$0xff] }
 0x2f4   : > { %v6087_v18 = vcombine.low %v6079_v42, %v6086_v55  ;;  %v6157_v26 = vcombine.low %v6149_v61, %v6156_v38  ;;  %v6179_v43 = vcombine.high %v6079_v42, %v6086_v55  ;;  %5810 = vmatprep.subr.bf16.mxu1 %v11272_v32  ;;  %v632_v29 = vld [vmem:[#allocation7 + $0x770] sm:$0xff] }
 0x2f5   : > { %v888_v50 = vld [vmem:[#allocation7 + $0xf70] sm:$0xff]  ;;  %v11192_v42 = vcombine.high %v624_v25, %v632_v29  ;;  %v11191_v40 = vcombine.low %v624_v25, %v632_v29 }
 0x2f6   : > { %6139 = vst [vmem:[#allocation2 + $0x28] sm:$0xff] %v6087_v18  ;;  %6177 = vst [vmem:[#allocation2 + $0x8] sm:$0xff] %v6157_v26  ;;  %5770 = vmatpush1.bf16.msra.mxu0 %v11015_v39  ;;  %v11448_v61 = vcombine.high %v880_v35, %v888_v50  ;;  %v864_v55 = vld [vmem:[#allocation7 + $0xeb0] sm:$0xff] }
 0x2f7   : > { %6183 = vst [vmem:[#allocation2 + $0x18] sm:$0xff] %v6179_v43  ;;  %5811 = vmatpush1.bf16.msra.mxu1 %v11271_v41  ;;  %5771 = vmatprep.subr.bf16.mxu0 %v11000_v47  ;;  %v872_v38 = vld [vmem:[#allocation7 + $0xef0] sm:$0xff]  ;;  %v11447_v41 = vcombine.low %v880_v35, %v888_v50  ;;  %v11176_v47 = vcombine.high %v608_v36, %v616_v24 }
 0x2f8   : > { %5812 = vmatprep.subr.bf16.mxu1 %v11256_v48  ;;  %v11432_v26 = vcombine.high %v864_v55, %v872_v38  ;;  %v592_v43 = vld [vmem:[#allocation7 + $0x630] sm:$0xff]  ;;  %v11431_v19 = vcombine.low %v864_v55, %v872_v38  ;;  %v497_v38 = vld [vmem:[#allocation7 + $0x338] sm:$0xff] }
 0x2f9   : > { %v6281_v51 = vpop.xlane.xlu1 %6280  ;;  %v600_v48 = vld [vmem:[#allocation7 + $0x670] sm:$0xff] }
 0x2fa   : > { %5772 = vmatpush1.bf16.msra.mxu0 %v10999_v28  ;;  %v6282_v4 = vcvt.f32.s32 %v6281_v51  ;;  %v848_v53 = vld [vmem:[#allocation7 + $0xe30] sm:$0xff]  ;;  %v11160_v28 = vcombine.high %v592_v43, %v600_v48  ;;  %v11159_v0 = vcombine.low %v592_v43, %v600_v48 }
 0x2fb   : > { %5813 = vmatpush1.bf16.msra.mxu1 %v11255_v12  ;;  %5773 = vmatprep.subr.bf16.mxu0 %v10984_v45  ;;  %v856_v13 = vld [vmem:[#allocation7 + $0xe70] sm:$0xff] }
 0x2fc   : > { %5814 = vmatprep.subr.bf16.mxu1 %v11240_v58  ;;  %v6285_v10 = vadd.s32 %v6284_v57, %v6282_v4  ;;  %v11416_v12 = vcombine.high %v848_v53, %v856_v13  ;;  %v576_v45 = vld [vmem:[#allocation7 + $0x5b0] sm:$0xff]  ;;  %v11415_v56 = vcombine.low %v848_v53, %v856_v13  ;;  %v481_v53 = vld [vmem:[#allocation7 + $0x2b8] sm:$0xff] }
 0x2fd   : > { %v584_v57 = vld [vmem:[#allocation7 + $0x5f0] sm:$0xff]  ;;  %v489_v13 = vld [vmem:[#allocation7 + $0x2f8] sm:$0xff] }
 0x2fe   : > { %5774 = vmatpush1.bf16.msra.mxu0 %v10983_v3  ;;  %v6295_v20 = vpop.xlane.xlu0 %6294  ;;  %v6300_v62 = vcvt.s32.f32 %v6285_v10  ;;  %v832_v58 = vld [vmem:[#allocation7 + $0xdb0] sm:$0xff]  ;;  %v11144_v2 = vcombine.high %v576_v45, %v584_v57 }
 0x2ff   : > { %5815 = vmatpush1.bf16.msra.mxu1 %v11239_v5  ;;  %5775 = vmatprep.subr.bf16.mxu0 %v10968_v6  ;;  %v6296_v49 = vcvt.f32.s32 %v6295_v20  ;;  %v840_v21 = vld [vmem:[#allocation7 + $0xdf0] sm:$0xff]  ;;  %v11143_v6 = vcombine.low %v576_v45, %v584_v57 }
 0x300   : > { %5816 = vmatprep.subr.bf16.mxu1 %v11224_v7  ;;  %v6307_v63 = vrot.slane %v6300_v62, %v6306_v44  ;;  %v11400_v46 = vcombine.high %v832_v58, %v840_v21  ;;  %v560_v51 = vld [vmem:[#allocation7 + $0x530] sm:$0xff]  ;;  %v11399_v7 = vcombine.low %v832_v58, %v840_v21  ;;  %v11050_v21 = vcombine.high %v481_v53, %v489_v13 }
 0x301   : > { %v6299_v32 = vadd.s32 %v6298_v11, %v6296_v49  ;;  %v568_v3 = vld [vmem:[#allocation7 + $0x570] sm:$0xff] }
 0x302   : > { %5776 = vmatpush1.bf16.msra.mxu0 %v10967_v31  ;;  %v816_v4 = vld [vmem:[#allocation7 + $0xd30] sm:$0xff]  ;;  %v11128_v8 = vcombine.high %v560_v51, %v568_v3  ;;  %v11127_v31 = vcombine.low %v560_v51, %v568_v3  ;;  %v465_v51 = vld [vmem:[#allocation7 + $0x238] sm:$0xff] }
 0x303   : > { %5817 = vmatpush1.bf16.msra.mxu1 %v11223_v17  ;;  %5777 = vmatprep.subr.bf16.mxu0 %v11208_v30  ;;  %v6301_v52 = vcvt.s32.f32 %v6299_v32  ;;  %v824_v5 = vld [vmem:[#allocation7 + $0xd70] sm:$0xff]  ;;  %v473_v3 = vld [vmem:[#allocation7 + $0x278] sm:$0xff] }
 0x304   : > { %5818 = vmatprep.subr.bf16.mxu1 %v11464_v22  ;;  %v11384_v1 = vcombine.high %v816_v4, %v824_v5  ;;  %v544_v10 = vld [vmem:[#allocation7 + $0x4b0] sm:$0xff]  ;;  %v11383_v17 = vcombine.low %v816_v4, %v824_v5 }
 0x305   : > { %v6311_v39 = vrot.slane %v6301_v52, %v6306_v44  ;;  %v552_v11 = vld [vmem:[#allocation7 + $0x4f0] sm:$0xff] }
 0x306   : > { %5778 = vmatpush2.bf16.msra.mxu0 %v11207_v33  ;;  %v800_v15 = vld [vmem:[#allocation7 + $0xcb0] sm:$0xff]  ;;  %v11112_v20 = vcombine.high %v544_v10, %v552_v11  ;;  %v11111_v25 = vcombine.low %v544_v10, %v552_v11  ;;  %v11034_v10 = vcombine.high %v465_v51, %v473_v3 }
 0x307   : > { %5819 = vmatpush2.bf16.msra.mxu1 %v11463_v34  ;;  %5779 = vmatprep.subr.bf16.mxu0 %v11192_v42  ;;  %v6313_v18 = vsel %vm6312_vm5, %v6311_v39, %v6307_v63  ;;  %v808_v16 = vld [vmem:[#allocation7 + $0xcf0] sm:$0xff]  ;;  %v513_v34 = vld [vmem:[#allocation7 + $0x3b8] sm:$0xff] }
 0x308   : > { %5820 = vmatprep.subr.bf16.mxu1 %v11448_v61  ;;  %6316 = vst.msk [vmem:[#allocation3] sm:$0x3] %vm6315_vm6, %v6313_v18  ;;  %v11368_v30 = vcombine.high %v800_v15, %v808_v16  ;;  %v528_v44 = vld [vmem:[#allocation7 + $0x430] sm:$0xff]  ;;  %v11367_v29 = vcombine.low %v800_v15, %v808_v16  ;;  %v521_v42 = vld [vmem:[#allocation7 + $0x3f8] sm:$0xff] }
 0x309   : > { %v536_v49 = vld [vmem:[#allocation7 + $0x470] sm:$0xff]  ;;  %v11082_v36 = vcombine.high %v513_v34, %v521_v42  ;;  %v505_v39 = vld [vmem:[#allocation7 + $0x378] sm:$0xff] }
 0x30a   : > { %5780 = vmatpush2.bf16.msra.mxu0 %v11191_v40  ;;  %v784_v62 = vld [vmem:[#allocation7 + $0xc30] sm:$0xff]  ;;  %v11096_v35 = vcombine.high %v528_v44, %v536_v49  ;;  %v11095_v52 = vcombine.low %v528_v44, %v536_v49  ;;  %v11066_v18 = vcombine.high %v497_v38, %v505_v39  ;;  %v11065_v45 = vcombine.low %v497_v38, %v505_v39  ;;  %v449_v16 = vld [vmem:[#allocation7 + $0x1b8] sm:$0xff] }
 0x30b   : > { %5821 = vmatpush2.bf16.msra.mxu1 %v11447_v41  ;;  %5781 = vmatprep.subr.bf16.mxu0 %v11176_v47  ;;  %v792_v22 = vld [vmem:[#allocation7 + $0xc70] sm:$0xff]  ;;  %v11081_v41 = vcombine.low %v513_v34, %v521_v42  ;;  %v417_v34 = vld [vmem:[#allocation7 + $0xb8] sm:$0xff] }
 0x30c   : > { %5822 = vmatprep.subr.bf16.mxu1 %v11432_v26  ;;  %v11352_v50 = vcombine.high %v784_v62, %v792_v22  ;;  %v1024_v32 = vld [vmem:[#allocation7 + $0x13b0] sm:$0xff]  ;;  %v11351_v63 = vcombine.low %v784_v62, %v792_v22  ;;  %v433_v62 = vld [vmem:[#allocation7 + $0x138] sm:$0xff] }
 0x30d   : > { %v1032_v33 = vld [vmem:[#allocation7 + $0x13f0] sm:$0xff]  ;;  %v441_v22 = vld [vmem:[#allocation7 + $0x178] sm:$0xff] }
 0x30e   : > { %5782 = vmatpush2.bf16.msra.mxu0 %v11175_v14  ;;  %v11592_v61 = vcombine.high %v1024_v32, %v1032_v33  ;;  %v1008_v24 = vld [vmem:[#allocation7 + $0x1330] sm:$0xff]  ;;  %v11591_v40 = vcombine.low %v1024_v32, %v1032_v33  ;;  %v425_v42 = vld [vmem:[#allocation7 + $0xf8] sm:$0xff] }
 0x30f   : > { %5823 = vmatpush2.bf16.msra.mxu1 %v11431_v19  ;;  %5783 = vmatprep.subr.bf16.mxu0 %v11160_v28  ;;  %v1016_v55 = vld [vmem:[#allocation7 + $0x1370] sm:$0xff]  ;;  %v401_v38 = vld [vmem:[#allocation7 + $0x38] sm:$0xff] }
 0x310   : > { %5824 = vmatprep.subr.bf16.mxu1 %v11416_v12  ;;  %v11576_v47 = vcombine.high %v1008_v24, %v1016_v55  ;;  %v992_v26 = vld [vmem:[#allocation7 + $0x12b0] sm:$0xff]  ;;  %v11575_v19 = vcombine.low %v1008_v24, %v1016_v55  ;;  %v409_v39 = vld [vmem:[#allocation7 + $0x78] sm:$0xff] }
 0x311   : > { %v1000_v43 = vld [vmem:[#allocation7 + $0x12f0] sm:$0xff] }
 0x312   : > { %5784 = vmatpush2.bf16.msra.mxu0 %v11159_v0  ;;  %v11560_v57 = vcombine.high %v992_v26, %v1000_v43  ;;  %v976_v0 = vld [vmem:[#allocation7 + $0x1230] sm:$0xff]  ;;  %v11559_v5 = vcombine.low %v992_v26, %v1000_v43 }
 0x313   : > { %5825 = vmatpush2.bf16.msra.mxu1 %v11415_v56  ;;  %5785 = vmatprep.subr.bf16.mxu0 %v11144_v2  ;;  %v984_v56 = vld [vmem:[#allocation7 + $0x1270] sm:$0xff] }
 0x314   : > { %5826 = vmatprep.subr.bf16.mxu1 %v11400_v46  ;;  %v960_v11 = vld [vmem:[#allocation7 + $0x11b0] sm:$0xff] }
 0x315   : > { %v968_v15 = vld [vmem:[#allocation7 + $0x11f0] sm:$0xff] }
 0x316   : > { %5786 = vmatpush2.bf16.msra.mxu0 %v11143_v6  ;;  %v944_v44 = vld [vmem:[#allocation7 + $0x1130] sm:$0xff] }
 0x317   : > { %5827 = vmatpush2.bf16.msra.mxu1 %v11399_v7  ;;  %5787 = vmatprep.subr.bf16.mxu0 %v11128_v8  ;;  %v11049_v7 = vcombine.low %v481_v53, %v489_v13  ;;  %v11544_v8 = vcombine.high %v976_v0, %v984_v56  ;;  %v952_v49 = vld [vmem:[#allocation7 + $0x1170] sm:$0xff]  ;;  %v649_v53 = vld [vmem:[#allocation7 + $0x7f8] sm:$0xff] }
 0x318   : > { %5828 = vmatprep.subr.bf16.mxu1 %v11384_v1  ;;  %v928_v32 = vld [vmem:[#allocation7 + $0x10b0] sm:$0xff] }
 0x319   : > { %v936_v33 = vld [vmem:[#allocation7 + $0x10f0] sm:$0xff] }
 0x31a   : > { %5788 = vmatpush2.bf16.msra.mxu0 %v11127_v31  ;;  %v457_v31 = vld [vmem:[#allocation7 + $0x1f8] sm:$0xff]  ;;  %v912_v24 = vld [vmem:[#allocation7 + $0x1030] sm:$0xff] }
 0x31b   : > { %5829 = vmatpush2.bf16.msra.mxu1 %v11383_v17  ;;  %5789 = vmatprep.subr.bf16.mxu0 %v11112_v20  ;;  %v11543_v17 = vcombine.low %v976_v0, %v984_v56  ;;  %v11528_v20 = vcombine.high %v960_v11, %v968_v15  ;;  %v920_v55 = vld [vmem:[#allocation7 + $0x1070] sm:$0xff] }
 0x31c   : > { %5830 = vmatprep.subr.bf16.mxu1 %v11368_v30  ;;  %v11018_v30 = vcombine.high %v449_v16, %v457_v31  ;;  %v1152_v26 = vld [vmem:[#allocation7 + $0x17b0] sm:$0xff]  ;;  %v11479_v13 = vcombine.low %v912_v24, %v920_v55 }
 0x31d   : > { %v1160_v43 = vld [vmem:[#allocation7 + $0x17f0] sm:$0xff] }
 0x31e   : > { %5790 = vmatpush2.bf16.msra.mxu0 %v11111_v25  ;;  %v11527_v25 = vcombine.low %v960_v11, %v968_v15  ;;  %v11719_v0 = vcombine.low %v1152_v26, %v1160_v43  ;;  %v1104_v11 = vld [vmem:[#allocation7 + $0x1630] sm:$0xff] }
 0x31f   : > { %5831 = vmatpush2.bf16.msra.mxu1 %v11367_v29  ;;  %5791 = vmatprep.subr.bf16.mxu0 %v11096_v35  ;;  %v11017_v29 = vcombine.low %v449_v16, %v457_v31  ;;  %v11512_v35 = vcombine.high %v944_v44, %v952_v49  ;;  %v1112_v15 = vld [vmem:[#allocation7 + $0x1670] sm:$0xff]  ;;  %v593_v16 = vld [vmem:[#allocation7 + $0x638] sm:$0xff] }
 0x320   : > { %5832 = vmatprep.subr.bf16.mxu1 %v11352_v50  ;;  %v11002_v50 = vcombine.high %v433_v62, %v441_v22  ;;  %v601_v31 = vld [vmem:[#allocation7 + $0x678] sm:$0xff] }
 0x322   : > { %5792 = vmatpush2.bf16.msra.mxu0 %v11095_v52  ;;  %v11511_v52 = vcombine.low %v944_v44, %v952_v49  ;;  %v1088_v44 = vld [vmem:[#allocation7 + $0x15b0] sm:$0xff] }
 0x323   : > { %5833 = vmatpush2.bf16.msra.mxu1 %v11351_v63  ;;  %5843 = vmatprep.subr.bf16.mxu0 %v11592_v61  ;;  %v11001_v63 = vcombine.low %v433_v62, %v441_v22  ;;  %v11496_v61 = vcombine.high %v928_v32, %v936_v33  ;;  %v1096_v49 = vld [vmem:[#allocation7 + $0x15f0] sm:$0xff]  ;;  %v577_v62 = vld [vmem:[#allocation7 + $0x5b8] sm:$0xff] }
 0x324   : > { %5884 = vmatprep.subr.bf16.mxu1 %v11082_v36  ;;  %v10986_v36 = vcombine.high %v417_v34, %v425_v42  ;;  %v585_v22 = vld [vmem:[#allocation7 + $0x5f8] sm:$0xff] }
 0x325   : > { %v5549_v48 = vpop.f32.mrf.mxu0  ;;  %5794 = vmatmul.mubr.bf16.vlgmr.msra.gmra.mxu0 %v13667_v23 }
 0x326   : > { %v5590_v14 = vpop.f32.mrf.mxu1  ;;  %5835 = vmatmul.mubr.bf16.vlgmr.msra.gmra.mxu1 %v13673_v27  ;;  %5844 = vmatpush1.bf16.msra.mxu0 %v11591_v40  ;;  %v11495_v40 = vcombine.low %v928_v32, %v936_v33  ;;  %v1072_v32 = vld [vmem:[#allocation7 + $0x1530] sm:$0xff] }
 0x327   : > { %v13844_v28 = vadd.f32 %v5590_v14, %v5549_v48  ;;  %5885 = vmatpush1.bf16.msra.mxu1 %v11081_v41  ;;  %v5551_v12 = vpop.f32.mrf.mxu0  ;;  %5845 = vmatprep.subr.bf16.mxu0 %v11576_v47  ;;  %v10985_v41 = vcombine.low %v417_v34, %v425_v42  ;;  %v11480_v47 = vcombine.high %v912_v24, %v920_v55  ;;  %v641_v48 = vld [vmem:[#allocation7 + $0x7b8] sm:$0xff]  ;;  %v1080_v33 = vld [vmem:[#allocation7 + $0x1570] sm:$0xff] }
 0x328   : > { %v5592_v58 = vpop.f32.mrf.mxu1  ;;  %5886 = vmatprep.subr.bf16.mxu1 %v11066_v18  ;;  %5875 = vmatprep.mubr.bf16.mxu0 %v13677_v54  ;;  %v10970_v18 = vcombine.high %v401_v38, %v409_v39  ;;  %v10969_v14 = vcombine.low %v401_v38, %v409_v39  ;;  %v11209_v56 = vcombine.low %v641_v48, %v649_v53  ;;  %v561_v34 = vld [vmem:[#allocation7 + $0x538] sm:$0xff]  ;;  %v1056_v24 = vld [vmem:[#allocation7 + $0x14b0] sm:$0xff] }
 0x329   : > { %v13847_v2 = vadd.f32 %v5592_v58, %v5551_v12  ;;  %v5553_v46 = vpop.f32.mrf.mxu0  ;;  %5916 = vmatprep.mubr.bf16.mxu1 %v13639_v59  ;;  %v11033_v59 = vcombine.low %v465_v51, %v473_v3  ;;  %v11210_v12 = vcombine.high %v641_v48, %v649_v53  ;;  %v625_v58 = vld [vmem:[#allocation7 + $0x738] sm:$0xff]  ;;  %v1120_v3 = vld [vmem:[#allocation7 + $0x16b0] sm:$0xff] }
 0x32a   : > { %v5594_v4 = vpop.f32.mrf.mxu1  ;;  %5846 = vmatpush1.bf16.msra.mxu0 %v11575_v19  ;;  %v11720_v19 = vcombine.high %v1152_v26, %v1160_v43  ;;  %v569_v42 = vld [vmem:[#allocation7 + $0x578] sm:$0xff]  ;;  %v1064_v55 = vld [vmem:[#allocation7 + $0x14f0] sm:$0xff] }
 0x32b   : > { %5887 = vmatpush1.bf16.msra.mxu1 %v11065_v45  ;;  %v5554_v6 = vpop.f32.mrf.mxu0  ;;  %5847 = vmatprep.subr.bf16.mxu0 %v11560_v57  ;;  %v1136_v45 = vld [vmem:[#allocation7 + $0x1730] sm:$0xff]  ;;  %v545_v38 = vld [vmem:[#allocation7 + $0x4b8] sm:$0xff] }
 0x32c   : > { %v5595_v1 = vpop.f32.mrf.mxu1  ;;  %5888 = vmatprep.subr.bf16.mxu1 %v11050_v21  ;;  %v1144_v57 = vld [vmem:[#allocation7 + $0x1770] sm:$0xff]  ;;  %v633_v21 = vld [vmem:[#allocation7 + $0x778] sm:$0xff] }
 0x32d   : > { %v11704_v46 = vcombine.high %v1136_v45, %v1144_v57  ;;  %v11194_v51 = vcombine.high %v625_v58, %v633_v21  ;;  %v1128_v4 = vld [vmem:[#allocation7 + $0x16f0] sm:$0xff]  ;;  %v617_v6 = vld [vmem:[#allocation7 + $0x6f8] sm:$0xff] }
 0x32e   : > { %5848 = vmatpush1.bf16.msra.mxu0 %v11559_v5  ;;  %v609_v5 = vld [vmem:[#allocation7 + $0x6b8] sm:$0xff]  ;;  %v11688_v1 = vcombine.high %v1120_v3, %v1128_v4  ;;  %v1040_v26 = vld [vmem:[#allocation7 + $0x1430] sm:$0xff] }
 0x32f   : > { %5889 = vmatpush1.bf16.msra.mxu1 %v11049_v7  ;;  %5849 = vmatprep.subr.bf16.mxu0 %v11544_v8  ;;  %v11703_v7 = vcombine.low %v1136_v45, %v1144_v57  ;;  %v11193_v8 = vcombine.low %v625_v58, %v633_v21  ;;  %v553_v39 = vld [vmem:[#allocation7 + $0x4f8] sm:$0xff]  ;;  %v1048_v43 = vld [vmem:[#allocation7 + $0x1470] sm:$0xff] }
 0x330   : > { %5890 = vmatprep.subr.bf16.mxu1 %v11034_v10  ;;  %v11178_v10 = vcombine.high %v609_v5, %v617_v6  ;;  %v529_v48 = vld [vmem:[#allocation7 + $0x438] sm:$0xff] }
 0x331   : > { %v537_v53 = vld [vmem:[#allocation7 + $0x478] sm:$0xff] }
 0x332   : > { %5850 = vmatpush1.bf16.msra.mxu0 %v11543_v17  ;;  %v11687_v17 = vcombine.low %v1120_v3, %v1128_v4  ;;  %v769_v45 = vld [vmem:[#allocation7 + $0xbb8] sm:$0xff] }
 0x333   : > { %5891 = vmatpush1.bf16.msra.mxu1 %v11033_v59  ;;  %5851 = vmatprep.subr.bf16.mxu0 %v11528_v20  ;;  %v11177_v59 = vcombine.low %v609_v5, %v617_v6  ;;  %v11672_v20 = vcombine.high %v1104_v11, %v1112_v15  ;;  %v777_v57 = vld [vmem:[#allocation7 + $0xbf8] sm:$0xff] }
 0x334   : > { %5892 = vmatprep.subr.bf16.mxu1 %v11018_v30  ;;  %v11162_v30 = vcombine.high %v593_v16, %v601_v31  ;;  %v1025_v58 = vld [vmem:[#allocation7 + $0x13b8] sm:$0xff] }
 0x335   : > { %v1033_v21 = vld [vmem:[#allocation7 + $0x13f8] sm:$0xff] }
 0x336   : > { %5852 = vmatpush1.bf16.msra.mxu0 %v11527_v25  ;;  %v11671_v25 = vcombine.low %v1104_v11, %v1112_v15  ;;  %v753_v3 = vld [vmem:[#allocation7 + $0xb38] sm:$0xff] }
 0x337   : > { %5893 = vmatpush1.bf16.msra.mxu1 %v11017_v29  ;;  %5853 = vmatprep.subr.bf16.mxu0 %v11512_v35  ;;  %v11161_v29 = vcombine.low %v593_v16, %v601_v31  ;;  %v11656_v35 = vcombine.high %v1088_v44, %v1096_v49  ;;  %v761_v4 = vld [vmem:[#allocation7 + $0xb78] sm:$0xff] }
 0x338   : > { %5894 = vmatprep.subr.bf16.mxu1 %v11002_v50  ;;  %v11146_v50 = vcombine.high %v577_v62, %v585_v22  ;;  %v1009_v5 = vld [vmem:[#allocation7 + $0x1338] sm:$0xff] }
 0x339   : > { %v1017_v6 = vld [vmem:[#allocation7 + $0x1378] sm:$0xff] }
 0x33a   : > { %5854 = vmatpush1.bf16.msra.mxu0 %v11511_v52  ;;  %v11655_v52 = vcombine.low %v1088_v44, %v1096_v49  ;;  %v737_v11 = vld [vmem:[#allocation7 + $0xab8] sm:$0xff]  ;;  %v11577_v49 = vcombine.low %v1009_v5, %v1017_v6 }
 0x33b   : > { %5895 = vmatpush1.bf16.msra.mxu1 %v11001_v63  ;;  %5855 = vmatprep.subr.bf16.mxu0 %v11496_v61  ;;  %v11145_v63 = vcombine.low %v577_v62, %v585_v22  ;;  %v11640_v61 = vcombine.high %v1072_v32, %v1080_v33  ;;  %v745_v15 = vld [vmem:[#allocation7 + $0xaf8] sm:$0xff] }
 0x33c   : > { %5896 = vmatprep.subr.bf16.mxu1 %v10986_v36  ;;  %v11130_v36 = vcombine.high %v561_v34, %v569_v42  ;;  %v993_v31 = vld [vmem:[#allocation7 + $0x12b8] sm:$0xff]  ;;  %v11306_v62 = vcombine.high %v737_v11, %v745_v15 }
 0x33e   : > { %5856 = vmatpush1.bf16.msra.mxu0 %v11495_v40  ;;  %v11639_v40 = vcombine.low %v1072_v32, %v1080_v33  ;;  %v985_v32 = vld [vmem:[#allocation7 + $0x1278] sm:$0xff] }
 0x33f   : > { %5897 = vmatpush1.bf16.msra.mxu1 %v10985_v41  ;;  %5857 = vmatprep.subr.bf16.mxu0 %v11480_v47  ;;  %v11129_v41 = vcombine.low %v561_v34, %v569_v42  ;;  %v11624_v47 = vcombine.high %v1056_v24, %v1064_v55 }
 0x340   : > { %5898 = vmatprep.subr.bf16.mxu1 %v10970_v18  ;;  %v11114_v18 = vcombine.high %v545_v38, %v553_v39 }
 0x342   : > { %5858 = vmatpush1.bf16.msra.mxu0 %v11479_v13  ;;  %v11623_v13 = vcombine.low %v1056_v24, %v1064_v55  ;;  %v713_v24 = vld [vmem:[#allocation7 + $0x9f8] sm:$0xff] }
 0x343   : > { %5899 = vmatpush1.bf16.msra.mxu1 %v10969_v14  ;;  %5859 = vmatprep.subr.bf16.mxu0 %v11720_v19  ;;  %v11113_v14 = vcombine.low %v545_v38, %v553_v39  ;;  %v11608_v19 = vcombine.high %v1040_v26, %v1048_v43  ;;  %v961_v55 = vld [vmem:[#allocation7 + $0x11b8] sm:$0xff] }
 0x344   : > { %5900 = vmatprep.subr.bf16.mxu1 %v11210_v12  ;;  %v11098_v12 = vcombine.high %v529_v48, %v537_v53  ;;  %v969_v38 = vld [vmem:[#allocation7 + $0x11f8] sm:$0xff] }
 0x346   : > { %5860 = vmatpush2.bf16.msra.mxu0 %v11719_v0  ;;  %v11607_v0 = vcombine.low %v1040_v26, %v1048_v43  ;;  %v945_v26 = vld [vmem:[#allocation7 + $0x1138] sm:$0xff] }
 0x347   : > { %5901 = vmatpush2.bf16.msra.mxu1 %v11209_v56  ;;  %5861 = vmatprep.subr.bf16.mxu0 %v11704_v46  ;;  %v11097_v56 = vcombine.low %v529_v48, %v537_v53  ;;  %v11338_v46 = vcombine.high %v769_v45, %v777_v57  ;;  %v953_v43 = vld [vmem:[#allocation7 + $0x1178] sm:$0xff]  ;;  %v11529_v53 = vcombine.low %v961_v55, %v969_v38 }
 0x348   : > { %5902 = vmatprep.subr.bf16.mxu1 %v11194_v51  ;;  %v11594_v51 = vcombine.high %v1025_v58, %v1033_v21 }
 0x34a   : > { %5862 = vmatpush2.bf16.msra.mxu0 %v11703_v7  ;;  %v11337_v7 = vcombine.low %v769_v45, %v777_v57  ;;  %v929_v45 = vld [vmem:[#allocation7 + $0x10b8] sm:$0xff] }
 0x34b   : > { %5903 = vmatpush2.bf16.msra.mxu1 %v11193_v8  ;;  %5863 = vmatprep.subr.bf16.mxu0 %v11688_v1  ;;  %v11593_v8 = vcombine.low %v1025_v58, %v1033_v21  ;;  %v11322_v1 = vcombine.high %v753_v3, %v761_v4  ;;  %v937_v57 = vld [vmem:[#allocation7 + $0x10f8] sm:$0xff]  ;;  %v11513_v21 = vcombine.low %v945_v26, %v953_v43 }
 0x34c   : > { %5904 = vmatprep.subr.bf16.mxu1 %v11178_v10  ;;  %v11578_v10 = vcombine.high %v1009_v5, %v1017_v6  ;;  %v11497_v6 = vcombine.low %v929_v45, %v937_v57 }
 0x34e   : > { %5864 = vmatpush2.bf16.msra.mxu0 %v11687_v17  ;;  %v1001_v17 = vld [vmem:[#allocation7 + $0x12f8] sm:$0xff] }
 0x34f   : > { %5905 = vmatpush2.bf16.msra.mxu1 %v11177_v59  ;;  %5865 = vmatprep.subr.bf16.mxu0 %v11672_v20 }
 0x350   : > { %5906 = vmatprep.subr.bf16.mxu1 %v11162_v30  ;;  %v11321_v30 = vcombine.low %v753_v3, %v761_v4  ;;  %v913_v3 = vld [vmem:[#allocation7 + $0x1038] sm:$0xff] }
 0x351   : > { %v921_v4 = vld [vmem:[#allocation7 + $0x1078] sm:$0xff] }
 0x352   : > { %5866 = vmatpush2.bf16.msra.mxu0 %v11671_v25 }
 0x353   : > { %5907 = vmatpush2.bf16.msra.mxu1 %v11161_v29  ;;  %5867 = vmatprep.subr.bf16.mxu0 %v11656_v35  ;;  %v11562_v29 = vcombine.high %v993_v31, %v1001_v17  ;;  %v729_v35 = vld [vmem:[#allocation7 + $0xa78] sm:$0xff] }
 0x354   : > { %5908 = vmatprep.subr.bf16.mxu1 %v11146_v50 }
 0x356   : > { %5868 = vmatpush2.bf16.msra.mxu0 %v11655_v52  ;;  %v11561_v52 = vcombine.low %v993_v31, %v1001_v17  ;;  %v11481_v31 = vcombine.low %v913_v3, %v921_v4 }
 0x357   : > { %5909 = vmatpush2.bf16.msra.mxu1 %v11145_v63  ;;  %5869 = vmatprep.subr.bf16.mxu0 %v11640_v61 }
 0x358   : > { %5910 = vmatprep.subr.bf16.mxu1 %v11130_v36 }
 0x35a   : > { %5870 = vmatpush2.bf16.msra.mxu0 %v11639_v40 }
 0x35b   : > { %5911 = vmatpush2.bf16.msra.mxu1 %v11129_v41  ;;  %5871 = vmatprep.subr.bf16.mxu0 %v11624_v47  ;;  %v11530_v41 = vcombine.high %v961_v55, %v969_v38  ;;  %v689_v47 = vld [vmem:[#allocation7 + $0x938] sm:$0xff] }
 0x35c   : > { %5912 = vmatprep.subr.bf16.mxu1 %v11114_v18  ;;  %v697_v18 = vld [vmem:[#allocation7 + $0x978] sm:$0xff] }
 0x35d   : > { %v11257_v58 = vcombine.low %v689_v47, %v697_v18  ;;  %v1105_v55 = vld [vmem:[#allocation7 + $0x1638] sm:$0xff] }
 0x35e   : > { %5872 = vmatpush2.bf16.msra.mxu0 %v11623_v13  ;;  %v11258_v13 = vcombine.high %v689_v47, %v697_v18  ;;  %v1113_v38 = vld [vmem:[#allocation7 + $0x1678] sm:$0xff] }
 0x35f   : > { %5913 = vmatpush2.bf16.msra.mxu1 %v11113_v14  ;;  %5873 = vmatprep.subr.bf16.mxu0 %v11608_v19  ;;  %v11514_v14 = vcombine.high %v945_v26, %v953_v43  ;;  %v673_v19 = vld [vmem:[#allocation7 + $0x8b8] sm:$0xff] }
 0x360   : > { %5914 = vmatprep.subr.bf16.mxu1 %v11098_v12  ;;  %v681_v12 = vld [vmem:[#allocation7 + $0x8f8] sm:$0xff] }
 0x361   : > { %v11241_v5 = vcombine.low %v673_v19, %v681_v12  ;;  %v833_v47 = vld [vmem:[#allocation7 + $0xdb8] sm:$0xff] }
 0x362   : > { %5874 = vmatpush2.bf16.msra.mxu0 %v11607_v0  ;;  %v11242_v0 = vcombine.high %v673_v19, %v681_v12  ;;  %v841_v18 = vld [vmem:[#allocation7 + $0xdf8] sm:$0xff] }
 0x363   : > { %5915 = vmatpush2.bf16.msra.mxu1 %v11097_v56  ;;  %5925 = vmatprep.subr.bf16.mxu0 %v11338_v46  ;;  %v11498_v56 = vcombine.high %v929_v45, %v937_v57  ;;  %v657_v46 = vld [vmem:[#allocation7 + $0x838] sm:$0xff] }
 0x364   : > { %5966 = vmatprep.subr.bf16.mxu1 %v11594_v51  ;;  %v665_v51 = vld [vmem:[#allocation7 + $0x878] sm:$0xff] }
 0x365   : > { %v5631_v16 = vpop.f32.mrf.mxu0  ;;  %5876 = vmatmul.mubr.bf16.vlgmr.msra.gmra.mxu0 %v13685_v37  ;;  %v1089_v26 = vld [vmem:[#allocation7 + $0x15b8] sm:$0xff] }
 0x366   : > { %v13852_v59 = vadd.f32 %v5631_v16, %v13844_v28  ;;  %v13854_v20 = vpop.f32.mrf.mxu1  ;;  %5917 = vmatmul.mubr.bf16.vlgmr.msra.gmra.mxu1 %v13667_v23  ;;  %5926 = vmatpush1.bf16.msra.mxu0 %v11337_v7  ;;  %v721_v28 = vld [vmem:[#allocation7 + $0xa38] sm:$0xff]  ;;  %v11226_v7 = vcombine.high %v657_v46, %v665_v51  ;;  %v11225_v16 = vcombine.low %v657_v46, %v665_v51 }
 0x367   : > { %5967 = vmatpush1.bf16.msra.mxu1 %v11593_v8  ;;  %v5633_v44 = vpop.f32.mrf.mxu0  ;;  %5927 = vmatprep.subr.bf16.mxu0 %v11322_v1  ;;  %v977_v23 = vld [vmem:[#allocation7 + $0x1238] sm:$0xff]  ;;  %v11290_v63 = vcombine.high %v721_v28, %v729_v35  ;;  %v11482_v8 = vcombine.high %v913_v3, %v921_v4 }
 0x368   : > { %v13858_v22 = vadd.f32 %v5633_v44, %v13847_v2  ;;  %v13860_v25 = vpop.f32.mrf.mxu1  ;;  %5968 = vmatprep.subr.bf16.mxu1 %v11578_v10  ;;  %5957 = vmatprep.mubr.bf16.mxu0 %v13643_v60  ;;  %v11305_v2 = vcombine.low %v737_v11, %v745_v15  ;;  %v11546_v36 = vcombine.high %v977_v23, %v985_v32  ;;  %v705_v60 = vld [vmem:[#allocation7 + $0x9b8] sm:$0xff] }
 0x369   : > { %v5635_v50 = vpop.f32.mrf.mxu0  ;;  %5998 = vmatprep.mubr.bf16.mxu1 %v13677_v54  ;;  %v11289_v54 = vcombine.low %v721_v28, %v729_v35  ;;  %v11545_v39 = vcombine.low %v977_v23, %v985_v32  ;;  %v11274_v40 = vcombine.high %v705_v60, %v713_v24  ;;  %v11273_v48 = vcombine.low %v705_v60, %v713_v24  ;;  %v897_v1 = vld [vmem:[#allocation7 + $0xfb8] sm:$0xff] }
 0x36a   : > { %v11727_v33 = vpack.c.bf16 %v13858_v22, %v13852_v59  ;;  %v5676_v34 = vpop.f32.mrf.mxu1  ;;  %5928 = vmatpush1.bf16.msra.mxu0 %v11321_v30  ;;  %v905_v10 = vld [vmem:[#allocation7 + $0xff8] sm:$0xff] }
 0x36b   : > { %5969 = vmatpush1.bf16.msra.mxu1 %v11577_v49  ;;  %v5636_v42 = vpop.f32.mrf.mxu0  ;;  %5929 = vmatprep.subr.bf16.mxu0 %v11306_v62  ;;  %v1153_v11 = vld [vmem:[#allocation7 + $0x17b8] sm:$0xff]  ;;  %v11466_v17 = vcombine.high %v897_v1, %v905_v10  ;;  %v11465_v28 = vcombine.low %v897_v1, %v905_v10 }
 0x36c   : > { %v5677_v61 = vpop.f32.mrf.mxu1  ;;  %5970 = vmatprep.subr.bf16.mxu1 %v11562_v29  ;;  %v1161_v15 = vld [vmem:[#allocation7 + $0x17f8] sm:$0xff] }
 0x36d   : > { %v11722_v30 = vcombine.high %v1153_v11, %v1161_v15  ;;  %v881_v44 = vld [vmem:[#allocation7 + $0xf38] sm:$0xff]  ;;  %v11721_v35 = vcombine.low %v1153_v11, %v1161_v15 }
 0x36e   : > { %5930 = vmatpush1.bf16.msra.mxu0 %v11305_v2  ;;  %v889_v49 = vld [vmem:[#allocation7 + $0xf78] sm:$0xff] }
 0x36f   : > { %5971 = vmatpush1.bf16.msra.mxu1 %v11561_v52  ;;  %5931 = vmatprep.subr.bf16.mxu0 %v11290_v63  ;;  %v1137_v62 = vld [vmem:[#allocation7 + $0x1738] sm:$0xff]  ;;  %v11450_v50 = vcombine.high %v881_v44, %v889_v49  ;;  %v11449_v52 = vcombine.low %v881_v44, %v889_v49 }
 0x370   : > { %5972 = vmatprep.subr.bf16.mxu1 %v11546_v36  ;;  %v1145_v29 = vld [vmem:[#allocation7 + $0x1778] sm:$0xff] }
 0x371   : > { %v11706_v23 = vcombine.high %v1137_v62, %v1145_v29  ;;  %v865_v32 = vld [vmem:[#allocation7 + $0xeb8] sm:$0xff]  ;;  %v11705_v63 = vcombine.low %v1137_v62, %v1145_v29 }
 0x372   : > { %5932 = vmatpush1.bf16.msra.mxu0 %v11289_v54  ;;  %v873_v34 = vld [vmem:[#allocation7 + $0xef8] sm:$0xff] }
 0x373   : > { %5973 = vmatpush1.bf16.msra.mxu1 %v11545_v39  ;;  %5933 = vmatprep.subr.bf16.mxu0 %v11274_v40  ;;  %v1121_v2 = vld [vmem:[#allocation7 + $0x16b8] sm:$0xff]  ;;  %v11434_v61 = vcombine.high %v865_v32, %v873_v34  ;;  %v11433_v54 = vcombine.low %v865_v32, %v873_v34 }
 0x374   : > { %5974 = vmatprep.subr.bf16.mxu1 %v11530_v41  ;;  %v1129_v42 = vld [vmem:[#allocation7 + $0x16f8] sm:$0xff]  ;;  %v11674_v41 = vcombine.high %v1105_v55, %v1113_v38 }
 0x375   : > { %v11690_v36 = vcombine.high %v1121_v2, %v1129_v42  ;;  %v849_v60 = vld [vmem:[#allocation7 + $0xe38] sm:$0xff]  ;;  %v11689_v39 = vcombine.low %v1121_v2, %v1129_v42 }
 0x376   : > { %5934 = vmatpush1.bf16.msra.mxu0 %v11273_v48  ;;  %v857_v24 = vld [vmem:[#allocation7 + $0xe78] sm:$0xff] }
 0x377   : > { %5975 = vmatpush1.bf16.msra.mxu1 %v11529_v53  ;;  %5935 = vmatprep.subr.bf16.mxu0 %v11258_v13  ;;  %v11418_v40 = vcombine.high %v849_v60, %v857_v24  ;;  %v1097_v43 = vld [vmem:[#allocation7 + $0x15f8] sm:$0xff]  ;;  %v11417_v48 = vcombine.low %v849_v60, %v857_v24  ;;  %v11673_v53 = vcombine.low %v1105_v55, %v1113_v38 }
 0x378   : > { %5976 = vmatprep.subr.bf16.mxu1 %v11514_v14  ;;  %v11402_v13 = vcombine.high %v833_v47, %v841_v18  ;;  %v11658_v14 = vcombine.high %v1089_v26, %v1097_v43  ;;  %v817_v19 = vld [vmem:[#allocation7 + $0xd38] sm:$0xff] }
 0x379   : > { %v825_v12 = vld [vmem:[#allocation7 + $0xd78] sm:$0xff] }
 0x37a   : > { %5936 = vmatpush1.bf16.msra.mxu0 %v11257_v58  ;;  %v1073_v45 = vld [vmem:[#allocation7 + $0x1538] sm:$0xff]  ;;  %v11401_v58 = vcombine.low %v833_v47, %v841_v18 }
 0x37b   : > { %5977 = vmatpush1.bf16.msra.mxu1 %v11513_v21  ;;  %5937 = vmatprep.subr.bf16.mxu0 %v11242_v0  ;;  %v1081_v57 = vld [vmem:[#allocation7 + $0x1578] sm:$0xff]  ;;  %v11657_v21 = vcombine.low %v1089_v26, %v1097_v43  ;;  %v11386_v0 = vcombine.high %v817_v19, %v825_v12 }
 0x37c   : > { %5978 = vmatprep.subr.bf16.mxu1 %v11498_v56  ;;  %v11642_v56 = vcombine.high %v1073_v45, %v1081_v57  ;;  %v801_v46 = vld [vmem:[#allocation7 + $0xcb8] sm:$0xff] }
 0x37d   : > { %v809_v51 = vld [vmem:[#allocation7 + $0xcf8] sm:$0xff] }
 0x37e   : > { %5938 = vmatpush1.bf16.msra.mxu0 %v11241_v5  ;;  %v1057_v3 = vld [vmem:[#allocation7 + $0x14b8] sm:$0xff]  ;;  %v11385_v5 = vcombine.low %v817_v19, %v825_v12 }
 0x37f   : > { %5979 = vmatpush1.bf16.msra.mxu1 %v11497_v6  ;;  %5939 = vmatprep.subr.bf16.mxu0 %v11226_v7  ;;  %v1065_v4 = vld [vmem:[#allocation7 + $0x14f8] sm:$0xff]  ;;  %v11641_v6 = vcombine.low %v1073_v45, %v1081_v57  ;;  %v11370_v7 = vcombine.high %v801_v46, %v809_v51 }
 0x380   : > { %5980 = vmatprep.subr.bf16.mxu1 %v11482_v8  ;;  %v11626_v8 = vcombine.high %v1057_v3, %v1065_v4  ;;  %v785_v1 = vld [vmem:[#allocation7 + $0xc38] sm:$0xff] }
 0x381   : > { %v793_v10 = vld [vmem:[#allocation7 + $0xc78] sm:$0xff] }
 0x382   : > { %5940 = vmatpush1.bf16.msra.mxu0 %v11225_v16  ;;  %v1041_v11 = vld [vmem:[#allocation7 + $0x1438] sm:$0xff]  ;;  %v11369_v16 = vcombine.low %v801_v46, %v809_v51  ;;  %v11353_v44 = vcombine.low %v785_v1, %v793_v10 }
 0x383   : > { %5981 = vmatpush1.bf16.msra.mxu1 %v11481_v31  ;;  %5941 = vmatprep.subr.bf16.mxu0 %v11466_v17  ;;  %v1049_v15 = vld [vmem:[#allocation7 + $0x1478] sm:$0xff]  ;;  %v11625_v31 = vcombine.low %v1057_v3, %v1065_v4  ;;  %v11354_v17 = vcombine.high %v785_v1, %v793_v10 }
 0x384   : > { %5982 = vmatprep.subr.bf16.mxu1 %v11722_v30  ;;  %v11610_v30 = vcombine.high %v1041_v11, %v1049_v15  ;;  %v11609_v49 = vcombine.low %v1041_v11, %v1049_v15 }
 0x386   : > { %5942 = vmatpush2.bf16.msra.mxu0 %v11465_v28 }
 0x387   : > { %5983 = vmatpush2.bf16.msra.mxu1 %v11721_v35  ;;  %5943 = vmatprep.subr.bf16.mxu0 %v11450_v50 }
 0x388   : > { %5984 = vmatprep.subr.bf16.mxu1 %v11706_v23 }
 0x38a   : > { %5944 = vmatpush2.bf16.msra.mxu0 %v11449_v52 }
 0x38b   : > { %5985 = vmatpush2.bf16.msra.mxu1 %v11705_v63  ;;  %5945 = vmatprep.subr.bf16.mxu0 %v11434_v61 }
 0x38c   : > { %5986 = vmatprep.subr.bf16.mxu1 %v11690_v36 }
 0x38e   : > { %5946 = vmatpush2.bf16.msra.mxu0 %v11433_v54 }
 0x38f   : > { %5987 = vmatpush2.bf16.msra.mxu1 %v11689_v39  ;;  %5947 = vmatprep.subr.bf16.mxu0 %v11418_v40 }
 0x390   : > { %5988 = vmatprep.subr.bf16.mxu1 %v11674_v41 }
 0x392   : > { %5948 = vmatpush2.bf16.msra.mxu0 %v11417_v48 }
 0x393   : > { %5989 = vmatpush2.bf16.msra.mxu1 %v11673_v53  ;;  %5949 = vmatprep.subr.bf16.mxu0 %v11402_v13 }
 0x394   : > { %5990 = vmatprep.subr.bf16.mxu1 %v11658_v14 }
 0x396   : > { %5950 = vmatpush2.bf16.msra.mxu0 %v11401_v58 }
 0x397   : > { %5991 = vmatpush2.bf16.msra.mxu1 %v11657_v21  ;;  %5951 = vmatprep.subr.bf16.mxu0 %v11386_v0 }
 0x398   : > { %5992 = vmatprep.subr.bf16.mxu1 %v11642_v56 }
 0x39a   : > { %5952 = vmatpush2.bf16.msra.mxu0 %v11385_v5 }
 0x39b   : > { %5993 = vmatpush2.bf16.msra.mxu1 %v11641_v6  ;;  %5953 = vmatprep.subr.bf16.mxu0 %v11370_v7 }
 0x39c   : > { %5994 = vmatprep.subr.bf16.mxu1 %v11626_v8 }
 0x39e   : > { %5954 = vmatpush2.bf16.msra.mxu0 %v11369_v16 }
 0x39f   : > { %5995 = vmatpush2.bf16.msra.mxu1 %v11625_v31  ;;  %5955 = vmatprep.subr.bf16.mxu0 %v11354_v17 }
 0x3a0   : > { %5996 = vmatprep.subr.bf16.mxu1 %v11610_v30 }
 0x3a2   : > { %5956 = vmatpush2.bf16.msra.mxu0 %v11353_v44 }
 0x3a3   : > { %5997 = vmatpush2.bf16.msra.mxu1 %v11609_v49 }
 0x3a5   : > { %v5713_v62 = vpop.f32.mrf.mxu0  ;;  %5958 = vmatmul.mubr.bf16.vlgmr.msra.gmra.mxu0 %v13673_v27  ;;  %v6098_v27 = vrot.slane %v11727_v33, %v13768_v9 }
 0x3a6   : > { %v5714_v29 = vadd.f32 %v5713_v62, %v13854_v20  ;;  %v5754_v28 = vpop.f32.mrf.mxu1  ;;  %5999 = vmatmul.mubr.bf16.vlgmr.msra.gmra.mxu1 %v13685_v37 }
 0x3a7   : > { %v5715_v35 = vpop.f32.mrf.mxu0 }
 0x3a8   : > { %v5755_v50 = vadd.f32 %v5754_v28, %v5714_v29  ;;  %v5716_v23 = vadd.f32 %v5715_v35, %v13860_v25  ;;  %v5756_v32 = vpop.f32.mrf.mxu1 }
 0x3a9   : > { %v5717_v34 = vpop.f32.mrf.mxu0 }
 0x3aa   : > { %v5757_v2 = vadd.f32 %v5756_v32, %v5716_v23  ;;  %v5758_v42 = vpop.f32.mrf.mxu1 }
 0x3ab   : > { %v5718_v52 = vpop.f32.mrf.mxu0 }
 0x3ac   : > { %v11728_v63 = vpack.c.bf16 %v5757_v2, %v5755_v50  ;;  %v5759_v61 = vpop.f32.mrf.mxu1 }
 0x3ae   : > { %v6105_v20 = vrot.slane %v11728_v63, %v13768_v9 }
 0x3b0   : > { %v6120_v36 = vcombine.low %v6098_v27, %v6105_v20  ;;  %v6158_v37 = vcombine.high %v6098_v27, %v6105_v20 }
 0x3b2   : > { %v6128_v11 = vrot.slane %v6120_v36, %v13768_v9  ;;  %v6166_v15 = vrot.slane %v6158_v37, %v13768_v9 }
 0x3e5   : > { %v5795_v60 = vpop.f32.mrf.mxu0 }
 0x3e6   : > { %v5836_v24 = vpop.f32.mrf.mxu1 }
 0x3e7   : > { %v5837_v55 = vadd.f32 %v5836_v24, %v5795_v60  ;;  %v5797_v25 = vpop.f32.mrf.mxu0 }
 0x3e8   : > { %v5838_v38 = vpop.f32.mrf.mxu1 }
 0x3e9   : > { %v5839_v54 = vadd.f32 %v5838_v38, %v5797_v25  ;;  %v5799_v39 = vpop.f32.mrf.mxu0 }
 0x3ea   : > { %v5840_v40 = vpop.f32.mrf.mxu1 }
 0x3eb   : > { %v5800_v41 = vpop.f32.mrf.mxu0 }
 0x3ec   : > { %v5841_v47 = vpop.f32.mrf.mxu1 }
 0x425   : > { %v5877_v18 = vpop.f32.mrf.mxu0 }
 0x426   : > { %v5878_v26 = vadd.f32 %v5877_v18, %v5837_v55  ;;  %v5918_v43 = vpop.f32.mrf.mxu1 }
 0x427   : > { %v5879_v48 = vpop.f32.mrf.mxu0 }
 0x428   : > { %v5880_v59 = vadd.f32 %v5879_v48, %v5839_v54  ;;  %v5920_v22 = vpop.f32.mrf.mxu1 }
 0x429   : > { %v5881_v33 = vpop.f32.mrf.mxu0 }
 0x42a   : > { %v11729_v53 = vpack.c.bf16 %v5880_v59, %v5878_v26  ;;  %v5922_v13 = vpop.f32.mrf.mxu1 }
 0x42b   : > { %v5882_v14 = vpop.f32.mrf.mxu0 }
 0x42c   : > { %v5923_v19 = vpop.f32.mrf.mxu1  ;;  %v6112_v7 = vrot.slane %v11729_v53, %v13768_v9 }
 0x465   : > { %v5959_v12 = vpop.f32.mrf.mxu0 }
 0x466   : > { %v5960_v45 = vadd.f32 %v5959_v12, %v5918_v43  ;;  %v6000_v57 = vpop.f32.mrf.mxu1 }
 0x467   : > { %v5961_v58 = vpop.f32.mrf.mxu0 }
 0x468   : > { %v5962_v21 = vadd.f32 %v5961_v58, %v5920_v22  ;;  %v6002_v0 = vpop.f32.mrf.mxu1  ;;  %v6001_v46 = vadd.f32 %v6000_v57, %v5960_v45 }
 0x469   : > { %v5963_v56 = vpop.f32.mrf.mxu0 }
 0x46a   : > { %v6003_v51 = vadd.f32 %v6002_v0, %v5962_v21  ;;  %v6004_v3 = vpop.f32.mrf.mxu1 }
 0x46b   : > { %v5964_v4 = vpop.f32.mrf.mxu0 }
 0x46c   : > { %v11730_v5 = vpack.c.bf16 %v6003_v51, %v6001_v46  ;;  %v6005_v6 = vpop.f32.mrf.mxu1 }
 0x46e   : > { %v6119_v8 = vrot.slane %v11730_v5, %v13768_v9 }
 0x470   : > { %v6121_v1 = vcombine.low %v6112_v7, %v6119_v8  ;;  %v6159_v10 = vcombine.high %v6112_v7, %v6119_v8 }
 0x472   : > { %v6135_v16 = vrot.slane %v6121_v1, %v13768_v9  ;;  %v6173_v31 = vrot.slane %v6159_v10, %v13768_v9 }
 0x474   : > { %v6136_v17 = vcombine.low %v6128_v11, %v6135_v16  ;;  %v6174_v30 = vcombine.low %v6166_v15, %v6173_v31  ;;  %v6180_v44 = vcombine.high %v6128_v11, %v6135_v16 }
 0x476   : > { %6140 = vst [vmem:[#allocation2 + $0x10] sm:$0xff] %v6136_v17  ;;  %6178 = vst [vmem:[#allocation2] sm:$0xff] %v6174_v30 }
 0x477   : > { %6184 = vst [vmem:[#allocation2 + $0x20] sm:$0xff] %v6180_v44 }
 0x478 PF: > { %v12759_v49 = vld [vmem:[%s13618_s13 + $0x78] sm:$0xff]   ;;  %v13372_v29 = vmov 0   ;;  %v12763_v35 = vld [vmem:[%s13618_s13 + $0x70] sm:$0xff]   ;;  %v12767_v34 = vld [vmem:[%s13618_s13 + $0x68] sm:$0xff]   ;;  %v7098_v18 = vlaneseq  ;;  %v13373_v13 = vmov 1966171168  }
 0x479   : > { %v12760_v62 = vld [vmem:[%s13618_s13 + $0xf8] sm:$0xff]   ;;  %12750 = vset.pattern.permute.xlu0 %v13372_v29  ;;  %12120 = vmatprep.subr.bf16.mxu0 %v12759_v49  ;;  %v12764_v50 = vld [vmem:[%s13618_s13 + $0xf0] sm:$0xff]   ;;  %v12768_v2 = vld [vmem:[%s13618_s13 + $0xe8] sm:$0xff]   ;;  %v7111_v14 = vunpack.c.l.s4 %v13373_v13  ;;  %s12117_s30 = sshll.u32 %s13443_s28, 5  ;;  %s14464_s11 = sld [smem:[#allocation26_spill]] }
 0x47a   : > { %v12761_v9 = vld [vmem:[%s13618_s13 + $0x38] sm:$0xff]   ;;  %12142 = vmatprep.subr.bf16.mxu1 %v12760_v62  ;;  %v12765_v23 = vld [vmem:[%s13618_s13 + $0x30] sm:$0xff]   ;;  %v12769_v42 = vld [vmem:[%s13618_s13 + $0x28] sm:$0xff]   ;;  %v13913_v22 = vshrl.u32 %v7098_v18, 7  ;;  %s10795_s2 = scalar_lea.sflag [#allocation6], %s13615_s19  ;;  %s13381_s22 = smov [#allocation12]  }
 0x47b   : > { %v12762_v28 = vld [vmem:[%s13618_s13 + $0xb8] sm:$0xff]   ;;  %12121 = vmatpush3.bf16.msra.mxu0 %v12761_v9  ;;  %v12766_v32 = vld [vmem:[%s13618_s13 + $0xb0] sm:$0xff]   ;;  %v12770_v52 = vld [vmem:[%s13618_s13 + $0xa8] sm:$0xff]   ;;  %v7112_v45 = vunpack.c.0.s8 %v7111_v14  ;;  %s13291_s0 = sshll.u32 %s13381_s22, 4  ;;  %s13292_s0 = int_to_ptr.vmem [resolvable:$false] %s13291_s0 }
 0x47c   : > { %12143 = vmatpush3.bf16.msra.mxu1 %v12762_v28  ;;  %12122 = vmatprep.subr.bf16.mxu0 %v12763_v35  ;;  %v12771_v63 = vld [vmem:[%s13618_s13 + $0x60] sm:$0xff]   ;;  %v12775_v36 = vld [vmem:[%s13618_s13 + $0x58] sm:$0xff]   ;;  %v12779_v55 = vld [vmem:[%s13618_s13 + $0x50] sm:$0xff]  }
 0x47d   : > { %12144 = vmatprep.subr.bf16.mxu1 %v12764_v50  ;;  %v12772_v61 = vld [vmem:[%s13618_s13 + $0xe0] sm:$0xff]   ;;  %v12776_v37 = vld [vmem:[%s13618_s13 + $0xd8] sm:$0xff]   ;;  %v12780_v25 = vld [vmem:[%s13618_s13 + $0xd0] sm:$0xff]   ;;  %v13918_v57 = vsub.s32 %v7112_v45, %v13913_v22 }
 0x47e   : > { %v12773_v27 = vld [vmem:[%s13618_s13 + $0x20] sm:$0xff]   ;;  %v12777_v60 = vld [vmem:[%s13618_s13 + $0x18] sm:$0xff]   ;;  %v12781_v38 = vld [vmem:[%s13618_s13 + $0x10] sm:$0xff]  }
 0x47f   : > { %12123 = vmatpush3.bf16.msra.mxu0 %v12765_v23  ;;  %v12774_v20 = vld [vmem:[%s13618_s13 + $0xa0] sm:$0xff]   ;;  %v12778_v24 = vld [vmem:[%s13618_s13 + $0x98] sm:$0xff]   ;;  %v12782_v54 = vld [vmem:[%s13618_s13 + $0x90] sm:$0xff]   ;;  %s10806_s21 = scalar_lea.hbm %s14464_s11, %s12117_s30 }
 0x480   : > { %12145 = vmatpush3.bf16.msra.mxu1 %v12766_v32  ;;  %12124 = vmatprep.subr.bf16.mxu0 %v12767_v34  ;;  %v12783_v39 = vld [vmem:[%s13618_s13 + $0x48] sm:$0xff]   ;;  %v12787_v26 = vld [vmem:[%s13618_s13 + $0x40] sm:$0xff]   ;;  %v12792_v53 = vld [vmem:[%s13618_s13 + $0x178] sm:$0xff]  }
 0x481   : > { %12146 = vmatprep.subr.bf16.mxu1 %v12768_v2  ;;  %v12784_v40 = vld [vmem:[%s13618_s13 + $0xc8] sm:$0xff]   ;;  %v12788_v43 = vld [vmem:[%s13618_s13 + $0xc0] sm:$0xff]   ;;  %v12793_v19 = vld [vmem:[%s13618_s13 + $0x1f8] sm:$0xff]  }
 0x482   : > { %v12785_v41 = vld [vmem:[%s13618_s13 + $0x8] sm:$0xff]   ;;  %v12789_v48 = vld [vmem:[%s13618_s13] sm:$0xff]   ;;  %v12794_v51 = vld [vmem:[%s13618_s13 + $0x138] sm:$0xff]  }
 0x483   : > { %12125 = vmatpush3.bf16.msra.mxu0 %v12769_v42  ;;  %v12786_v47 = vld [vmem:[%s13618_s13 + $0x88] sm:$0xff]   ;;  %v12790_v59 = vld [vmem:[%s13618_s13 + $0x80] sm:$0xff]   ;;  %v12795_v4 = vld [vmem:[%s13618_s13 + $0x1b8] sm:$0xff]  }
 0x484   : > { %12147 = vmatpush3.bf16.msra.mxu1 %v12770_v52  ;;  %12126 = vmatprep.subr.bf16.mxu0 %v12771_v63  ;;  %v6317_v33 = vld [vmem:[#allocation2 + $0x28] sm:$0xff]  ;;  %v12796_v7 = vld [vmem:[%s13618_s13 + $0x170] sm:$0xff]   ;;  %v12800_v16 = vld [vmem:[%s13618_s13 + $0x168] sm:$0xff]  }
 0x485   : > { %12148 = vmatprep.subr.bf16.mxu1 %v12772_v61  ;;  %v7109_v12 = vcombine.high %v6317_v33, %v6317_v33  ;;  %v7116_v58 = vrot.slane %v6317_v33, %v13918_v57  ;;  %v12797_v1 = vld [vmem:[%s13618_s13 + $0x1f0] sm:$0xff]   ;;  %v12801_v31 = vld [vmem:[%s13618_s13 + $0x1e8] sm:$0xff]   ;;  %v12804_v44 = vld [vmem:[%s13618_s13 + $0x160] sm:$0xff]  }
 0x486   : > { %v12798_v10 = vld [vmem:[%s13618_s13 + $0x130] sm:$0xff]   ;;  %v12802_v17 = vld [vmem:[%s13618_s13 + $0x128] sm:$0xff]   ;;  %v12805_v49 = vld [vmem:[%s13618_s13 + $0x1e0] sm:$0xff]  }
 0x487   : > { %12127 = vmatpush3.bf16.msra.mxu0 %v12773_v27  ;;  %v13922_v21 = vrot.slane %v7109_v12, %v13918_v57  ;;  %v7124_v0 = vcombine.high %v7116_v58, %v7116_v58  ;;  %v7132_v56 = vrot.slane %v7116_v58, %v13918_v57  ;;  %v12799_v15 = vld [vmem:[%s13618_s13 + $0x1b0] sm:$0xff]   ;;  %v12803_v30 = vld [vmem:[%s13618_s13 + $0x1a8] sm:$0xff]   ;;  %v12806_v62 = vld [vmem:[%s13618_s13 + $0x120] sm:$0xff]  }
 0x488   : > { %12149 = vmatpush3.bf16.msra.mxu1 %v12774_v20  ;;  %12128 = vmatprep.subr.bf16.mxu0 %v12775_v36  ;;  %v12807_v29 = vld [vmem:[%s13618_s13 + $0x1a0] sm:$0xff]   ;;  %v12808_v9 = vld [vmem:[%s13618_s13 + $0x158] sm:$0xff]   ;;  %v12812_v23 = vld [vmem:[%s13618_s13 + $0x150] sm:$0xff]  }
 0x489   : > { %12150 = vmatprep.subr.bf16.mxu1 %v12776_v37  ;;  %v7125_v46 = vcombine.high %v13922_v21, %v13922_v21  ;;  %v7146_v3 = vrot.slane %v7124_v0, %v13918_v57  ;;  %v7154_v6 = vcombine.high %v7132_v56, %v7132_v56  ;;  %v12809_v28 = vld [vmem:[%s13618_s13 + $0x1d8] sm:$0xff]   ;;  %v12813_v32 = vld [vmem:[%s13618_s13 + $0x1d0] sm:$0xff]   ;;  %v12816_v42 = vld [vmem:[%s13618_s13 + $0x148] sm:$0xff]  }
 0x48a   : > { %v12810_v35 = vld [vmem:[%s13618_s13 + $0x118] sm:$0xff]   ;;  %v12814_v34 = vld [vmem:[%s13618_s13 + $0x110] sm:$0xff]   ;;  %v12817_v52 = vld [vmem:[%s13618_s13 + $0x1c8] sm:$0xff]  }
 0x48b   : > { %12129 = vmatpush3.bf16.msra.mxu0 %v12777_v60  ;;  %v7153_v5 = vrot.slane %v7125_v46, %v13918_v57  ;;  %9787 = vmatprep.mubr.bf16.mxu0 %v7146_v3  ;;  %v7156_v8 = vcombine.high %v7146_v3, %v7146_v3  ;;  %v12811_v50 = vld [vmem:[%s13618_s13 + $0x198] sm:$0xff]   ;;  %v12815_v2 = vld [vmem:[%s13618_s13 + $0x190] sm:$0xff]   ;;  %v12818_v63 = vld [vmem:[%s13618_s13 + $0x108] sm:$0xff]   ;;  %v7139_v60 = vrot.slane %v13922_v21, %v13918_v57 }
 0x48c   : > { %12151 = vmatpush3.bf16.msra.mxu1 %v12778_v24  ;;  %12130 = vmatprep.subr.bf16.mxu0 %v12779_v55  ;;  %v12819_v61 = vld [vmem:[%s13618_s13 + $0x188] sm:$0xff]   ;;  %v12820_v27 = vld [vmem:[%s13618_s13 + $0x140] sm:$0xff]   ;;  %v12824_v24 = vld [vmem:[%s13618_s13 + $0x278] sm:$0xff]  }
 0x48d   : > { %12152 = vmatprep.subr.bf16.mxu1 %v12780_v25  ;;  %v7157_v11 = vcombine.high %v7153_v5, %v7153_v5  ;;  %9827 = vmatprep.mubr.bf16.mxu1 %v7156_v8  ;;  %v12821_v20 = vld [vmem:[%s13618_s13 + $0x1c0] sm:$0xff]   ;;  %v12825_v55 = vld [vmem:[%s13618_s13 + $0x2f8] sm:$0xff]   ;;  %v12832_v18 = vld [vmem:[%s13618_s13 + $0x268] sm:$0xff]  }
 0x48e   : > { %v12822_v36 = vld [vmem:[%s13618_s13 + $0x100] sm:$0xff]   ;;  %v12826_v25 = vld [vmem:[%s13618_s13 + $0x238] sm:$0xff]   ;;  %v12844_v58 = vld [vmem:[%s13618_s13 + $0x250] sm:$0xff]  }
 0x48f   : > { %12131 = vmatpush3.bf16.msra.mxu0 %v12781_v38  ;;  %v12823_v37 = vld [vmem:[%s13618_s13 + $0x180] sm:$0xff]   ;;  %v12827_v38 = vld [vmem:[%s13618_s13 + $0x2b8] sm:$0xff]   ;;  %v12845_v21 = vld [vmem:[%s13618_s13 + $0x2d0] sm:$0xff]  }
 0x490   : > { %12153 = vmatpush3.bf16.msra.mxu1 %v12782_v54  ;;  %12132 = vmatprep.subr.bf16.mxu0 %v12783_v39  ;;  %v7155_v54 = vcombine.high %v7139_v60, %v7139_v60  ;;  %v12828_v39 = vld [vmem:[%s13618_s13 + $0x270] sm:$0xff]   ;;  %v12837_v33 = vld [vmem:[%s13618_s13 + $0x2e0] sm:$0xff]   ;;  %v12840_v14 = vld [vmem:[%s13618_s13 + $0x258] sm:$0xff]  }
 0x491   : > { %12154 = vmatprep.subr.bf16.mxu1 %v12784_v40  ;;  %v12829_v40 = vld [vmem:[%s13618_s13 + $0x2f0] sm:$0xff]   ;;  %v12839_v13 = vld [vmem:[%s13618_s13 + $0x2a0] sm:$0xff]   ;;  %v12842_v12 = vld [vmem:[%s13618_s13 + $0x218] sm:$0xff]  }
 0x492   : > { %v12843_v45 = vld [vmem:[%s13618_s13 + $0x298] sm:$0xff]   ;;  %v12846_v0 = vld [vmem:[%s13618_s13 + $0x210] sm:$0xff]   ;;  %v12848_v46 = vld [vmem:[%s13618_s13 + $0x248] sm:$0xff]  }
 0x493   : > { %12133 = vmatpush3.bf16.msra.mxu0 %v12785_v41  ;;  %v12830_v41 = vld [vmem:[%s13618_s13 + $0x230] sm:$0xff]   ;;  %v12849_v3 = vld [vmem:[%s13618_s13 + $0x2c8] sm:$0xff]  }
 0x494   : > { %12155 = vmatpush3.bf16.msra.mxu1 %v12786_v47  ;;  %12134 = vmatprep.subr.bf16.mxu0 %v12787_v26  ;;  %v12831_v47 = vld [vmem:[%s13618_s13 + $0x2b0] sm:$0xff]   ;;  %v12833_v26 = vld [vmem:[%s13618_s13 + $0x2e8] sm:$0xff]  }
 0x495   : > { %12156 = vmatprep.subr.bf16.mxu1 %v12788_v43  ;;  %v12834_v43 = vld [vmem:[%s13618_s13 + $0x228] sm:$0xff]  }
 0x497   : > { %12135 = vmatpush3.bf16.msra.mxu0 %v12789_v48  ;;  %v12835_v48 = vld [vmem:[%s13618_s13 + $0x2a8] sm:$0xff]  }
 0x498   : > { %12157 = vmatpush3.bf16.msra.mxu1 %v12790_v59  ;;  %12164 = vmatprep.subr.bf16.mxu0 %v12792_v53  ;;  %v12836_v59 = vld [vmem:[%s13618_s13 + $0x260] sm:$0xff]  }
 0x499   : > { %12186 = vmatprep.subr.bf16.mxu1 %v12793_v19  ;;  %v12838_v53 = vld [vmem:[%s13618_s13 + $0x220] sm:$0xff]   ;;  %v12841_v19 = vld [vmem:[%s13618_s13 + $0x2d8] sm:$0xff]  }
 0x49a   : > { %9788 = vmatmul.mubr.bf16.vlgmr.msra.gmra.mxu0 %v7132_v56  ;;  %v12847_v56 = vld [vmem:[%s13618_s13 + $0x290] sm:$0xff]  }
 0x49b   : > { %12165 = vmatpush3.bf16.msra.mxu0 %v12794_v51  ;;  %9828 = vmatmul.mubr.bf16.vlgmr.msra.gmra.mxu1 %v7154_v6  ;;  %v6318_v51 = vld [vmem:[#allocation2 + $0x10] sm:$0xff] }
 0x49c   : > { %12166 = vmatprep.subr.bf16.mxu0 %v12796_v7  ;;  %12187 = vmatpush3.bf16.msra.mxu1 %v12795_v4  ;;  %v7165_v4 = vrot.slane %v6318_v51, %v13918_v57  ;;  %v12850_v6 = vld [vmem:[%s13618_s13 + $0x208] sm:$0xff]  }
 0x49d   : > { %9867 = vmatprep.mubr.bf16.mxu0 %v7153_v5  ;;  %12188 = vmatprep.subr.bf16.mxu1 %v12797_v1  ;;  %v7158_v5 = vcombine.high %v6318_v51, %v6318_v51  ;;  %v12851_v7 = vld [vmem:[%s13618_s13 + $0x288] sm:$0xff]  }
 0x49e   : > { %9907 = vmatprep.mubr.bf16.mxu1 %v7157_v11  ;;  %v7173_v8 = vcombine.high %v7165_v4, %v7165_v4  ;;  %v12853_v11 = vld [vmem:[%s13618_s13 + $0x2c0] sm:$0xff]   ;;  %v12897_v51 = vld [vmem:[%s13618_s13 + $0x468] sm:$0xff]  }
 0x49f   : > { %12167 = vmatpush3.bf16.msra.mxu0 %v12798_v10  ;;  %v13991_v1 = vrot.slane %v7158_v5, %v13918_v57  ;;  %v12852_v10 = vld [vmem:[%s13618_s13 + $0x240] sm:$0xff]   ;;  %v12900_v5 = vld [vmem:[%s13618_s13 + $0x4a8] sm:$0xff]  }
 0x4a0   : > { %12168 = vmatprep.subr.bf16.mxu0 %v12800_v16  ;;  %12189 = vmatpush3.bf16.msra.mxu1 %v12799_v15  ;;  %v7195_v15 = vrot.slane %v7173_v8, %v13918_v57  ;;  %v12903_v8 = vld [vmem:[%s13618_s13 + $0x420] sm:$0xff]  }
 0x4a1   : > { %12190 = vmatprep.subr.bf16.mxu1 %v12801_v31  ;;  %v7174_v16 = vcombine.high %v13991_v1, %v13991_v1  ;;  %v12854_v31 = vld [vmem:[%s13618_s13 + $0x200] sm:$0xff]  }
 0x4a3   : > { %12169 = vmatpush3.bf16.msra.mxu0 %v12802_v17  ;;  %v12855_v17 = vld [vmem:[%s13618_s13 + $0x280] sm:$0xff]  }
 0x4a4   : > { %12170 = vmatprep.subr.bf16.mxu0 %v12804_v44  ;;  %12191 = vmatpush3.bf16.msra.mxu1 %v12803_v30  ;;  %v7205_v30 = vcombine.high %v7195_v15, %v7195_v15  ;;  %v7181_v44 = vrot.slane %v7165_v4, %v13918_v57  ;;  %v12899_v4 = vld [vmem:[%s13618_s13 + $0x428] sm:$0xff]  }
 0x4a5   : > { %12192 = vmatprep.subr.bf16.mxu1 %v12805_v49  ;;  %v12856_v49 = vld [vmem:[%s13618_s13 + $0x378] sm:$0xff]  }
 0x4a7   : > { %12171 = vmatpush3.bf16.msra.mxu0 %v12806_v62  ;;  %v7091_v62 = vld [vmem:[#allocation3] sm:$0x3] }
 0x4a8   : > { %12172 = vmatprep.subr.bf16.mxu0 %v12808_v9  ;;  %12193 = vmatpush3.bf16.msra.mxu1 %v12807_v29  ;;  %v12857_v29 = vld [vmem:[%s13618_s13 + $0x3f8] sm:$0xff]   ;;  %v7202_v9 = vrot.slane %v7174_v16, %v13918_v57 }
 0x4a9   : > { %12194 = vmatprep.subr.bf16.mxu1 %v12809_v28  ;;  %v12858_v28 = vld [vmem:[%s13618_s13 + $0x338] sm:$0xff]   ;;  %7095 = vperm.xlu0 %12750, %v7091_v62  }
 0x4aa   : > { %v12908_v16 = vld [vmem:[%s13618_s13 + $0x498] sm:$0xff]  }
 0x4ab   : > { %12173 = vmatpush3.bf16.msra.mxu0 %v12810_v35  ;;  %v12859_v35 = vld [vmem:[%s13618_s13 + $0x3b8] sm:$0xff]  }
 0x4ac   : > { %12174 = vmatprep.subr.bf16.mxu0 %v12812_v23  ;;  %12195 = vmatpush3.bf16.msra.mxu1 %v12811_v50  ;;  %v7203_v50 = vcombine.high %v7181_v44, %v7181_v44  ;;  %v12860_v23 = vld [vmem:[%s13618_s13 + $0x370] sm:$0xff]   ;;  %v6319_v62 = vld [vmem:[#allocation2 + $0x8] sm:$0xff] }
 0x4ad   : > { %12196 = vmatprep.subr.bf16.mxu1 %v12813_v32  ;;  %v12861_v32 = vld [vmem:[%s13618_s13 + $0x3f0] sm:$0xff]  }
 0x4af   : > { %12175 = vmatpush3.bf16.msra.mxu0 %v12814_v34  ;;  %v7206_v34 = vcombine.high %v7202_v9, %v7202_v9 }
 0x4b0   : > { %12176 = vmatprep.subr.bf16.mxu0 %v12816_v42  ;;  %12197 = vmatpush3.bf16.msra.mxu1 %v12815_v2  ;;  %v12862_v2 = vld [vmem:[%s13618_s13 + $0x330] sm:$0xff]  }
 0x4b1   : > { %12198 = vmatprep.subr.bf16.mxu1 %v12817_v52  ;;  %v12863_v42 = vld [vmem:[%s13618_s13 + $0x3b0] sm:$0xff]   ;;  %v12864_v52 = vld [vmem:[%s13618_s13 + $0x368] sm:$0xff]  }
 0x4b3   : > { %12177 = vmatpush3.bf16.msra.mxu0 %v12818_v63  ;;  %v12865_v63 = vld [vmem:[%s13618_s13 + $0x3e8] sm:$0xff]  }
 0x4b4   : > { %12178 = vmatprep.subr.bf16.mxu0 %v12820_v27  ;;  %12199 = vmatpush3.bf16.msra.mxu1 %v12819_v61  ;;  %v12866_v61 = vld [vmem:[%s13618_s13 + $0x328] sm:$0xff]  }
 0x4b5   : > { %12200 = vmatprep.subr.bf16.mxu1 %v12821_v20  ;;  %v12867_v27 = vld [vmem:[%s13618_s13 + $0x3a8] sm:$0xff]   ;;  %v12868_v20 = vld [vmem:[%s13618_s13 + $0x360] sm:$0xff]  }
 0x4b7   : > { %12179 = vmatpush3.bf16.msra.mxu0 %v12822_v36  ;;  %v12869_v36 = vld [vmem:[%s13618_s13 + $0x3e0] sm:$0xff]  }
 0x4b8   : > { %12208 = vmatprep.subr.bf16.mxu0 %v12824_v24  ;;  %12201 = vmatpush3.bf16.msra.mxu1 %v12823_v37  ;;  %v12870_v37 = vld [vmem:[%s13618_s13 + $0x320] sm:$0xff]   ;;  %v12872_v24 = vld [vmem:[%s13618_s13 + $0x358] sm:$0xff]  }
 0x4b9   : > { %12230 = vmatprep.subr.bf16.mxu1 %v12825_v55  ;;  %v12873_v55 = vld [vmem:[%s13618_s13 + $0x3d8] sm:$0xff]  }
 0x4ba   : > { %9868 = vmatmul.mubr.bf16.vlgmr.msra.gmra.mxu0 %v7139_v60  ;;  %v12871_v60 = vld [vmem:[%s13618_s13 + $0x3a0] sm:$0xff]  }
 0x4bb   : > { %12209 = vmatpush3.bf16.msra.mxu0 %v12826_v25  ;;  %9908 = vmatmul.mubr.bf16.vlgmr.msra.gmra.mxu1 %v7155_v54  ;;  %v12874_v25 = vld [vmem:[%s13618_s13 + $0x318] sm:$0xff]   ;;  %v12876_v54 = vld [vmem:[%s13618_s13 + $0x350] sm:$0xff]  }
 0x4bc   : > { %12210 = vmatprep.subr.bf16.mxu0 %v12828_v39  ;;  %12231 = vmatpush3.bf16.msra.mxu1 %v12827_v38  ;;  %v12875_v38 = vld [vmem:[%s13618_s13 + $0x398] sm:$0xff]   ;;  %v12877_v39 = vld [vmem:[%s13618_s13 + $0x3d0] sm:$0xff]  }
 0x4bd   : > { %12232 = vmatprep.subr.bf16.mxu1 %v12829_v40  ;;  %9947 = vmatprep.mubr.bf16.mxu0 %v7195_v15  ;;  %v12878_v40 = vld [vmem:[%s13618_s13 + $0x310] sm:$0xff]   ;;  %v12907_v15 = vld [vmem:[%s13618_s13 + $0x418] sm:$0xff]  }
 0x4be   : > { %9987 = vmatprep.mubr.bf16.mxu1 %v7205_v30  ;;  %v12911_v30 = vld [vmem:[%s13618_s13 + $0x410] sm:$0xff]  }
 0x4bf   : > { %12211 = vmatpush3.bf16.msra.mxu0 %v12830_v41  ;;  %v12879_v41 = vld [vmem:[%s13618_s13 + $0x390] sm:$0xff]  }
 0x4c0   : > { %12212 = vmatprep.subr.bf16.mxu0 %v12832_v18  ;;  %12233 = vmatpush3.bf16.msra.mxu1 %v12831_v47  ;;  %v12880_v47 = vld [vmem:[%s13618_s13 + $0x348] sm:$0xff]  }
 0x4c1   : > { %12234 = vmatprep.subr.bf16.mxu1 %v12833_v26  ;;  %v12881_v18 = vld [vmem:[%s13618_s13 + $0x3c8] sm:$0xff]  }
 0x4c2   : > { %v12882_v26 = vld [vmem:[%s13618_s13 + $0x308] sm:$0xff]  }
 0x4c3   : > { %12213 = vmatpush3.bf16.msra.mxu0 %v12834_v43  ;;  %v12883_v43 = vld [vmem:[%s13618_s13 + $0x388] sm:$0xff]  }
 0x4c4   : > { %12214 = vmatprep.subr.bf16.mxu0 %v12836_v59  ;;  %12235 = vmatpush3.bf16.msra.mxu1 %v12835_v48  ;;  %v12884_v48 = vld [vmem:[%s13618_s13 + $0x340] sm:$0xff]  }
 0x4c5   : > { %12236 = vmatprep.subr.bf16.mxu1 %v12837_v33  ;;  %v12885_v59 = vld [vmem:[%s13618_s13 + $0x3c0] sm:$0xff]  }
 0x4c6   : > { %v12886_v33 = vld [vmem:[%s13618_s13 + $0x300] sm:$0xff]  }
 0x4c7   : > { %12215 = vmatpush3.bf16.msra.mxu0 %v12838_v53  ;;  %v12887_v53 = vld [vmem:[%s13618_s13 + $0x380] sm:$0xff]  }
 0x4c8   : > { %12216 = vmatprep.subr.bf16.mxu0 %v12840_v14  ;;  %12237 = vmatpush3.bf16.msra.mxu1 %v12839_v13  ;;  %v7188_v13 = vrot.slane %v13991_v1, %v13918_v57  ;;  %v12889_v14 = vld [vmem:[%s13618_s13 + $0x478] sm:$0xff]   ;;  %v12904_v1 = vld [vmem:[%s13618_s13 + $0x4a0] sm:$0xff]  }
 0x4c9   : > { %12238 = vmatprep.subr.bf16.mxu1 %v12841_v19  ;;  %v12890_v19 = vld [vmem:[%s13618_s13 + $0x4f8] sm:$0xff]  }
 0x4cb   : > { %12217 = vmatpush3.bf16.msra.mxu0 %v12842_v12  ;;  %v12891_v12 = vld [vmem:[%s13618_s13 + $0x438] sm:$0xff]  }
 0x4cc   : > { %12218 = vmatprep.subr.bf16.mxu0 %v12844_v58  ;;  %12239 = vmatpush3.bf16.msra.mxu1 %v12843_v45  ;;  %v12892_v45 = vld [vmem:[%s13618_s13 + $0x4b8] sm:$0xff]   ;;  %v7204_v58 = vcombine.high %v7188_v13, %v7188_v13 }
 0x4cd   : > { %12240 = vmatprep.subr.bf16.mxu1 %v12845_v21  ;;  %v12893_v21 = vld [vmem:[%s13618_s13 + $0x470] sm:$0xff]  }
 0x4cf   : > { %12219 = vmatpush3.bf16.msra.mxu0 %v12846_v0  ;;  %v12894_v0 = vld [vmem:[%s13618_s13 + $0x4f0] sm:$0xff]  }
 0x4d0   : > { %12220 = vmatprep.subr.bf16.mxu0 %v12848_v46  ;;  %12241 = vmatpush3.bf16.msra.mxu1 %v12847_v56  ;;  %v12895_v56 = vld [vmem:[%s13618_s13 + $0x430] sm:$0xff]  }
 0x4d1   : > { %12242 = vmatprep.subr.bf16.mxu1 %v12849_v3  ;;  %v12896_v46 = vld [vmem:[%s13618_s13 + $0x4b0] sm:$0xff]   ;;  %v12898_v3 = vld [vmem:[%s13618_s13 + $0x4e8] sm:$0xff]  }
 0x4d3   : > { %12221 = vmatpush3.bf16.msra.mxu0 %v12850_v6  ;;  %v12901_v6 = vld [vmem:[%s13618_s13 + $0x460] sm:$0xff]  }
 0x4d4   : > { %12222 = vmatprep.subr.bf16.mxu0 %v12852_v10  ;;  %12243 = vmatpush3.bf16.msra.mxu1 %v12851_v7  ;;  %v12902_v7 = vld [vmem:[%s13618_s13 + $0x4e0] sm:$0xff]   ;;  %v12905_v10 = vld [vmem:[%s13618_s13 + $0x458] sm:$0xff]  }
 0x4d5   : > { %12244 = vmatprep.subr.bf16.mxu1 %v12853_v11  ;;  %v12906_v11 = vld [vmem:[%s13618_s13 + $0x4d8] sm:$0xff]  }
 0x4d7   : > { %12223 = vmatpush3.bf16.msra.mxu0 %v12854_v31  ;;  %v12909_v31 = vld [vmem:[%s13618_s13 + $0x450] sm:$0xff]  }
 0x4d8   : > { %12252 = vmatprep.subr.bf16.mxu0 %v12856_v49  ;;  %12245 = vmatpush3.bf16.msra.mxu1 %v12855_v17  ;;  %v12910_v17 = vld [vmem:[%s13618_s13 + $0x4d0] sm:$0xff]   ;;  %v12913_v49 = vld [vmem:[%s13618_s13 + $0x448] sm:$0xff]  }
 0x4d9   : > { %12274 = vmatprep.subr.bf16.mxu1 %v12857_v29  ;;  %v12914_v29 = vld [vmem:[%s13618_s13 + $0x4c8] sm:$0xff]  }
 0x4da   : > { %9948 = vmatmul.mubr.bf16.vlgmr.msra.gmra.mxu0 %v7181_v44  ;;  %v12912_v44 = vld [vmem:[%s13618_s13 + $0x490] sm:$0xff]  }
 0x4db   : > { %12253 = vmatpush3.bf16.msra.mxu0 %v12858_v28  ;;  %10027 = vmatprep.mubr.bf16.mxu0 %v7202_v9  ;;  %v7214_v9 = vrot.slane %v6319_v62, %v13918_v57  ;;  %v7207_v28 = vcombine.high %v6319_v62, %v6319_v62  ;;  %v12963_v62 = vld [vmem:[%s13618_s13 + $0x6e8] sm:$0xff]  }
 0x4dc   : > { %9988 = vmatmul.mubr.bf16.vlgmr.msra.gmra.mxu1 %v7203_v50  ;;  %12254 = vmatprep.subr.bf16.mxu0 %v12860_v23  ;;  %v12917_v50 = vld [vmem:[%s13618_s13 + $0x440] sm:$0xff]  }
 0x4dd   : > { %12275 = vmatpush3.bf16.msra.mxu1 %v12859_v35  ;;  %10067 = vmatprep.mubr.bf16.mxu1 %v7206_v34  ;;  %v12915_v35 = vld [vmem:[%s13618_s13 + $0x408] sm:$0xff]   ;;  %v7222_v23 = vcombine.high %v7214_v9, %v7214_v9 }
 0x4de   : > { %12276 = vmatprep.subr.bf16.mxu1 %v12861_v32  ;;  %v14066_v32 = vrot.slane %v7207_v28, %v13918_v57  ;;  %v12916_v34 = vld [vmem:[%s13618_s13 + $0x488] sm:$0xff]  }
 0x4df   : > { %12255 = vmatpush3.bf16.msra.mxu0 %v12862_v2  ;;  %v12918_v2 = vld [vmem:[%s13618_s13 + $0x4c0] sm:$0xff]   ;;  %v12965_v28 = vld [vmem:[%s13618_s13 + $0x6a8] sm:$0xff]  }
 0x4e0   : > { %12256 = vmatprep.subr.bf16.mxu0 %v12864_v52  ;;  %v7223_v52 = vcombine.high %v14066_v32, %v14066_v32 }
 0x4e1   : > { %12277 = vmatpush3.bf16.msra.mxu1 %v12863_v42  ;;  %v7244_v42 = vrot.slane %v7222_v23, %v13918_v57  ;;  %v12970_v23 = vld [vmem:[%s13618_s13 + $0x658] sm:$0xff]  }
 0x4e2   : > { %12278 = vmatprep.subr.bf16.mxu1 %v12865_v63  ;;  %v12919_v63 = vld [vmem:[%s13618_s13 + $0x400] sm:$0xff]  }
 0x4e3   : > { %12257 = vmatpush3.bf16.msra.mxu0 %v12866_v61  ;;  %v7254_v61 = vcombine.high %v7244_v42, %v7244_v42 }
 0x4e4   : > { %12258 = vmatprep.subr.bf16.mxu0 %v12868_v20  ;;  %v12921_v20 = vld [vmem:[%s13618_s13 + $0x578] sm:$0xff]  }
 0x4e5   : > { %12279 = vmatpush3.bf16.msra.mxu1 %v12867_v27  ;;  %v7230_v27 = vrot.slane %v7214_v9, %v13918_v57  ;;  %v12966_v9 = vld [vmem:[%s13618_s13 + $0x660] sm:$0xff]  }
 0x4e6   : > { %12280 = vmatprep.subr.bf16.mxu1 %v12869_v36  ;;  %v12920_v36 = vld [vmem:[%s13618_s13 + $0x480] sm:$0xff]  }
 0x4e7   : > { %12259 = vmatpush3.bf16.msra.mxu0 %v12870_v37  ;;  %v7251_v37 = vrot.slane %v7223_v52, %v13918_v57  ;;  %v12973_v52 = vld [vmem:[%s13618_s13 + $0x698] sm:$0xff]  }
 0x4e8   : > { %12260 = vmatprep.subr.bf16.mxu0 %v12872_v24  ;;  %v12923_v24 = vld [vmem:[%s13618_s13 + $0x538] sm:$0xff]  }
 0x4e9   : > { %12281 = vmatpush3.bf16.msra.mxu1 %v12871_v60  ;;  %v12922_v60 = vld [vmem:[%s13618_s13 + $0x5f8] sm:$0xff]  }
 0x4ea   : > { %12282 = vmatprep.subr.bf16.mxu1 %v12873_v55  ;;  %v7252_v55 = vcombine.high %v7230_v27, %v7230_v27 }
 0x4eb   : > { %12261 = vmatpush3.bf16.msra.mxu0 %v12874_v25  ;;  %v12925_v25 = vld [vmem:[%s13618_s13 + $0x570] sm:$0xff]  }
 0x4ec   : > { %12262 = vmatprep.subr.bf16.mxu0 %v12876_v54  ;;  %v7255_v54 = vcombine.high %v7251_v37, %v7251_v37 }
 0x4ed   : > { %12283 = vmatpush3.bf16.msra.mxu1 %v12875_v38  ;;  %v12924_v38 = vld [vmem:[%s13618_s13 + $0x5b8] sm:$0xff]  }
 0x4ee   : > { %12284 = vmatprep.subr.bf16.mxu1 %v12877_v39  ;;  %v12926_v39 = vld [vmem:[%s13618_s13 + $0x5f0] sm:$0xff]  }
 0x4ef   : > { %12263 = vmatpush3.bf16.msra.mxu0 %v12878_v40  ;;  %v12927_v40 = vld [vmem:[%s13618_s13 + $0x530] sm:$0xff]  }
 0x4f0   : > { %12264 = vmatprep.subr.bf16.mxu0 %v12880_v47  ;;  %v12928_v47 = vld [vmem:[%s13618_s13 + $0x5b0] sm:$0xff]  }
 0x4f1   : > { %12285 = vmatpush3.bf16.msra.mxu1 %v12879_v41  ;;  %v12929_v41 = vld [vmem:[%s13618_s13 + $0x568] sm:$0xff]  }
 0x4f2   : > { %12286 = vmatprep.subr.bf16.mxu1 %v12881_v18  ;;  %v12930_v18 = vld [vmem:[%s13618_s13 + $0x5e8] sm:$0xff]  }
 0x4f3   : > { %12265 = vmatpush3.bf16.msra.mxu0 %v12882_v26  ;;  %v12931_v26 = vld [vmem:[%s13618_s13 + $0x528] sm:$0xff]  }
 0x4f4   : > { %12266 = vmatprep.subr.bf16.mxu0 %v12884_v48  ;;  %v12932_v48 = vld [vmem:[%s13618_s13 + $0x5a8] sm:$0xff]  }
 0x4f5   : > { %12287 = vmatpush3.bf16.msra.mxu1 %v12883_v43  ;;  %v12933_v43 = vld [vmem:[%s13618_s13 + $0x560] sm:$0xff]  }
 0x4f6   : > { %12288 = vmatprep.subr.bf16.mxu1 %v12885_v59  ;;  %v12934_v59 = vld [vmem:[%s13618_s13 + $0x5e0] sm:$0xff]  }
 0x4f7   : > { %12267 = vmatpush3.bf16.msra.mxu0 %v12886_v33  ;;  %v12935_v33 = vld [vmem:[%s13618_s13 + $0x520] sm:$0xff]  }
 0x4f8   : > { %12296 = vmatprep.subr.bf16.mxu0 %v12889_v14  ;;  %v12938_v14 = vld [vmem:[%s13618_s13 + $0x5d8] sm:$0xff]  }
 0x4f9   : > { %12289 = vmatpush3.bf16.msra.mxu1 %v12887_v53  ;;  %v12937_v53 = vld [vmem:[%s13618_s13 + $0x558] sm:$0xff]  }
 0x4fa   : > { %10028 = vmatmul.mubr.bf16.vlgmr.msra.gmra.mxu0 %v7188_v13  ;;  %12318 = vmatprep.subr.bf16.mxu1 %v12890_v19  ;;  %v12936_v13 = vld [vmem:[%s13618_s13 + $0x5a0] sm:$0xff]   ;;  %v12939_v19 = vld [vmem:[%s13618_s13 + $0x518] sm:$0xff]  }
 0x4fb   : > { %12297 = vmatpush3.bf16.msra.mxu0 %v12891_v12  ;;  %10107 = vmatprep.mubr.bf16.mxu0 %v7244_v42  ;;  %v12941_v12 = vld [vmem:[%s13618_s13 + $0x550] sm:$0xff]  }
 0x4fc   : > { %10068 = vmatmul.mubr.bf16.vlgmr.msra.gmra.mxu1 %v7204_v58  ;;  %12298 = vmatprep.subr.bf16.mxu0 %v12893_v21  ;;  %v12942_v58 = vld [vmem:[%s13618_s13 + $0x5d0] sm:$0xff]  }
 0x4fd   : > { %12319 = vmatpush3.bf16.msra.mxu1 %v12892_v45  ;;  %10147 = vmatprep.mubr.bf16.mxu1 %v7254_v61  ;;  %v12940_v45 = vld [vmem:[%s13618_s13 + $0x598] sm:$0xff]   ;;  %v12943_v21 = vld [vmem:[%s13618_s13 + $0x510] sm:$0xff]  }
 0x4fe   : > { %12320 = vmatprep.subr.bf16.mxu1 %v12894_v0  ;;  %v12945_v0 = vld [vmem:[%s13618_s13 + $0x548] sm:$0xff]   ;;  %v12974_v42 = vld [vmem:[%s13618_s13 + $0x650] sm:$0xff]  }
 0x4ff   : > { %12299 = vmatpush3.bf16.msra.mxu0 %v12895_v56  ;;  %v12944_v56 = vld [vmem:[%s13618_s13 + $0x590] sm:$0xff]  }
 0x500   : > { %12300 = vmatprep.subr.bf16.mxu0 %v12897_v51  ;;  %v12947_v51 = vld [vmem:[%s13618_s13 + $0x508] sm:$0xff]   ;;  %v12976_v61 = vld [vmem:[%s13618_s13 + $0x610] sm:$0xff]  }
 0x501   : > { %12321 = vmatpush3.bf16.msra.mxu1 %v12896_v46  ;;  %v12946_v46 = vld [vmem:[%s13618_s13 + $0x5c8] sm:$0xff]  }
 0x502   : > { %12322 = vmatprep.subr.bf16.mxu1 %v12898_v3  ;;  %v12949_v3 = vld [vmem:[%s13618_s13 + $0x540] sm:$0xff]  }
 0x503   : > { %12301 = vmatpush3.bf16.msra.mxu0 %v12899_v4  ;;  %v12948_v4 = vld [vmem:[%s13618_s13 + $0x588] sm:$0xff]  }
 0x504   : > { %12302 = vmatprep.subr.bf16.mxu0 %v12901_v6  ;;  %v12951_v6 = vld [vmem:[%s13618_s13 + $0x500] sm:$0xff]  }
 0x505   : > { %12323 = vmatpush3.bf16.msra.mxu1 %v12900_v5  ;;  %v12950_v5 = vld [vmem:[%s13618_s13 + $0x5c0] sm:$0xff]  }
 0x506   : > { %12324 = vmatprep.subr.bf16.mxu1 %v12902_v7  ;;  %v7237_v7 = vrot.slane %v14066_v32, %v13918_v57  ;;  %v12969_v32 = vld [vmem:[%s13618_s13 + $0x6a0] sm:$0xff]  }
 0x507   : > { %12303 = vmatpush3.bf16.msra.mxu0 %v12903_v8  ;;  %v12954_v8 = vld [vmem:[%s13618_s13 + $0x678] sm:$0xff]  }
 0x508   : > { %12304 = vmatprep.subr.bf16.mxu0 %v12905_v10  ;;  %v12955_v10 = vld [vmem:[%s13618_s13 + $0x6f8] sm:$0xff]  }
 0x509   : > { %12325 = vmatpush3.bf16.msra.mxu1 %v12904_v1  ;;  %v12952_v1 = vld [vmem:[%s13618_s13 + $0x580] sm:$0xff]  }
 0x50a   : > { %12326 = vmatprep.subr.bf16.mxu1 %v12906_v11  ;;  %v12956_v11 = vld [vmem:[%s13618_s13 + $0x638] sm:$0xff]  }
 0x50b   : > { %12305 = vmatpush3.bf16.msra.mxu0 %v12907_v15  ;;  %v7253_v15 = vcombine.high %v7237_v7, %v7237_v7 }
 0x50c   : > { %12306 = vmatprep.subr.bf16.mxu0 %v12909_v31  ;;  %v12957_v31 = vld [vmem:[%s13618_s13 + $0x6b8] sm:$0xff]  }
 0x50d   : > { %12327 = vmatpush3.bf16.msra.mxu1 %v12908_v16  ;;  %v12958_v16 = vld [vmem:[%s13618_s13 + $0x670] sm:$0xff]  }
 0x50e   : > { %12328 = vmatprep.subr.bf16.mxu1 %v12910_v17  ;;  %v12959_v17 = vld [vmem:[%s13618_s13 + $0x6f0] sm:$0xff]  }
 0x50f   : > { %12307 = vmatpush3.bf16.msra.mxu0 %v12911_v30  ;;  %v12960_v30 = vld [vmem:[%s13618_s13 + $0x630] sm:$0xff]  }
 0x510   : > { %12308 = vmatprep.subr.bf16.mxu0 %v12913_v49  ;;  %v12961_v49 = vld [vmem:[%s13618_s13 + $0x6b0] sm:$0xff]  }
 0x511   : > { %12329 = vmatpush3.bf16.msra.mxu1 %v12912_v44  ;;  %v12962_v44 = vld [vmem:[%s13618_s13 + $0x668] sm:$0xff]  }
 0x512   : > { %12330 = vmatprep.subr.bf16.mxu1 %v12914_v29  ;;  %v12964_v29 = vld [vmem:[%s13618_s13 + $0x628] sm:$0xff]  }
 0x513   : > { %12309 = vmatpush3.bf16.msra.mxu0 %v12915_v35  ;;  %v12967_v35 = vld [vmem:[%s13618_s13 + $0x6e0] sm:$0xff]  }
 0x514   : > { %12310 = vmatprep.subr.bf16.mxu0 %v12917_v50  ;;  %v12968_v50 = vld [vmem:[%s13618_s13 + $0x620] sm:$0xff]  }
 0x515   : > { %12331 = vmatpush3.bf16.msra.mxu1 %v12916_v34  ;;  %v12971_v34 = vld [vmem:[%s13618_s13 + $0x6d8] sm:$0xff]  }
 0x516   : > { %12332 = vmatprep.subr.bf16.mxu1 %v12918_v2  ;;  %v12972_v2 = vld [vmem:[%s13618_s13 + $0x618] sm:$0xff]  }
 0x517   : > { %12311 = vmatpush3.bf16.msra.mxu0 %v12919_v63  ;;  %v12975_v63 = vld [vmem:[%s13618_s13 + $0x6d0] sm:$0xff]  }
 0x518   : > { %12340 = vmatprep.subr.bf16.mxu0 %v12921_v20  ;;  %v12977_v20 = vld [vmem:[%s13618_s13 + $0x690] sm:$0xff]  }
 0x519   : > { %12333 = vmatpush3.bf16.msra.mxu1 %v12920_v36  ;;  %v6320_v36 = vld [vmem:[#allocation2] sm:$0xff] }
 0x51a   : > { %10108 = vmatmul.mubr.bf16.vlgmr.msra.gmra.mxu0 %v7230_v27  ;;  %12362 = vmatprep.subr.bf16.mxu1 %v12922_v60  ;;  %v12978_v27 = vld [vmem:[%s13618_s13 + $0x648] sm:$0xff]   ;;  %v7263_v60 = vrot.slane %v6320_v36, %v13918_v57 }
 0x51b   : > { %12341 = vmatpush3.bf16.msra.mxu0 %v12923_v24  ;;  %10187 = vmatprep.mubr.bf16.mxu0 %v7251_v37  ;;  %v12979_v37 = vld [vmem:[%s13618_s13 + $0x6c8] sm:$0xff]   ;;  %v7256_v24 = vcombine.high %v6320_v36, %v6320_v36 }
 0x51c   : > { %10148 = vmatmul.mubr.bf16.vlgmr.msra.gmra.mxu1 %v7252_v55  ;;  %12342 = vmatprep.subr.bf16.mxu0 %v12925_v25  ;;  %v12980_v55 = vld [vmem:[%s13618_s13 + $0x608] sm:$0xff]   ;;  %v12982_v25 = vld [vmem:[%s13618_s13 + $0x640] sm:$0xff]  }
 0x51d   : > { %12363 = vmatpush3.bf16.msra.mxu1 %v12924_v38  ;;  %10227 = vmatprep.mubr.bf16.mxu1 %v7255_v54  ;;  %v7271_v38 = vcombine.high %v7263_v60, %v7263_v60  ;;  %v14141_v54 = vrot.slane %v7256_v24, %v13918_v57  ;;  %v13012_v36 = vld [vmem:[%s13618_s13 + $0x708] sm:$0xff]   ;;  %v13015_v24 = vld [vmem:[%s13618_s13 + $0x7c0] sm:$0xff]  }
 0x51e   : > { %12364 = vmatprep.subr.bf16.mxu1 %v12926_v39  ;;  %v12981_v39 = vld [vmem:[%s13618_s13 + $0x688] sm:$0xff]  }
 0x51f   : > { %12343 = vmatpush3.bf16.msra.mxu0 %v12927_v40  ;;  %v12983_v40 = vld [vmem:[%s13618_s13 + $0x6c0] sm:$0xff]  }
 0x520   : > { %12344 = vmatprep.subr.bf16.mxu0 %v12929_v41  ;;  %v12984_v41 = vld [vmem:[%s13618_s13 + $0x600] sm:$0xff]  }
 0x521   : > { %12365 = vmatpush3.bf16.msra.mxu1 %v12928_v47  ;;  %v7293_v47 = vrot.slane %v7271_v38, %v13918_v57  ;;  %v7286_v38 = vrot.slane %v14141_v54, %v13918_v57 }
 0x522   : > { %12366 = vmatprep.subr.bf16.mxu1 %v12930_v18  ;;  %v7272_v18 = vcombine.high %v14141_v54, %v14141_v54  ;;  %v13025_v54 = vld [vmem:[%s13618_s13 + $0x830] sm:$0xff]  }
 0x523   : > { %12345 = vmatpush3.bf16.msra.mxu0 %v12931_v26  ;;  %v12985_v26 = vld [vmem:[%s13618_s13 + $0x680] sm:$0xff]  }
 0x524   : > { %12346 = vmatprep.subr.bf16.mxu0 %v12933_v43  ;;  %v12986_v43 = vld [vmem:[%s13618_s13 + $0x778] sm:$0xff]  }
 0x525   : > { %12367 = vmatpush3.bf16.msra.mxu1 %v12932_v48  ;;  %v7100_v48 = vsub.s32 0, %v13913_v22 }
 0x526   : > { %12368 = vmatprep.subr.bf16.mxu1 %v12934_v59  ;;  %v7303_v59 = vcombine.high %v7293_v47, %v7293_v47 }
 0x527   : > { %12347 = vmatpush3.bf16.msra.mxu0 %v12935_v33  ;;  %v7279_v33 = vrot.slane %v7263_v60, %v13918_v57  ;;  %v13014_v60 = vld [vmem:[%s13618_s13 + $0x740] sm:$0xff]  }
 0x528   : > { %12348 = vmatprep.subr.bf16.mxu0 %v12937_v53  ;;  %v7092_v53 = vld [vmem:[%s13626_s23] sm:$0xff] }
 0x529   : > { %12369 = vmatpush3.bf16.msra.mxu1 %v12936_v13  ;;  %v12987_v13 = vld [vmem:[%s13618_s13 + $0x7f8] sm:$0xff]  }
 0x52a   : > { %12370 = vmatprep.subr.bf16.mxu1 %v12938_v14  ;;  %v7300_v14 = vrot.slane %v7272_v18, %v13918_v57  ;;  %v7302_v18 = vcombine.high %v7286_v38, %v7286_v38 }
 0x52b   : > { %12349 = vmatpush3.bf16.msra.mxu0 %v12939_v19  ;;  %v12988_v19 = vld [vmem:[%s13618_s13 + $0x738] sm:$0xff]  }
 0x52c   : > { %12350 = vmatprep.subr.bf16.mxu0 %v12941_v12  ;;  %v12989_v12 = vld [vmem:[%s13618_s13 + $0x7b8] sm:$0xff]  }
 0x52d   : > { %12371 = vmatpush3.bf16.msra.mxu1 %v12940_v45  ;;  %v7101_v45 = vrot.slane %v7092_v53, %v7100_v48 }
 0x52e   : > { %12372 = vmatprep.subr.bf16.mxu1 %v12942_v58  ;;  %v7301_v58 = vcombine.high %v7279_v33, %v7279_v33 }
 0x52f   : > { %12351 = vmatpush3.bf16.msra.mxu0 %v12943_v21  ;;  %v7096_v21 = vpop.permute.xlu0 %7095 }
 0x530   : > { %12352 = vmatprep.subr.bf16.mxu0 %v12945_v0  ;;  %v12990_v0 = vld [vmem:[%s13618_s13 + $0x770] sm:$0xff]  }
 0x531   : > { %12373 = vmatpush3.bf16.msra.mxu1 %v12944_v56  ;;  %v12991_v56 = vld [vmem:[%s13618_s13 + $0x7f0] sm:$0xff]  }
 0x532   : > { %12374 = vmatprep.subr.bf16.mxu1 %v12946_v46  ;;  %v7304_v46 = vcombine.high %v7300_v14, %v7300_v14 }
 0x533   : > { %12353 = vmatpush3.bf16.msra.mxu0 %v12947_v51 }
 0x534   : > { %12354 = vmatprep.subr.bf16.mxu0 %v12949_v3  ;;  %v12992_v3 = vld [vmem:[%s13618_s13 + $0x730] sm:$0xff]  }
 0x535   : > { %12375 = vmatpush3.bf16.msra.mxu1 %v12948_v4  ;;  %v7102_v4 = vmul.f32 %v7101_v45, %v7096_v21 }
 0x536   : > { %12376 = vmatprep.subr.bf16.mxu1 %v12950_v5  ;;  %v12993_v5 = vld [vmem:[%s13618_s13 + $0x7b0] sm:$0xff]  }
 0x537   : > { %12355 = vmatpush3.bf16.msra.mxu0 %v12951_v6 }
 0x538   : > { %12384 = vmatprep.subr.bf16.mxu0 %v12954_v8  ;;  %v12994_v8 = vld [vmem:[%s13618_s13 + $0x768] sm:$0xff]  }
 0x539   : > { %12377 = vmatpush3.bf16.msra.mxu1 %v12952_v1 }
 0x53a   : > { %10188 = vmatmul.mubr.bf16.vlgmr.msra.gmra.mxu0 %v7237_v7  ;;  %12406 = vmatprep.subr.bf16.mxu1 %v12955_v10  ;;  %v12995_v10 = vld [vmem:[%s13618_s13 + $0x7e8] sm:$0xff]  }
 0x53b   : > { %12385 = vmatpush3.bf16.msra.mxu0 %v12956_v11  ;;  %10267 = vmatprep.mubr.bf16.mxu0 %v7293_v47  ;;  %v13022_v47 = vld [vmem:[%s13618_s13 + $0x8b8] sm:$0xff]  }
 0x53c   : > { %10228 = vmatmul.mubr.bf16.vlgmr.msra.gmra.mxu1 %v7253_v15  ;;  %12386 = vmatprep.subr.bf16.mxu0 %v12958_v16  ;;  %v12996_v16 = vld [vmem:[%s13618_s13 + $0x728] sm:$0xff]  }
 0x53d   : > { %12407 = vmatpush3.bf16.msra.mxu1 %v12957_v31  ;;  %10307 = vmatprep.mubr.bf16.mxu1 %v7303_v59  ;;  %v13026_v59 = vld [vmem:[%s13618_s13 + $0x8b0] sm:$0xff]  }
 0x53e   : > { %12408 = vmatprep.subr.bf16.mxu1 %v12959_v17 }
 0x53f   : > { %12387 = vmatpush3.bf16.msra.mxu0 %v12960_v30  ;;  %v12997_v30 = vld [vmem:[%s13618_s13 + $0x7a8] sm:$0xff]  }
 0x540   : > { %12388 = vmatprep.subr.bf16.mxu0 %v12962_v44 }
 0x541   : > { %12409 = vmatpush3.bf16.msra.mxu1 %v12961_v49 }
 0x542   : > { %12410 = vmatprep.subr.bf16.mxu1 %v12963_v62  ;;  %v12998_v62 = vld [vmem:[%s13618_s13 + $0x760] sm:$0xff]  }
 0x543   : > { %12389 = vmatpush3.bf16.msra.mxu0 %v12964_v29 }
 0x544   : > { %12390 = vmatprep.subr.bf16.mxu0 %v12966_v9  ;;  %v12999_v9 = vld [vmem:[%s13618_s13 + $0x7e0] sm:$0xff]  }
 0x545   : > { %12411 = vmatpush3.bf16.msra.mxu1 %v12965_v28 }
 0x546   : > { %12412 = vmatprep.subr.bf16.mxu1 %v12967_v35  ;;  %v13000_v35 = vld [vmem:[%s13618_s13 + $0x720] sm:$0xff]  }
 0x547   : > { %12391 = vmatpush3.bf16.msra.mxu0 %v12968_v50  ;;  %v13001_v50 = vld [vmem:[%s13618_s13 + $0x7a0] sm:$0xff]  }
 0x548   : > { %12392 = vmatprep.subr.bf16.mxu0 %v12970_v23  ;;  %v13002_v23 = vld [vmem:[%s13618_s13 + $0x758] sm:$0xff]  }
 0x549   : > { %12413 = vmatpush3.bf16.msra.mxu1 %v12969_v32  ;;  %v13003_v32 = vld [vmem:[%s13618_s13 + $0x7d8] sm:$0xff]  }
 0x54a   : > { %12414 = vmatprep.subr.bf16.mxu1 %v12971_v34  ;;  %v13004_v34 = vld [vmem:[%s13618_s13 + $0x718] sm:$0xff]  }
 0x54b   : > { %12393 = vmatpush3.bf16.msra.mxu0 %v12972_v2  ;;  %v13005_v2 = vld [vmem:[%s13618_s13 + $0x798] sm:$0xff]  }
 0x54c   : > { %12394 = vmatprep.subr.bf16.mxu0 %v12974_v42  ;;  %v13006_v42 = vld [vmem:[%s13618_s13 + $0x750] sm:$0xff]  }
 0x54d   : > { %12415 = vmatpush3.bf16.msra.mxu1 %v12973_v52  ;;  %v13007_v52 = vld [vmem:[%s13618_s13 + $0x7d0] sm:$0xff]  }
 0x54e   : > { %12416 = vmatprep.subr.bf16.mxu1 %v12975_v63  ;;  %v13008_v63 = vld [vmem:[%s13618_s13 + $0x710] sm:$0xff]  }
 0x54f   : > { %12395 = vmatpush3.bf16.msra.mxu0 %v12976_v61  ;;  %v13009_v61 = vld [vmem:[%s13618_s13 + $0x790] sm:$0xff]  }
 0x550   : > { %12396 = vmatprep.subr.bf16.mxu0 %v12978_v27  ;;  %v13010_v27 = vld [vmem:[%s13618_s13 + $0x748] sm:$0xff]  }
 0x551   : > { %12417 = vmatpush3.bf16.msra.mxu1 %v12977_v20  ;;  %v13011_v20 = vld [vmem:[%s13618_s13 + $0x7c8] sm:$0xff]  }
 0x552   : > { %12418 = vmatprep.subr.bf16.mxu1 %v12979_v37  ;;  %v13013_v37 = vld [vmem:[%s13618_s13 + $0x788] sm:$0xff]  }
 0x553   : > { %12397 = vmatpush3.bf16.msra.mxu0 %v12980_v55  ;;  %v13016_v55 = vld [vmem:[%s13618_s13 + $0x700] sm:$0xff]  }
 0x554   : > { %12398 = vmatprep.subr.bf16.mxu0 %v12982_v25  ;;  %v13017_v25 = vld [vmem:[%s13618_s13 + $0x780] sm:$0xff]  }
 0x555   : > { %12419 = vmatpush3.bf16.msra.mxu1 %v12981_v39  ;;  %v13019_v39 = vld [vmem:[%s13618_s13 + $0x878] sm:$0xff]  }
 0x556   : > { %12420 = vmatprep.subr.bf16.mxu1 %v12983_v40  ;;  %v13020_v40 = vld [vmem:[%s13618_s13 + $0x8f8] sm:$0xff]  }
 0x557   : > { %12399 = vmatpush3.bf16.msra.mxu0 %v12984_v41  ;;  %v13021_v41 = vld [vmem:[%s13618_s13 + $0x838] sm:$0xff]  }
 0x558   : > { %12428 = vmatprep.subr.bf16.mxu0 %v12986_v43  ;;  %v13024_v43 = vld [vmem:[%s13618_s13 + $0x8f0] sm:$0xff]  }
 0x559   : > { %12421 = vmatpush3.bf16.msra.mxu1 %v12985_v26  ;;  %v13023_v26 = vld [vmem:[%s13618_s13 + $0x870] sm:$0xff]  }
 0x55a   : > { %v12136_v51 = vpop.f32.mrf.mxu0  ;;  %10268 = vmatmul.mubr.bf16.vlgmr.msra.gmra.mxu0 %v7279_v33  ;;  %12450 = vmatprep.subr.bf16.mxu1 %v12987_v13  ;;  %v13027_v13 = vld [vmem:[%s13618_s13 + $0x868] sm:$0xff]  }
 0x55b   : > { %12429 = vmatpush3.bf16.msra.mxu0 %v12988_v19  ;;  %10347 = vmatprep.mubr.bf16.mxu0 %v7300_v14  ;;  %v12158_v6 = vpop.f32.mrf.mxu1  ;;  %v13028_v19 = vld [vmem:[%s13618_s13 + $0x8e8] sm:$0xff]  }
 0x55c   : > { %10308 = vmatmul.mubr.bf16.vlgmr.msra.gmra.mxu1 %v7301_v58  ;;  %v12137_v7 = vpop.f32.mrf.mxu0  ;;  %12430 = vmatprep.subr.bf16.mxu0 %v12990_v0  ;;  %v13029_v58 = vld [vmem:[%s13618_s13 + $0x828] sm:$0xff]  }
 0x55d   : > { %12451 = vmatpush3.bf16.msra.mxu1 %v12989_v12  ;;  %v12138_v1 = vadd.f32 %v12137_v7, %v12136_v51  ;;  %10387 = vmatprep.mubr.bf16.mxu1 %v7304_v46  ;;  %v12159_v11 = vpop.f32.mrf.mxu1  ;;  %v13033_v7 = vld [vmem:[%s13618_s13 + $0x820] sm:$0xff]  }
 0x55e   : > { %v12139_v15 = vpop.f32.mrf.mxu0  ;;  %12452 = vmatprep.subr.bf16.mxu1 %v12991_v56  ;;  %v12160_v17 = vadd.f32 %v12159_v11, %v12158_v6  ;;  %v13030_v56 = vld [vmem:[%s13618_s13 + $0x8a8] sm:$0xff]   ;;  %v13037_v11 = vld [vmem:[%s13618_s13 + $0x818] sm:$0xff]  }
 0x55f   : > { %v9790_v31 = vadd.f32 %v12138_v1, %v7102_v4  ;;  %12431 = vmatpush3.bf16.msra.mxu0 %v12992_v3  ;;  %v12161_v44 = vpop.f32.mrf.mxu1  ;;  %v13031_v3 = vld [vmem:[%s13618_s13 + $0x860] sm:$0xff]   ;;  %v13035_v1 = vld [vmem:[%s13618_s13 + $0x858] sm:$0xff]  }
 0x560   : > { %v12140_v49 = vpop.f32.mrf.mxu0  ;;  %12432 = vmatprep.subr.bf16.mxu0 %v12994_v8  ;;  %v13034_v8 = vld [vmem:[%s13618_s13 + $0x8a0] sm:$0xff]   ;;  %v13038_v15 = vld [vmem:[%s13618_s13 + $0x898] sm:$0xff]   ;;  %v13043_v44 = vld [vmem:[%s13618_s13 + $0x848] sm:$0xff]  }
 0x561   : > { %v14167_v29 = vadd.f32 %v12160_v17, %v9790_v31  ;;  %12453 = vmatpush3.bf16.msra.mxu1 %v12993_v5  ;;  %v12162_v28 = vpop.f32.mrf.mxu1  ;;  %v13032_v5 = vld [vmem:[%s13618_s13 + $0x8e0] sm:$0xff]   ;;  %v13040_v31 = vld [vmem:[%s13618_s13 + $0x8d0] sm:$0xff]   ;;  %v13044_v49 = vld [vmem:[%s13618_s13 + $0x8c8] sm:$0xff]  }
 0x562   : > { %12454 = vmatprep.subr.bf16.mxu1 %v12995_v10  ;;  %v13036_v10 = vld [vmem:[%s13618_s13 + $0x8d8] sm:$0xff]   ;;  %v13041_v17 = vld [vmem:[%s13618_s13 + $0x810] sm:$0xff]  }
 0x563   : > { %12433 = vmatpush3.bf16.msra.mxu0 %v12996_v16  ;;  %v13039_v16 = vld [vmem:[%s13618_s13 + $0x850] sm:$0xff]  }
 0x564   : > { %12434 = vmatprep.subr.bf16.mxu0 %v12998_v62  ;;  %v6321_v62 = vld [vmem:[#allocation2 + $0x18] sm:$0xff] }
 0x565   : > { %12455 = vmatpush3.bf16.msra.mxu1 %v12997_v30  ;;  %v13042_v30 = vld [vmem:[%s13618_s13 + $0x890] sm:$0xff]   ;;  %v7305_v28 = vcombine.high %v6321_v62, %v6321_v62 }
 0x566   : > { %12456 = vmatprep.subr.bf16.mxu1 %v12999_v9  ;;  %v7312_v9 = vrot.slane %v6321_v62, %v13918_v57  ;;  %v13084_v62 = vld [vmem:[%s13618_s13 + $0xa78] sm:$0xff]  }
 0x567   : > { %12435 = vmatpush3.bf16.msra.mxu0 %v13000_v35  ;;  %v13047_v35 = vld [vmem:[%s13618_s13 + $0x840] sm:$0xff]  }
 0x568   : > { %12436 = vmatprep.subr.bf16.mxu0 %v13002_v23  ;;  %v7320_v23 = vcombine.high %v7312_v9, %v7312_v9 }
 0x569   : > { %12457 = vmatpush3.bf16.msra.mxu1 %v13001_v50  ;;  %v13046_v50 = vld [vmem:[%s13618_s13 + $0x888] sm:$0xff]  }
 0x56a   : > { %12458 = vmatprep.subr.bf16.mxu1 %v13003_v32  ;;  %v14224_v32 = vrot.slane %v7305_v28, %v13918_v57  ;;  %v13086_v28 = vld [vmem:[%s13618_s13 + $0xa38] sm:$0xff]  }
 0x56b   : > { %12437 = vmatpush3.bf16.msra.mxu0 %v13004_v34  ;;  %v13048_v34 = vld [vmem:[%s13618_s13 + $0x8c0] sm:$0xff]  }
 0x56c   : > { %12438 = vmatprep.subr.bf16.mxu0 %v13006_v42  ;;  %v7342_v42 = vrot.slane %v7320_v23, %v13918_v57  ;;  %v13087_v23 = vld [vmem:[%s13618_s13 + $0xab8] sm:$0xff]  }
 0x56d   : > { %12459 = vmatpush3.bf16.msra.mxu1 %v13005_v2  ;;  %v13049_v2 = vld [vmem:[%s13618_s13 + $0x800] sm:$0xff]  }
 0x56e   : > { %12460 = vmatprep.subr.bf16.mxu1 %v13007_v52  ;;  %v7321_v52 = vcombine.high %v14224_v32, %v14224_v32 }
 0x56f   : > { %12439 = vmatpush3.bf16.msra.mxu0 %v13008_v63  ;;  %v7328_v63 = vrot.slane %v7312_v9, %v13918_v57  ;;  %v13085_v9 = vld [vmem:[%s13618_s13 + $0xaf8] sm:$0xff]  }
 0x570   : > { %12440 = vmatprep.subr.bf16.mxu0 %v13010_v27  ;;  %v13050_v27 = vld [vmem:[%s13618_s13 + $0x880] sm:$0xff]  }
 0x571   : > { %12461 = vmatpush3.bf16.msra.mxu1 %v13009_v61  ;;  %v13051_v61 = vld [vmem:[%s13618_s13 + $0x978] sm:$0xff]  }
 0x572   : > { %12462 = vmatprep.subr.bf16.mxu1 %v13011_v20  ;;  %v7352_v20 = vcombine.high %v7342_v42, %v7342_v42 }
 0x573   : > { %12441 = vmatpush3.bf16.msra.mxu0 %v13012_v36  ;;  %v7349_v36 = vrot.slane %v7321_v52, %v13918_v57 }
 0x574   : > { %12442 = vmatprep.subr.bf16.mxu0 %v13014_v60  ;;  %v13053_v60 = vld [vmem:[%s13618_s13 + $0x938] sm:$0xff]  }
 0x575   : > { %12463 = vmatpush3.bf16.msra.mxu1 %v13013_v37  ;;  %v13052_v37 = vld [vmem:[%s13618_s13 + $0x9f8] sm:$0xff]  }
 0x576   : > { %12464 = vmatprep.subr.bf16.mxu1 %v13015_v24  ;;  %v7350_v24 = vcombine.high %v7328_v63, %v7328_v63 }
 0x577   : > { %12443 = vmatpush3.bf16.msra.mxu0 %v13016_v55  ;;  %v13055_v55 = vld [vmem:[%s13618_s13 + $0x970] sm:$0xff]  }
 0x578   : > { %12472 = vmatprep.subr.bf16.mxu0 %v13019_v39 }
 0x579   : > { %12465 = vmatpush3.bf16.msra.mxu1 %v13017_v25  ;;  %v13054_v25 = vld [vmem:[%s13618_s13 + $0x9b8] sm:$0xff]  }
 0x57a   : > { %v12180_v48 = vpop.f32.mrf.mxu0  ;;  %10348 = vmatmul.mubr.bf16.vlgmr.msra.gmra.mxu0 %v7286_v38  ;;  %12494 = vmatprep.subr.bf16.mxu1 %v13020_v40  ;;  %v7353_v38 = vcombine.high %v7349_v36, %v7349_v36  ;;  %v13056_v40 = vld [vmem:[%s13618_s13 + $0x9f0] sm:$0xff]  }
 0x57b   : > { %12473 = vmatpush3.bf16.msra.mxu0 %v13021_v41  ;;  %v12202_v33 = vpop.f32.mrf.mxu1  ;;  %10427 = vmatprep.mubr.bf16.mxu0 %v7342_v42  ;;  %v13057_v41 = vld [vmem:[%s13618_s13 + $0x930] sm:$0xff]  }
 0x57c   : > { %10388 = vmatmul.mubr.bf16.vlgmr.msra.gmra.mxu1 %v7302_v18  ;;  %v12181_v53 = vpop.f32.mrf.mxu0  ;;  %12474 = vmatprep.subr.bf16.mxu0 %v13023_v26  ;;  %v13059_v26 = vld [vmem:[%s13618_s13 + $0x968] sm:$0xff]  }
 0x57d   : > { %12495 = vmatpush3.bf16.msra.mxu1 %v13022_v47  ;;  %v12182_v14 = vadd.f32 %v12181_v53, %v12180_v48  ;;  %v12203_v12 = vpop.f32.mrf.mxu1  ;;  %10467 = vmatprep.mubr.bf16.mxu1 %v7352_v20  ;;  %v13058_v48 = vld [vmem:[%s13618_s13 + $0x9b0] sm:$0xff]   ;;  %v13374_v20 = vmov 2  }
 0x57e   : > { %v12183_v45 = vpop.f32.mrf.mxu0  ;;  %12496 = vmatprep.subr.bf16.mxu1 %v13024_v43  ;;  %v12204_v0 = vadd.f32 %v12203_v12, %v12202_v33  ;;  %v13060_v33 = vld [vmem:[%s13618_s13 + $0x9e8] sm:$0xff]   ;;  %12752 = vset.pattern.permute.xlu1 %v13374_v20 }
 0x57f   : > { %v9870_v21 = vadd.f32 %v12182_v14, %v14167_v29  ;;  %12475 = vmatpush3.bf16.msra.mxu0 %v13025_v54  ;;  %v12205_v46 = vpop.f32.mrf.mxu1  ;;  %v13045_v29 = vld [vmem:[%s13618_s13 + $0x808] sm:$0xff]   ;;  %v13063_v45 = vld [vmem:[%s13618_s13 + $0x960] sm:$0xff]  }
 0x580   : > { %v12184_v51 = vpop.f32.mrf.mxu0  ;;  %12476 = vmatprep.subr.bf16.mxu0 %v13027_v13  ;;  %v13061_v14 = vld [vmem:[%s13618_s13 + $0x928] sm:$0xff]   ;;  %v13065_v46 = vld [vmem:[%s13618_s13 + $0x920] sm:$0xff]  }
 0x581   : > { %v14204_v4 = vadd.f32 %v12204_v0, %v9870_v21  ;;  %12497 = vmatpush3.bf16.msra.mxu1 %v13026_v59  ;;  %v12206_v6 = vpop.f32.mrf.mxu1  ;;  %v13062_v21 = vld [vmem:[%s13618_s13 + $0x9a8] sm:$0xff]   ;;  %v13067_v51 = vld [vmem:[%s13618_s13 + $0x958] sm:$0xff]  }
 0x582   : > { %12498 = vmatprep.subr.bf16.mxu1 %v13028_v19  ;;  %v13071_v6 = vld [vmem:[%s13618_s13 + $0x950] sm:$0xff]  }
 0x583   : > { %12477 = vmatpush3.bf16.msra.mxu0 %v13029_v58 }
 0x584   : > { %12478 = vmatprep.subr.bf16.mxu0 %v13031_v3  ;;  %v13066_v3 = vld [vmem:[%s13618_s13 + $0x9a0] sm:$0xff]  }
 0x585   : > { %12499 = vmatpush3.bf16.msra.mxu1 %v13030_v56  ;;  %v13064_v56 = vld [vmem:[%s13618_s13 + $0x9e0] sm:$0xff]  }
 0x586   : > { %12500 = vmatprep.subr.bf16.mxu1 %v13032_v5  ;;  %v13069_v5 = vld [vmem:[%s13618_s13 + $0x918] sm:$0xff]  }
 0x587   : > { %12479 = vmatpush3.bf16.msra.mxu0 %v13033_v7  ;;  %v13070_v7 = vld [vmem:[%s13618_s13 + $0x998] sm:$0xff]  }
 0x588   : > { %12480 = vmatprep.subr.bf16.mxu0 %v13035_v1  ;;  %v13073_v1 = vld [vmem:[%s13618_s13 + $0x910] sm:$0xff]  }
 0x589   : > { %12501 = vmatpush3.bf16.msra.mxu1 %v13034_v8  ;;  %v13072_v8 = vld [vmem:[%s13618_s13 + $0x9d0] sm:$0xff]  }
 0x58a   : > { %12502 = vmatprep.subr.bf16.mxu1 %v13036_v10  ;;  %v13075_v10 = vld [vmem:[%s13618_s13 + $0x948] sm:$0xff]  }
 0x58b   : > { %12481 = vmatpush3.bf16.msra.mxu0 %v13037_v11  ;;  %v13074_v11 = vld [vmem:[%s13618_s13 + $0x990] sm:$0xff]  }
 0x58c   : > { %12482 = vmatprep.subr.bf16.mxu0 %v13039_v16  ;;  %v13077_v16 = vld [vmem:[%s13618_s13 + $0x908] sm:$0xff]  }
 0x58d   : > { %12503 = vmatpush3.bf16.msra.mxu1 %v13038_v15  ;;  %v13076_v15 = vld [vmem:[%s13618_s13 + $0x9c8] sm:$0xff]  }
 0x58e   : > { %12504 = vmatprep.subr.bf16.mxu1 %v13040_v31  ;;  %v13079_v31 = vld [vmem:[%s13618_s13 + $0x940] sm:$0xff]  }
 0x58f   : > { %12483 = vmatpush3.bf16.msra.mxu0 %v13041_v17  ;;  %v13078_v17 = vld [vmem:[%s13618_s13 + $0x988] sm:$0xff]  }
 0x590   : > { %12484 = vmatprep.subr.bf16.mxu0 %v13043_v44  ;;  %v13081_v44 = vld [vmem:[%s13618_s13 + $0x900] sm:$0xff]  }
 0x591   : > { %12505 = vmatpush3.bf16.msra.mxu1 %v13042_v30  ;;  %v13080_v30 = vld [vmem:[%s13618_s13 + $0x9c0] sm:$0xff]  }
 0x592   : > { %12506 = vmatprep.subr.bf16.mxu1 %v13044_v49  ;;  %v7335_v49 = vrot.slane %v14224_v32, %v13918_v57  ;;  %v13089_v32 = vld [vmem:[%s13618_s13 + $0xaf0] sm:$0xff]  }
 0x593   : > { %12485 = vmatpush3.bf16.msra.mxu0 %v13045_v29  ;;  %v13082_v29 = vld [vmem:[%s13618_s13 + $0x980] sm:$0xff]  }
 0x594   : > { %12486 = vmatprep.subr.bf16.mxu0 %v13047_v35  ;;  %v7351_v35 = vcombine.high %v7335_v49, %v7335_v49 }
 0x595   : > { %12507 = vmatpush3.bf16.msra.mxu1 %v13046_v50  ;;  %v13088_v50 = vld [vmem:[%s13618_s13 + $0xa70] sm:$0xff]  }
 0x596   : > { %12508 = vmatprep.subr.bf16.mxu1 %v13048_v34 }
 0x597   : > { %12487 = vmatpush3.bf16.msra.mxu0 %v13049_v2  ;;  %v13090_v2 = vld [vmem:[%s13618_s13 + $0xa30] sm:$0xff]  }
 0x598   : > { %12516 = vmatprep.subr.bf16.mxu0 %v13051_v61 }
 0x599   : > { %12509 = vmatpush3.bf16.msra.mxu1 %v13050_v27  ;;  %v13091_v27 = vld [vmem:[%s13618_s13 + $0xab0] sm:$0xff]  }
 0x59a   : > { %v12224_v39 = vpop.f32.mrf.mxu0  ;;  %10428 = vmatmul.mubr.bf16.vlgmr.msra.gmra.mxu0 %v7328_v63  ;;  %12538 = vmatprep.subr.bf16.mxu1 %v13052_v37  ;;  %v13092_v63 = vld [vmem:[%s13618_s13 + $0xa68] sm:$0xff]  }
 0x59b   : > { %12517 = vmatpush3.bf16.msra.mxu0 %v13053_v60  ;;  %10507 = vmatprep.mubr.bf16.mxu0 %v7349_v36  ;;  %v13093_v60 = vld [vmem:[%s13618_s13 + $0xae8] sm:$0xff]  }
 0x59c   : > { %v12246_v47 = vpop.f32.mrf.mxu1  ;;  %10468 = vmatmul.mubr.bf16.vlgmr.msra.gmra.mxu1 %v7350_v24  ;;  %v12225_v18 = vpop.f32.mrf.mxu0  ;;  %12518 = vmatprep.subr.bf16.mxu0 %v13055_v55  ;;  %v14281_v24 = vld [vmem:[#allocation3] sm:$0x3] }
 0x59d   : > { %12539 = vmatpush3.bf16.msra.mxu1 %v13054_v25  ;;  %v12226_v43 = vadd.f32 %v12225_v18, %v12224_v39  ;;  %10547 = vmatprep.mubr.bf16.mxu1 %v7353_v38  ;;  %v13094_v38 = vld [vmem:[%s13618_s13 + $0xa28] sm:$0xff]  }
 0x59e   : > { %v12247_v54 = vpop.f32.mrf.mxu1  ;;  %v12227_v59 = vpop.f32.mrf.mxu0  ;;  %12540 = vmatprep.subr.bf16.mxu1 %v13056_v40  ;;  %10726 = vperm.xlu1 %12752, %v14281_v24   ;;  %v13095_v18 = vld [vmem:[%s13618_s13 + $0xaa8] sm:$0xff]  }
 0x59f   : > { %v9950_v53 = vadd.f32 %v12226_v43, %v14204_v4  ;;  %v12248_v13 = vadd.f32 %v12247_v54, %v12246_v47  ;;  %12519 = vmatpush3.bf16.msra.mxu0 %v13057_v41  ;;  %v13068_v4 = vld [vmem:[%s13618_s13 + $0x9d8] sm:$0xff]   ;;  %v13096_v41 = vld [vmem:[%s13618_s13 + $0xa60] sm:$0xff]   ;;  %v13375_v54 = vmov 3  }
 0x5a0   : > { %v12249_v19 = vpop.f32.mrf.mxu1  ;;  %v12228_v12 = vpop.f32.mrf.mxu0  ;;  %12520 = vmatprep.subr.bf16.mxu0 %v13059_v26  ;;  %v13097_v43 = vld [vmem:[%s13618_s13 + $0xae0] sm:$0xff]   ;;  %v13100_v59 = vld [vmem:[%s13618_s13 + $0xa58] sm:$0xff]  }
 0x5a1   : > { %v14247_v58 = vadd.f32 %v12248_v13, %v9950_v53  ;;  %12541 = vmatpush3.bf16.msra.mxu1 %v13058_v48  ;;  %v13098_v48 = vld [vmem:[%s13618_s13 + $0xa20] sm:$0xff]   ;;  %v13376_v53 = vmov 1   ;;  %v13101_v13 = vld [vmem:[%s13618_s13 + $0xad8] sm:$0xff]   ;;  %v13104_v19 = vld [vmem:[%s13618_s13 + $0xa50] sm:$0xff]   ;;  %v13377_v12 = vmov 4  }
 0x5a2   : > { %v12250_v0 = vpop.f32.mrf.mxu1  ;;  %12542 = vmatprep.subr.bf16.mxu1 %v13060_v33  ;;  %12753 = vset.pattern.permute.xlu1 %v13375_v54  ;;  %v13099_v33 = vld [vmem:[%s13618_s13 + $0xaa0] sm:$0xff]   ;;  %v13132_v54 = vld [vmem:[%s13618_s13 + $0xb58] sm:$0xff]  }
 0x5a3   : > { %12521 = vmatpush3.bf16.msra.mxu0 %v13061_v14  ;;  %10736 = vperm.xlu1 %12753, %v14281_v24   ;;  %v13102_v14 = vld [vmem:[%s13618_s13 + $0xa18] sm:$0xff]   ;;  %v13106_v0 = vld [vmem:[%s13618_s13 + $0xa10] sm:$0xff]  }
 0x5a4   : > { %12522 = vmatprep.subr.bf16.mxu0 %v13063_v45  ;;  %12751 = vset.pattern.permute.xlu0 %v13376_v53  ;;  %v13103_v45 = vld [vmem:[%s13618_s13 + $0xa98] sm:$0xff]  }
 0x5a5   : > { %12543 = vmatpush3.bf16.msra.mxu1 %v13062_v21  ;;  %10716 = vperm.xlu0 %12751, %v14281_v24   ;;  %v13378_v21 = vmov 5   ;;  %v13134_v53 = vld [vmem:[%s13618_s13 + $0xb18] sm:$0xff]  }
 0x5a6   : > { %12544 = vmatprep.subr.bf16.mxu1 %v13064_v56  ;;  %v13108_v56 = vld [vmem:[%s13618_s13 + $0xa48] sm:$0xff]  }
 0x5a7   : > { %12523 = vmatpush3.bf16.msra.mxu0 %v13065_v46  ;;  %12754 = vset.pattern.permute.xlu1 %v13377_v12  ;;  %v13107_v46 = vld [vmem:[%s13618_s13 + $0xa90] sm:$0xff]  }
 0x5a8   : > { %12524 = vmatprep.subr.bf16.mxu0 %v13067_v51  ;;  %10746 = vperm.xlu1 %12754, %v14281_v24   ;;  %v13379_v51 = vmov 6   ;;  %v13138_v12 = vld [vmem:[%s13618_s13 + $0xb10] sm:$0xff]  }
 0x5a9   : > { %12545 = vmatpush3.bf16.msra.mxu1 %v13066_v3  ;;  %12755 = vset.pattern.permute.xlu0 %v13378_v21  ;;  %v13109_v3 = vld [vmem:[%s13618_s13 + $0xac8] sm:$0xff]  }
 0x5aa   : > { %12546 = vmatprep.subr.bf16.mxu1 %v13068_v4  ;;  %10756 = vperm.xlu0 %12755, %v14281_v24   ;;  %v6322_v4 = vld [vmem:[#allocation2 + $0x20] sm:$0xff]  ;;  %v13141_v21 = vld [vmem:[%s13618_s13 + $0xbc8] sm:$0xff]  }
 0x5ab   : > { %12525 = vmatpush3.bf16.msra.mxu0 %v13069_v5  ;;  %v13110_v5 = vld [vmem:[%s13618_s13 + $0xa08] sm:$0xff]  }
 0x5ac   : > { %12526 = vmatprep.subr.bf16.mxu0 %v13071_v6  ;;  %12756 = vset.pattern.permute.xlu1 %v13379_v51  ;;  %v7361_v6 = vrot.slane %v6322_v4, %v13918_v57  ;;  %v13145_v51 = vld [vmem:[%s13618_s13 + $0xbc0] sm:$0xff]  }
 0x5ad   : > { %12547 = vmatpush3.bf16.msra.mxu1 %v13070_v7  ;;  %10766 = vperm.xlu1 %12756, %v14281_v24   ;;  %v7354_v7 = vcombine.high %v6322_v4, %v6322_v4 }
 0x5ae   : > { %12548 = vmatprep.subr.bf16.mxu1 %v13072_v8  ;;  %v13380_v8 = vmov 7  }
 0x5af   : > { %12527 = vmatpush3.bf16.msra.mxu0 %v13073_v1  ;;  %12758 = vset.pattern.permute.xlu0 %v13380_v8  ;;  %v13112_v1 = vld [vmem:[%s13618_s13 + $0xa40] sm:$0xff]  }
 0x5b0   : > { %12528 = vmatprep.subr.bf16.mxu0 %v13075_v10  ;;  %v13111_v10 = vld [vmem:[%s13618_s13 + $0xa88] sm:$0xff]  }
 0x5b1   : > { %12549 = vmatpush3.bf16.msra.mxu1 %v13074_v11  ;;  %v7369_v11 = vcombine.high %v7361_v6, %v7361_v6  ;;  %12757 = vset.pattern.permute.xlu1 %v13380_v8 }
 0x5b2   : > { %12550 = vmatprep.subr.bf16.mxu1 %v13076_v15  ;;  %v14313_v15 = vrot.slane %v7354_v7, %v13918_v57  ;;  %10776 = vperm.xlu1 %12757, %v14281_v24   ;;  %v13125_v24 = vld [vmem:[%s13618_s13 + $0xbe8] sm:$0xff]  }
 0x5b3   : > { %12529 = vmatpush3.bf16.msra.mxu0 %v13077_v16  ;;  %v13113_v16 = vld [vmem:[%s13618_s13 + $0xac0] sm:$0xff]  }
 0x5b4   : > { %12530 = vmatprep.subr.bf16.mxu0 %v13079_v31  ;;  %v13114_v31 = vld [vmem:[%s13618_s13 + $0xa00] sm:$0xff]   ;;  %v7384_v4 = vrot.slane %v14313_v15, %v13918_v57 }
 0x5b5   : > { %12551 = vmatpush3.bf16.msra.mxu1 %v13078_v17  ;;  %v7391_v17 = vrot.slane %v7369_v11, %v13918_v57 }
 0x5b6   : > { %12552 = vmatprep.subr.bf16.mxu1 %v13080_v30  ;;  %v7370_v30 = vcombine.high %v14313_v15, %v14313_v15 }
 0x5b7   : > { %12531 = vmatpush3.bf16.msra.mxu0 %v13081_v44  ;;  %v7377_v44 = vrot.slane %v7361_v6, %v13918_v57  ;;  %v7400_v6 = vcombine.high %v7384_v4, %v7384_v4 }
 0x5b8   : > { %12560 = vmatprep.subr.bf16.mxu0 %v13084_v62  ;;  %v13115_v62 = vld [vmem:[%s13618_s13 + $0xa80] sm:$0xff]  }
 0x5b9   : > { %12553 = vmatpush3.bf16.msra.mxu1 %v13082_v29  ;;  %v7401_v29 = vcombine.high %v7391_v17, %v7391_v17 }
 0x5ba   : > { %v12268_v34 = vpop.f32.mrf.mxu0  ;;  %10508 = vmatmul.mubr.bf16.vlgmr.msra.gmra.mxu0 %v7335_v49  ;;  %12582 = vmatprep.subr.bf16.mxu1 %v13085_v9  ;;  %v13116_v49 = vld [vmem:[%s13618_s13 + $0xb78] sm:$0xff]   ;;  %v7398_v9 = vrot.slane %v7370_v30, %v13918_v57 }
 0x5bb   : > { %12561 = vmatpush3.bf16.msra.mxu0 %v13086_v28  ;;  %10587 = vmatprep.mubr.bf16.mxu0 %v7391_v17  ;;  %v13117_v28 = vld [vmem:[%s13618_s13 + $0xbf8] sm:$0xff]  }
 0x5bc   : > { %v12290_v42 = vpop.f32.mrf.mxu1  ;;  %10548 = vmatmul.mubr.bf16.vlgmr.msra.gmra.mxu1 %v7351_v35  ;;  %v12269_v52 = vpop.f32.mrf.mxu0  ;;  %12562 = vmatprep.subr.bf16.mxu0 %v13088_v50  ;;  %v13118_v35 = vld [vmem:[%s13618_s13 + $0xb38] sm:$0xff]   ;;  %v7399_v50 = vcombine.high %v7377_v44, %v7377_v44 }
 0x5bd   : > { %12583 = vmatpush3.bf16.msra.mxu1 %v13087_v23  ;;  %v12270_v61 = vadd.f32 %v12269_v52, %v12268_v34  ;;  %10627 = vmatprep.mubr.bf16.mxu1 %v7401_v29  ;;  %v13120_v23 = vld [vmem:[%s13618_s13 + $0xb70] sm:$0xff]   ;;  %v13119_v34 = vld [vmem:[%s13618_s13 + $0xbb8] sm:$0xff]  }
 0x5be   : > { %v12291_v36 = vpop.f32.mrf.mxu1  ;;  %v12271_v37 = vpop.f32.mrf.mxu0  ;;  %12584 = vmatprep.subr.bf16.mxu1 %v13089_v32  ;;  %v7402_v32 = vcombine.high %v7398_v9, %v7398_v9  ;;  %v13122_v52 = vld [vmem:[%s13618_s13 + $0xb30] sm:$0xff]  }
 0x5bf   : > { %v10030_v55 = vadd.f32 %v12270_v61, %v14247_v58  ;;  %v12292_v25 = vadd.f32 %v12291_v36, %v12290_v42  ;;  %12563 = vmatpush3.bf16.msra.mxu0 %v13090_v2  ;;  %v13105_v58 = vld [vmem:[%s13618_s13 + $0xad0] sm:$0xff]  }
 0x5c0   : > { %v12293_v39 = vpop.f32.mrf.mxu1  ;;  %v12272_v40 = vpop.f32.mrf.mxu0  ;;  %12564 = vmatprep.subr.bf16.mxu0 %v13092_v63  ;;  %v13121_v42 = vld [vmem:[%s13618_s13 + $0xbf0] sm:$0xff]  }
 0x5c1   : > { %v14287_v47 = vadd.f32 %v12292_v25, %v10030_v55  ;;  %12585 = vmatpush3.bf16.msra.mxu1 %v13091_v27  ;;  %v13124_v27 = vld [vmem:[%s13618_s13 + $0xb68] sm:$0xff]   ;;  %v13123_v36 = vld [vmem:[%s13618_s13 + $0xbb0] sm:$0xff]  }
 0x5c2   : > { %v12294_v26 = vpop.f32.mrf.mxu1  ;;  %12586 = vmatprep.subr.bf16.mxu1 %v13093_v60 }
 0x5c3   : > { %12565 = vmatpush3.bf16.msra.mxu0 %v13094_v38  ;;  %v13126_v38 = vld [vmem:[%s13618_s13 + $0xb28] sm:$0xff]  }
 0x5c4   : > { %12566 = vmatprep.subr.bf16.mxu0 %v13096_v41  ;;  %v13128_v41 = vld [vmem:[%s13618_s13 + $0xb60] sm:$0xff]   ;;  %v13127_v26 = vld [vmem:[%s13618_s13 + $0xba8] sm:$0xff]  }
 0x5c5   : > { %12587 = vmatpush3.bf16.msra.mxu1 %v13095_v18 }
 0x5c6   : > { %12588 = vmatprep.subr.bf16.mxu1 %v13097_v43 }
 0x5c7   : > { %12567 = vmatpush3.bf16.msra.mxu0 %v13098_v48  ;;  %v13129_v48 = vld [vmem:[%s13618_s13 + $0xbe0] sm:$0xff]  }
 0x5c8   : > { %12568 = vmatprep.subr.bf16.mxu0 %v13100_v59  ;;  %v13131_v59 = vld [vmem:[%s13618_s13 + $0xba0] sm:$0xff]  }
 0x5c9   : > { %12589 = vmatpush3.bf16.msra.mxu1 %v13099_v33  ;;  %v13133_v33 = vld [vmem:[%s13618_s13 + $0xbd8] sm:$0xff]  }
 0x5ca   : > { %12590 = vmatprep.subr.bf16.mxu1 %v13101_v13  ;;  %v13136_v13 = vld [vmem:[%s13618_s13 + $0xb50] sm:$0xff]  }
 0x5cb   : > { %12569 = vmatpush3.bf16.msra.mxu0 %v13102_v14  ;;  %v13135_v14 = vld [vmem:[%s13618_s13 + $0xb98] sm:$0xff]  }
 0x5cc   : > { %12570 = vmatprep.subr.bf16.mxu0 %v13104_v19  ;;  %v13137_v19 = vld [vmem:[%s13618_s13 + $0xbd0] sm:$0xff]  }
 0x5cd   : > { %12591 = vmatpush3.bf16.msra.mxu1 %v13103_v45  ;;  %v13140_v45 = vld [vmem:[%s13618_s13 + $0xb48] sm:$0xff]  }
 0x5ce   : > { %12592 = vmatprep.subr.bf16.mxu1 %v13105_v58  ;;  %v13139_v58 = vld [vmem:[%s13618_s13 + $0xb90] sm:$0xff]  }
 0x5cf   : > { %12571 = vmatpush3.bf16.msra.mxu0 %v13106_v0  ;;  %v13142_v0 = vld [vmem:[%s13618_s13 + $0xb08] sm:$0xff]  }
 0x5d0   : > { %12572 = vmatprep.subr.bf16.mxu0 %v13108_v56  ;;  %v13144_v56 = vld [vmem:[%s13618_s13 + $0xb40] sm:$0xff]  }
 0x5d1   : > { %12593 = vmatpush3.bf16.msra.mxu1 %v13107_v46  ;;  %v13143_v46 = vld [vmem:[%s13618_s13 + $0xb88] sm:$0xff]  }
 0x5d2   : > { %12594 = vmatprep.subr.bf16.mxu1 %v13109_v3  ;;  %v13146_v3 = vld [vmem:[%s13618_s13 + $0xb00] sm:$0xff]  }
 0x5d3   : > { %12573 = vmatpush3.bf16.msra.mxu0 %v13110_v5  ;;  %v13147_v5 = vld [vmem:[%s13618_s13 + $0xb80] sm:$0xff]  }
 0x5d4   : > { %12574 = vmatprep.subr.bf16.mxu0 %v13112_v1 }
 0x5d5   : > { %12595 = vmatpush3.bf16.msra.mxu1 %v13111_v10 }
 0x5d6   : > { %12596 = vmatprep.subr.bf16.mxu1 %v13113_v16 }
 0x5d7   : > { %12575 = vmatpush3.bf16.msra.mxu0 %v13114_v31 }
 0x5d8   : > { %12604 = vmatprep.subr.bf16.mxu0 %v13116_v49 }
 0x5d9   : > { %12597 = vmatpush3.bf16.msra.mxu1 %v13115_v62 }
 0x5da   : > { %v12312_v2 = vpop.f32.mrf.mxu0  ;;  %10588 = vmatmul.mubr.bf16.vlgmr.msra.gmra.mxu0 %v7377_v44  ;;  %12626 = vmatprep.subr.bf16.mxu1 %v13117_v28 }
 0x5db   : > { %12605 = vmatpush3.bf16.msra.mxu0 %v13118_v35  ;;  %10667 = vmatprep.mubr.bf16.mxu0 %v7398_v9 }
 0x5dc   : > { %v12334_v63 = vpop.f32.mrf.mxu1  ;;  %10628 = vmatmul.mubr.bf16.vlgmr.msra.gmra.mxu1 %v7399_v50  ;;  %v12313_v61 = vpop.f32.mrf.mxu0  ;;  %12606 = vmatprep.subr.bf16.mxu0 %v13120_v23 }
 0x5dd   : > { %12627 = vmatpush3.bf16.msra.mxu1 %v13119_v34  ;;  %v12314_v20 = vadd.f32 %v12313_v61, %v12312_v2  ;;  %10707 = vmatprep.mubr.bf16.mxu1 %v7402_v32 }
 0x5de   : > { %v12335_v37 = vpop.f32.mrf.mxu1  ;;  %v12315_v60 = vpop.f32.mrf.mxu0  ;;  %12628 = vmatprep.subr.bf16.mxu1 %v13121_v42 }
 0x5df   : > { %v10110_v55 = vadd.f32 %v12314_v20, %v14287_v47  ;;  %v12336_v25 = vadd.f32 %v12335_v37, %v12334_v63  ;;  %12607 = vmatpush3.bf16.msra.mxu0 %v13122_v52  ;;  %v13130_v47 = vld [vmem:[%s13618_s13 + $0xb20] sm:$0xff]   ;;  %s14463_s13 = sld [smem:[#allocation21_spill]] }
 0x5e0   : > { %v12337_v39 = vpop.f32.mrf.mxu1  ;;  %v12316_v40 = vpop.f32.mrf.mxu0  ;;  %12608 = vmatprep.subr.bf16.mxu0 %v13124_v27 }
 0x5e1   : > { %v10150_v18 = vadd.f32 %v12336_v25, %v10110_v55  ;;  %12629 = vmatpush3.bf16.msra.mxu1 %v13123_v36 }
 0x5e2   : > { %v12338_v43 = vpop.f32.mrf.mxu1  ;;  %12630 = vmatprep.subr.bf16.mxu1 %v13125_v24 }
 0x5e3   : > { %12609 = vmatpush3.bf16.msra.mxu0 %v13126_v38 }
 0x5e4   : > { %12610 = vmatprep.subr.bf16.mxu0 %v13128_v41 }
 0x5e5   : > { %12631 = vmatpush3.bf16.msra.mxu1 %v13127_v26  ;;  %p14465_p10 = scmp.ne.s32.totalorder %s14463_s13, 0 }
 0x5e6   : > { %12632 = vmatprep.subr.bf16.mxu1 %v13129_v48 }
 0x5e7   : > { %12611 = vmatpush3.bf16.msra.mxu0 %v13130_v47 }
 0x5e8   : > { %12612 = vmatprep.subr.bf16.mxu0 %v13132_v54 }
 0x5e9   : > { %12633 = vmatpush3.bf16.msra.mxu1 %v13131_v59 }
 0x5ea   : > { %12634 = vmatprep.subr.bf16.mxu1 %v13133_v33 }
 0x5eb   : > { %12613 = vmatpush3.bf16.msra.mxu0 %v13134_v53 }
 0x5ec   : > { %12614 = vmatprep.subr.bf16.mxu0 %v13136_v13 }
 0x5ed   : > { %12635 = vmatpush3.bf16.msra.mxu1 %v13135_v14 }
 0x5ee   : > { %12636 = vmatprep.subr.bf16.mxu1 %v13137_v19 }
 0x5ef   : > { %12615 = vmatpush3.bf16.msra.mxu0 %v13138_v12 }
 0x5f0   : > { %12616 = vmatprep.subr.bf16.mxu0 %v13140_v45 }
 0x5f1   : > { %12637 = vmatpush3.bf16.msra.mxu1 %v13139_v58 }
 0x5f2   : > { %12638 = vmatprep.subr.bf16.mxu1 %v13141_v21 }
 0x5f3   : > { %12617 = vmatpush3.bf16.msra.mxu0 %v13142_v0 }
 0x5f4   : > { %12618 = vmatprep.subr.bf16.mxu0 %v13144_v56 }
 0x5f5   : > { %12639 = vmatpush3.bf16.msra.mxu1 %v13143_v46 }
 0x5f6   : > { %12640 = vmatprep.subr.bf16.mxu1 %v13145_v51 }
 0x5f7   : > { %12619 = vmatpush3.bf16.msra.mxu0 %v13146_v3 }
 0x5f9   : > { %12641 = vmatpush3.bf16.msra.mxu1 %v13147_v5 }
 0x5fa   : > { %v12356_v7 = vpop.f32.mrf.mxu0  ;;  %10668 = vmatmul.mubr.bf16.vlgmr.msra.gmra.mxu0 %v7384_v4 }
 0x5fc   : > { %v12378_v8 = vpop.f32.mrf.mxu1  ;;  %10708 = vmatmul.mubr.bf16.vlgmr.msra.gmra.mxu1 %v7400_v6  ;;  %v12357_v1 = vpop.f32.mrf.mxu0 }
 0x5fd   : > { %v12358_v10 = vadd.f32 %v12357_v1, %v12356_v7 }
 0x5fe   : > { %v12379_v11 = vpop.f32.mrf.mxu1  ;;  %v12359_v16 = vpop.f32.mrf.mxu0 }
 0x5ff   : > { %v10190_v31 = vadd.f32 %v12358_v10, %v10150_v18  ;;  %v12380_v17 = vadd.f32 %v12379_v11, %v12378_v8 }
 0x600   : > { %v12381_v30 = vpop.f32.mrf.mxu1  ;;  %v12360_v44 = vpop.f32.mrf.mxu0 }
 0x601   : > { %v10230_v49 = vadd.f32 %v12380_v17, %v10190_v31  ;;  %v10721_v30 = vsub.s32 1, %v13913_v22 }
 0x602   : > { %v12382_v57 = vpop.f32.mrf.mxu1 }
 0x603   : > { %v10731_v57 = vsub.s32 2, %v13913_v22 }
 0x619   : > { %v10727_v1 = vpop.permute.xlu1 %10726 }
 0x61a   : > { %v12400_v15 = vpop.f32.mrf.mxu0 }
 0x61c   : > { %v12422_v62 = vpop.f32.mrf.mxu1  ;;  %v12401_v29 = vpop.f32.mrf.mxu0 }
 0x61d   : > { %v12402_v9 = vadd.f32 %v12401_v29, %v12400_v15 }
 0x61e   : > { %v12423_v28 = vpop.f32.mrf.mxu1  ;;  %v12403_v35 = vpop.f32.mrf.mxu0 }
 0x61f   : > { %v10270_v50 = vadd.f32 %v12402_v9, %v10230_v49  ;;  %v12424_v23 = vadd.f32 %v12423_v28, %v12422_v62  ;;  %v10737_v31 = vpop.permute.xlu1 %10736  ;;  %v13150_v62 = vld [vmem:[%s13626_s23] sm:$0xff]  ;;  %s10808_s23 = sshll.u32 %s13629_s9, 4  ;;  %s10809_s23 = int_to_ptr.vmem [resolvable:$true] %s10808_s23 }
 0x620   : > { %v12425_v34 = vpop.f32.mrf.mxu1  ;;  %v12404_v32 = vpop.f32.mrf.mxu0  ;;  %v10722_v29 = vrot.slane %v13150_v62, %v10721_v30  ;;  %s13287_s18 = scalar_lea.vmem %s10809_s23, 32  ;;  %p13294_p5 = scmp.lt.s32.totalorder %s10809_s23, %s13292_s0 }
 0x621   : > { %v10310_v2 = vadd.f32 %v12424_v23, %v10270_v50  ;;  %v10717_v9 = vpop.permute.xlu0 %10716  ;;  %v10741_v32 = vsub.s32 3, %v13913_v22  ;;  %p13288_p9 = scmp.ne.s32.totalorder %s10809_s23, %s13287_s18 }
 0x622   : > { %v12426_v42 = vpop.f32.mrf.mxu1 }
 0x623   : > { %v10747_v28 = vpop.permute.xlu1 %10746  ;;  %p13289_p4 = pnand %p13288_p9, %p14465_p10 }
 0x625   : > { %p13290_p7 = pneg %p13289_p4 }
 0x63a   : > { %v12444_v52 = vpop.f32.mrf.mxu0 }
 0x63c   : > { %v12466_v63 = vpop.f32.mrf.mxu1  ;;  %v12445_v61 = vpop.f32.mrf.mxu0 }
 0x63d   : > { %v12446_v27 = vadd.f32 %v12445_v61, %v12444_v52 }
 0x63e   : > { %v12467_v20 = vpop.f32.mrf.mxu1  ;;  %v12447_v36 = vpop.f32.mrf.mxu0 }
 0x63f   : > { %v10350_v37 = vadd.f32 %v12446_v27, %v10310_v2  ;;  %v12468_v60 = vadd.f32 %v12467_v20, %v12466_v63  ;;  %v10732_v2 = vrot.slane %v13150_v62, %v10731_v57  ;;  %v10751_v63 = vsub.s32 4, %v13913_v22 }
 0x640   : > { %v12469_v24 = vpop.f32.mrf.mxu1  ;;  %v12448_v55 = vpop.f32.mrf.mxu0  ;;  %v10723_v20 = vmul.f32 %v10722_v29, %v10717_v9  ;;  %v10761_v36 = vsub.s32 5, %v13913_v22 }
 0x641   : > { %v10390_v25 = vadd.f32 %v12468_v60, %v10350_v37  ;;  %v10742_v55 = vrot.slane %v13150_v62, %v10741_v32 }
 0x642   : > { %v12470_v38 = vpop.f32.mrf.mxu1 }
 0x65a   : > { %v12488_v39 = vpop.f32.mrf.mxu0 }
 0x65c   : > { %v12510_v40 = vpop.f32.mrf.mxu1  ;;  %v12489_v41 = vpop.f32.mrf.mxu0 }
 0x65d   : > { %v12490_v18 = vadd.f32 %v12489_v41, %v12488_v39  ;;  %v10752_v39 = vrot.slane %v13150_v62, %v10751_v63 }
 0x65e   : > { %v12511_v26 = vpop.f32.mrf.mxu1  ;;  %v12491_v43 = vpop.f32.mrf.mxu0 }
 0x65f   : > { %v10430_v48 = vadd.f32 %v12490_v18, %v10390_v25  ;;  %v12512_v47 = vadd.f32 %v12511_v26, %v12510_v40  ;;  %v10733_v25 = vmul.f32 %v10732_v2, %v10727_v1  ;;  %v10767_v40 = vpop.permute.xlu1 %10766  ;;  %v10771_v18 = vsub.s32 6, %v13913_v22 }
 0x660   : > { %v12513_v54 = vpop.f32.mrf.mxu1  ;;  %v12492_v59 = vpop.f32.mrf.mxu0  ;;  %v10762_v26 = vrot.slane %v13150_v62, %v10761_v36  ;;  %v10781_v43 = vsub.s32 7, %v13913_v22  ;;  %v12115_v22 = vld [vmem:[%s346_s16] ss:$0 sm:$0xff]  ;;  %s13293_s16 = scalar_lea.vmem %s13292_s0, 64 }
 0x661   : > { %v10470_v33 = vadd.f32 %v12512_v47, %v10430_v48  ;;  %v10757_v48 = vpop.permute.xlu0 %10756  ;;  %v10743_v47 = vmul.f32 %v10742_v55, %v10737_v31  ;;  %v10753_v59 = vmul.f32 %v10752_v39, %v10747_v28  ;;  %p13295_p1 = scmp.lt.s32.totalorder %s13293_s16, %s13287_s18 }
 0x662   : > { %v12514_v53 = vpop.f32.mrf.mxu1 }
 0x663   : > { %v10772_v53 = vrot.slane %v13150_v62, %v10771_v18  ;;  %p13296_p6 = por %p13295_p1, %p13294_p5 }
 0x665   : > { %p13297_p11 = pnand %p13296_p6, %p13290_p7 }
 0x67a   : > { %v12532_v13 = vpop.f32.mrf.mxu0 }
 0x67c   : > { %v12554_v14 = vpop.f32.mrf.mxu1  ;;  %v12533_v19 = vpop.f32.mrf.mxu0 }
 0x67d   : > { %v12534_v8 = vadd.f32 %v12533_v19, %v12532_v13  ;;  %v10763_v13 = vmul.f32 %v10762_v26, %v10757_v48  ;;  %v10777_v19 = vpop.permute.xlu1 %10776 }
 0x67e   : > { %v12555_v12 = vpop.f32.mrf.mxu1  ;;  %v12535_v45 = vpop.f32.mrf.mxu0 }
 0x67f   : > { %v10510_v10 = vadd.f32 %v12534_v8, %v10470_v33  ;;  %v12556_v11 = vadd.f32 %v12555_v12, %v12554_v14  ;;  %v10782_v14 = vrot.slane %v13150_v62, %v10781_v43  ;;  %v10773_v45 = vmul.f32 %v10772_v53, %v10767_v40 }
 0x680   : > { %v12557_v58 = vpop.f32.mrf.mxu1  ;;  %v12536_v21 = vpop.f32.mrf.mxu0 }
 0x681   : > { %v10550_v17 = vadd.f32 %v12556_v11, %v10510_v10  ;;  %v10783_v21 = vmul.f32 %v10782_v14, %v10777_v19 }
 0x682   : > { %v12558_v0 = vpop.f32.mrf.mxu1 }
 0x69a   : > { %v12576_v56 = vpop.f32.mrf.mxu0 }
 0x69c   : > { %v12598_v46 = vpop.f32.mrf.mxu1  ;;  %v12577_v51 = vpop.f32.mrf.mxu0 }
 0x69d   : > { %v12578_v16 = vadd.f32 %v12577_v51, %v12576_v56 }
 0x69e   : > { %v12599_v3 = vpop.f32.mrf.mxu1  ;;  %v12579_v4 = vpop.f32.mrf.mxu0 }
 0x69f   : > { %v10590_v44 = vadd.f32 %v12578_v16, %v10550_v17  ;;  %v12600_v49 = vadd.f32 %v12599_v3, %v12598_v46 }
 0x6a0   : > { %v12601_v5 = vpop.f32.mrf.mxu1  ;;  %v12580_v6 = vpop.f32.mrf.mxu0 }
 0x6a1   : > { %v10630_v23 = vadd.f32 %v12600_v49, %v10590_v44 }
 0x6a2   : > { %v12602_v7 = vpop.f32.mrf.mxu1 }
 0x6ba   : > { %v12620_v15 = vpop.f32.mrf.mxu0 }
 0x6bc   : > { %v12642_v35 = vpop.f32.mrf.mxu1  ;;  %v12621_v50 = vpop.f32.mrf.mxu0 }
 0x6bd   : > { %v12622_v34 = vadd.f32 %v12621_v50, %v12620_v15 }
 0x6be   : > { %v12643_v42 = vpop.f32.mrf.mxu1  ;;  %v12623_v52 = vpop.f32.mrf.mxu0 }
 0x6bf   : > { %v10670_v61 = vadd.f32 %v12622_v34, %v10630_v23  ;;  %v12644_v27 = vadd.f32 %v12643_v42, %v12642_v35 }
 0x6c0   : > { %v12645_v37 = vpop.f32.mrf.mxu1  ;;  %v12624_v60 = vpop.f32.mrf.mxu0 }
 0x6c1   : > { %v10710_v24 = vadd.f32 %v12644_v27, %v10670_v61 }
 0x6c2   : > { %v12646_v38 = vpop.f32.mrf.mxu1 }
 0x6c3   : > { %v10724_v41 = vadd.f32 %v10723_v20, %v10710_v24 }
 0x6c5   : > { %v10734_v54 = vadd.f32 %v10733_v25, %v10724_v41 }
 0x6c7   : > { %v10744_v33 = vadd.f32 %v10743_v47, %v10734_v54 }
 0x6c9   : > { %v10754_v12 = vadd.f32 %v10753_v59, %v10744_v33 }
 0x6cb   : > { %v10764_v58 = vadd.f32 %v10763_v13, %v10754_v12 }
 0x6cd   : > { %v10774_v0 = vadd.f32 %v10773_v45, %v10764_v58 }
 0x6cf   : > { %v10784_v56 = vadd.f32 %v10783_v21, %v10774_v0 }
 0x6d1   : > { %v10792_v46 = vadd.f32 %v12115_v22, %v10784_v56 }
 0x6d3   : > { %10793 = vst [vmem:[%s13629_s9] sm:$0x3] %v10792_v46 }
 0x6d4   : > { %13300 = shalt.err (!%p13297_p11)
}
 0x6d5   : > { %s13301_s28 = scalar_lea.hbm %s10806_s21, 32  ;;  %s13305_s8 = scalar_lea.hbm %s14464_s11, 64 }
 0x6d6   : > { %p13302_p13 = scmp.ne.s32.totalorder %s10806_s21, %s13301_s28  ;;  %p13306_p2 = scmp.lt.s32.totalorder %s10806_s21, %s14464_s11 }
 0x6d7   : > { %p13307_p3 = scmp.lt.s32.totalorder %s13305_s8, %s13301_s28 }
 0x6d8   : > { %p13303_p12 = pnand %p13302_p13, %p14465_p10 }
 0x6d9   : > { %p13308_p0 = por %p13307_p3, %p13306_p2 }
 0x6da   : > { %p13304_p8 = pneg %p13303_p12 }
 0x6dc   : > { %p13309_p9 = pnand %p13308_p0, %p13304_p8 }
 0x6de   : > { %13312 = shalt.err (!%p13309_p9)
}
 0x6df   : > { %12664 = dma.vmem_to_hbm [thread:$0]  (%p14465_p10), %s10809_s23, 32, %s10806_s21, %s10795_s2  }
 0x6e0 PF: > { %s14466_s10 = sld [smem:[#allocation17_spill]]  ;;  %p14469_p7 = scmp.ge.s32.totalorder %s13359_s27, 2 }
 0x6e1   : > { %s14467_s7 = sld [smem:[#allocation22_spill]] }
 0x6e6   : > { %s10820_s24 = sand.u32 1, %s14466_s10  }
 0x6e7   : > { %p14468_p4 = scmp.ne.s32.totalorder %s14467_s7, 0  ;;  %s10821_s26 = scalar_lea.sflag [#allocation6], %s10820_s24 }
 0x6e9   : > { %p12684_p5 = pnand %p14469_p7, %p14468_p4 }
 0x6eb   : > { %p12685_p1 = pneg %p12684_p5 }
 0x6ed   : > { %13342 = dma.done.wait (%p12685_p1), %s10821_s26, 32  }
 0x6ee   : > { %13344 = vsyncadd (%p12685_p1), %s10821_s26, 4294967264  ;;  %s14470_s27 = sld [smem:[#allocation19_spill]]  ;;  %s14473_s24 = smov %s13351_s25 }
 0x6ef   : > { %s14471_s17 = sld [smem:[#allocation18_spill]] }
 0x6f0   : > { %s14472_s26 = sld [smem:[#allocation20_spill]] }
 0x6f4   : > { %p19_p6 = scmp.ge.s32.totalorder %s14470_s27, 4  }
 0x6f5   : > { %s14474_s25 = smov %s14471_s17 }
 0x6f6   :  { %21 = sbr.rel (!%p19_p6) target bundleno = 10 (0xa), region = 126 }
 0x6fb   :  { %10826 = vsyncpa [#allocation5], 1 }
 0x6fc   :  { %10828 = vsyncpa [#allocation5 + $0x1], 1 }
 0x6fd   :  { %10829 = vsyncpa [#allocation8], 1 }
 0x6fe   :  { %10830 = vsyncpa [#allocation6], 1 }
 0x6ff   :  { %10832 = vsyncpa [#allocation6 + $0x1], 1 }

</bundles_post_ra>
